<compile_context>
chip_gen: v5e
topology: v5e:2x2
jax: 0.10.0
libtpu: 0.0.40
codegen_flags: <defaults>
</compile_context>

<pallas_src>
import functools

import jax
import jax.numpy as jnp
from jax import lax
from jax.experimental import pallas as pl
from jax.experimental.pallas import tpu as pltpu


def _sigmoid(z):
    # exp goes to the EUP slot; exact form keeps the reference match tight.
    return 1.0 / (1.0 + jnp.exp(-z))


# ------------------------------ fused CBAM kernel -----------------------------
def _cbam_kernel(x_ref, w1_ref, b1_ref, w2t_ref, b2_ref, wconv_ref, bn_ref,
                 o_ref, pad_ref, sflat_ref, *, N, C, H, W, K, P):
    # x_ref:    (N, C, HW)   input, HW = H*W on the lane axis
    # w1_ref:   (C, Cr)      Linear(C, C//r) weight (column-oriented use)
    # b1_ref:   (1, Cr)
    # w2t_ref:  (C, Cr)      Linear(C//r, C) weight, transposed
    # b2_ref:   (C, 1)
    # wconv_ref:(2*K*K,) SMEM  Conv2d(2,1,K) weight flattened [c, kh, kw]
    # bn_ref:   (2,) SMEM      [gamma, beta]
    # o_ref:    (N, C, HW)   output
    # pad_ref:  (N, 2, H+2P, W+2P) VMEM scratch  zero-padded [mean, max] maps
    # sflat_ref:(N, 1, HW)   VMEM scratch  flattened spatial sigmoid
    HW = H * W
    x = x_ref[...].astype(jnp.float32)                        # (N, C, HW)

    # ---------------- channel attention (whole batch, one MLP pass) ----------
    avg = jnp.mean(x, axis=2, keepdims=True)                   # AdaptiveAvgPool2d(1) -> (N, C, 1)
    mx = jnp.max(x, axis=2, keepdims=True)                     # AdaptiveMaxPool2d(1) -> (N, C, 1)
    pooled = jnp.concatenate([avg, mx], axis=0)                # (2N, C, 1)

    w1 = w1_ref[...]                                           # (C, Cr)
    w2t = w2t_ref[...]                                         # (C, Cr)
    b1 = b1_ref[...]                                           # (1, Cr)
    b2 = b2_ref[...]                                           # (C, 1)

    h = jnp.sum(pooled * w1[None], axis=1, keepdims=True) + b1[None]      # (2N, 1, Cr)
    h = h * _sigmoid(h)                                                    # SiLU
    mlp_out = jnp.sum(h * w2t[None], axis=2, keepdims=True) + b2[None]     # (2N, C, 1)

    sig_ch = _sigmoid(mlp_out[:N] + mlp_out[N:])               # (N, C, 1)
    y = x * sig_ch                                             # (N, C, HW)  lane-dense

    # ---------------- spatial attention ----------------
    mean_map = jnp.mean(y, axis=1, keepdims=True)              # (N, 1, HW)
    max_map = jnp.max(y, axis=1, keepdims=True)                # (N, 1, HW)
    mm = jnp.concatenate([mean_map, max_map], axis=1)          # (N, 2, HW)

    # Zero-padded conv input lives in a VMEM scratch (replaces a wrapper pad op);
    # one combined [mean, max] store per image row.
    pad_ref[...] = jnp.zeros_like(pad_ref)
    for i in range(H):
        pad_ref[:, :, P + i, P:P + W] = mm[:, :, i * W:(i + 1) * W]

    # KxK "same" conv, 2 in-channels -> 1 out-channel, no bias.
    # SMEM taps hoisted; lane-offset (kw) ref reads hoisted out of the kh loop
    # and shared by both channels: K reads total, inner loop is value slices.
    wts = [wconv_ref[i] for i in range(2 * K * K)]
    conv = jnp.zeros((N, H, W), jnp.float32)
    for kw in range(K):
        slab = pad_ref[:, :, :, kw:kw + W]                     # (N, 2, H+2P, W)
        slab0 = slab[:, 0]                                     # (N, H+2P, W)
        slab1 = slab[:, 1]
        for kh in range(K):
            conv = conv + wts[kh * K + kw] * slab0[:, kh:kh + H, :] \
                        + wts[K * K + kh * K + kw] * slab1[:, kh:kh + H, :]

    # BatchNorm2d(1), training-mode batch statistics (biased variance, eps=1e-5)
    cnt = float(N * H * W)
    mean = jnp.sum(conv) / cnt
    var = jnp.sum((conv - mean) ** 2) / cnt
    bn = (conv - mean) * lax.rsqrt(var + 1e-5) * bn_ref[0] + bn_ref[1]
    sig_sp = _sigmoid(bn)                                      # (N, H, W)

    # Flatten (N, H, W) -> (N, 1, HW) via a tiny VMEM scratch so the final
    # multiply / store stay lane-dense over HW.
    for i in range(H):
        sflat_ref[:, :, i * W:(i + 1) * W] = sig_sp[:, i:i + 1, :]

    o_ref[...] = (y * sflat_ref[...]).astype(o_ref.dtype)


# ------------------------------------ wrapper --------------------------------
def cbam_forward(x, params, kernel_size=7):
    N, C, H, W = x.shape
    Cr = params["w1"].shape[1]
    HW = H * W
    K = kernel_size
    P = K // 2

    x3 = x.reshape(N, C, HW)                                   # free row-major view
    w1 = params["w1"].astype(jnp.float32)                      # (C, Cr)
    b1 = params["b1"].reshape(1, Cr).astype(jnp.float32)
    w2t = params["w2"].T.astype(jnp.float32)                   # (C, Cr)
    b2 = params["b2"].reshape(C, 1).astype(jnp.float32)
    wconv = params["conv_w"].reshape(-1).astype(jnp.float32)   # (2*K*K,)
    bn = jnp.stack([jnp.asarray(params["gamma"], jnp.float32),
                    jnp.asarray(params["beta"], jnp.float32)])  # (2,)

    kernel = functools.partial(_cbam_kernel, N=N, C=C, H=H, W=W, K=K, P=P)

    out3 = pl.pallas_call(
        kernel,
        out_shape=jax.ShapeDtypeStruct((N, C, HW), x.dtype),
        grid=(1,),
        in_specs=[
            pl.BlockSpec((N, C, HW), lambda i: (0, 0, 0)),
            pl.BlockSpec((C, Cr), lambda i: (0, 0)),
            pl.BlockSpec((1, Cr), lambda i: (0, 0)),
            pl.BlockSpec((C, Cr), lambda i: (0, 0)),
            pl.BlockSpec((C, 1), lambda i: (0, 0)),
            pl.BlockSpec(memory_space=pltpu.MemorySpace.SMEM),
            pl.BlockSpec(memory_space=pltpu.MemorySpace.SMEM),
        ],
        out_specs=pl.BlockSpec((N, C, HW), lambda i: (0, 0, 0)),
        scratch_shapes=[
            pltpu.VMEM((N, 2, H + 2 * P, W + 2 * P), jnp.float32),
            pltpu.VMEM((N, 1, HW), jnp.float32),
        ],
        compiler_params=pltpu.CompilerParams(dimension_semantics=("arbitrary",)),
    )(x3, w1, b1, w2t, b2, wconv, bn)
    return out3.reshape(N, C, H, W)


# ------------------------------ pure-JAX reference ---------------------------
def cbam_ref(x, params):
    w1, b1, w2, b2 = params["w1"], params["b1"], params["w2"], params["b2"]
    avg = jnp.mean(x, axis=(2, 3))
    mx = jnp.max(x, axis=(2, 3))

    def mlp(v):
        h = v @ w1 + b1
        h = h * jax.nn.sigmoid(h)
        return h @ w2 + b2

    att = jax.nn.sigmoid(mlp(avg) + mlp(mx))
    y = x * att[:, :, None, None]

    avg_s = jnp.mean(y, axis=1, keepdims=True)
    max_s = jnp.max(y, axis=1, keepdims=True)
    inp = jnp.concatenate([avg_s, max_s], axis=1)
    conv = lax.conv_general_dilated(inp, params["conv_w"], (1, 1),
                                    [(3, 3), (3, 3)],
                                    dimension_numbers=("NCHW", "OIHW", "NCHW"))
    mean = jnp.mean(conv)
    var = jnp.mean((conv - mean) ** 2)
    bn = (conv - mean) / jnp.sqrt(var + 1e-5) * params["gamma"] + params["beta"]
    return y * jax.nn.sigmoid(bn)


if __name__ == "__main__":
    N, C, H, W = 2, 32, 16, 16
    reduction_ratio = 16
    Cr = C // reduction_ratio
    K = 7

    key = jax.random.PRNGKey(0)
    ks = jax.random.split(key, 6)
    x = jax.random.normal(ks[0], (N, C, H, W), jnp.float32)
    params = {
        "w1": jax.random.normal(ks[1], (C, Cr), jnp.float32) * 0.2,   # Linear(C, C//r)
        "b1": jax.random.normal(ks[2], (Cr,), jnp.float32) * 0.1,
        "w2": jax.random.normal(ks[3], (Cr, C), jnp.float32) * 0.2,   # Linear(C//r, C)
        "b2": jax.random.normal(ks[4], (C,), jnp.float32) * 0.1,
        "conv_w": jax.random.normal(ks[5], (1, 2, K, K), jnp.float32) * 0.1,  # Conv2d(2,1,7)
        "gamma": jnp.float32(1.0),   # BatchNorm2d(1) defaults
        "beta": jnp.float32(0.0),
    }

    out = jax.block_until_ready(cbam_forward(x, params))
    ref = cbam_ref(x, params)

    assert out.shape == (N, C, H, W)
    err = float(jnp.max(jnp.abs(out - ref)))
    if err > 1e-3:
        raise AssertionError(f"Pallas CBAM mismatch vs reference: max abs err {err}")
    print("KERNEL_OK")
</pallas_src>

<mosaic_0001>
module attributes {stable_mosaic.version = 11 : i64} {
  func.func @_cbam_kernel(%arg0: i32, %arg1: memref<2x32x256xf32, #tpu.memory_space<vmem>>, %arg2: memref<32x2xf32, #tpu.memory_space<vmem>>, %arg3: memref<1x2xf32, #tpu.memory_space<vmem>>, %arg4: memref<32x2xf32, #tpu.memory_space<vmem>>, %arg5: memref<32x1xf32, #tpu.memory_space<vmem>>, %arg6: memref<98xf32, #tpu.memory_space<smem>>, %arg7: memref<2xf32, #tpu.memory_space<smem>>, %arg8: memref<2x32x256xf32, #tpu.memory_space<vmem>>, %arg9: memref<2x2x22x22xf32, #tpu.memory_space<vmem>>, %arg10: memref<2x1x256xf32, #tpu.memory_space<vmem>>) attributes {dimension_semantics = [#tpu.dimension_semantics<arbitrary>], iteration_bounds = array<i64: 1>, scalar_prefetch = 0 : i64, scratch_operands = 2 : i64, tpu.core_type = #tpu.core_type<tc>, window_params = [{pipeline_mode = #tpu.pipeline_mode<synchronous>, transform_indices = @transform_0, window_bounds = array<i64: 2, 32, 256>}, {pipeline_mode = #tpu.pipeline_mode<synchronous>, transform_indices = @transform_1, window_bounds = array<i64: 32, 2>}, {pipeline_mode = #tpu.pipeline_mode<synchronous>, transform_indices = @transform_2, window_bounds = array<i64: 1, 2>}, {pipeline_mode = #tpu.pipeline_mode<synchronous>, transform_indices = @transform_3, window_bounds = array<i64: 32, 2>}, {pipeline_mode = #tpu.pipeline_mode<synchronous>, transform_indices = @transform_4, window_bounds = array<i64: 32, 1>}, {transform_indices = @transform_5, window_bounds = array<i64: 98>}, {transform_indices = @transform_6, window_bounds = array<i64: 2>}, {pipeline_mode = #tpu.pipeline_mode<synchronous>, transform_indices = @transform_7, window_bounds = array<i64: 2, 32, 256>}]} {
    %c0 = arith.constant 0 : index
    %c0_0 = arith.constant 0 : index
    %c0_1 = arith.constant 0 : index
    %0 = vector.load %arg1[%c0, %c0_0, %c0_1] : memref<2x32x256xf32, #tpu.memory_space<vmem>>, vector<2x32x256xf32>
    %cst = arith.constant dense<0.000000e+00> : vector<2x32xf32>
    %1 = vector.multi_reduction <add>, %0, %cst [2] : vector<2x32x256xf32> to vector<2x32xf32>
    %2 = vector.shape_cast %1 : vector<2x32xf32> to vector<2x32x1xf32>
    %cst_2 = arith.constant 2.560000e+02 : f32
    %3 = vector.broadcast %cst_2 : f32 to vector<2x32x1xf32>
    %4 = arith.divf %2, %3 : vector<2x32x1xf32>
    %cst_3 = arith.constant dense<0xFF800000> : vector<2x32xf32>
    %5 = vector.multi_reduction <maximumf>, %0, %cst_3 [2] : vector<2x32x256xf32> to vector<2x32xf32>
    %6 = vector.shape_cast %5 : vector<2x32xf32> to vector<2x32x1xf32>
    %7 = tpu.concatenate %4, %6 in 0 : vector<2x32x1xf32>, vector<2x32x1xf32> -> vector<4x32x1xf32>
    %c0_4 = arith.constant 0 : index
    %c0_5 = arith.constant 0 : index
    %8 = vector.load %arg2[%c0_4, %c0_5] : memref<32x2xf32, #tpu.memory_space<vmem>>, vector<32x2xf32>
    %c0_6 = arith.constant 0 : index
    %c0_7 = arith.constant 0 : index
    %9 = vector.load %arg4[%c0_6, %c0_7] : memref<32x2xf32, #tpu.memory_space<vmem>>, vector<32x2xf32>
    %c0_8 = arith.constant 0 : index
    %c0_9 = arith.constant 0 : index
    %10 = vector.load %arg3[%c0_8, %c0_9] : memref<1x2xf32, #tpu.memory_space<vmem>>, vector<1x2xf32>
    %c0_10 = arith.constant 0 : index
    %c0_11 = arith.constant 0 : index
    %11 = vector.load %arg5[%c0_10, %c0_11] : memref<32x1xf32, #tpu.memory_space<vmem>>, vector<32x1xf32>
    %12 = vector.shape_cast %8 : vector<32x2xf32> to vector<1x32x2xf32>
    %13 = vector.broadcast %7 : vector<4x32x1xf32> to vector<4x32x2xf32>
    %14 = vector.broadcast %12 : vector<1x32x2xf32> to vector<4x32x2xf32>
    %15 = arith.mulf %13, %14 : vector<4x32x2xf32>
    %cst_12 = arith.constant dense<0.000000e+00> : vector<4x2xf32>
    %16 = vector.multi_reduction <add>, %15, %cst_12 [1] : vector<4x32x2xf32> to vector<4x2xf32>
    %17 = vector.shape_cast %16 : vector<4x2xf32> to vector<4x1x2xf32>
    %18 = vector.shape_cast %10 : vector<1x2xf32> to vector<1x1x2xf32>
    %19 = vector.broadcast %18 : vector<1x1x2xf32> to vector<4x1x2xf32>
    %20 = arith.addf %17, %19 : vector<4x1x2xf32>
    %cst_13 = arith.constant 0.000000e+00 : f32
    %21 = vector.broadcast %cst_13 : f32 to vector<4x1x2xf32>
    %22 = arith.subf %21, %20 : vector<4x1x2xf32>
    %23 = math.exp %22 : vector<4x1x2xf32>
    %cst_14 = arith.constant 1.000000e+00 : f32
    %24 = vector.broadcast %cst_14 : f32 to vector<4x1x2xf32>
    %25 = arith.addf %24, %23 : vector<4x1x2xf32>
    %cst_15 = arith.constant 1.000000e+00 : f32
    %26 = vector.broadcast %cst_15 : f32 to vector<4x1x2xf32>
    %27 = arith.divf %26, %25 : vector<4x1x2xf32>
    %28 = arith.mulf %20, %27 : vector<4x1x2xf32>
    %29 = vector.shape_cast %9 : vector<32x2xf32> to vector<1x32x2xf32>
    %30 = vector.broadcast %28 : vector<4x1x2xf32> to vector<4x32x2xf32>
    %31 = vector.broadcast %29 : vector<1x32x2xf32> to vector<4x32x2xf32>
    %32 = arith.mulf %30, %31 : vector<4x32x2xf32>
    %cst_16 = arith.constant dense<0.000000e+00> : vector<4x32xf32>
    %33 = vector.multi_reduction <add>, %32, %cst_16 [2] : vector<4x32x2xf32> to vector<4x32xf32>
    %34 = vector.shape_cast %33 : vector<4x32xf32> to vector<4x32x1xf32>
    %35 = vector.shape_cast %11 : vector<32x1xf32> to vector<1x32x1xf32>
    %36 = vector.broadcast %35 : vector<1x32x1xf32> to vector<4x32x1xf32>
    %37 = arith.addf %34, %36 : vector<4x32x1xf32>
    %38 = vector.extract_strided_slice %37 {offsets = [0, 0, 0], sizes = [2, 32, 1], strides = [1, 1, 1]} : vector<4x32x1xf32> to vector<2x32x1xf32>
    %39 = vector.extract_strided_slice %37 {offsets = [2, 0, 0], sizes = [2, 32, 1], strides = [1, 1, 1]} : vector<4x32x1xf32> to vector<2x32x1xf32>
    %40 = arith.addf %38, %39 : vector<2x32x1xf32>
    %cst_17 = arith.constant 0.000000e+00 : f32
    %41 = vector.broadcast %cst_17 : f32 to vector<2x32x1xf32>
    %42 = arith.subf %41, %40 : vector<2x32x1xf32>
    %43 = math.exp %42 : vector<2x32x1xf32>
    %cst_18 = arith.constant 1.000000e+00 : f32
    %44 = vector.broadcast %cst_18 : f32 to vector<2x32x1xf32>
    %45 = arith.addf %44, %43 : vector<2x32x1xf32>
    %cst_19 = arith.constant 1.000000e+00 : f32
    %46 = vector.broadcast %cst_19 : f32 to vector<2x32x1xf32>
    %47 = arith.divf %46, %45 : vector<2x32x1xf32>
    %48 = vector.broadcast %47 : vector<2x32x1xf32> to vector<2x32x256xf32>
    %49 = arith.mulf %0, %48 : vector<2x32x256xf32>
    %cst_20 = arith.constant dense<0.000000e+00> : vector<2x256xf32>
    %50 = vector.multi_reduction <add>, %49, %cst_20 [1] : vector<2x32x256xf32> to vector<2x256xf32>
    %51 = vector.shape_cast %50 : vector<2x256xf32> to vector<2x1x256xf32>
    %cst_21 = arith.constant 3.200000e+01 : f32
    %52 = vector.broadcast %cst_21 : f32 to vector<2x1x256xf32>
    %53 = arith.divf %51, %52 : vector<2x1x256xf32>
    %cst_22 = arith.constant dense<0xFF800000> : vector<2x256xf32>
    %54 = vector.multi_reduction <maximumf>, %49, %cst_22 [1] : vector<2x32x256xf32> to vector<2x256xf32>
    %55 = vector.shape_cast %54 : vector<2x256xf32> to vector<2x1x256xf32>
    %56 = tpu.concatenate %53, %55 in 1 : vector<2x1x256xf32>, vector<2x1x256xf32> -> vector<2x2x256xf32>
    %cst_23 = arith.constant 0.000000e+00 : f32
    %57 = vector.broadcast %cst_23 : f32 to vector<2x2x22x22xf32>
    %c0_24 = arith.constant 0 : index
    %c0_25 = arith.constant 0 : index
    %c0_26 = arith.constant 0 : index
    %c0_27 = arith.constant 0 : index
    %58 = vector.load %arg9[%c0_24, %c0_25, %c0_26, %c0_27] : memref<2x2x22x22xf32, #tpu.memory_space<vmem>>, vector<2x2x22x22xf32>
    tpu.vector_store %arg9[%c0_24, %c0_25, %c0_26, %c0_27], %57 {strides = array<i32>} : memref<2x2x22x22xf32, #tpu.memory_space<vmem>>, vector<2x2x22x22xf32>,
    %59 = vector.extract_strided_slice %56 {offsets = [0, 0, 0], sizes = [2, 2, 16], strides = [1, 1, 1]} : vector<2x2x256xf32> to vector<2x2x16xf32>
    %c0_28 = arith.constant 0 : index
    %c0_29 = arith.constant 0 : index
    %c3 = arith.constant 3 : index
    %c3_30 = arith.constant 3 : index
    %60 = vector.load %arg9[%c0_28, %c0_29, %c3, %c3_30] : memref<2x2x22x22xf32, #tpu.memory_space<vmem>>, vector<2x2x1x16xf32>
    %61 = vector.shape_cast %60 : vector<2x2x1x16xf32> to vector<2x2x16xf32>
    %62 = vector.shape_cast %59 : vector<2x2x16xf32> to vector<2x2x1x16xf32>
    tpu.vector_store %arg9[%c0_28, %c0_29, %c3, %c3_30], %62 {strides = array<i32>} : memref<2x2x22x22xf32, #tpu.memory_space<vmem>>, vector<2x2x1x16xf32>,
    %63 = vector.extract_strided_slice %56 {offsets = [0, 0, 16], sizes = [2, 2, 16], strides = [1, 1, 1]} : vector<2x2x256xf32> to vector<2x2x16xf32>
    %c0_31 = arith.constant 0 : index
    %c0_32 = arith.constant 0 : index
    %c4 = arith.constant 4 : index
    %c3_33 = arith.constant 3 : index
    %64 = vector.load %arg9[%c0_31, %c0_32, %c4, %c3_33] : memref<2x2x22x22xf32, #tpu.memory_space<vmem>>, vector<2x2x1x16xf32>
    %65 = vector.shape_cast %64 : vector<2x2x1x16xf32> to vector<2x2x16xf32>
    %66 = vector.shape_cast %63 : vector<2x2x16xf32> to vector<2x2x1x16xf32>
    tpu.vector_store %arg9[%c0_31, %c0_32, %c4, %c3_33], %66 {strides = array<i32>} : memref<2x2x22x22xf32, #tpu.memory_space<vmem>>, vector<2x2x1x16xf32>,
    %67 = vector.extract_strided_slice %56 {offsets = [0, 0, 32], sizes = [2, 2, 16], strides = [1, 1, 1]} : vector<2x2x256xf32> to vector<2x2x16xf32>
    %c0_34 = arith.constant 0 : index
    %c0_35 = arith.constant 0 : index
    %c5 = arith.constant 5 : index
    %c3_36 = arith.constant 3 : index
    %68 = vector.load %arg9[%c0_34, %c0_35, %c5, %c3_36] : memref<2x2x22x22xf32, #tpu.memory_space<vmem>>, vector<2x2x1x16xf32>
    %69 = vector.shape_cast %68 : vector<2x2x1x16xf32> to vector<2x2x16xf32>
    %70 = vector.shape_cast %67 : vector<2x2x16xf32> to vector<2x2x1x16xf32>
    tpu.vector_store %arg9[%c0_34, %c0_35, %c5, %c3_36], %70 {strides = array<i32>} : memref<2x2x22x22xf32, #tpu.memory_space<vmem>>, vector<2x2x1x16xf32>,
    %71 = vector.extract_strided_slice %56 {offsets = [0, 0, 48], sizes = [2, 2, 16], strides = [1, 1, 1]} : vector<2x2x256xf32> to vector<2x2x16xf32>
    %c0_37 = arith.constant 0 : index
    %c0_38 = arith.constant 0 : index
    %c6 = arith.constant 6 : index
    %c3_39 = arith.constant 3 : index
    %72 = vector.load %arg9[%c0_37, %c0_38, %c6, %c3_39] : memref<2x2x22x22xf32, #tpu.memory_space<vmem>>, vector<2x2x1x16xf32>
    %73 = vector.shape_cast %72 : vector<2x2x1x16xf32> to vector<2x2x16xf32>
    %74 = vector.shape_cast %71 : vector<2x2x16xf32> to vector<2x2x1x16xf32>
    tpu.vector_store %arg9[%c0_37, %c0_38, %c6, %c3_39], %74 {strides = array<i32>} : memref<2x2x22x22xf32, #tpu.memory_space<vmem>>, vector<2x2x1x16xf32>,
    %75 = vector.extract_strided_slice %56 {offsets = [0, 0, 64], sizes = [2, 2, 16], strides = [1, 1, 1]} : vector<2x2x256xf32> to vector<2x2x16xf32>
    %c0_40 = arith.constant 0 : index
    %c0_41 = arith.constant 0 : index
    %c7 = arith.constant 7 : index
    %c3_42 = arith.constant 3 : index
    %76 = vector.load %arg9[%c0_40, %c0_41, %c7, %c3_42] : memref<2x2x22x22xf32, #tpu.memory_space<vmem>>, vector<2x2x1x16xf32>
    %77 = vector.shape_cast %76 : vector<2x2x1x16xf32> to vector<2x2x16xf32>
    %78 = vector.shape_cast %75 : vector<2x2x16xf32> to vector<2x2x1x16xf32>
    tpu.vector_store %arg9[%c0_40, %c0_41, %c7, %c3_42], %78 {strides = array<i32>} : memref<2x2x22x22xf32, #tpu.memory_space<vmem>>, vector<2x2x1x16xf32>,
    %79 = vector.extract_strided_slice %56 {offsets = [0, 0, 80], sizes = [2, 2, 16], strides = [1, 1, 1]} : vector<2x2x256xf32> to vector<2x2x16xf32>
    %c0_43 = arith.constant 0 : index
    %c0_44 = arith.constant 0 : index
    %c8 = arith.constant 8 : index
    %c3_45 = arith.constant 3 : index
    %80 = vector.load %arg9[%c0_43, %c0_44, %c8, %c3_45] : memref<2x2x22x22xf32, #tpu.memory_space<vmem>>, vector<2x2x1x16xf32>
    %81 = vector.shape_cast %80 : vector<2x2x1x16xf32> to vector<2x2x16xf32>
    %82 = vector.shape_cast %79 : vector<2x2x16xf32> to vector<2x2x1x16xf32>
    tpu.vector_store %arg9[%c0_43, %c0_44, %c8, %c3_45], %82 {strides = array<i32>} : memref<2x2x22x22xf32, #tpu.memory_space<vmem>>, vector<2x2x1x16xf32>,
    %83 = vector.extract_strided_slice %56 {offsets = [0, 0, 96], sizes = [2, 2, 16], strides = [1, 1, 1]} : vector<2x2x256xf32> to vector<2x2x16xf32>
    %c0_46 = arith.constant 0 : index
    %c0_47 = arith.constant 0 : index
    %c9 = arith.constant 9 : index
    %c3_48 = arith.constant 3 : index
    %84 = vector.load %arg9[%c0_46, %c0_47, %c9, %c3_48] : memref<2x2x22x22xf32, #tpu.memory_space<vmem>>, vector<2x2x1x16xf32>
    %85 = vector.shape_cast %84 : vector<2x2x1x16xf32> to vector<2x2x16xf32>
    %86 = vector.shape_cast %83 : vector<2x2x16xf32> to vector<2x2x1x16xf32>
    tpu.vector_store %arg9[%c0_46, %c0_47, %c9, %c3_48], %86 {strides = array<i32>} : memref<2x2x22x22xf32, #tpu.memory_space<vmem>>, vector<2x2x1x16xf32>,
    %87 = vector.extract_strided_slice %56 {offsets = [0, 0, 112], sizes = [2, 2, 16], strides = [1, 1, 1]} : vector<2x2x256xf32> to vector<2x2x16xf32>
    %c0_49 = arith.constant 0 : index
    %c0_50 = arith.constant 0 : index
    %c10 = arith.constant 10 : index
    %c3_51 = arith.constant 3 : index
    %88 = vector.load %arg9[%c0_49, %c0_50, %c10, %c3_51] : memref<2x2x22x22xf32, #tpu.memory_space<vmem>>, vector<2x2x1x16xf32>
    %89 = vector.shape_cast %88 : vector<2x2x1x16xf32> to vector<2x2x16xf32>
    %90 = vector.shape_cast %87 : vector<2x2x16xf32> to vector<2x2x1x16xf32>
    tpu.vector_store %arg9[%c0_49, %c0_50, %c10, %c3_51], %90 {strides = array<i32>} : memref<2x2x22x22xf32, #tpu.memory_space<vmem>>, vector<2x2x1x16xf32>,
    %91 = vector.extract_strided_slice %56 {offsets = [0, 0, 128], sizes = [2, 2, 16], strides = [1, 1, 1]} : vector<2x2x256xf32> to vector<2x2x16xf32>
    %c0_52 = arith.constant 0 : index
    %c0_53 = arith.constant 0 : index
    %c11 = arith.constant 11 : index
    %c3_54 = arith.constant 3 : index
    %92 = vector.load %arg9[%c0_52, %c0_53, %c11, %c3_54] : memref<2x2x22x22xf32, #tpu.memory_space<vmem>>, vector<2x2x1x16xf32>
    %93 = vector.shape_cast %92 : vector<2x2x1x16xf32> to vector<2x2x16xf32>
    %94 = vector.shape_cast %91 : vector<2x2x16xf32> to vector<2x2x1x16xf32>
    tpu.vector_store %arg9[%c0_52, %c0_53, %c11, %c3_54], %94 {strides = array<i32>} : memref<2x2x22x22xf32, #tpu.memory_space<vmem>>, vector<2x2x1x16xf32>,
    %95 = vector.extract_strided_slice %56 {offsets = [0, 0, 144], sizes = [2, 2, 16], strides = [1, 1, 1]} : vector<2x2x256xf32> to vector<2x2x16xf32>
    %c0_55 = arith.constant 0 : index
    %c0_56 = arith.constant 0 : index
    %c12 = arith.constant 12 : index
    %c3_57 = arith.constant 3 : index
    %96 = vector.load %arg9[%c0_55, %c0_56, %c12, %c3_57] : memref<2x2x22x22xf32, #tpu.memory_space<vmem>>, vector<2x2x1x16xf32>
    %97 = vector.shape_cast %96 : vector<2x2x1x16xf32> to vector<2x2x16xf32>
    %98 = vector.shape_cast %95 : vector<2x2x16xf32> to vector<2x2x1x16xf32>
    tpu.vector_store %arg9[%c0_55, %c0_56, %c12, %c3_57], %98 {strides = array<i32>} : memref<2x2x22x22xf32, #tpu.memory_space<vmem>>, vector<2x2x1x16xf32>,
    %99 = vector.extract_strided_slice %56 {offsets = [0, 0, 160], sizes = [2, 2, 16], strides = [1, 1, 1]} : vector<2x2x256xf32> to vector<2x2x16xf32>
    %c0_58 = arith.constant 0 : index
    %c0_59 = arith.constant 0 : index
    %c13 = arith.constant 13 : index
    %c3_60 = arith.constant 3 : index
    %100 = vector.load %arg9[%c0_58, %c0_59, %c13, %c3_60] : memref<2x2x22x22xf32, #tpu.memory_space<vmem>>, vector<2x2x1x16xf32>
    %101 = vector.shape_cast %100 : vector<2x2x1x16xf32> to vector<2x2x16xf32>
    %102 = vector.shape_cast %99 : vector<2x2x16xf32> to vector<2x2x1x16xf32>
    tpu.vector_store %arg9[%c0_58, %c0_59, %c13, %c3_60], %102 {strides = array<i32>} : memref<2x2x22x22xf32, #tpu.memory_space<vmem>>, vector<2x2x1x16xf32>,
    %103 = vector.extract_strided_slice %56 {offsets = [0, 0, 176], sizes = [2, 2, 16], strides = [1, 1, 1]} : vector<2x2x256xf32> to vector<2x2x16xf32>
    %c0_61 = arith.constant 0 : index
    %c0_62 = arith.constant 0 : index
    %c14 = arith.constant 14 : index
    %c3_63 = arith.constant 3 : index
    %104 = vector.load %arg9[%c0_61, %c0_62, %c14, %c3_63] : memref<2x2x22x22xf32, #tpu.memory_space<vmem>>, vector<2x2x1x16xf32>
    %105 = vector.shape_cast %104 : vector<2x2x1x16xf32> to vector<2x2x16xf32>
    %106 = vector.shape_cast %103 : vector<2x2x16xf32> to vector<2x2x1x16xf32>
    tpu.vector_store %arg9[%c0_61, %c0_62, %c14, %c3_63], %106 {strides = array<i32>} : memref<2x2x22x22xf32, #tpu.memory_space<vmem>>, vector<2x2x1x16xf32>,
    %107 = vector.extract_strided_slice %56 {offsets = [0, 0, 192], sizes = [2, 2, 16], strides = [1, 1, 1]} : vector<2x2x256xf32> to vector<2x2x16xf32>
    %c0_64 = arith.constant 0 : index
    %c0_65 = arith.constant 0 : index
    %c15 = arith.constant 15 : index
    %c3_66 = arith.constant 3 : index
    %108 = vector.load %arg9[%c0_64, %c0_65, %c15, %c3_66] : memref<2x2x22x22xf32, #tpu.memory_space<vmem>>, vector<2x2x1x16xf32>
    %109 = vector.shape_cast %108 : vector<2x2x1x16xf32> to vector<2x2x16xf32>
    %110 = vector.shape_cast %107 : vector<2x2x16xf32> to vector<2x2x1x16xf32>
    tpu.vector_store %arg9[%c0_64, %c0_65, %c15, %c3_66], %110 {strides = array<i32>} : memref<2x2x22x22xf32, #tpu.memory_space<vmem>>, vector<2x2x1x16xf32>,
    %111 = vector.extract_strided_slice %56 {offsets = [0, 0, 208], sizes = [2, 2, 16], strides = [1, 1, 1]} : vector<2x2x256xf32> to vector<2x2x16xf32>
    %c0_67 = arith.constant 0 : index
    %c0_68 = arith.constant 0 : index
    %c16 = arith.constant 16 : index
    %c3_69 = arith.constant 3 : index
    %112 = vector.load %arg9[%c0_67, %c0_68, %c16, %c3_69] : memref<2x2x22x22xf32, #tpu.memory_space<vmem>>, vector<2x2x1x16xf32>
    %113 = vector.shape_cast %112 : vector<2x2x1x16xf32> to vector<2x2x16xf32>
    %114 = vector.shape_cast %111 : vector<2x2x16xf32> to vector<2x2x1x16xf32>
    tpu.vector_store %arg9[%c0_67, %c0_68, %c16, %c3_69], %114 {strides = array<i32>} : memref<2x2x22x22xf32, #tpu.memory_space<vmem>>, vector<2x2x1x16xf32>,
    %115 = vector.extract_strided_slice %56 {offsets = [0, 0, 224], sizes = [2, 2, 16], strides = [1, 1, 1]} : vector<2x2x256xf32> to vector<2x2x16xf32>
    %c0_70 = arith.constant 0 : index
    %c0_71 = arith.constant 0 : index
    %c17 = arith.constant 17 : index
    %c3_72 = arith.constant 3 : index
    %116 = vector.load %arg9[%c0_70, %c0_71, %c17, %c3_72] : memref<2x2x22x22xf32, #tpu.memory_space<vmem>>, vector<2x2x1x16xf32>
    %117 = vector.shape_cast %116 : vector<2x2x1x16xf32> to vector<2x2x16xf32>
    %118 = vector.shape_cast %115 : vector<2x2x16xf32> to vector<2x2x1x16xf32>
    tpu.vector_store %arg9[%c0_70, %c0_71, %c17, %c3_72], %118 {strides = array<i32>} : memref<2x2x22x22xf32, #tpu.memory_space<vmem>>, vector<2x2x1x16xf32>,
    %119 = vector.extract_strided_slice %56 {offsets = [0, 0, 240], sizes = [2, 2, 16], strides = [1, 1, 1]} : vector<2x2x256xf32> to vector<2x2x16xf32>
    %c0_73 = arith.constant 0 : index
    %c0_74 = arith.constant 0 : index
    %c18 = arith.constant 18 : index
    %c3_75 = arith.constant 3 : index
    %120 = vector.load %arg9[%c0_73, %c0_74, %c18, %c3_75] : memref<2x2x22x22xf32, #tpu.memory_space<vmem>>, vector<2x2x1x16xf32>
    %121 = vector.shape_cast %120 : vector<2x2x1x16xf32> to vector<2x2x16xf32>
    %122 = vector.shape_cast %119 : vector<2x2x16xf32> to vector<2x2x1x16xf32>
    tpu.vector_store %arg9[%c0_73, %c0_74, %c18, %c3_75], %122 {strides = array<i32>} : memref<2x2x22x22xf32, #tpu.memory_space<vmem>>, vector<2x2x1x16xf32>,
    %c0_76 = arith.constant 0 : index
    %123 = memref.load %arg6[%c0_76] : memref<98xf32, #tpu.memory_space<smem>>
    %c1 = arith.constant 1 : index
    %124 = memref.load %arg6[%c1] : memref<98xf32, #tpu.memory_space<smem>>
    %c2 = arith.constant 2 : index
    %125 = memref.load %arg6[%c2] : memref<98xf32, #tpu.memory_space<smem>>
    %c3_77 = arith.constant 3 : index
    %126 = memref.load %arg6[%c3_77] : memref<98xf32, #tpu.memory_space<smem>>
    %c4_78 = arith.constant 4 : index
    %127 = memref.load %arg6[%c4_78] : memref<98xf32, #tpu.memory_space<smem>>
    %c5_79 = arith.constant 5 : index
    %128 = memref.load %arg6[%c5_79] : memref<98xf32, #tpu.memory_space<smem>>
    %c6_80 = arith.constant 6 : index
    %129 = memref.load %arg6[%c6_80] : memref<98xf32, #tpu.memory_space<smem>>
    %c7_81 = arith.constant 7 : index
    %130 = memref.load %arg6[%c7_81] : memref<98xf32, #tpu.memory_space<smem>>
    %c8_82 = arith.constant 8 : index
    %131 = memref.load %arg6[%c8_82] : memref<98xf32, #tpu.memory_space<smem>>
    %c9_83 = arith.constant 9 : index
    %132 = memref.load %arg6[%c9_83] : memref<98xf32, #tpu.memory_space<smem>>
    %c10_84 = arith.constant 10 : index
    %133 = memref.load %arg6[%c10_84] : memref<98xf32, #tpu.memory_space<smem>>
    %c11_85 = arith.constant 11 : index
    %134 = memref.load %arg6[%c11_85] : memref<98xf32, #tpu.memory_space<smem>>
    %c12_86 = arith.constant 12 : index
    %135 = memref.load %arg6[%c12_86] : memref<98xf32, #tpu.memory_space<smem>>
    %c13_87 = arith.constant 13 : index
    %136 = memref.load %arg6[%c13_87] : memref<98xf32, #tpu.memory_space<smem>>
    %c14_88 = arith.constant 14 : index
    %137 = memref.load %arg6[%c14_88] : memref<98xf32, #tpu.memory_space<smem>>
    %c15_89 = arith.constant 15 : index
    %138 = memref.load %arg6[%c15_89] : memref<98xf32, #tpu.memory_space<smem>>
    %c16_90 = arith.constant 16 : index
    %139 = memref.load %arg6[%c16_90] : memref<98xf32, #tpu.memory_space<smem>>
    %c17_91 = arith.constant 17 : index
    %140 = memref.load %arg6[%c17_91] : memref<98xf32, #tpu.memory_space<smem>>
    %c18_92 = arith.constant 18 : index
    %141 = memref.load %arg6[%c18_92] : memref<98xf32, #tpu.memory_space<smem>>
    %c19 = arith.constant 19 : index
    %142 = memref.load %arg6[%c19] : memref<98xf32, #tpu.memory_space<smem>>
    %c20 = arith.constant 20 : index
    %143 = memref.load %arg6[%c20] : memref<98xf32, #tpu.memory_space<smem>>
    %c21 = arith.constant 21 : index
    %144 = memref.load %arg6[%c21] : memref<98xf32, #tpu.memory_space<smem>>
    %c22 = arith.constant 22 : index
    %145 = memref.load %arg6[%c22] : memref<98xf32, #tpu.memory_space<smem>>
    %c23 = arith.constant 23 : index
    %146 = memref.load %arg6[%c23] : memref<98xf32, #tpu.memory_space<smem>>
    %c24 = arith.constant 24 : index
    %147 = memref.load %arg6[%c24] : memref<98xf32, #tpu.memory_space<smem>>
    %c25 = arith.constant 25 : index
    %148 = memref.load %arg6[%c25] : memref<98xf32, #tpu.memory_space<smem>>
    %c26 = arith.constant 26 : index
    %149 = memref.load %arg6[%c26] : memref<98xf32, #tpu.memory_space<smem>>
    %c27 = arith.constant 27 : index
    %150 = memref.load %arg6[%c27] : memref<98xf32, #tpu.memory_space<smem>>
    %c28 = arith.constant 28 : index
    %151 = memref.load %arg6[%c28] : memref<98xf32, #tpu.memory_space<smem>>
    %c29 = arith.constant 29 : index
    %152 = memref.load %arg6[%c29] : memref<98xf32, #tpu.memory_space<smem>>
    %c30 = arith.constant 30 : index
    %153 = memref.load %arg6[%c30] : memref<98xf32, #tpu.memory_space<smem>>
    %c31 = arith.constant 31 : index
    %154 = memref.load %arg6[%c31] : memref<98xf32, #tpu.memory_space<smem>>
    %c32 = arith.constant 32 : index
    %155 = memref.load %arg6[%c32] : memref<98xf32, #tpu.memory_space<smem>>
    %c33 = arith.constant 33 : index
    %156 = memref.load %arg6[%c33] : memref<98xf32, #tpu.memory_space<smem>>
    %c34 = arith.constant 34 : index
    %157 = memref.load %arg6[%c34] : memref<98xf32, #tpu.memory_space<smem>>
    %c35 = arith.constant 35 : index
    %158 = memref.load %arg6[%c35] : memref<98xf32, #tpu.memory_space<smem>>
    %c36 = arith.constant 36 : index
    %159 = memref.load %arg6[%c36] : memref<98xf32, #tpu.memory_space<smem>>
    %c37 = arith.constant 37 : index
    %160 = memref.load %arg6[%c37] : memref<98xf32, #tpu.memory_space<smem>>
    %c38 = arith.constant 38 : index
    %161 = memref.load %arg6[%c38] : memref<98xf32, #tpu.memory_space<smem>>
    %c39 = arith.constant 39 : index
    %162 = memref.load %arg6[%c39] : memref<98xf32, #tpu.memory_space<smem>>
    %c40 = arith.constant 40 : index
    %163 = memref.load %arg6[%c40] : memref<98xf32, #tpu.memory_space<smem>>
    %c41 = arith.constant 41 : index
    %164 = memref.load %arg6[%c41] : memref<98xf32, #tpu.memory_space<smem>>
    %c42 = arith.constant 42 : index
    %165 = memref.load %arg6[%c42] : memref<98xf32, #tpu.memory_space<smem>>
    %c43 = arith.constant 43 : index
    %166 = memref.load %arg6[%c43] : memref<98xf32, #tpu.memory_space<smem>>
    %c44 = arith.constant 44 : index
    %167 = memref.load %arg6[%c44] : memref<98xf32, #tpu.memory_space<smem>>
    %c45 = arith.constant 45 : index
    %168 = memref.load %arg6[%c45] : memref<98xf32, #tpu.memory_space<smem>>
    %c46 = arith.constant 46 : index
    %169 = memref.load %arg6[%c46] : memref<98xf32, #tpu.memory_space<smem>>
    %c47 = arith.constant 47 : index
    %170 = memref.load %arg6[%c47] : memref<98xf32, #tpu.memory_space<smem>>
    %c48 = arith.constant 48 : index
    %171 = memref.load %arg6[%c48] : memref<98xf32, #tpu.memory_space<smem>>
    %c49 = arith.constant 49 : index
    %172 = memref.load %arg6[%c49] : memref<98xf32, #tpu.memory_space<smem>>
    %c50 = arith.constant 50 : index
    %173 = memref.load %arg6[%c50] : memref<98xf32, #tpu.memory_space<smem>>
    %c51 = arith.constant 51 : index
    %174 = memref.load %arg6[%c51] : memref<98xf32, #tpu.memory_space<smem>>
    %c52 = arith.constant 52 : index
    %175 = memref.load %arg6[%c52] : memref<98xf32, #tpu.memory_space<smem>>
    %c53 = arith.constant 53 : index
    %176 = memref.load %arg6[%c53] : memref<98xf32, #tpu.memory_space<smem>>
    %c54 = arith.constant 54 : index
    %177 = memref.load %arg6[%c54] : memref<98xf32, #tpu.memory_space<smem>>
    %c55 = arith.constant 55 : index
    %178 = memref.load %arg6[%c55] : memref<98xf32, #tpu.memory_space<smem>>
    %c56 = arith.constant 56 : index
    %179 = memref.load %arg6[%c56] : memref<98xf32, #tpu.memory_space<smem>>
    %c57 = arith.constant 57 : index
    %180 = memref.load %arg6[%c57] : memref<98xf32, #tpu.memory_space<smem>>
    %c58 = arith.constant 58 : index
    %181 = memref.load %arg6[%c58] : memref<98xf32, #tpu.memory_space<smem>>
    %c59 = arith.constant 59 : index
    %182 = memref.load %arg6[%c59] : memref<98xf32, #tpu.memory_space<smem>>
    %c60 = arith.constant 60 : index
    %183 = memref.load %arg6[%c60] : memref<98xf32, #tpu.memory_space<smem>>
    %c61 = arith.constant 61 : index
    %184 = memref.load %arg6[%c61] : memref<98xf32, #tpu.memory_space<smem>>
    %c62 = arith.constant 62 : index
    %185 = memref.load %arg6[%c62] : memref<98xf32, #tpu.memory_space<smem>>
    %c63 = arith.constant 63 : index
    %186 = memref.load %arg6[%c63] : memref<98xf32, #tpu.memory_space<smem>>
    %c64 = arith.constant 64 : index
    %187 = memref.load %arg6[%c64] : memref<98xf32, #tpu.memory_space<smem>>
    %c65 = arith.constant 65 : index
    %188 = memref.load %arg6[%c65] : memref<98xf32, #tpu.memory_space<smem>>
    %c66 = arith.constant 66 : index
    %189 = memref.load %arg6[%c66] : memref<98xf32, #tpu.memory_space<smem>>
    %c67 = arith.constant 67 : index
    %190 = memref.load %arg6[%c67] : memref<98xf32, #tpu.memory_space<smem>>
    %c68 = arith.constant 68 : index
    %191 = memref.load %arg6[%c68] : memref<98xf32, #tpu.memory_space<smem>>
    %c69 = arith.constant 69 : index
    %192 = memref.load %arg6[%c69] : memref<98xf32, #tpu.memory_space<smem>>
    %c70 = arith.constant 70 : index
    %193 = memref.load %arg6[%c70] : memref<98xf32, #tpu.memory_space<smem>>
    %c71 = arith.constant 71 : index
    %194 = memref.load %arg6[%c71] : memref<98xf32, #tpu.memory_space<smem>>
    %c72 = arith.constant 72 : index
    %195 = memref.load %arg6[%c72] : memref<98xf32, #tpu.memory_space<smem>>
    %c73 = arith.constant 73 : index
    %196 = memref.load %arg6[%c73] : memref<98xf32, #tpu.memory_space<smem>>
    %c74 = arith.constant 74 : index
    %197 = memref.load %arg6[%c74] : memref<98xf32, #tpu.memory_space<smem>>
    %c75 = arith.constant 75 : index
    %198 = memref.load %arg6[%c75] : memref<98xf32, #tpu.memory_space<smem>>
    %c76 = arith.constant 76 : index
    %199 = memref.load %arg6[%c76] : memref<98xf32, #tpu.memory_space<smem>>
    %c77 = arith.constant 77 : index
    %200 = memref.load %arg6[%c77] : memref<98xf32, #tpu.memory_space<smem>>
    %c78 = arith.constant 78 : index
    %201 = memref.load %arg6[%c78] : memref<98xf32, #tpu.memory_space<smem>>
    %c79 = arith.constant 79 : index
    %202 = memref.load %arg6[%c79] : memref<98xf32, #tpu.memory_space<smem>>
    %c80 = arith.constant 80 : index
    %203 = memref.load %arg6[%c80] : memref<98xf32, #tpu.memory_space<smem>>
    %c81 = arith.constant 81 : index
    %204 = memref.load %arg6[%c81] : memref<98xf32, #tpu.memory_space<smem>>
    %c82 = arith.constant 82 : index
    %205 = memref.load %arg6[%c82] : memref<98xf32, #tpu.memory_space<smem>>
    %c83 = arith.constant 83 : index
    %206 = memref.load %arg6[%c83] : memref<98xf32, #tpu.memory_space<smem>>
    %c84 = arith.constant 84 : index
    %207 = memref.load %arg6[%c84] : memref<98xf32, #tpu.memory_space<smem>>
    %c85 = arith.constant 85 : index
    %208 = memref.load %arg6[%c85] : memref<98xf32, #tpu.memory_space<smem>>
    %c86 = arith.constant 86 : index
    %209 = memref.load %arg6[%c86] : memref<98xf32, #tpu.memory_space<smem>>
    %c87 = arith.constant 87 : index
    %210 = memref.load %arg6[%c87] : memref<98xf32, #tpu.memory_space<smem>>
    %c88 = arith.constant 88 : index
    %211 = memref.load %arg6[%c88] : memref<98xf32, #tpu.memory_space<smem>>
    %c89 = arith.constant 89 : index
    %212 = memref.load %arg6[%c89] : memref<98xf32, #tpu.memory_space<smem>>
    %c90 = arith.constant 90 : index
    %213 = memref.load %arg6[%c90] : memref<98xf32, #tpu.memory_space<smem>>
    %c91 = arith.constant 91 : index
    %214 = memref.load %arg6[%c91] : memref<98xf32, #tpu.memory_space<smem>>
    %c92 = arith.constant 92 : index
    %215 = memref.load %arg6[%c92] : memref<98xf32, #tpu.memory_space<smem>>
    %c93 = arith.constant 93 : index
    %216 = memref.load %arg6[%c93] : memref<98xf32, #tpu.memory_space<smem>>
    %c94 = arith.constant 94 : index
    %217 = memref.load %arg6[%c94] : memref<98xf32, #tpu.memory_space<smem>>
    %c95 = arith.constant 95 : index
    %218 = memref.load %arg6[%c95] : memref<98xf32, #tpu.memory_space<smem>>
    %c96 = arith.constant 96 : index
    %219 = memref.load %arg6[%c96] : memref<98xf32, #tpu.memory_space<smem>>
    %c97 = arith.constant 97 : index
    %220 = memref.load %arg6[%c97] : memref<98xf32, #tpu.memory_space<smem>>
    %cst_93 = arith.constant 0.000000e+00 : f32
    %221 = vector.broadcast %cst_93 : f32 to vector<2x16x16xf32>
    %c0_94 = arith.constant 0 : index
    %c0_95 = arith.constant 0 : index
    %c0_96 = arith.constant 0 : index
    %c0_97 = arith.constant 0 : index
    %222 = vector.load %arg9[%c0_94, %c0_95, %c0_96, %c0_97] : memref<2x2x22x22xf32, #tpu.memory_space<vmem>>, vector<2x2x22x16xf32>
    %223 = vector.extract_strided_slice %222 {offsets = [0, 0, 0, 0], sizes = [2, 1, 22, 16], strides = [1, 1, 1, 1]} : vector<2x2x22x16xf32> to vector<2x1x22x16xf32>
    %224 = vector.shape_cast %223 : vector<2x1x22x16xf32> to vector<2x22x16xf32>
    %225 = vector.extract_strided_slice %222 {offsets = [0, 1, 0, 0], sizes = [2, 1, 22, 16], strides = [1, 1, 1, 1]} : vector<2x2x22x16xf32> to vector<2x1x22x16xf32>
    %226 = vector.shape_cast %225 : vector<2x1x22x16xf32> to vector<2x22x16xf32>
    %227 = vector.extract_strided_slice %224 {offsets = [0, 0, 0], sizes = [2, 16, 16], strides = [1, 1, 1]} : vector<2x22x16xf32> to vector<2x16x16xf32>
    %228 = vector.broadcast %123 : f32 to vector<2x16x16xf32>
    %229 = arith.mulf %228, %227 : vector<2x16x16xf32>
    %230 = arith.addf %221, %229 : vector<2x16x16xf32>
    %231 = vector.extract_strided_slice %226 {offsets = [0, 0, 0], sizes = [2, 16, 16], strides = [1, 1, 1]} : vector<2x22x16xf32> to vector<2x16x16xf32>
    %232 = vector.broadcast %172 : f32 to vector<2x16x16xf32>
    %233 = arith.mulf %232, %231 : vector<2x16x16xf32>
    %234 = arith.addf %230, %233 : vector<2x16x16xf32>
    %235 = vector.extract_strided_slice %224 {offsets = [0, 1, 0], sizes = [2, 16, 16], strides = [1, 1, 1]} : vector<2x22x16xf32> to vector<2x16x16xf32>
    %236 = vector.broadcast %130 : f32 to vector<2x16x16xf32>
    %237 = arith.mulf %236, %235 : vector<2x16x16xf32>
    %238 = arith.addf %234, %237 : vector<2x16x16xf32>
    %239 = vector.extract_strided_slice %226 {offsets = [0, 1, 0], sizes = [2, 16, 16], strides = [1, 1, 1]} : vector<2x22x16xf32> to vector<2x16x16xf32>
    %240 = vector.broadcast %179 : f32 to vector<2x16x16xf32>
    %241 = arith.mulf %240, %239 : vector<2x16x16xf32>
    %242 = arith.addf %238, %241 : vector<2x16x16xf32>
    %243 = vector.extract_strided_slice %224 {offsets = [0, 2, 0], sizes = [2, 16, 16], strides = [1, 1, 1]} : vector<2x22x16xf32> to vector<2x16x16xf32>
    %244 = vector.broadcast %137 : f32 to vector<2x16x16xf32>
    %245 = arith.mulf %244, %243 : vector<2x16x16xf32>
    %246 = arith.addf %242, %245 : vector<2x16x16xf32>
    %247 = vector.extract_strided_slice %226 {offsets = [0, 2, 0], sizes = [2, 16, 16], strides = [1, 1, 1]} : vector<2x22x16xf32> to vector<2x16x16xf32>
    %248 = vector.broadcast %186 : f32 to vector<2x16x16xf32>
    %249 = arith.mulf %248, %247 : vector<2x16x16xf32>
    %250 = arith.addf %246, %249 : vector<2x16x16xf32>
    %251 = vector.extract_strided_slice %224 {offsets = [0, 3, 0], sizes = [2, 16, 16], strides = [1, 1, 1]} : vector<2x22x16xf32> to vector<2x16x16xf32>
    %252 = vector.broadcast %144 : f32 to vector<2x16x16xf32>
    %253 = arith.mulf %252, %251 : vector<2x16x16xf32>
    %254 = arith.addf %250, %253 : vector<2x16x16xf32>
    %255 = vector.extract_strided_slice %226 {offsets = [0, 3, 0], sizes = [2, 16, 16], strides = [1, 1, 1]} : vector<2x22x16xf32> to vector<2x16x16xf32>
    %256 = vector.broadcast %193 : f32 to vector<2x16x16xf32>
    %257 = arith.mulf %256, %255 : vector<2x16x16xf32>
    %258 = arith.addf %254, %257 : vector<2x16x16xf32>
    %259 = vector.extract_strided_slice %224 {offsets = [0, 4, 0], sizes = [2, 16, 16], strides = [1, 1, 1]} : vector<2x22x16xf32> to vector<2x16x16xf32>
    %260 = vector.broadcast %151 : f32 to vector<2x16x16xf32>
    %261 = arith.mulf %260, %259 : vector<2x16x16xf32>
    %262 = arith.addf %258, %261 : vector<2x16x16xf32>
    %263 = vector.extract_strided_slice %226 {offsets = [0, 4, 0], sizes = [2, 16, 16], strides = [1, 1, 1]} : vector<2x22x16xf32> to vector<2x16x16xf32>
    %264 = vector.broadcast %200 : f32 to vector<2x16x16xf32>
    %265 = arith.mulf %264, %263 : vector<2x16x16xf32>
    %266 = arith.addf %262, %265 : vector<2x16x16xf32>
    %267 = vector.extract_strided_slice %224 {offsets = [0, 5, 0], sizes = [2, 16, 16], strides = [1, 1, 1]} : vector<2x22x16xf32> to vector<2x16x16xf32>
    %268 = vector.broadcast %158 : f32 to vector<2x16x16xf32>
    %269 = arith.mulf %268, %267 : vector<2x16x16xf32>
    %270 = arith.addf %266, %269 : vector<2x16x16xf32>
    %271 = vector.extract_strided_slice %226 {offsets = [0, 5, 0], sizes = [2, 16, 16], strides = [1, 1, 1]} : vector<2x22x16xf32> to vector<2x16x16xf32>
    %272 = vector.broadcast %207 : f32 to vector<2x16x16xf32>
    %273 = arith.mulf %272, %271 : vector<2x16x16xf32>
    %274 = arith.addf %270, %273 : vector<2x16x16xf32>
    %275 = vector.extract_strided_slice %224 {offsets = [0, 6, 0], sizes = [2, 16, 16], strides = [1, 1, 1]} : vector<2x22x16xf32> to vector<2x16x16xf32>
    %276 = vector.broadcast %165 : f32 to vector<2x16x16xf32>
    %277 = arith.mulf %276, %275 : vector<2x16x16xf32>
    %278 = arith.addf %274, %277 : vector<2x16x16xf32>
    %279 = vector.extract_strided_slice %226 {offsets = [0, 6, 0], sizes = [2, 16, 16], strides = [1, 1, 1]} : vector<2x22x16xf32> to vector<2x16x16xf32>
    %280 = vector.broadcast %214 : f32 to vector<2x16x16xf32>
    %281 = arith.mulf %280, %279 : vector<2x16x16xf32>
    %282 = arith.addf %278, %281 : vector<2x16x16xf32>
    %c0_98 = arith.constant 0 : index
    %c0_99 = arith.constant 0 : index
    %c0_100 = arith.constant 0 : index
    %c1_101 = arith.constant 1 : index
    %283 = vector.load %arg9[%c0_98, %c0_99, %c0_100, %c1_101] : memref<2x2x22x22xf32, #tpu.memory_space<vmem>>, vector<2x2x22x16xf32>
    %284 = vector.extract_strided_slice %283 {offsets = [0, 0, 0, 0], sizes = [2, 1, 22, 16], strides = [1, 1, 1, 1]} : vector<2x2x22x16xf32> to vector<2x1x22x16xf32>
    %285 = vector.shape_cast %284 : vector<2x1x22x16xf32> to vector<2x22x16xf32>
    %286 = vector.extract_strided_slice %283 {offsets = [0, 1, 0, 0], sizes = [2, 1, 22, 16], strides = [1, 1, 1, 1]} : vector<2x2x22x16xf32> to vector<2x1x22x16xf32>
    %287 = vector.shape_cast %286 : vector<2x1x22x16xf32> to vector<2x22x16xf32>
    %288 = vector.extract_strided_slice %285 {offsets = [0, 0, 0], sizes = [2, 16, 16], strides = [1, 1, 1]} : vector<2x22x16xf32> to vector<2x16x16xf32>
    %289 = vector.broadcast %124 : f32 to vector<2x16x16xf32>
    %290 = arith.mulf %289, %288 : vector<2x16x16xf32>
    %291 = arith.addf %282, %290 : vector<2x16x16xf32>
    %292 = vector.extract_strided_slice %287 {offsets = [0, 0, 0], sizes = [2, 16, 16], strides = [1, 1, 1]} : vector<2x22x16xf32> to vector<2x16x16xf32>
    %293 = vector.broadcast %173 : f32 to vector<2x16x16xf32>
    %294 = arith.mulf %293, %292 : vector<2x16x16xf32>
    %295 = arith.addf %291, %294 : vector<2x16x16xf32>
    %296 = vector.extract_strided_slice %285 {offsets = [0, 1, 0], sizes = [2, 16, 16], strides = [1, 1, 1]} : vector<2x22x16xf32> to vector<2x16x16xf32>
    %297 = vector.broadcast %131 : f32 to vector<2x16x16xf32>
    %298 = arith.mulf %297, %296 : vector<2x16x16xf32>
    %299 = arith.addf %295, %298 : vector<2x16x16xf32>
    %300 = vector.extract_strided_slice %287 {offsets = [0, 1, 0], sizes = [2, 16, 16], strides = [1, 1, 1]} : vector<2x22x16xf32> to vector<2x16x16xf32>
    %301 = vector.broadcast %180 : f32 to vector<2x16x16xf32>
    %302 = arith.mulf %301, %300 : vector<2x16x16xf32>
    %303 = arith.addf %299, %302 : vector<2x16x16xf32>
    %304 = vector.extract_strided_slice %285 {offsets = [0, 2, 0], sizes = [2, 16, 16], strides = [1, 1, 1]} : vector<2x22x16xf32> to vector<2x16x16xf32>
    %305 = vector.broadcast %138 : f32 to vector<2x16x16xf32>
    %306 = arith.mulf %305, %304 : vector<2x16x16xf32>
    %307 = arith.addf %303, %306 : vector<2x16x16xf32>
    %308 = vector.extract_strided_slice %287 {offsets = [0, 2, 0], sizes = [2, 16, 16], strides = [1, 1, 1]} : vector<2x22x16xf32> to vector<2x16x16xf32>
    %309 = vector.broadcast %187 : f32 to vector<2x16x16xf32>
    %310 = arith.mulf %309, %308 : vector<2x16x16xf32>
    %311 = arith.addf %307, %310 : vector<2x16x16xf32>
    %312 = vector.extract_strided_slice %285 {offsets = [0, 3, 0], sizes = [2, 16, 16], strides = [1, 1, 1]} : vector<2x22x16xf32> to vector<2x16x16xf32>
    %313 = vector.broadcast %145 : f32 to vector<2x16x16xf32>
    %314 = arith.mulf %313, %312 : vector<2x16x16xf32>
    %315 = arith.addf %311, %314 : vector<2x16x16xf32>
    %316 = vector.extract_strided_slice %287 {offsets = [0, 3, 0], sizes = [2, 16, 16], strides = [1, 1, 1]} : vector<2x22x16xf32> to vector<2x16x16xf32>
    %317 = vector.broadcast %194 : f32 to vector<2x16x16xf32>
    %318 = arith.mulf %317, %316 : vector<2x16x16xf32>
    %319 = arith.addf %315, %318 : vector<2x16x16xf32>
    %320 = vector.extract_strided_slice %285 {offsets = [0, 4, 0], sizes = [2, 16, 16], strides = [1, 1, 1]} : vector<2x22x16xf32> to vector<2x16x16xf32>
    %321 = vector.broadcast %152 : f32 to vector<2x16x16xf32>
    %322 = arith.mulf %321, %320 : vector<2x16x16xf32>
    %323 = arith.addf %319, %322 : vector<2x16x16xf32>
    %324 = vector.extract_strided_slice %287 {offsets = [0, 4, 0], sizes = [2, 16, 16], strides = [1, 1, 1]} : vector<2x22x16xf32> to vector<2x16x16xf32>
    %325 = vector.broadcast %201 : f32 to vector<2x16x16xf32>
    %326 = arith.mulf %325, %324 : vector<2x16x16xf32>
    %327 = arith.addf %323, %326 : vector<2x16x16xf32>
    %328 = vector.extract_strided_slice %285 {offsets = [0, 5, 0], sizes = [2, 16, 16], strides = [1, 1, 1]} : vector<2x22x16xf32> to vector<2x16x16xf32>
    %329 = vector.broadcast %159 : f32 to vector<2x16x16xf32>
    %330 = arith.mulf %329, %328 : vector<2x16x16xf32>
    %331 = arith.addf %327, %330 : vector<2x16x16xf32>
    %332 = vector.extract_strided_slice %287 {offsets = [0, 5, 0], sizes = [2, 16, 16], strides = [1, 1, 1]} : vector<2x22x16xf32> to vector<2x16x16xf32>
    %333 = vector.broadcast %208 : f32 to vector<2x16x16xf32>
    %334 = arith.mulf %333, %332 : vector<2x16x16xf32>
    %335 = arith.addf %331, %334 : vector<2x16x16xf32>
    %336 = vector.extract_strided_slice %285 {offsets = [0, 6, 0], sizes = [2, 16, 16], strides = [1, 1, 1]} : vector<2x22x16xf32> to vector<2x16x16xf32>
    %337 = vector.broadcast %166 : f32 to vector<2x16x16xf32>
    %338 = arith.mulf %337, %336 : vector<2x16x16xf32>
    %339 = arith.addf %335, %338 : vector<2x16x16xf32>
    %340 = vector.extract_strided_slice %287 {offsets = [0, 6, 0], sizes = [2, 16, 16], strides = [1, 1, 1]} : vector<2x22x16xf32> to vector<2x16x16xf32>
    %341 = vector.broadcast %215 : f32 to vector<2x16x16xf32>
    %342 = arith.mulf %341, %340 : vector<2x16x16xf32>
    %343 = arith.addf %339, %342 : vector<2x16x16xf32>
    %c0_102 = arith.constant 0 : index
    %c0_103 = arith.constant 0 : index
    %c0_104 = arith.constant 0 : index
    %c2_105 = arith.constant 2 : index
    %344 = vector.load %arg9[%c0_102, %c0_103, %c0_104, %c2_105] : memref<2x2x22x22xf32, #tpu.memory_space<vmem>>, vector<2x2x22x16xf32>
    %345 = vector.extract_strided_slice %344 {offsets = [0, 0, 0, 0], sizes = [2, 1, 22, 16], strides = [1, 1, 1, 1]} : vector<2x2x22x16xf32> to vector<2x1x22x16xf32>
    %346 = vector.shape_cast %345 : vector<2x1x22x16xf32> to vector<2x22x16xf32>
    %347 = vector.extract_strided_slice %344 {offsets = [0, 1, 0, 0], sizes = [2, 1, 22, 16], strides = [1, 1, 1, 1]} : vector<2x2x22x16xf32> to vector<2x1x22x16xf32>
    %348 = vector.shape_cast %347 : vector<2x1x22x16xf32> to vector<2x22x16xf32>
    %349 = vector.extract_strided_slice %346 {offsets = [0, 0, 0], sizes = [2, 16, 16], strides = [1, 1, 1]} : vector<2x22x16xf32> to vector<2x16x16xf32>
    %350 = vector.broadcast %125 : f32 to vector<2x16x16xf32>
    %351 = arith.mulf %350, %349 : vector<2x16x16xf32>
    %352 = arith.addf %343, %351 : vector<2x16x16xf32>
    %353 = vector.extract_strided_slice %348 {offsets = [0, 0, 0], sizes = [2, 16, 16], strides = [1, 1, 1]} : vector<2x22x16xf32> to vector<2x16x16xf32>
    %354 = vector.broadcast %174 : f32 to vector<2x16x16xf32>
    %355 = arith.mulf %354, %353 : vector<2x16x16xf32>
    %356 = arith.addf %352, %355 : vector<2x16x16xf32>
    %357 = vector.extract_strided_slice %346 {offsets = [0, 1, 0], sizes = [2, 16, 16], strides = [1, 1, 1]} : vector<2x22x16xf32> to vector<2x16x16xf32>
    %358 = vector.broadcast %132 : f32 to vector<2x16x16xf32>
    %359 = arith.mulf %358, %357 : vector<2x16x16xf32>
    %360 = arith.addf %356, %359 : vector<2x16x16xf32>
    %361 = vector.extract_strided_slice %348 {offsets = [0, 1, 0], sizes = [2, 16, 16], strides = [1, 1, 1]} : vector<2x22x16xf32> to vector<2x16x16xf32>
    %362 = vector.broadcast %181 : f32 to vector<2x16x16xf32>
    %363 = arith.mulf %362, %361 : vector<2x16x16xf32>
    %364 = arith.addf %360, %363 : vector<2x16x16xf32>
    %365 = vector.extract_strided_slice %346 {offsets = [0, 2, 0], sizes = [2, 16, 16], strides = [1, 1, 1]} : vector<2x22x16xf32> to vector<2x16x16xf32>
    %366 = vector.broadcast %139 : f32 to vector<2x16x16xf32>
    %367 = arith.mulf %366, %365 : vector<2x16x16xf32>
    %368 = arith.addf %364, %367 : vector<2x16x16xf32>
    %369 = vector.extract_strided_slice %348 {offsets = [0, 2, 0], sizes = [2, 16, 16], strides = [1, 1, 1]} : vector<2x22x16xf32> to vector<2x16x16xf32>
    %370 = vector.broadcast %188 : f32 to vector<2x16x16xf32>
    %371 = arith.mulf %370, %369 : vector<2x16x16xf32>
    %372 = arith.addf %368, %371 : vector<2x16x16xf32>
    %373 = vector.extract_strided_slice %346 {offsets = [0, 3, 0], sizes = [2, 16, 16], strides = [1, 1, 1]} : vector<2x22x16xf32> to vector<2x16x16xf32>
    %374 = vector.broadcast %146 : f32 to vector<2x16x16xf32>
    %375 = arith.mulf %374, %373 : vector<2x16x16xf32>
    %376 = arith.addf %372, %375 : vector<2x16x16xf32>
    %377 = vector.extract_strided_slice %348 {offsets = [0, 3, 0], sizes = [2, 16, 16], strides = [1, 1, 1]} : vector<2x22x16xf32> to vector<2x16x16xf32>
    %378 = vector.broadcast %195 : f32 to vector<2x16x16xf32>
    %379 = arith.mulf %378, %377 : vector<2x16x16xf32>
    %380 = arith.addf %376, %379 : vector<2x16x16xf32>
    %381 = vector.extract_strided_slice %346 {offsets = [0, 4, 0], sizes = [2, 16, 16], strides = [1, 1, 1]} : vector<2x22x16xf32> to vector<2x16x16xf32>
    %382 = vector.broadcast %153 : f32 to vector<2x16x16xf32>
    %383 = arith.mulf %382, %381 : vector<2x16x16xf32>
    %384 = arith.addf %380, %383 : vector<2x16x16xf32>
    %385 = vector.extract_strided_slice %348 {offsets = [0, 4, 0], sizes = [2, 16, 16], strides = [1, 1, 1]} : vector<2x22x16xf32> to vector<2x16x16xf32>
    %386 = vector.broadcast %202 : f32 to vector<2x16x16xf32>
    %387 = arith.mulf %386, %385 : vector<2x16x16xf32>
    %388 = arith.addf %384, %387 : vector<2x16x16xf32>
    %389 = vector.extract_strided_slice %346 {offsets = [0, 5, 0], sizes = [2, 16, 16], strides = [1, 1, 1]} : vector<2x22x16xf32> to vector<2x16x16xf32>
    %390 = vector.broadcast %160 : f32 to vector<2x16x16xf32>
    %391 = arith.mulf %390, %389 : vector<2x16x16xf32>
    %392 = arith.addf %388, %391 : vector<2x16x16xf32>
    %393 = vector.extract_strided_slice %348 {offsets = [0, 5, 0], sizes = [2, 16, 16], strides = [1, 1, 1]} : vector<2x22x16xf32> to vector<2x16x16xf32>
    %394 = vector.broadcast %209 : f32 to vector<2x16x16xf32>
    %395 = arith.mulf %394, %393 : vector<2x16x16xf32>
    %396 = arith.addf %392, %395 : vector<2x16x16xf32>
    %397 = vector.extract_strided_slice %346 {offsets = [0, 6, 0], sizes = [2, 16, 16], strides = [1, 1, 1]} : vector<2x22x16xf32> to vector<2x16x16xf32>
    %398 = vector.broadcast %167 : f32 to vector<2x16x16xf32>
    %399 = arith.mulf %398, %397 : vector<2x16x16xf32>
    %400 = arith.addf %396, %399 : vector<2x16x16xf32>
    %401 = vector.extract_strided_slice %348 {offsets = [0, 6, 0], sizes = [2, 16, 16], strides = [1, 1, 1]} : vector<2x22x16xf32> to vector<2x16x16xf32>
    %402 = vector.broadcast %216 : f32 to vector<2x16x16xf32>
    %403 = arith.mulf %402, %401 : vector<2x16x16xf32>
    %404 = arith.addf %400, %403 : vector<2x16x16xf32>
    %c0_106 = arith.constant 0 : index
    %c0_107 = arith.constant 0 : index
    %c0_108 = arith.constant 0 : index
    %c3_109 = arith.constant 3 : index
    %405 = vector.load %arg9[%c0_106, %c0_107, %c0_108, %c3_109] : memref<2x2x22x22xf32, #tpu.memory_space<vmem>>, vector<2x2x22x16xf32>
    %406 = vector.extract_strided_slice %405 {offsets = [0, 0, 0, 0], sizes = [2, 1, 22, 16], strides = [1, 1, 1, 1]} : vector<2x2x22x16xf32> to vector<2x1x22x16xf32>
    %407 = vector.shape_cast %406 : vector<2x1x22x16xf32> to vector<2x22x16xf32>
    %408 = vector.extract_strided_slice %405 {offsets = [0, 1, 0, 0], sizes = [2, 1, 22, 16], strides = [1, 1, 1, 1]} : vector<2x2x22x16xf32> to vector<2x1x22x16xf32>
    %409 = vector.shape_cast %408 : vector<2x1x22x16xf32> to vector<2x22x16xf32>
    %410 = vector.extract_strided_slice %407 {offsets = [0, 0, 0], sizes = [2, 16, 16], strides = [1, 1, 1]} : vector<2x22x16xf32> to vector<2x16x16xf32>
    %411 = vector.broadcast %126 : f32 to vector<2x16x16xf32>
    %412 = arith.mulf %411, %410 : vector<2x16x16xf32>
    %413 = arith.addf %404, %412 : vector<2x16x16xf32>
    %414 = vector.extract_strided_slice %409 {offsets = [0, 0, 0], sizes = [2, 16, 16], strides = [1, 1, 1]} : vector<2x22x16xf32> to vector<2x16x16xf32>
    %415 = vector.broadcast %175 : f32 to vector<2x16x16xf32>
    %416 = arith.mulf %415, %414 : vector<2x16x16xf32>
    %417 = arith.addf %413, %416 : vector<2x16x16xf32>
    %418 = vector.extract_strided_slice %407 {offsets = [0, 1, 0], sizes = [2, 16, 16], strides = [1, 1, 1]} : vector<2x22x16xf32> to vector<2x16x16xf32>
    %419 = vector.broadcast %133 : f32 to vector<2x16x16xf32>
    %420 = arith.mulf %419, %418 : vector<2x16x16xf32>
    %421 = arith.addf %417, %420 : vector<2x16x16xf32>
    %422 = vector.extract_strided_slice %409 {offsets = [0, 1, 0], sizes = [2, 16, 16], strides = [1, 1, 1]} : vector<2x22x16xf32> to vector<2x16x16xf32>
    %423 = vector.broadcast %182 : f32 to vector<2x16x16xf32>
    %424 = arith.mulf %423, %422 : vector<2x16x16xf32>
    %425 = arith.addf %421, %424 : vector<2x16x16xf32>
    %426 = vector.extract_strided_slice %407 {offsets = [0, 2, 0], sizes = [2, 16, 16], strides = [1, 1, 1]} : vector<2x22x16xf32> to vector<2x16x16xf32>
    %427 = vector.broadcast %140 : f32 to vector<2x16x16xf32>
    %428 = arith.mulf %427, %426 : vector<2x16x16xf32>
    %429 = arith.addf %425, %428 : vector<2x16x16xf32>
    %430 = vector.extract_strided_slice %409 {offsets = [0, 2, 0], sizes = [2, 16, 16], strides = [1, 1, 1]} : vector<2x22x16xf32> to vector<2x16x16xf32>
    %431 = vector.broadcast %189 : f32 to vector<2x16x16xf32>
    %432 = arith.mulf %431, %430 : vector<2x16x16xf32>
    %433 = arith.addf %429, %432 : vector<2x16x16xf32>
    %434 = vector.extract_strided_slice %407 {offsets = [0, 3, 0], sizes = [2, 16, 16], strides = [1, 1, 1]} : vector<2x22x16xf32> to vector<2x16x16xf32>
    %435 = vector.broadcast %147 : f32 to vector<2x16x16xf32>
    %436 = arith.mulf %435, %434 : vector<2x16x16xf32>
    %437 = arith.addf %433, %436 : vector<2x16x16xf32>
    %438 = vector.extract_strided_slice %409 {offsets = [0, 3, 0], sizes = [2, 16, 16], strides = [1, 1, 1]} : vector<2x22x16xf32> to vector<2x16x16xf32>
    %439 = vector.broadcast %196 : f32 to vector<2x16x16xf32>
    %440 = arith.mulf %439, %438 : vector<2x16x16xf32>
    %441 = arith.addf %437, %440 : vector<2x16x16xf32>
    %442 = vector.extract_strided_slice %407 {offsets = [0, 4, 0], sizes = [2, 16, 16], strides = [1, 1, 1]} : vector<2x22x16xf32> to vector<2x16x16xf32>
    %443 = vector.broadcast %154 : f32 to vector<2x16x16xf32>
    %444 = arith.mulf %443, %442 : vector<2x16x16xf32>
    %445 = arith.addf %441, %444 : vector<2x16x16xf32>
    %446 = vector.extract_strided_slice %409 {offsets = [0, 4, 0], sizes = [2, 16, 16], strides = [1, 1, 1]} : vector<2x22x16xf32> to vector<2x16x16xf32>
    %447 = vector.broadcast %203 : f32 to vector<2x16x16xf32>
    %448 = arith.mulf %447, %446 : vector<2x16x16xf32>
    %449 = arith.addf %445, %448 : vector<2x16x16xf32>
    %450 = vector.extract_strided_slice %407 {offsets = [0, 5, 0], sizes = [2, 16, 16], strides = [1, 1, 1]} : vector<2x22x16xf32> to vector<2x16x16xf32>
    %451 = vector.broadcast %161 : f32 to vector<2x16x16xf32>
    %452 = arith.mulf %451, %450 : vector<2x16x16xf32>
    %453 = arith.addf %449, %452 : vector<2x16x16xf32>
    %454 = vector.extract_strided_slice %409 {offsets = [0, 5, 0], sizes = [2, 16, 16], strides = [1, 1, 1]} : vector<2x22x16xf32> to vector<2x16x16xf32>
    %455 = vector.broadcast %210 : f32 to vector<2x16x16xf32>
    %456 = arith.mulf %455, %454 : vector<2x16x16xf32>
    %457 = arith.addf %453, %456 : vector<2x16x16xf32>
    %458 = vector.extract_strided_slice %407 {offsets = [0, 6, 0], sizes = [2, 16, 16], strides = [1, 1, 1]} : vector<2x22x16xf32> to vector<2x16x16xf32>
    %459 = vector.broadcast %168 : f32 to vector<2x16x16xf32>
    %460 = arith.mulf %459, %458 : vector<2x16x16xf32>
    %461 = arith.addf %457, %460 : vector<2x16x16xf32>
    %462 = vector.extract_strided_slice %409 {offsets = [0, 6, 0], sizes = [2, 16, 16], strides = [1, 1, 1]} : vector<2x22x16xf32> to vector<2x16x16xf32>
    %463 = vector.broadcast %217 : f32 to vector<2x16x16xf32>
    %464 = arith.mulf %463, %462 : vector<2x16x16xf32>
    %465 = arith.addf %461, %464 : vector<2x16x16xf32>
    %c0_110 = arith.constant 0 : index
    %c0_111 = arith.constant 0 : index
    %c0_112 = arith.constant 0 : index
    %c4_113 = arith.constant 4 : index
    %466 = vector.load %arg9[%c0_110, %c0_111, %c0_112, %c4_113] : memref<2x2x22x22xf32, #tpu.memory_space<vmem>>, vector<2x2x22x16xf32>
    %467 = vector.extract_strided_slice %466 {offsets = [0, 0, 0, 0], sizes = [2, 1, 22, 16], strides = [1, 1, 1, 1]} : vector<2x2x22x16xf32> to vector<2x1x22x16xf32>
    %468 = vector.shape_cast %467 : vector<2x1x22x16xf32> to vector<2x22x16xf32>
    %469 = vector.extract_strided_slice %466 {offsets = [0, 1, 0, 0], sizes = [2, 1, 22, 16], strides = [1, 1, 1, 1]} : vector<2x2x22x16xf32> to vector<2x1x22x16xf32>
    %470 = vector.shape_cast %469 : vector<2x1x22x16xf32> to vector<2x22x16xf32>
    %471 = vector.extract_strided_slice %468 {offsets = [0, 0, 0], sizes = [2, 16, 16], strides = [1, 1, 1]} : vector<2x22x16xf32> to vector<2x16x16xf32>
    %472 = vector.broadcast %127 : f32 to vector<2x16x16xf32>
    %473 = arith.mulf %472, %471 : vector<2x16x16xf32>
    %474 = arith.addf %465, %473 : vector<2x16x16xf32>
    %475 = vector.extract_strided_slice %470 {offsets = [0, 0, 0], sizes = [2, 16, 16], strides = [1, 1, 1]} : vector<2x22x16xf32> to vector<2x16x16xf32>
    %476 = vector.broadcast %176 : f32 to vector<2x16x16xf32>
    %477 = arith.mulf %476, %475 : vector<2x16x16xf32>
    %478 = arith.addf %474, %477 : vector<2x16x16xf32>
    %479 = vector.extract_strided_slice %468 {offsets = [0, 1, 0], sizes = [2, 16, 16], strides = [1, 1, 1]} : vector<2x22x16xf32> to vector<2x16x16xf32>
    %480 = vector.broadcast %134 : f32 to vector<2x16x16xf32>
    %481 = arith.mulf %480, %479 : vector<2x16x16xf32>
    %482 = arith.addf %478, %481 : vector<2x16x16xf32>
    %483 = vector.extract_strided_slice %470 {offsets = [0, 1, 0], sizes = [2, 16, 16], strides = [1, 1, 1]} : vector<2x22x16xf32> to vector<2x16x16xf32>
    %484 = vector.broadcast %183 : f32 to vector<2x16x16xf32>
    %485 = arith.mulf %484, %483 : vector<2x16x16xf32>
    %486 = arith.addf %482, %485 : vector<2x16x16xf32>
    %487 = vector.extract_strided_slice %468 {offsets = [0, 2, 0], sizes = [2, 16, 16], strides = [1, 1, 1]} : vector<2x22x16xf32> to vector<2x16x16xf32>
    %488 = vector.broadcast %141 : f32 to vector<2x16x16xf32>
    %489 = arith.mulf %488, %487 : vector<2x16x16xf32>
    %490 = arith.addf %486, %489 : vector<2x16x16xf32>
    %491 = vector.extract_strided_slice %470 {offsets = [0, 2, 0], sizes = [2, 16, 16], strides = [1, 1, 1]} : vector<2x22x16xf32> to vector<2x16x16xf32>
    %492 = vector.broadcast %190 : f32 to vector<2x16x16xf32>
    %493 = arith.mulf %492, %491 : vector<2x16x16xf32>
    %494 = arith.addf %490, %493 : vector<2x16x16xf32>
    %495 = vector.extract_strided_slice %468 {offsets = [0, 3, 0], sizes = [2, 16, 16], strides = [1, 1, 1]} : vector<2x22x16xf32> to vector<2x16x16xf32>
    %496 = vector.broadcast %148 : f32 to vector<2x16x16xf32>
    %497 = arith.mulf %496, %495 : vector<2x16x16xf32>
    %498 = arith.addf %494, %497 : vector<2x16x16xf32>
    %499 = vector.extract_strided_slice %470 {offsets = [0, 3, 0], sizes = [2, 16, 16], strides = [1, 1, 1]} : vector<2x22x16xf32> to vector<2x16x16xf32>
    %500 = vector.broadcast %197 : f32 to vector<2x16x16xf32>
    %501 = arith.mulf %500, %499 : vector<2x16x16xf32>
    %502 = arith.addf %498, %501 : vector<2x16x16xf32>
    %503 = vector.extract_strided_slice %468 {offsets = [0, 4, 0], sizes = [2, 16, 16], strides = [1, 1, 1]} : vector<2x22x16xf32> to vector<2x16x16xf32>
    %504 = vector.broadcast %155 : f32 to vector<2x16x16xf32>
    %505 = arith.mulf %504, %503 : vector<2x16x16xf32>
    %506 = arith.addf %502, %505 : vector<2x16x16xf32>
    %507 = vector.extract_strided_slice %470 {offsets = [0, 4, 0], sizes = [2, 16, 16], strides = [1, 1, 1]} : vector<2x22x16xf32> to vector<2x16x16xf32>
    %508 = vector.broadcast %204 : f32 to vector<2x16x16xf32>
    %509 = arith.mulf %508, %507 : vector<2x16x16xf32>
    %510 = arith.addf %506, %509 : vector<2x16x16xf32>
    %511 = vector.extract_strided_slice %468 {offsets = [0, 5, 0], sizes = [2, 16, 16], strides = [1, 1, 1]} : vector<2x22x16xf32> to vector<2x16x16xf32>
    %512 = vector.broadcast %162 : f32 to vector<2x16x16xf32>
    %513 = arith.mulf %512, %511 : vector<2x16x16xf32>
    %514 = arith.addf %510, %513 : vector<2x16x16xf32>
    %515 = vector.extract_strided_slice %470 {offsets = [0, 5, 0], sizes = [2, 16, 16], strides = [1, 1, 1]} : vector<2x22x16xf32> to vector<2x16x16xf32>
    %516 = vector.broadcast %211 : f32 to vector<2x16x16xf32>
    %517 = arith.mulf %516, %515 : vector<2x16x16xf32>
    %518 = arith.addf %514, %517 : vector<2x16x16xf32>
    %519 = vector.extract_strided_slice %468 {offsets = [0, 6, 0], sizes = [2, 16, 16], strides = [1, 1, 1]} : vector<2x22x16xf32> to vector<2x16x16xf32>
    %520 = vector.broadcast %169 : f32 to vector<2x16x16xf32>
    %521 = arith.mulf %520, %519 : vector<2x16x16xf32>
    %522 = arith.addf %518, %521 : vector<2x16x16xf32>
    %523 = vector.extract_strided_slice %470 {offsets = [0, 6, 0], sizes = [2, 16, 16], strides = [1, 1, 1]} : vector<2x22x16xf32> to vector<2x16x16xf32>
    %524 = vector.broadcast %218 : f32 to vector<2x16x16xf32>
    %525 = arith.mulf %524, %523 : vector<2x16x16xf32>
    %526 = arith.addf %522, %525 : vector<2x16x16xf32>
    %c0_114 = arith.constant 0 : index
    %c0_115 = arith.constant 0 : index
    %c0_116 = arith.constant 0 : index
    %c5_117 = arith.constant 5 : index
    %527 = vector.load %arg9[%c0_114, %c0_115, %c0_116, %c5_117] : memref<2x2x22x22xf32, #tpu.memory_space<vmem>>, vector<2x2x22x16xf32>
    %528 = vector.extract_strided_slice %527 {offsets = [0, 0, 0, 0], sizes = [2, 1, 22, 16], strides = [1, 1, 1, 1]} : vector<2x2x22x16xf32> to vector<2x1x22x16xf32>
    %529 = vector.shape_cast %528 : vector<2x1x22x16xf32> to vector<2x22x16xf32>
    %530 = vector.extract_strided_slice %527 {offsets = [0, 1, 0, 0], sizes = [2, 1, 22, 16], strides = [1, 1, 1, 1]} : vector<2x2x22x16xf32> to vector<2x1x22x16xf32>
    %531 = vector.shape_cast %530 : vector<2x1x22x16xf32> to vector<2x22x16xf32>
    %532 = vector.extract_strided_slice %529 {offsets = [0, 0, 0], sizes = [2, 16, 16], strides = [1, 1, 1]} : vector<2x22x16xf32> to vector<2x16x16xf32>
    %533 = vector.broadcast %128 : f32 to vector<2x16x16xf32>
    %534 = arith.mulf %533, %532 : vector<2x16x16xf32>
    %535 = arith.addf %526, %534 : vector<2x16x16xf32>
    %536 = vector.extract_strided_slice %531 {offsets = [0, 0, 0], sizes = [2, 16, 16], strides = [1, 1, 1]} : vector<2x22x16xf32> to vector<2x16x16xf32>
    %537 = vector.broadcast %177 : f32 to vector<2x16x16xf32>
    %538 = arith.mulf %537, %536 : vector<2x16x16xf32>
    %539 = arith.addf %535, %538 : vector<2x16x16xf32>
    %540 = vector.extract_strided_slice %529 {offsets = [0, 1, 0], sizes = [2, 16, 16], strides = [1, 1, 1]} : vector<2x22x16xf32> to vector<2x16x16xf32>
    %541 = vector.broadcast %135 : f32 to vector<2x16x16xf32>
    %542 = arith.mulf %541, %540 : vector<2x16x16xf32>
    %543 = arith.addf %539, %542 : vector<2x16x16xf32>
    %544 = vector.extract_strided_slice %531 {offsets = [0, 1, 0], sizes = [2, 16, 16], strides = [1, 1, 1]} : vector<2x22x16xf32> to vector<2x16x16xf32>
    %545 = vector.broadcast %184 : f32 to vector<2x16x16xf32>
    %546 = arith.mulf %545, %544 : vector<2x16x16xf32>
    %547 = arith.addf %543, %546 : vector<2x16x16xf32>
    %548 = vector.extract_strided_slice %529 {offsets = [0, 2, 0], sizes = [2, 16, 16], strides = [1, 1, 1]} : vector<2x22x16xf32> to vector<2x16x16xf32>
    %549 = vector.broadcast %142 : f32 to vector<2x16x16xf32>
    %550 = arith.mulf %549, %548 : vector<2x16x16xf32>
    %551 = arith.addf %547, %550 : vector<2x16x16xf32>
    %552 = vector.extract_strided_slice %531 {offsets = [0, 2, 0], sizes = [2, 16, 16], strides = [1, 1, 1]} : vector<2x22x16xf32> to vector<2x16x16xf32>
    %553 = vector.broadcast %191 : f32 to vector<2x16x16xf32>
    %554 = arith.mulf %553, %552 : vector<2x16x16xf32>
    %555 = arith.addf %551, %554 : vector<2x16x16xf32>
    %556 = vector.extract_strided_slice %529 {offsets = [0, 3, 0], sizes = [2, 16, 16], strides = [1, 1, 1]} : vector<2x22x16xf32> to vector<2x16x16xf32>
    %557 = vector.broadcast %149 : f32 to vector<2x16x16xf32>
    %558 = arith.mulf %557, %556 : vector<2x16x16xf32>
    %559 = arith.addf %555, %558 : vector<2x16x16xf32>
    %560 = vector.extract_strided_slice %531 {offsets = [0, 3, 0], sizes = [2, 16, 16], strides = [1, 1, 1]} : vector<2x22x16xf32> to vector<2x16x16xf32>
    %561 = vector.broadcast %198 : f32 to vector<2x16x16xf32>
    %562 = arith.mulf %561, %560 : vector<2x16x16xf32>
    %563 = arith.addf %559, %562 : vector<2x16x16xf32>
    %564 = vector.extract_strided_slice %529 {offsets = [0, 4, 0], sizes = [2, 16, 16], strides = [1, 1, 1]} : vector<2x22x16xf32> to vector<2x16x16xf32>
    %565 = vector.broadcast %156 : f32 to vector<2x16x16xf32>
    %566 = arith.mulf %565, %564 : vector<2x16x16xf32>
    %567 = arith.addf %563, %566 : vector<2x16x16xf32>
    %568 = vector.extract_strided_slice %531 {offsets = [0, 4, 0], sizes = [2, 16, 16], strides = [1, 1, 1]} : vector<2x22x16xf32> to vector<2x16x16xf32>
    %569 = vector.broadcast %205 : f32 to vector<2x16x16xf32>
    %570 = arith.mulf %569, %568 : vector<2x16x16xf32>
    %571 = arith.addf %567, %570 : vector<2x16x16xf32>
    %572 = vector.extract_strided_slice %529 {offsets = [0, 5, 0], sizes = [2, 16, 16], strides = [1, 1, 1]} : vector<2x22x16xf32> to vector<2x16x16xf32>
    %573 = vector.broadcast %163 : f32 to vector<2x16x16xf32>
    %574 = arith.mulf %573, %572 : vector<2x16x16xf32>
    %575 = arith.addf %571, %574 : vector<2x16x16xf32>
    %576 = vector.extract_strided_slice %531 {offsets = [0, 5, 0], sizes = [2, 16, 16], strides = [1, 1, 1]} : vector<2x22x16xf32> to vector<2x16x16xf32>
    %577 = vector.broadcast %212 : f32 to vector<2x16x16xf32>
    %578 = arith.mulf %577, %576 : vector<2x16x16xf32>
    %579 = arith.addf %575, %578 : vector<2x16x16xf32>
    %580 = vector.extract_strided_slice %529 {offsets = [0, 6, 0], sizes = [2, 16, 16], strides = [1, 1, 1]} : vector<2x22x16xf32> to vector<2x16x16xf32>
    %581 = vector.broadcast %170 : f32 to vector<2x16x16xf32>
    %582 = arith.mulf %581, %580 : vector<2x16x16xf32>
    %583 = arith.addf %579, %582 : vector<2x16x16xf32>
    %584 = vector.extract_strided_slice %531 {offsets = [0, 6, 0], sizes = [2, 16, 16], strides = [1, 1, 1]} : vector<2x22x16xf32> to vector<2x16x16xf32>
    %585 = vector.broadcast %219 : f32 to vector<2x16x16xf32>
    %586 = arith.mulf %585, %584 : vector<2x16x16xf32>
    %587 = arith.addf %583, %586 : vector<2x16x16xf32>
    %c0_118 = arith.constant 0 : index
    %c0_119 = arith.constant 0 : index
    %c0_120 = arith.constant 0 : index
    %c6_121 = arith.constant 6 : index
    %588 = vector.load %arg9[%c0_118, %c0_119, %c0_120, %c6_121] : memref<2x2x22x22xf32, #tpu.memory_space<vmem>>, vector<2x2x22x16xf32>
    %589 = vector.extract_strided_slice %588 {offsets = [0, 0, 0, 0], sizes = [2, 1, 22, 16], strides = [1, 1, 1, 1]} : vector<2x2x22x16xf32> to vector<2x1x22x16xf32>
    %590 = vector.shape_cast %589 : vector<2x1x22x16xf32> to vector<2x22x16xf32>
    %591 = vector.extract_strided_slice %588 {offsets = [0, 1, 0, 0], sizes = [2, 1, 22, 16], strides = [1, 1, 1, 1]} : vector<2x2x22x16xf32> to vector<2x1x22x16xf32>
    %592 = vector.shape_cast %591 : vector<2x1x22x16xf32> to vector<2x22x16xf32>
    %593 = vector.extract_strided_slice %590 {offsets = [0, 0, 0], sizes = [2, 16, 16], strides = [1, 1, 1]} : vector<2x22x16xf32> to vector<2x16x16xf32>
    %594 = vector.broadcast %129 : f32 to vector<2x16x16xf32>
    %595 = arith.mulf %594, %593 : vector<2x16x16xf32>
    %596 = arith.addf %587, %595 : vector<2x16x16xf32>
    %597 = vector.extract_strided_slice %592 {offsets = [0, 0, 0], sizes = [2, 16, 16], strides = [1, 1, 1]} : vector<2x22x16xf32> to vector<2x16x16xf32>
    %598 = vector.broadcast %178 : f32 to vector<2x16x16xf32>
    %599 = arith.mulf %598, %597 : vector<2x16x16xf32>
    %600 = arith.addf %596, %599 : vector<2x16x16xf32>
    %601 = vector.extract_strided_slice %590 {offsets = [0, 1, 0], sizes = [2, 16, 16], strides = [1, 1, 1]} : vector<2x22x16xf32> to vector<2x16x16xf32>
    %602 = vector.broadcast %136 : f32 to vector<2x16x16xf32>
    %603 = arith.mulf %602, %601 : vector<2x16x16xf32>
    %604 = arith.addf %600, %603 : vector<2x16x16xf32>
    %605 = vector.extract_strided_slice %592 {offsets = [0, 1, 0], sizes = [2, 16, 16], strides = [1, 1, 1]} : vector<2x22x16xf32> to vector<2x16x16xf32>
    %606 = vector.broadcast %185 : f32 to vector<2x16x16xf32>
    %607 = arith.mulf %606, %605 : vector<2x16x16xf32>
    %608 = arith.addf %604, %607 : vector<2x16x16xf32>
    %609 = vector.extract_strided_slice %590 {offsets = [0, 2, 0], sizes = [2, 16, 16], strides = [1, 1, 1]} : vector<2x22x16xf32> to vector<2x16x16xf32>
    %610 = vector.broadcast %143 : f32 to vector<2x16x16xf32>
    %611 = arith.mulf %610, %609 : vector<2x16x16xf32>
    %612 = arith.addf %608, %611 : vector<2x16x16xf32>
    %613 = vector.extract_strided_slice %592 {offsets = [0, 2, 0], sizes = [2, 16, 16], strides = [1, 1, 1]} : vector<2x22x16xf32> to vector<2x16x16xf32>
    %614 = vector.broadcast %192 : f32 to vector<2x16x16xf32>
    %615 = arith.mulf %614, %613 : vector<2x16x16xf32>
    %616 = arith.addf %612, %615 : vector<2x16x16xf32>
    %617 = vector.extract_strided_slice %590 {offsets = [0, 3, 0], sizes = [2, 16, 16], strides = [1, 1, 1]} : vector<2x22x16xf32> to vector<2x16x16xf32>
    %618 = vector.broadcast %150 : f32 to vector<2x16x16xf32>
    %619 = arith.mulf %618, %617 : vector<2x16x16xf32>
    %620 = arith.addf %616, %619 : vector<2x16x16xf32>
    %621 = vector.extract_strided_slice %592 {offsets = [0, 3, 0], sizes = [2, 16, 16], strides = [1, 1, 1]} : vector<2x22x16xf32> to vector<2x16x16xf32>
    %622 = vector.broadcast %199 : f32 to vector<2x16x16xf32>
    %623 = arith.mulf %622, %621 : vector<2x16x16xf32>
    %624 = arith.addf %620, %623 : vector<2x16x16xf32>
    %625 = vector.extract_strided_slice %590 {offsets = [0, 4, 0], sizes = [2, 16, 16], strides = [1, 1, 1]} : vector<2x22x16xf32> to vector<2x16x16xf32>
    %626 = vector.broadcast %157 : f32 to vector<2x16x16xf32>
    %627 = arith.mulf %626, %625 : vector<2x16x16xf32>
    %628 = arith.addf %624, %627 : vector<2x16x16xf32>
    %629 = vector.extract_strided_slice %592 {offsets = [0, 4, 0], sizes = [2, 16, 16], strides = [1, 1, 1]} : vector<2x22x16xf32> to vector<2x16x16xf32>
    %630 = vector.broadcast %206 : f32 to vector<2x16x16xf32>
    %631 = arith.mulf %630, %629 : vector<2x16x16xf32>
    %632 = arith.addf %628, %631 : vector<2x16x16xf32>
    %633 = vector.extract_strided_slice %590 {offsets = [0, 5, 0], sizes = [2, 16, 16], strides = [1, 1, 1]} : vector<2x22x16xf32> to vector<2x16x16xf32>
    %634 = vector.broadcast %164 : f32 to vector<2x16x16xf32>
    %635 = arith.mulf %634, %633 : vector<2x16x16xf32>
    %636 = arith.addf %632, %635 : vector<2x16x16xf32>
    %637 = vector.extract_strided_slice %592 {offsets = [0, 5, 0], sizes = [2, 16, 16], strides = [1, 1, 1]} : vector<2x22x16xf32> to vector<2x16x16xf32>
    %638 = vector.broadcast %213 : f32 to vector<2x16x16xf32>
    %639 = arith.mulf %638, %637 : vector<2x16x16xf32>
    %640 = arith.addf %636, %639 : vector<2x16x16xf32>
    %641 = vector.extract_strided_slice %590 {offsets = [0, 6, 0], sizes = [2, 16, 16], strides = [1, 1, 1]} : vector<2x22x16xf32> to vector<2x16x16xf32>
    %642 = vector.broadcast %171 : f32 to vector<2x16x16xf32>
    %643 = arith.mulf %642, %641 : vector<2x16x16xf32>
    %644 = arith.addf %640, %643 : vector<2x16x16xf32>
    %645 = vector.extract_strided_slice %592 {offsets = [0, 6, 0], sizes = [2, 16, 16], strides = [1, 1, 1]} : vector<2x22x16xf32> to vector<2x16x16xf32>
    %646 = vector.broadcast %220 : f32 to vector<2x16x16xf32>
    %647 = arith.mulf %646, %645 : vector<2x16x16xf32>
    %648 = arith.addf %644, %647 : vector<2x16x16xf32>
    %649 = vector.shape_cast %648 : vector<2x16x16xf32> to vector<1x2x16x16xf32>
    %cst_122 = arith.constant dense<0.000000e+00> : vector<1xf32>
    %650 = vector.multi_reduction <add>, %649, %cst_122 [1, 2, 3] : vector<1x2x16x16xf32> to vector<1xf32>
    %651 = vector.shape_cast %650 : vector<1xf32> to vector<1x1x1x1xf32>
    %652 = vector.extract %651[0, 0, 0, 0] : f32 from vector<1x1x1x1xf32>
    %cst_123 = arith.constant 5.120000e+02 : f32
    %653 = arith.divf %652, %cst_123 : f32
    %654 = vector.broadcast %653 : f32 to vector<2x16x16xf32>
    %655 = arith.subf %648, %654 : vector<2x16x16xf32>
    %656 = arith.mulf %655, %655 : vector<2x16x16xf32>
    %657 = vector.shape_cast %656 : vector<2x16x16xf32> to vector<1x2x16x16xf32>
    %cst_124 = arith.constant dense<0.000000e+00> : vector<1xf32>
    %658 = vector.multi_reduction <add>, %657, %cst_124 [1, 2, 3] : vector<1x2x16x16xf32> to vector<1xf32>
    %659 = vector.shape_cast %658 : vector<1xf32> to vector<1x1x1x1xf32>
    %660 = vector.extract %659[0, 0, 0, 0] : f32 from vector<1x1x1x1xf32>
    %cst_125 = arith.constant 5.120000e+02 : f32
    %661 = arith.divf %660, %cst_125 : f32
    %662 = vector.broadcast %653 : f32 to vector<2x16x16xf32>
    %663 = arith.subf %648, %662 : vector<2x16x16xf32>
    %cst_126 = arith.constant 9.99999974E-6 : f32
    %664 = arith.addf %661, %cst_126 : f32
    %665 = math.rsqrt %664 : f32
    %666 = vector.broadcast %665 : f32 to vector<2x16x16xf32>
    %667 = arith.mulf %663, %666 : vector<2x16x16xf32>
    %c0_127 = arith.constant 0 : index
    %668 = memref.load %arg7[%c0_127] : memref<2xf32, #tpu.memory_space<smem>>
    %669 = vector.broadcast %668 : f32 to vector<2x16x16xf32>
    %670 = arith.mulf %667, %669 : vector<2x16x16xf32>
    %c1_128 = arith.constant 1 : index
    %671 = memref.load %arg7[%c1_128] : memref<2xf32, #tpu.memory_space<smem>>
    %672 = vector.broadcast %671 : f32 to vector<2x16x16xf32>
    %673 = arith.addf %670, %672 : vector<2x16x16xf32>
    %cst_129 = arith.constant 0.000000e+00 : f32
    %674 = vector.broadcast %cst_129 : f32 to vector<2x16x16xf32>
    %675 = arith.subf %674, %673 : vector<2x16x16xf32>
    %676 = math.exp %675 : vector<2x16x16xf32>
    %cst_130 = arith.constant 1.000000e+00 : f32
    %677 = vector.broadcast %cst_130 : f32 to vector<2x16x16xf32>
    %678 = arith.addf %677, %676 : vector<2x16x16xf32>
    %cst_131 = arith.constant 1.000000e+00 : f32
    %679 = vector.broadcast %cst_131 : f32 to vector<2x16x16xf32>
    %680 = arith.divf %679, %678 : vector<2x16x16xf32>
    %681 = vector.extract_strided_slice %680 {offsets = [0, 0, 0], sizes = [2, 1, 16], strides = [1, 1, 1]} : vector<2x16x16xf32> to vector<2x1x16xf32>
    %c0_132 = arith.constant 0 : index
    %c0_133 = arith.constant 0 : index
    %c0_134 = arith.constant 0 : index
    %682 = vector.load %arg10[%c0_132, %c0_133, %c0_134] : memref<2x1x256xf32, #tpu.memory_space<vmem>>, vector<2x1x16xf32>
    tpu.vector_store %arg10[%c0_132, %c0_133, %c0_134], %681 {strides = array<i32>} : memref<2x1x256xf32, #tpu.memory_space<vmem>>, vector<2x1x16xf32>,
    %683 = vector.extract_strided_slice %680 {offsets = [0, 1, 0], sizes = [2, 1, 16], strides = [1, 1, 1]} : vector<2x16x16xf32> to vector<2x1x16xf32>
    %c0_135 = arith.constant 0 : index
    %c0_136 = arith.constant 0 : index
    %c16_137 = arith.constant 16 : index
    %684 = vector.load %arg10[%c0_135, %c0_136, %c16_137] : memref<2x1x256xf32, #tpu.memory_space<vmem>>, vector<2x1x16xf32>
    tpu.vector_store %arg10[%c0_135, %c0_136, %c16_137], %683 {strides = array<i32>} : memref<2x1x256xf32, #tpu.memory_space<vmem>>, vector<2x1x16xf32>,
    %685 = vector.extract_strided_slice %680 {offsets = [0, 2, 0], sizes = [2, 1, 16], strides = [1, 1, 1]} : vector<2x16x16xf32> to vector<2x1x16xf32>
    %c0_138 = arith.constant 0 : index
    %c0_139 = arith.constant 0 : index
    %c32_140 = arith.constant 32 : index
    %686 = vector.load %arg10[%c0_138, %c0_139, %c32_140] : memref<2x1x256xf32, #tpu.memory_space<vmem>>, vector<2x1x16xf32>
    tpu.vector_store %arg10[%c0_138, %c0_139, %c32_140], %685 {strides = array<i32>} : memref<2x1x256xf32, #tpu.memory_space<vmem>>, vector<2x1x16xf32>,
    %687 = vector.extract_strided_slice %680 {offsets = [0, 3, 0], sizes = [2, 1, 16], strides = [1, 1, 1]} : vector<2x16x16xf32> to vector<2x1x16xf32>
    %c0_141 = arith.constant 0 : index
    %c0_142 = arith.constant 0 : index
    %c48_143 = arith.constant 48 : index
    %688 = vector.load %arg10[%c0_141, %c0_142, %c48_143] : memref<2x1x256xf32, #tpu.memory_space<vmem>>, vector<2x1x16xf32>
    tpu.vector_store %arg10[%c0_141, %c0_142, %c48_143], %687 {strides = array<i32>} : memref<2x1x256xf32, #tpu.memory_space<vmem>>, vector<2x1x16xf32>,
    %689 = vector.extract_strided_slice %680 {offsets = [0, 4, 0], sizes = [2, 1, 16], strides = [1, 1, 1]} : vector<2x16x16xf32> to vector<2x1x16xf32>
    %c0_144 = arith.constant 0 : index
    %c0_145 = arith.constant 0 : index
    %c64_146 = arith.constant 64 : index
    %690 = vector.load %arg10[%c0_144, %c0_145, %c64_146] : memref<2x1x256xf32, #tpu.memory_space<vmem>>, vector<2x1x16xf32>
    tpu.vector_store %arg10[%c0_144, %c0_145, %c64_146], %689 {strides = array<i32>} : memref<2x1x256xf32, #tpu.memory_space<vmem>>, vector<2x1x16xf32>,
    %691 = vector.extract_strided_slice %680 {offsets = [0, 5, 0], sizes = [2, 1, 16], strides = [1, 1, 1]} : vector<2x16x16xf32> to vector<2x1x16xf32>
    %c0_147 = arith.constant 0 : index
    %c0_148 = arith.constant 0 : index
    %c80_149 = arith.constant 80 : index
    %692 = vector.load %arg10[%c0_147, %c0_148, %c80_149] : memref<2x1x256xf32, #tpu.memory_space<vmem>>, vector<2x1x16xf32>
    tpu.vector_store %arg10[%c0_147, %c0_148, %c80_149], %691 {strides = array<i32>} : memref<2x1x256xf32, #tpu.memory_space<vmem>>, vector<2x1x16xf32>,
    %693 = vector.extract_strided_slice %680 {offsets = [0, 6, 0], sizes = [2, 1, 16], strides = [1, 1, 1]} : vector<2x16x16xf32> to vector<2x1x16xf32>
    %c0_150 = arith.constant 0 : index
    %c0_151 = arith.constant 0 : index
    %c96_152 = arith.constant 96 : index
    %694 = vector.load %arg10[%c0_150, %c0_151, %c96_152] : memref<2x1x256xf32, #tpu.memory_space<vmem>>, vector<2x1x16xf32>
    tpu.vector_store %arg10[%c0_150, %c0_151, %c96_152], %693 {strides = array<i32>} : memref<2x1x256xf32, #tpu.memory_space<vmem>>, vector<2x1x16xf32>,
    %695 = vector.extract_strided_slice %680 {offsets = [0, 7, 0], sizes = [2, 1, 16], strides = [1, 1, 1]} : vector<2x16x16xf32> to vector<2x1x16xf32>
    %c0_153 = arith.constant 0 : index
    %c0_154 = arith.constant 0 : index
    %c112 = arith.constant 112 : index
    %696 = vector.load %arg10[%c0_153, %c0_154, %c112] : memref<2x1x256xf32, #tpu.memory_space<vmem>>, vector<2x1x16xf32>
    tpu.vector_store %arg10[%c0_153, %c0_154, %c112], %695 {strides = array<i32>} : memref<2x1x256xf32, #tpu.memory_space<vmem>>, vector<2x1x16xf32>,
    %697 = vector.extract_strided_slice %680 {offsets = [0, 8, 0], sizes = [2, 1, 16], strides = [1, 1, 1]} : vector<2x16x16xf32> to vector<2x1x16xf32>
    %c0_155 = arith.constant 0 : index
    %c0_156 = arith.constant 0 : index
    %c128 = arith.constant 128 : index
    %698 = vector.load %arg10[%c0_155, %c0_156, %c128] : memref<2x1x256xf32, #tpu.memory_space<vmem>>, vector<2x1x16xf32>
    tpu.vector_store %arg10[%c0_155, %c0_156, %c128], %697 {strides = array<i32>} : memref<2x1x256xf32, #tpu.memory_space<vmem>>, vector<2x1x16xf32>,
    %699 = vector.extract_strided_slice %680 {offsets = [0, 9, 0], sizes = [2, 1, 16], strides = [1, 1, 1]} : vector<2x16x16xf32> to vector<2x1x16xf32>
    %c0_157 = arith.constant 0 : index
    %c0_158 = arith.constant 0 : index
    %c144 = arith.constant 144 : index
    %700 = vector.load %arg10[%c0_157, %c0_158, %c144] : memref<2x1x256xf32, #tpu.memory_space<vmem>>, vector<2x1x16xf32>
    tpu.vector_store %arg10[%c0_157, %c0_158, %c144], %699 {strides = array<i32>} : memref<2x1x256xf32, #tpu.memory_space<vmem>>, vector<2x1x16xf32>,
    %701 = vector.extract_strided_slice %680 {offsets = [0, 10, 0], sizes = [2, 1, 16], strides = [1, 1, 1]} : vector<2x16x16xf32> to vector<2x1x16xf32>
    %c0_159 = arith.constant 0 : index
    %c0_160 = arith.constant 0 : index
    %c160 = arith.constant 160 : index
    %702 = vector.load %arg10[%c0_159, %c0_160, %c160] : memref<2x1x256xf32, #tpu.memory_space<vmem>>, vector<2x1x16xf32>
    tpu.vector_store %arg10[%c0_159, %c0_160, %c160], %701 {strides = array<i32>} : memref<2x1x256xf32, #tpu.memory_space<vmem>>, vector<2x1x16xf32>,
    %703 = vector.extract_strided_slice %680 {offsets = [0, 11, 0], sizes = [2, 1, 16], strides = [1, 1, 1]} : vector<2x16x16xf32> to vector<2x1x16xf32>
    %c0_161 = arith.constant 0 : index
    %c0_162 = arith.constant 0 : index
    %c176 = arith.constant 176 : index
    %704 = vector.load %arg10[%c0_161, %c0_162, %c176] : memref<2x1x256xf32, #tpu.memory_space<vmem>>, vector<2x1x16xf32>
    tpu.vector_store %arg10[%c0_161, %c0_162, %c176], %703 {strides = array<i32>} : memref<2x1x256xf32, #tpu.memory_space<vmem>>, vector<2x1x16xf32>,
    %705 = vector.extract_strided_slice %680 {offsets = [0, 12, 0], sizes = [2, 1, 16], strides = [1, 1, 1]} : vector<2x16x16xf32> to vector<2x1x16xf32>
    %c0_163 = arith.constant 0 : index
    %c0_164 = arith.constant 0 : index
    %c192 = arith.constant 192 : index
    %706 = vector.load %arg10[%c0_163, %c0_164, %c192] : memref<2x1x256xf32, #tpu.memory_space<vmem>>, vector<2x1x16xf32>
    tpu.vector_store %arg10[%c0_163, %c0_164, %c192], %705 {strides = array<i32>} : memref<2x1x256xf32, #tpu.memory_space<vmem>>, vector<2x1x16xf32>,
    %707 = vector.extract_strided_slice %680 {offsets = [0, 13, 0], sizes = [2, 1, 16], strides = [1, 1, 1]} : vector<2x16x16xf32> to vector<2x1x16xf32>
    %c0_165 = arith.constant 0 : index
    %c0_166 = arith.constant 0 : index
    %c208 = arith.constant 208 : index
    %708 = vector.load %arg10[%c0_165, %c0_166, %c208] : memref<2x1x256xf32, #tpu.memory_space<vmem>>, vector<2x1x16xf32>
    tpu.vector_store %arg10[%c0_165, %c0_166, %c208], %707 {strides = array<i32>} : memref<2x1x256xf32, #tpu.memory_space<vmem>>, vector<2x1x16xf32>,
    %709 = vector.extract_strided_slice %680 {offsets = [0, 14, 0], sizes = [2, 1, 16], strides = [1, 1, 1]} : vector<2x16x16xf32> to vector<2x1x16xf32>
    %c0_167 = arith.constant 0 : index
    %c0_168 = arith.constant 0 : index
    %c224 = arith.constant 224 : index
    %710 = vector.load %arg10[%c0_167, %c0_168, %c224] : memref<2x1x256xf32, #tpu.memory_space<vmem>>, vector<2x1x16xf32>
    tpu.vector_store %arg10[%c0_167, %c0_168, %c224], %709 {strides = array<i32>} : memref<2x1x256xf32, #tpu.memory_space<vmem>>, vector<2x1x16xf32>,
    %711 = vector.extract_strided_slice %680 {offsets = [0, 15, 0], sizes = [2, 1, 16], strides = [1, 1, 1]} : vector<2x16x16xf32> to vector<2x1x16xf32>
    %c0_169 = arith.constant 0 : index
    %c0_170 = arith.constant 0 : index
    %c240 = arith.constant 240 : index
    %712 = vector.load %arg10[%c0_169, %c0_170, %c240] : memref<2x1x256xf32, #tpu.memory_space<vmem>>, vector<2x1x16xf32>
    tpu.vector_store %arg10[%c0_169, %c0_170, %c240], %711 {strides = array<i32>} : memref<2x1x256xf32, #tpu.memory_space<vmem>>, vector<2x1x16xf32>,
    %c0_171 = arith.constant 0 : index
    %c0_172 = arith.constant 0 : index
    %c0_173 = arith.constant 0 : index
    %713 = vector.load %arg10[%c0_171, %c0_172, %c0_173] : memref<2x1x256xf32, #tpu.memory_space<vmem>>, vector<2x1x256xf32>
    %714 = vector.broadcast %713 : vector<2x1x256xf32> to vector<2x32x256xf32>
    %715 = arith.mulf %49, %714 : vector<2x32x256xf32>
    %c0_174 = arith.constant 0 : index
    %c0_175 = arith.constant 0 : index
    %c0_176 = arith.constant 0 : index
    %716 = vector.load %arg8[%c0_174, %c0_175, %c0_176] : memref<2x32x256xf32, #tpu.memory_space<vmem>>, vector<2x32x256xf32>
    tpu.vector_store %arg8[%c0_174, %c0_175, %c0_176], %715 {strides = array<i32>} : memref<2x32x256xf32, #tpu.memory_space<vmem>>, vector<2x32x256xf32>,
    return
  }
  func.func @transform_0(%arg0: i32) -> (i32, i32, i32) {
    %c0_i32 = arith.constant 0 : i32
    %c0_i32_0 = arith.constant 0 : i32
    %c0_i32_1 = arith.constant 0 : i32
    %c0_i32_2 = arith.constant 0 : i32
    return %c0_i32, %c0_i32_0, %c0_i32_1 : i32, i32, i32
  }
  func.func @transform_1(%arg0: i32) -> (i32, i32) {
    %c0_i32 = arith.constant 0 : i32
    %c0_i32_0 = arith.constant 0 : i32
    %c0_i32_1 = arith.constant 0 : i32
    return %c0_i32, %c0_i32_0 : i32, i32
  }
  func.func @transform_2(%arg0: i32) -> (i32, i32) {
    %c0_i32 = arith.constant 0 : i32
    %c0_i32_0 = arith.constant 0 : i32
    %c0_i32_1 = arith.constant 0 : i32
    return %c0_i32, %c0_i32_0 : i32, i32
  }
  func.func @transform_3(%arg0: i32) -> (i32, i32) {
    %c0_i32 = arith.constant 0 : i32
    %c0_i32_0 = arith.constant 0 : i32
    %c0_i32_1 = arith.constant 0 : i32
    return %c0_i32, %c0_i32_0 : i32, i32
  }
  func.func @transform_4(%arg0: i32) -> (i32, i32) {
    %c0_i32 = arith.constant 0 : i32
    %c0_i32_0 = arith.constant 0 : i32
    %c0_i32_1 = arith.constant 0 : i32
    return %c0_i32, %c0_i32_0 : i32, i32
  }
  func.func @transform_5(%arg0: i32) -> i32 {
    %c0_i32 = arith.constant 0 : i32
    %c0_i32_0 = arith.constant 0 : i32
    return %c0_i32 : i32
  }
  func.func @transform_6(%arg0: i32) -> i32 {
    %c0_i32 = arith.constant 0 : i32
    %c0_i32_0 = arith.constant 0 : i32
    return %c0_i32 : i32
  }
  func.func @transform_7(%arg0: i32) -> (i32, i32, i32) {
    %c0_i32 = arith.constant 0 : i32
    %c0_i32_0 = arith.constant 0 : i32
    %c0_i32_1 = arith.constant 0 : i32
    %c0_i32_2 = arith.constant 0 : i32
    return %c0_i32, %c0_i32_0, %c0_i32_1 : i32, i32, i32
  }
}

</mosaic_0001>

<bundles_post_ra>
// kernel: tpu_custom_call.1
= control target key start
LH: loop header
LB: loop body
LE: loop exit
PB: predicated region body
PF: predicated region fallthrough
CT: control target
= control target key end

     0   :  { %12 = vsyncpa [#allocation5], 0  ;;  %s9067_s0 = inlined_call_operand.hbm [shape: f32[2,32,256], index: 0, kind: input, shape index: {}]   ;;  %s9068_s1 = inlined_call_operand.vmem [shape: f32[32,2], index: 1, kind: input, shape index: {}]   ;;  %s9069_s2 = inlined_call_operand.vmem [shape: f32[1,2], index: 2, kind: input, shape index: {}]   ;;  %s9070_s3 = inlined_call_operand.vmem [shape: f32[32,2], index: 3, kind: input, shape index: {}]   ;;  %s9071_s4 = inlined_call_operand.vmem [shape: f32[32,1], index: 4, kind: input, shape index: {}]   ;;  %s9072_s5 = inlined_call_operand.vmem [shape: f32[98], index: 5, kind: input, shape index: {}]   ;;  %s9073_s6 = inlined_call_operand.vmem [shape: f32[2], index: 6, kind: input, shape index: {}]   ;;  %s9074_s7 = inlined_call_operand.hbm [shape: f32[2,32,256], index: 7, kind: output, shape index: {}]  }
   0x1   :  { %13 = vsyncpa [#allocation7], 0 }
   0x2   :  { %14 = vsyncpa [#allocation10], 0 }
   0x3   :  { %15 = vsyncpa [#allocation6], 0  ;;  %s20_s26 = sshll.u32 %s9067_s0, 4  ;;  %s5483_s27 = smov [#allocation4]   ;;  %s21_s26 = int_to_ptr.hbm [resolvable:$true] %s20_s26 }
   0x4   :  { %s22_s28 = sshll.u32 %s5483_s27, 4  ;;  %s42_s8 = sshll.u32 %s9072_s5, 4  ;;  %s23_s28 = int_to_ptr.vmem [resolvable:$true] %s22_s28  ;;  %s43_s8 = int_to_ptr.vmem [resolvable:$true] %s42_s8 }
   0x5   :  { %s5484_s9 = smov 256   ;;  %s5485_s10 = smov 16  }
   0x6   :  { %28 = dma.hbm_to_vmem [thread:$0]  %s21_s26, 2048, %s23_s28, [#allocation5], %s5484_s9, %s5484_s9, %s5485_s10  }
   0x7   :  { %s5486_s11 = smov [#allocation8]   ;;  %s51_s0 = sshll.u32 %s9073_s6, 4  ;;  %s52_s0 = int_to_ptr.vmem [resolvable:$true] %s51_s0 }
   0x8   :  { %45 = dma.vmem_to_smem %s43_s8, 16, %s5486_s11, [#allocation7]  }
   0x9   :  { %s5487_s14 = smov [#allocation9]  }
   0xa   :  { %54 = dma.vmem_to_smem %s52_s0, 16, %s5487_s14, [#allocation10]  }
   0xb   :  { %5475 = dma.done.wait [#allocation5], 2048  }
   0xc   :  { %5476 = vsyncadd [#allocation5], 4294965248 }
   0xd   :  { %5477 = dma.done.wait [#allocation7], 16  }
   0xe   :  { %5478 = vsyncadd [#allocation7], 4294967280 }
   0xf   :  { %5479 = dma.done.wait [#allocation10], 16  }
  0x10   :  { %5480 = vsyncadd [#allocation10], 4294967280 }
  0x11   :  { %67 = sfence }
  0x12   :  { %v76_v0 = vld [vmem:[#allocation4 + $0x40] sm:$0xff]  ;;  %v77_v1 = vld [vmem:[#allocation4 + $0x48] sm:$0xff]  ;;  %v78_v9 = vld [vmem:[#allocation4 + $0x50] sm:$0xff]  ;;  %v5488_v32 = vmov 0   ;;  %v5489_v39 = vmov 256.0   ;;  %vm256_vm1 = vcmask 15360  }
  0x13   :  { %v72_v2 = vld [vmem:[#allocation4 + $0x20] sm:$0xff]  ;;  %v96_v3 = vadd.f32 %v77_v1, %v76_v0  ;;  %v73_v4 = vld [vmem:[#allocation4 + $0x28] sm:$0xff]  ;;  %v79_v10 = vld [vmem:[#allocation4 + $0x58] sm:$0xff]  ;;  %v135_v30 = vmax.f32 %v76_v0, %v77_v1  ;;  %5265 = vset.pattern.permute.xlu1 %v5488_v32  ;;  %5267 = vset.pattern.permute.xlu2 %v5488_v32  ;;  %5268 = vrcp.f32 %v5489_v39  ;;  %s5492_s14 = smov 3   ;;  %s5493_s5 = smov 99  }
  0x14   :  { %v68_v5 = vld [vmem:[#allocation4] sm:$0xff]  ;;  %v69_v6 = vld [vmem:[#allocation4 + $0x8] sm:$0xff]  ;;  %v90_v7 = vadd.f32 %v73_v4, %v72_v2  ;;  %v74_v11 = vld [vmem:[#allocation4 + $0x30] sm:$0xff]  ;;  %v99_v15 = vadd.f32 %v79_v10, %v78_v9  ;;  %v129_v26 = vmax.f32 %v72_v2, %v73_v4  ;;  %v138_v29 = vmax.f32 %v78_v9, %v79_v10  ;;  %5266 = vset.pattern.permute.xlu0 %v5488_v32  ;;  %s5494_s6 = smov 67   ;;  %s5495_s15 = smov 83  }
  0x15   :  { %v84_v8 = vadd.f32 %v69_v6, %v68_v5  ;;  %97 = vadd.xlane.f32.xlu2 %v96_v3  ;;  %v75_v12 = vld [vmem:[#allocation4 + $0x38] sm:$0xff]  ;;  %v70_v13 = vld [vmem:[#allocation4 + $0x10] sm:$0xff]  ;;  %v80_v20 = vld [vmem:[#allocation4 + $0x60] sm:$0xff]  ;;  %v123_v22 = vmax.f32 %v68_v5, %v69_v6  ;;  %s5496_s16 = smov 51   ;;  %s5497_s17 = smov 19  }
  0x16   :  { %91 = vadd.xlane.f32.xlu1 %v90_v7  ;;  %v71_v14 = vld [vmem:[#allocation4 + $0x18] sm:$0xff]  ;;  %v93_v16 = vadd.f32 %v75_v12, %v74_v11  ;;  %v82_v18 = vld [vmem:[#allocation4 + $0x70] sm:$0xff]  ;;  %v81_v21 = vld [vmem:[#allocation4 + $0x68] sm:$0xff]  ;;  %v132_v25 = vmax.f32 %v74_v11, %v75_v12  ;;  %s5498_s18 = smov 35   ;;  %s5128_s19 = sld [smem:[#allocation8 + $0x1]] }
  0x17   :  { %85 = vadd.xlane.f32.xlu0 %v84_v8  ;;  %v87_v17 = vadd.f32 %v71_v14, %v70_v13  ;;  %v83_v19 = vld [vmem:[#allocation4 + $0x78] sm:$0xff]  ;;  %v102_v24 = vadd.f32 %v81_v21, %v80_v20  ;;  %v126_v27 = vmax.f32 %v70_v13, %v71_v14  ;;  %v141_v28 = vmax.f32 %v80_v20, %v81_v21  ;;  %v5572_v4 = vld [vmem:[%s9068_s1 + $0x10] sm:$0xff]  ;;  %v5580_v9 = vld [vmem:[%s9068_s1 + $0x18] sm:$0xff]  ;;  %s5500_s20 = smov 127   ;;  %s5501_s21 = smov 126  }
  0x18   :  { %v105_v23 = vadd.f32 %v83_v19, %v82_v18  ;;  %v144_v31 = vmax.f32 %v82_v18, %v83_v19  ;;  %v147_v3 = vld [vmem:[%s9068_s1] sm:$0xff]  ;;  %v148_v8 = vld [vmem:[%s9068_s1 + $0x8] sm:$0xff]  ;;  %s5129_s1 = sld [smem:[#allocation8 + $0x2]]  ;;  %s5502_s22 = smov 125  }
  0x19   :  { %v5269_v41 = vpop.eup %5268  ;;  %s5177_s23 = sld [smem:[#allocation8 + $0x32]] }
  0x1a   :  { %v109_v44 = vmul.f32 256.0, %v5269_v41  ;;  %vm113_vm0 = vweird.f32 %v5269_v41  ;;  %s5178_s24 = sld [smem:[#allocation8 + $0x33]] }
  0x1b   :  { %s5179_s25 = sld [smem:[#allocation8 + $0x34]] }
  0x1c   :  { %v110_v45 = vsub.f32 1.0, %v109_v44  ;;  %s5135_s26 = sld [smem:[#allocation8 + $0x8]] }
  0x1d   :  { %100 = vadd.xlane.f32.xlu2 %v99_v15  ;;  %s5142_s27 = sld [smem:[#allocation8 + $0xf]] }
  0x1e   :  { %94 = vadd.xlane.f32.xlu1 %v93_v16  ;;  %v111_v49 = vmul.f32 %v5269_v41, %v110_v45  ;;  %s5149_s28 = sld [smem:[#allocation8 + $0x16]] }
  0x1f   :  { %88 = vadd.xlane.f32.xlu0 %v87_v17  ;;  %s5163_s29 = sld [smem:[#allocation8 + $0x24]] }
  0x20   :  { %v112_v50 = vadd.f32 %v5269_v41, %v111_v49  ;;  %s5170_s30 = sld [smem:[#allocation8 + $0x2b]] }
  0x21   :  { %s5136_s8 = sld [smem:[#allocation8 + $0x9]] }
  0x22   :  { %v114_v54 = vsel %vm113_vm0, %v5269_v41, %v112_v50  ;;  %s5143_s11 = sld [smem:[#allocation8 + $0x10]] }
  0x23   :  { %s5150_s12 = sld [smem:[#allocation8 + $0x17]] }
  0x24   :  { %s5157_s13 = sld [smem:[#allocation8 + $0x1e]] }
  0x25   :  { %124 = vmax.xlane.f32.xlu2 %v123_v22  ;;  %s5164_s0 = sld [smem:[#allocation8 + $0x25]] }
  0x26   :  { %106 = vadd.xlane.f32.xlu1 %v105_v23 }
  0x27   :  { %103 = vadd.xlane.f32.xlu0 %v102_v24 }
  0x2d   :  { %133 = vmax.xlane.f32.xlu2 %v132_v25 }
  0x2e   :  { %130 = vmax.xlane.f32.xlu1 %v129_v26 }
  0x2f   :  { %127 = vmax.xlane.f32.xlu0 %v126_v27 }
  0x35   :  { %142 = vmax.xlane.f32.xlu2 %v141_v28 }
  0x36   :  { %139 = vmax.xlane.f32.xlu1 %v138_v29 }
  0x37   :  { %136 = vmax.xlane.f32.xlu0 %v135_v30 }
  0x3f   :  { %145 = vmax.xlane.f32.xlu0 %v144_v31 }
  0x88   :  { %v98_v33 = vpop.xlane.xlu2 %97 }
  0x89   :  { %v92_v34 = vpop.xlane.xlu1 %91  ;;  %v119_v58 = vmul.f32 %v114_v54, %v98_v33 }
  0x8a   :  { %v86_v35 = vpop.xlane.xlu0 %85  ;;  %v117_v59 = vmul.f32 %v114_v54, %v92_v34 }
  0x8b   :  { %v115_v55 = vmul.f32 %v114_v54, %v86_v35 }
  0x90   :  { %v101_v36 = vpop.xlane.xlu2 %100 }
  0x91   :  { %v95_v37 = vpop.xlane.xlu1 %94  ;;  %v120_v62 = vmul.f32 %v114_v54, %v101_v36 }
  0x92   :  { %v89_v38 = vpop.xlane.xlu0 %88  ;;  %v118_v60 = vmul.f32 %v114_v54, %v95_v37 }
  0x93   :  { %v116_v56 = vmul.f32 %v114_v54, %v89_v38 }
  0x98   :  { %v125_v40 = vpop.xlane.xlu2 %124 }
  0x99   :  { %v107_v42 = vpop.xlane.xlu1 %106  ;;  %202 = vperm.xlu1 %5265, %v125_v40  }
  0x9a   :  { %v104_v43 = vpop.xlane.xlu0 %103  ;;  %v122_v63 = vmul.f32 %v114_v54, %v107_v42  ;;  %v5596_v42 = vld [vmem:[%s9069_s2] sm:$0x1]  ;;  %s5130_s2 = sld [smem:[#allocation8 + $0x3]] }
  0x9b   :  { %v121_v61 = vmul.f32 %v114_v54, %v104_v43 }
  0xa0   :  { %v134_v46 = vpop.xlane.xlu2 %133 }
  0xa1   :  { %v131_v47 = vpop.xlane.xlu1 %130  ;;  %217 = vperm.xlu1 %5265, %v134_v46  }
  0xa2   :  { %v128_v48 = vpop.xlane.xlu0 %127  ;;  %212 = vperm.xlu2 %5267, %v131_v47  }
  0xa3   :  { %207 = vperm.xlu0 %5266, %v128_v48  }
  0xa8   :  { %v143_v51 = vpop.xlane.xlu2 %142 }
  0xa9   :  { %v140_v52 = vpop.xlane.xlu1 %139  ;;  %232 = vperm.xlu1 %5265, %v143_v51  }
  0xaa   :  { %v137_v53 = vpop.xlane.xlu0 %136  ;;  %227 = vperm.xlu2 %5267, %v140_v52  }
  0xab   :  { %222 = vperm.xlu0 %5266, %v137_v53  }
  0xb1   :  { %162 = vperm.xlu1 %5265, %v115_v55  }
  0xb2   :  { %v146_v57 = vpop.xlane.xlu0 %145  ;;  %167 = vperm.xlu2 %5267, %v116_v56  }
  0xb3   :  { %237 = vperm.xlu0 %5266, %v146_v57  }
  0xb9   :  { %182 = vperm.xlu1 %5265, %v119_v58  }
  0xba   :  { %177 = vperm.xlu2 %5267, %v118_v60  }
  0xbb   :  { %172 = vperm.xlu0 %5266, %v117_v59  }
  0xc1   :  { %192 = vperm.xlu1 %5265, %v121_v61  }
  0xc2   :  { %187 = vperm.xlu2 %5267, %v120_v62  }
  0xca   :  { %197 = vperm.xlu2 %5267, %v122_v63  }
  0xfc   :  { %v213_v0 = vpop.permute.xlu2 %212 }
  0xfd   :  { %v250_v11 = vmul.f32 %v213_v0, %v5572_v4 }
  0xff   :  { %v286_v17 = vsel %vm256_vm1, %v250_v11, 0.0 }
 0x104   :  { %v228_v1 = vpop.permute.xlu2 %227 }
 0x105   :  { %v253_v23 = vmul.f32 %v228_v1, %v148_v8 }
 0x107   :  { %v297_v29 = vsel %vm256_vm1, %v253_v23, 0.0 }
 0x10b   :  { %v203_v2 = vpop.permute.xlu1 %202 }
 0x10c   :  { %v248_v5 = vmul.f32 %v203_v2, %v147_v3  ;;  %v168_v6 = vpop.permute.xlu2 %167 }
 0x10d   :  { %v241_v46 = vmul.f32 %v168_v6, %v148_v8 }
 0x10e   :  { %v283_v13 = vsel %vm256_vm1, %v248_v5, 0.0 }
 0x10f   :  { %v258_v54 = vsel %vm256_vm1, %v241_v46, 0.0 }
 0x113   :  { %v218_v7 = vpop.permute.xlu1 %217 }
 0x114   :  { %v251_v14 = vmul.f32 %v218_v7, %v5580_v9  ;;  %v178_v24 = vpop.permute.xlu2 %177 }
 0x115   :  { %v208_v10 = vpop.permute.xlu0 %207  ;;  %v243_v55 = vmul.f32 %v178_v24, %v5580_v9 }
 0x116   :  { %v249_v12 = vmul.f32 %v208_v10, %v148_v8  ;;  %v288_v19 = vsel %vm256_vm1, %v251_v14, 0.0 }
 0x117   :  { %v262_v1 = vsel %vm256_vm1, %v243_v55, 0.0  ;;  %v5636_v55 = vld [vmem:[%s9070_s3 + $0x8] sm:$0xff] }
 0x118   :  { %v284_v15 = vsel %vm256_vm1, %v249_v12, 0.0 }
 0x119   :  { %v285_v16 = vadd.f32 %v284_v15, %v283_v13 }
 0x11b   :  { %v287_v18 = vadd.f32 %v286_v17, %v285_v16  ;;  %v233_v20 = vpop.permute.xlu1 %232 }
 0x11c   :  { %v254_v30 = vmul.f32 %v233_v20, %v5572_v4  ;;  %v188_v40 = vpop.permute.xlu2 %187 }
 0x11d   :  { %v289_v21 = vadd.f32 %v288_v19, %v287_v18  ;;  %v223_v22 = vpop.permute.xlu0 %222  ;;  %v245_v61 = vmul.f32 %v188_v40, %v148_v8 }
 0x11e   :  { %v252_v25 = vmul.f32 %v223_v22, %v147_v3  ;;  %v299_v36 = vsel %vm256_vm1, %v254_v30, 0.0 }
 0x11f   :  { %v290_v26 = vrot.slane %v289_v21, 4  ;;  %v271_v10 = vsel %vm256_vm1, %v245_v61, 0.0 }
 0x120   :  { %v296_v27 = vsel %vm256_vm1, %v252_v25, 0.0 }
 0x121   :  { %v291_v28 = vadd.f32 %v290_v26, %v289_v21  ;;  %v298_v32 = vadd.f32 %v297_v29, %v296_v27 }
 0x123   :  { %v292_v31 = vrot.slane %v291_v28, 2  ;;  %v163_v33 = vpop.permute.xlu1 %162  ;;  %v300_v39 = vadd.f32 %v299_v36, %v298_v32 }
 0x124   :  { %v240_v41 = vmul.f32 %v163_v33, %v147_v3  ;;  %v198_v2 = vpop.permute.xlu2 %197 }
 0x125   :  { %v293_v34 = vadd.f32 %v292_v31, %v291_v28  ;;  %v238_v35 = vpop.permute.xlu0 %237  ;;  %v247_v12 = vmul.f32 %v198_v2, %v5580_v9 }
 0x126   :  { %v255_v37 = vmul.f32 %v238_v35, %v5580_v9  ;;  %v257_v49 = vsel %vm256_vm1, %v240_v41, 0.0 }
 0x127   :  { %v294_v38 = vrot.slane %v293_v34, 1  ;;  %v259_v57 = vadd.f32 %v258_v54, %v257_v49  ;;  %v275_v21 = vsel %vm256_vm1, %v247_v12, 0.0  ;;  %v5631_v54 = vld [vmem:[%s9070_s3 + $0x10] sm:$0xff] }
 0x128   :  { %v301_v43 = vsel %vm256_vm1, %v255_v37, 0.0 }
 0x129   :  { %v295_v44 = vadd.f32 %v294_v38, %v293_v34  ;;  %v302_v45 = vadd.f32 %v301_v43, %v300_v39 }
 0x12b   :  { %v303_v47 = vrot.slane %v302_v45, 4  ;;  %v5600_v48 = vadd.f32 %v295_v44, %v5596_v42  ;;  %v183_v50 = vpop.permute.xlu1 %182 }
 0x12c   :  { %v244_v59 = vmul.f32 %v183_v50, %v147_v3 }
 0x12d   :  { %v304_v51 = vadd.f32 %v303_v47, %v302_v45  ;;  %v173_v52 = vpop.permute.xlu0 %172  ;;  %v315_v53 = vsub.f32 0.0, %v5600_v48 }
 0x12e   :  { %v242_v56 = vmul.f32 %v173_v52, %v5572_v4  ;;  %v270_v6 = vsel %vm256_vm1, %v244_v59, 0.0 }
 0x12f   :  { %v305_v58 = vrot.slane %v304_v51, 2  ;;  %v321_v60 = vmul.f32 1.442695, %v315_v53  ;;  %v272_v14 = vadd.f32 %v271_v10, %v270_v6  ;;  %v5652_v10 = vld [vmem:[%s9070_s3 + $0x18] sm:$0xff] }
 0x130   :  { %v260_v62 = vsel %vm256_vm1, %v242_v56, 0.0 }
 0x131   :  { %v306_v63 = vadd.f32 %v305_v58, %v304_v51  ;;  %v261_v0 = vadd.f32 %v260_v62, %v259_v57  ;;  %5270 = vpow2.f32 %v321_v60 }
 0x133   :  { %v307_v5 = vrot.slane %v306_v63, 1  ;;  %v263_v7 = vadd.f32 %v262_v1, %v261_v0  ;;  %v193_v11 = vpop.permute.xlu1 %192 }
 0x134   :  { %v246_v8 = vmul.f32 %v193_v11, %v5572_v4 }
 0x135   :  { %v308_v3 = vadd.f32 %v307_v5, %v306_v63  ;;  %v264_v13 = vrot.slane %v263_v7, 4 }
 0x136   :  { %v273_v18 = vsel %vm256_vm1, %v246_v8, 0.0 }
 0x137   :  { %v5271_v15 = vpop.eup %5270  ;;  %v5614_v16 = vadd.f32 %v308_v3, %v5596_v42  ;;  %v265_v17 = vadd.f32 %v264_v13, %v263_v7  ;;  %v274_v19 = vadd.f32 %v273_v18, %v272_v14 }
 0x138   :  { %v327_v20 = vadd.f32 1.0, %v5271_v15 }
 0x139   :  { %v316_v22 = vsub.f32 0.0, %v5614_v16  ;;  %v266_v23 = vrot.slane %v265_v17, 2  ;;  %v276_v9 = vadd.f32 %v275_v21, %v274_v19 }
 0x13a   :  { %5272 = vrcp.f32 %v327_v20  ;;  %v370_v39 = vand.u32 2147483648, %v327_v20  ;;  %v368_v41 = vand.u32 2147483647, %v327_v20  ;;  %vm364_vm3 = vweird.f32 %v327_v20 }
 0x13b   :  { %v323_v24 = vmul.f32 1.442695, %v316_v22  ;;  %v267_v25 = vadd.f32 %v266_v23, %v265_v17  ;;  %v277_v4 = vrot.slane %v276_v9, 4 }
 0x13c   :  { %v371_v46 = vor.u32 1.1754944e-38, %v370_v39  ;;  %vm369_vm5 = vcmp.eq.f32.partialorder %v368_v41, 8.507059e+37 }
 0x13d   :  { %5274 = vpow2.f32 %v323_v24  ;;  %v268_v26 = vrot.slane %v267_v25, 1  ;;  %v278_v27 = vadd.f32 %v277_v4, %v276_v9 }
 0x13f   :  { %v269_v28 = vadd.f32 %v268_v26, %v267_v25  ;;  %v279_v30 = vrot.slane %v278_v27, 2 }
 0x140   :  { %v5273_v29 = vpop.eup %5272 }
 0x141   :  { %v360_v31 = vmul.f32 %v5273_v29, %v327_v20  ;;  %v5620_v32 = vadd.f32 %v269_v28, %v5596_v42  ;;  %v280_v33 = vadd.f32 %v279_v30, %v278_v27  ;;  %vm365_vm2 = vweird.f32 %v5273_v29 }
 0x142   :  { %vm366_vm4 = vmor %vm364_vm3, %vm365_vm2 }
 0x143   :  { %v5275_v34 = vpop.eup %5274  ;;  %v361_v35 = vsub.f32 1.0, %v360_v31  ;;  %v313_v36 = vsub.f32 0.0, %v5620_v32  ;;  %v281_v38 = vrot.slane %v280_v33, 1 }
 0x144   :  { %v328_v37 = vadd.f32 1.0, %v5275_v34 }
 0x145   :  { %v362_v40 = vmul.f32 %v5273_v29, %v361_v35  ;;  %v317_v43 = vmul.f32 1.442695, %v313_v36  ;;  %v282_v44 = vadd.f32 %v281_v38, %v280_v33 }
 0x146   :  { %5276 = vrcp.f32 %v328_v37  ;;  %v385_v5 = vand.u32 2147483648, %v328_v37  ;;  %v383_v7 = vand.u32 2147483647, %v328_v37  ;;  %vm379_vm7 = vweird.f32 %v328_v37 }
 0x147   :  { %v363_v45 = vadd.f32 %v5273_v29, %v362_v40  ;;  %5278 = vpow2.f32 %v317_v43  ;;  %v5624_v47 = vadd.f32 %v282_v44, %v5596_v42  ;;  %v5641_v42 = vld [vmem:[%s9070_s3] sm:$0xff]  ;;  %s5156_s3 = sld [smem:[#allocation8 + $0x1d]] }
 0x148   :  { %v386_v3 = vor.u32 1.1754944e-38, %v385_v5  ;;  %vm384_vm9 = vcmp.eq.f32.partialorder %v383_v7, 8.507059e+37 }
 0x149   :  { %v367_v49 = vsel %vm366_vm4, %v5273_v29, %v363_v45  ;;  %v314_v51 = vsub.f32 0.0, %v5624_v47 }
 0x14a   :  { %v372_v50 = vsel %vm369_vm5, %v371_v46, %v367_v49 }
 0x14b   :  { %v391_v52 = vmul.f32 %v372_v50, %v5600_v48  ;;  %v319_v56 = vmul.f32 1.442695, %v314_v51 }
 0x14c   :  { %v5277_v53 = vpop.eup %5276 }
 0x14d   :  { %v5279_v57 = vpop.eup %5278  ;;  %v395_v58 = vperm.slane %v391_v52, 0  ;;  %v375_v48 = vmul.f32 %v5277_v53, %v328_v37  ;;  %5280 = vpow2.f32 %v319_v56  ;;  %vm380_vm6 = vweird.f32 %v5277_v53 }
 0x14e   :  { %v325_v59 = vadd.f32 1.0, %v5279_v57  ;;  %vm381_vm8 = vmor %vm379_vm7, %vm380_vm6 }
 0x14f   :  { %v407_v60 = vmul.f32 %v395_v58, %v5631_v54  ;;  %v406_v61 = vmul.f32 %v395_v58, %v5636_v55  ;;  %v405_v62 = vmul.f32 %v395_v58, %v5641_v42  ;;  %v376_v63 = vsub.f32 1.0, %v375_v48 }
 0x150   :  { %5282 = vrcp.f32 %v325_v59  ;;  %v408_v14 = vmul.f32 %v395_v58, %v5652_v10  ;;  %v340_v23 = vand.u32 2147483648, %v325_v59  ;;  %v338_v24 = vand.u32 2147483647, %v325_v59 }
 0x151   :  { %v443_v0 = vsel %vm256_vm1, %v407_v60, 0.0  ;;  %v440_v1 = vsel %vm256_vm1, %v406_v61, 0.0  ;;  %v437_v2 = vsel %vm256_vm1, %v405_v62, 0.0  ;;  %v377_v6 = vmul.f32 %v5277_v53, %v376_v63 }
 0x152   :  { %444 = vadd.xlane.f32.xlu1 %v443_v0  ;;  %441 = vadd.xlane.f32.xlu0 %v440_v1  ;;  %v446_v21 = vsel %vm256_vm1, %v408_v14, 0.0  ;;  %vm334_vm11 = vweird.f32 %v325_v59  ;;  %v341_v30 = vor.u32 1.1754944e-38, %v340_v23  ;;  %vm339_vm13 = vcmp.eq.f32.partialorder %v338_v24, 8.507059e+37 }
 0x153   :  { %438 = vadd.xlane.f32.xlu2 %v437_v2  ;;  %v5281_v11 = vpop.eup %5280  ;;  %v378_v12 = vadd.f32 %v5277_v53, %v377_v6 }
 0x154   :  { %v326_v13 = vadd.f32 1.0, %v5281_v11 }
 0x155   :  { %v382_v15 = vsel %vm381_vm8, %v5277_v53, %v378_v12 }
 0x156   :  { %v5283_v8 = vpop.eup %5282  ;;  %v387_v17 = vsel %vm384_vm9, %v386_v3, %v382_v15  ;;  %5284 = vrcp.f32 %v326_v13  ;;  %v355_v39 = vand.u32 2147483648, %v326_v13  ;;  %v353_v43 = vand.u32 2147483647, %v326_v13 }
 0x157   :  { %v330_v18 = vmul.f32 %v5283_v8, %v325_v59  ;;  %v392_v19 = vmul.f32 %v387_v17, %v5614_v16  ;;  %vm335_vm10 = vweird.f32 %v5283_v8  ;;  %vm349_vm15 = vweird.f32 %v326_v13 }
 0x158   :  { %vm336_vm12 = vmor %vm334_vm11, %vm335_vm10  ;;  %vm354_vm2 = vcmp.eq.f32.partialorder %v353_v43, 8.507059e+37 }
 0x159   :  { %v331_v20 = vsub.f32 1.0, %v330_v18  ;;  %v396_v22 = vperm.slane %v392_v19, 0 }
 0x15b   :  { %447 = vadd.xlane.f32.xlu2 %v446_v21  ;;  %v332_v9 = vmul.f32 %v5283_v8, %v331_v20  ;;  %v410_v25 = vmul.f32 %v396_v22, %v5636_v55  ;;  %v409_v4 = vmul.f32 %v396_v22, %v5641_v42  ;;  %v411_v29 = vmul.f32 %v396_v22, %v5631_v54  ;;  %v158_v21 = vld [vmem:[%s9071_s4 + $0x10] sm:$0xff] }
 0x15c   :  { %v5285_v26 = vpop.eup %5284  ;;  %v412_v38 = vmul.f32 %v396_v22, %v5652_v10 }
 0x15d   :  { %v333_v27 = vadd.f32 %v5283_v8, %v332_v9  ;;  %v452_v28 = vsel %vm256_vm1, %v410_v25, 0.0  ;;  %v449_v16 = vsel %vm256_vm1, %v409_v4, 0.0  ;;  %v345_v33 = vmul.f32 %v5285_v26, %v326_v13 }
 0x15e   :  { %453 = vadd.xlane.f32.xlu1 %v452_v28  ;;  %450 = vadd.xlane.f32.xlu0 %v449_v16  ;;  %v455_v37 = vsel %vm256_vm1, %v411_v29, 0.0  ;;  %vm350_vm14 = vweird.f32 %v5285_v26  ;;  %v458_v46 = vsel %vm256_vm1, %v412_v38, 0.0  ;;  %v159_v28 = vld [vmem:[%s9071_s4 + $0x18] sm:$0xff] }
 0x15f   :  { %v337_v31 = vsel %vm336_vm12, %v5283_v8, %v333_v27  ;;  %v346_v36 = vsub.f32 1.0, %v345_v33  ;;  %vm351_vm0 = vmor %vm349_vm15, %vm350_vm14  ;;  %v156_v8 = vld [vmem:[%s9071_s4] sm:$0xff] }
 0x160   :  { %v342_v34 = vsel %vm339_vm13, %v341_v30, %v337_v31 }
 0x161   :  { %v389_v35 = vmul.f32 %v342_v34, %v5620_v32  ;;  %v347_v41 = vmul.f32 %v5285_v26, %v346_v36  ;;  %v356_v32 = vor.u32 1.1754944e-38, %v355_v39 }
 0x163   :  { %456 = vadd.xlane.f32.xlu2 %v455_v37  ;;  %v393_v40 = vperm.slane %v389_v35, 0  ;;  %v348_v45 = vadd.f32 %v5285_v26, %v347_v41 }
 0x165   :  { %v398_v44 = vmul.f32 %v393_v40, %v5636_v55  ;;  %v397_v49 = vmul.f32 %v393_v40, %v5641_v42  ;;  %v352_v51 = vsel %vm351_vm0, %v5285_v26, %v348_v45  ;;  %v399_v57 = vmul.f32 %v393_v40, %v5631_v54 }
 0x166   :  { %459 = vadd.xlane.f32.xlu0 %v458_v46  ;;  %v357_v52 = vsel %vm354_vm2, %v356_v32, %v352_v51  ;;  %v400_v60 = vmul.f32 %v393_v40, %v5652_v10 }
 0x167   :  { %v416_v50 = vsel %vm256_vm1, %v398_v44, 0.0  ;;  %v390_v53 = vmul.f32 %v357_v52, %v5624_v47  ;;  %v413_v56 = vsel %vm256_vm1, %v397_v49, 0.0  ;;  %v419_v59 = vsel %vm256_vm1, %v399_v57, 0.0 }
 0x168   :  { %417 = vadd.xlane.f32.xlu1 %v416_v50  ;;  %v422_v62 = vsel %vm256_vm1, %v400_v60, 0.0 }
 0x169   :  { %v394_v58 = vperm.slane %v390_v53, 0 }
 0x16b   :  { %414 = vadd.xlane.f32.xlu2 %v413_v56  ;;  %v401_v48 = vmul.f32 %v394_v58, %v5641_v42  ;;  %v403_v47 = vmul.f32 %v394_v58, %v5631_v54  ;;  %v404_v63 = vmul.f32 %v394_v58, %v5652_v10  ;;  %v402_v1 = vmul.f32 %v394_v58, %v5636_v55  ;;  %v157_v10 = vld [vmem:[%s9071_s4 + $0x8] sm:$0xff]  ;;  %s5491_s4 = smov 115  }
 0x16d   :  { %v425_v61 = vsel %vm256_vm1, %v401_v48, 0.0  ;;  %v431_v0 = vsel %vm256_vm1, %v403_v47, 0.0  ;;  %v434_v42 = vsel %vm256_vm1, %v404_v63, 0.0  ;;  %v428_v2 = vsel %vm256_vm1, %v402_v1, 0.0 }
 0x16e   :  { %420 = vadd.xlane.f32.xlu0 %v419_v59 }
 0x170   :  { %426 = vadd.xlane.f32.xlu1 %v425_v61 }
 0x173   :  { %423 = vadd.xlane.f32.xlu2 %v422_v62 }
 0x176   :  { %432 = vadd.xlane.f32.xlu0 %v431_v0 }
 0x178   :  { %435 = vadd.xlane.f32.xlu1 %v434_v42 }
 0x17b   :  { %429 = vadd.xlane.f32.xlu2 %v428_v2 }
 0x1c5   :  { %v442_v6 = vpop.xlane.xlu0 %441  ;;  %v445_v7 = vpop.xlane.xlu1 %444 }
 0x1c6   :  { %v439_v5 = vpop.xlane.xlu2 %438  ;;  %v470_v14 = vadd.f32 %v442_v6, %v157_v10  ;;  %v471_v25 = vadd.f32 %v445_v7, %v158_v21 }
 0x1c7   :  { %v469_v19 = vadd.f32 %v439_v5, %v156_v8 }
 0x1ce   :  { %v448_v11 = vpop.xlane.xlu2 %447 }
 0x1cf   :  { %v472_v35 = vadd.f32 %v448_v11, %v159_v28 }
 0x1d1   :  { %v451_v12 = vpop.xlane.xlu0 %450  ;;  %v454_v54 = vpop.xlane.xlu1 %453 }
 0x1d2   :  { %v473_v16 = vadd.f32 %v451_v12, %v156_v8  ;;  %v474_v60 = vadd.f32 %v454_v54, %v157_v10 }
 0x1d6   :  { %v457_v3 = vpop.xlane.xlu2 %456 }
 0x1d7   :  { %v475_v43 = vadd.f32 %v457_v3, %v158_v21 }
 0x1d9   :  { %v460_v13 = vpop.xlane.xlu0 %459 }
 0x1da   :  { %v476_v51 = vadd.f32 %v460_v13, %v159_v28 }
 0x1db   :  { %v418_v55 = vpop.xlane.xlu1 %417 }
 0x1dc   :  { %v462_v15 = vadd.f32 %v418_v55, %v157_v10 }
 0x1de   :  { %v478_v17 = vadd.f32 %v470_v14, %v462_v15  ;;  %v415_v18 = vpop.xlane.xlu2 %414 }
 0x1df   :  { %v461_v20 = vadd.f32 %v415_v18, %v156_v8 }
 0x1e0   :  { %v486_v22 = vsub.f32 0.0, %v478_v17 }
 0x1e1   :  { %v477_v23 = vadd.f32 %v469_v19, %v461_v20  ;;  %v421_v24 = vpop.xlane.xlu0 %420 }
 0x1e2   :  { %v495_v9 = vmul.f32 1.442695, %v486_v22  ;;  %v463_v26 = vadd.f32 %v421_v24, %v158_v21 }
 0x1e3   :  { %v485_v4 = vsub.f32 0.0, %v477_v23  ;;  %v427_v27 = vpop.xlane.xlu1 %426 }
 0x1e4   :  { %5286 = vpow2.f32 %v495_v9  ;;  %v465_v29 = vadd.f32 %v427_v27, %v156_v8  ;;  %v479_v31 = vadd.f32 %v471_v25, %v463_v26 }
 0x1e5   :  { %v493_v30 = vmul.f32 1.442695, %v485_v4 }
 0x1e6   :  { %v481_v33 = vadd.f32 %v473_v16, %v465_v29  ;;  %v424_v34 = vpop.xlane.xlu2 %423  ;;  %v487_v36 = vsub.f32 0.0, %v479_v31 }
 0x1e7   :  { %5288 = vpow2.f32 %v493_v30  ;;  %v464_v37 = vadd.f32 %v424_v34, %v159_v28 }
 0x1e8   :  { %v489_v38 = vsub.f32 0.0, %v481_v33  ;;  %v497_v39 = vmul.f32 1.442695, %v487_v36 }
 0x1e9   :  { %v480_v40 = vadd.f32 %v472_v35, %v464_v37  ;;  %v433_v45 = vpop.xlane.xlu0 %432 }
 0x1ea   :  { %v5287_v41 = vpop.eup %5286  ;;  %v501_v44 = vmul.f32 1.442695, %v489_v38  ;;  %5290 = vpow2.f32 %v497_v39  ;;  %v467_v32 = vadd.f32 %v433_v45, %v158_v21 }
 0x1eb   :  { %v510_v46 = vadd.f32 1.0, %v5287_v41  ;;  %v488_v49 = vsub.f32 0.0, %v480_v40  ;;  %v436_v50 = vpop.xlane.xlu1 %435 }
 0x1ec   :  { %5292 = vpow2.f32 %v501_v44  ;;  %v468_v52 = vadd.f32 %v436_v50, %v159_v28  ;;  %v483_v57 = vadd.f32 %v475_v43, %v467_v32 }
 0x1ed   :  { %v5289_v53 = vpop.eup %5288  ;;  %5294 = vrcp.f32 %v510_v46  ;;  %v499_v56 = vmul.f32 1.442695, %v488_v49  ;;  %v543_v13 = vand.u32 2147483648, %v510_v46  ;;  %vm537_vm3 = vweird.f32 %v510_v46 }
 0x1ee   :  { %v5695_v58 = vadd.f32 1.0, %v5289_v53  ;;  %v484_v48 = vadd.f32 %v476_v51, %v468_v52  ;;  %v430_v59 = vpop.xlane.xlu2 %429  ;;  %v491_v61 = vsub.f32 0.0, %v483_v57 }
 0x1ef   :  { %5296 = vpow2.f32 %v499_v56  ;;  %v466_v62 = vadd.f32 %v430_v59, %v157_v10  ;;  %v541_v10 = vand.u32 2147483647, %v510_v46  ;;  %v544_v22 = vor.u32 1.1754944e-38, %v543_v13 }
 0x1f0   :  { %5298 = vrcp.f32 %v5695_v58  ;;  %v492_v47 = vsub.f32 0.0, %v484_v48  ;;  %v5291_v63 = vpop.eup %5290  ;;  %v505_v0 = vmul.f32 1.442695, %v491_v61  ;;  %v526_v15 = vand.u32 2147483647, %v5695_v58 }
 0x1f1   :  { %v482_v1 = vadd.f32 %v474_v60, %v466_v62  ;;  %v5698_v2 = vadd.f32 1.0, %v5291_v63  ;;  %v528_v18 = vand.u32 2147483648, %v5695_v58  ;;  %vm5710_vm4 = vcmp.eq.f32.partialorder %v541_v10, 8.507059e+37  ;;  %v5346_v10 = vld [vmem:[#allocation4 + $0x60] sm:$0xff] }
 0x1f2   :  { %v5293_v42 = vpop.eup %5292  ;;  %v507_v5 = vmul.f32 1.442695, %v492_v47  ;;  %5300 = vpow2.f32 %v505_v0  ;;  %vm522_vm5 = vweird.f32 %v5695_v58  ;;  %vm5717_vm6 = vcmp.eq.f32.partialorder %v526_v15, 8.507059e+37 }
 0x1f3   :  { %v5295_v6 = vpop.eup %5294  ;;  %v5700_v7 = vadd.f32 1.0, %v5293_v42  ;;  %v490_v11 = vsub.f32 0.0, %v482_v1  ;;  %5302 = vrcp.f32 %v5698_v2  ;;  %v529_v28 = vor.u32 1.1754944e-38, %v528_v18 }
 0x1f4   :  { %v533_v12 = vmul.f32 %v5295_v6, %v510_v46  ;;  %vm538_vm1 = vweird.f32 %v5295_v6  ;;  %v556_v31 = vand.u32 2147483647, %v5698_v2  ;;  %v558_v41 = vand.u32 2147483648, %v5698_v2 }
 0x1f5   :  { %v5297_v54 = vpop.eup %5296  ;;  %5304 = vrcp.f32 %v5700_v7  ;;  %v503_v3 = vmul.f32 1.442695, %v490_v11  ;;  %vm539_vm7 = vmor %vm537_vm3, %vm538_vm1  ;;  %vm552_vm11 = vweird.f32 %v5698_v2  ;;  %v586_v61 = vand.u32 2147483647, %v5700_v7 }
 0x1f6   :  { %v5299_v55 = vpop.eup %5298  ;;  %v5704_v8 = vadd.f32 1.0, %v5297_v54  ;;  %5306 = vpow2.f32 %v507_v5  ;;  %v534_v14 = vsub.f32 1.0, %v533_v12  ;;  %vm557_vm13 = vcmp.eq.f32.partialorder %v556_v31, 8.507059e+37 }
 0x1f7   :  { %5308 = vpow2.f32 %v503_v3  ;;  %v518_v17 = vmul.f32 %v5299_v55, %v5695_v58  ;;  %vm523_vm8 = vweird.f32 %v5299_v55  ;;  %v559_v53 = vor.u32 1.1754944e-38, %v558_v41 }
 0x1f8   :  { %5310 = vrcp.f32 %v5704_v8  ;;  %v535_v19 = vmul.f32 %v5295_v6, %v534_v14  ;;  %v5301_v20 = vpop.eup %5300  ;;  %vm524_vm9 = vmor %vm522_vm5, %vm523_vm8  ;;  %v571_v56 = vand.u32 2147483647, %v5704_v8  ;;  %v573_v57 = vand.u32 2147483648, %v5704_v8 }
 0x1f9   :  { %v519_v23 = vsub.f32 1.0, %v518_v17  ;;  %v5303_v9 = vpop.eup %5302  ;;  %v5714_v24 = vadd.f32 1.0, %v5301_v20  ;;  %vm567_vm15 = vweird.f32 %v5704_v8  ;;  %v588_v62 = vand.u32 2147483648, %v5700_v7 }
 0x1fa   :  { %v536_v25 = vadd.f32 %v5295_v6, %v535_v19  ;;  %v548_v16 = vmul.f32 %v5303_v9, %v5698_v2  ;;  %vm553_vm10 = vweird.f32 %v5303_v9  ;;  %v574_v2 = vor.u32 1.1754944e-38, %v573_v57 }
 0x1fb   :  { %v5721_v26 = vpop.eup %5304  ;;  %v520_v27 = vmul.f32 %v5299_v55, %v519_v23  ;;  %5312 = vrcp.f32 %v5714_v24  ;;  %vm554_vm12 = vmor %vm552_vm11, %vm553_vm10  ;;  %vm582_vm1 = vweird.f32 %v5700_v7  ;;  %vm572_vm3 = vcmp.eq.f32.partialorder %v571_v56, 8.507059e+37  ;;  %v5343_v56 = vld [vmem:[#allocation4 + $0x30] sm:$0xff] }
 0x1fc   :  { %v5307_v29 = vpop.eup %5306  ;;  %v540_v30 = vsel %vm539_vm7, %v5295_v6, %v536_v25  ;;  %v578_v33 = vmul.f32 %v5721_v26, %v5700_v7  ;;  %v549_v38 = vsub.f32 1.0, %v548_v16  ;;  %vm583_vm0 = vweird.f32 %v5721_v26 }
 0x1fd   :  { %v5309_v34 = vpop.eup %5308  ;;  %v5728_v35 = vadd.f32 1.0, %v5307_v29  ;;  %v545_v36 = vsel %vm5710_vm4, %v544_v22, %v540_v30  ;;  %v521_v37 = vadd.f32 %v5299_v55, %v520_v27  ;;  %vm5761_vm4 = vmor %vm582_vm1, %vm583_vm0  ;;  %vm5765_vm5 = vcmp.eq.f32.partialorder %v586_v61, 8.507059e+37 }
 0x1fe   :  { %v5311_v39 = vpop.eup %5310  ;;  %v5732_v40 = vadd.f32 1.0, %v5309_v34  ;;  %644 = vperm.xlu2 %5267, %v545_v36   ;;  %v579_v43 = vsub.f32 1.0, %v578_v33  ;;  %v550_v45 = vmul.f32 %v5303_v9, %v549_v38  ;;  %v589_v13 = vor.u32 1.1754944e-38, %v588_v62 }
 0x1ff   :  { %5314 = vrcp.f32 %v5728_v35  ;;  %v525_v44 = vsel %vm524_vm9, %v5299_v55, %v521_v37  ;;  %v563_v46 = vmul.f32 %v5311_v39, %v5704_v8  ;;  %vm568_vm14 = vweird.f32 %v5311_v39 }
 0x200   :  { %5316 = vrcp.f32 %v5732_v40  ;;  %v530_v49 = vsel %vm5717_vm6, %v529_v28, %v525_v44  ;;  %v551_v32 = vadd.f32 %v5303_v9, %v550_v45  ;;  %v580_v51 = vmul.f32 %v5721_v26, %v579_v43  ;;  %vm569_vm2 = vmor %vm567_vm15, %vm568_vm14  ;;  %v5341_v43 = vld [vmem:[#allocation4 + $0x10] sm:$0xff]  ;;  %v5342_v45 = vld [vmem:[#allocation4 + $0x20] sm:$0xff] }
 0x201   :  { %639 = vperm.xlu1 %5265, %v530_v49   ;;  %v564_v50 = vsub.f32 1.0, %v563_v46  ;;  %v5745_v52 = vpop.eup %5312  ;;  %v601_v15 = vand.u32 2147483647, %v5732_v40  ;;  %v603_v17 = vand.u32 2147483648, %v5732_v40  ;;  %v618_v18 = vand.u32 2147483648, %v5714_v24 }
 0x202   :  { %v555_v58 = vsel %vm554_vm12, %v5303_v9, %v551_v32  ;;  %v608_v59 = vmul.f32 %v5745_v52, %v5714_v24  ;;  %v581_v0 = vadd.f32 %v5721_v26, %v580_v51  ;;  %vm613_vm6 = vweird.f32 %v5745_v52 }
 0x203   :  { %v565_v48 = vmul.f32 %v5311_v39, %v564_v50  ;;  %v560_v60 = vsel %vm557_vm13, %v559_v53, %v555_v58  ;;  %vm612_vm8 = vweird.f32 %v5714_v24  ;;  %v616_v21 = vand.u32 2147483647, %v5714_v24 }
 0x204   :  { %649 = vperm.xlu0 %5266, %v560_v60   ;;  %v609_v1 = vsub.f32 1.0, %v608_v59  ;;  %v585_v7 = vsel %vm5761_vm4, %v5721_v26, %v581_v0  ;;  %vm597_vm9 = vweird.f32 %v5732_v40  ;;  %vm5782_vm10 = vmor %vm612_vm8, %vm613_vm6  ;;  %vm602_vm13 = vcmp.eq.f32.partialorder %v601_v15, 8.507059e+37 }
 0x205   :  { %v5315_v47 = vpop.eup %5314  ;;  %v566_v63 = vadd.f32 %v5311_v39, %v565_v48  ;;  %v590_v22 = vsel %vm5765_vm5, %v589_v13, %v585_v7  ;;  %v604_v24 = vor.u32 1.1754944e-38, %v603_v17  ;;  %v619_v26 = vor.u32 1.1754944e-38, %v618_v18 }
 0x206   :  { %v5317_v42 = vpop.eup %5316  ;;  %v623_v5 = vmul.f32 %v5315_v47, %v5728_v35  ;;  %v610_v12 = vmul.f32 %v5745_v52, %v609_v1  ;;  %vm628_vm11 = vweird.f32 %v5315_v47  ;;  %v633_v27 = vand.u32 2147483648, %v5728_v35 }
 0x207   :  { %v570_v6 = vsel %vm569_vm2, %v5311_v39, %v566_v63  ;;  %v593_v11 = vmul.f32 %v5317_v42, %v5732_v40  ;;  %vm598_vm7 = vweird.f32 %v5317_v42  ;;  %vm617_vm14 = vcmp.eq.f32.partialorder %v616_v21, 8.507059e+37  ;;  %v5340_v40 = vld [vmem:[#allocation4] sm:$0xff] }
 0x208   :  { %v575_v54 = vsel %vm572_vm3, %v574_v2, %v570_v6  ;;  %v624_v55 = vsub.f32 1.0, %v623_v5  ;;  %v611_v14 = vadd.f32 %v5745_v52, %v610_v12  ;;  %vm599_vm12 = vmor %vm597_vm9, %vm598_vm7  ;;  %vm627_vm15 = vweird.f32 %v5728_v35  ;;  %v5345_v12 = vld [vmem:[#allocation4 + $0x50] sm:$0xff] }
 0x209   :  { %654 = vperm.xlu1 %5265, %v575_v54   ;;  %v594_v8 = vsub.f32 1.0, %v593_v11  ;;  %v631_v16 = vand.u32 2147483647, %v5728_v35  ;;  %vm629_vm0 = vmor %vm627_vm15, %vm628_vm11  ;;  %v634_v33 = vor.u32 1.1754944e-38, %v633_v27  ;;  %v5490_v36 = vmov 32.0  }
 0x20a   :  { %v625_v19 = vmul.f32 %v5315_v47, %v624_v55  ;;  %v615_v25 = vsel %vm5782_vm10, %v5745_v52, %v611_v14  ;;  %5318 = vrcp.f32 %v5490_v36  ;;  %vm776_vm3 = vcmask 1040384  }
 0x20b   :  { %v595_v20 = vmul.f32 %v5317_v42, %v594_v8  ;;  %v620_v30 = vsel %vm617_vm14, %v619_v26, %v615_v25  ;;  %vm632_vm2 = vcmp.eq.f32.partialorder %v631_v16, 8.507059e+37  ;;  %vm781_vm4 = vcmask 179200  }
 0x20c   :  { %659 = vperm.xlu0 %5266, %v590_v22   ;;  %v626_v4 = vadd.f32 %v5315_v47, %v625_v19  ;;  %v5347_v22 = vld [vmem:[#allocation4 + $0x70] sm:$0xff]  ;;  %vm815_vm5 = vcmask 147480   ;;  %vm784_vm6 = vcmask 177152   ;;  %vm1209_vm7 = vcmask 1046528  }
 0x20d   :  { %v596_v9 = vadd.f32 %v5317_v42, %v595_v20  ;;  %vm1272_vm8 = vcmask 1045504   ;;  %vm1335_vm9 = vcmask 1044480   ;;  %vm1398_vm10 = vcmask 1043456  }
 0x20e   :  { %v630_v31 = vsel %vm629_vm0, %v5315_v47, %v626_v4  ;;  %vm1461_vm11 = vcmask 1042432  }
 0x20f   :  { %v600_v28 = vsel %vm599_vm12, %v5317_v42, %v596_v9  ;;  %v635_v34 = vsel %vm632_vm2, %v634_v33, %v630_v31  ;;  %v5344_v42 = vld [vmem:[#allocation4 + $0x40] sm:$0xff]  ;;  %v5348_v33 = vld [vmem:[#allocation4 + $0x48] sm:$0xff]  ;;  %vm1524_vm12 = vcmask 1041408  }
 0x210   :  { %v605_v29 = vsel %vm602_vm13, %v604_v24, %v600_v28  ;;  %v5319_v39 = vpop.eup %5318  ;;  %vm4682_vm13 = vcmask 130048  }
 0x211   :  { %664 = vperm.xlu2 %5267, %v605_v29   ;;  %669 = vperm.xlu1 %5265, %v620_v30   ;;  %v730_v49 = vmul.f32 32.0, %v5319_v39  ;;  %vm734_vm1 = vweird.f32 %v5319_v39 }
 0x213   :  { %v731_v58 = vsub.f32 1.0, %v730_v49 }
 0x214   :  { %674 = vperm.xlu0 %5266, %v635_v34  }
 0x215   :  { %v732_v47 = vmul.f32 %v5319_v39, %v731_v58 }
 0x217   :  { %v733_v3 = vadd.f32 %v5319_v39, %v732_v47 }
 0x219   :  { %v5830_v19 = vsel %vm734_vm1, %v5319_v39, %v733_v3 }
 0x258   :  { %v5794_v38 = vpop.permute.xlu2 %644 }
 0x259   :  { %v5802_v44 = vmul.f32 %v5341_v43, %v5794_v38 }
 0x25b   :  { %9109 = vst [vmem:[#allocation17_spill] sm:$0xff] %v5802_v44 }
 0x26b   :  { %v665_v63 = vpop.permute.xlu2 %664 }
 0x26c   :  { %v5822_v54 = vmul.f32 %v5345_v12, %v665_v63 }
 0x26e   :  { %9113 = vst [vmem:[#allocation21_spill] sm:$0xff] %v5822_v54 }
 0x273   :  { %v5792_v37 = vpop.permute.xlu1 %639 }
 0x274   :  { %v5797_v35 = vmul.f32 %v5340_v40, %v5792_v37  ;;  %v5349_v40 = vld [vmem:[#allocation4 + $0x58] sm:$0xff] }
 0x275   :  { %v5851_v43 = vmul.f32 %v5349_v40, %v665_v63 }
 0x276   :  { %9108 = vst [vmem:[#allocation16_spill] sm:$0xff] %v5797_v35  ;;  %v5799_v41 = vpop.permute.xlu0 %649  ;;  %v693_v32 = vadd.f32 %v5802_v44, %v5797_v35  ;;  %v740_v50 = vmax.f32 %v5797_v35, %v5802_v44 }
 0x277   :  { %v5805_v46 = vmul.f32 %v5342_v45, %v5799_v41  ;;  %9117 = vst [vmem:[#allocation25_spill] sm:$0xff] %v5851_v43  ;;  %v5350_v45 = vld [vmem:[#allocation4 + $0x68] sm:$0xff] }
 0x279   :  { %9110 = vst [vmem:[#allocation18_spill] sm:$0xff] %v5805_v46  ;;  %v694_v52 = vadd.f32 %v693_v32, %v5805_v46  ;;  %v741_v53 = vmax.f32 %v740_v50, %v5805_v46 }
 0x27b   :  { %v5811_v51 = vpop.permute.xlu1 %654 }
 0x27c   :  { %v5816_v57 = vmul.f32 %v5343_v56, %v5811_v51 }
 0x27e   :  { %9111 = vst [vmem:[#allocation19_spill] sm:$0xff] %v5816_v57  ;;  %v695_v48 = vadd.f32 %v694_v52, %v5816_v57  ;;  %v742_v59 = vmax.f32 %v741_v53, %v5816_v57  ;;  %v660_v60 = vpop.permute.xlu0 %659  ;;  %v5351_v53 = vld [vmem:[#allocation4 + $0x78] sm:$0xff] }
 0x27f   :  { %v5820_v2 = vmul.f32 %v5344_v42, %v660_v60  ;;  %v5849_v34 = vmul.f32 %v5348_v33, %v660_v60 }
 0x280   :  { %v696_v61 = vrot.slane %v695_v48, 4  ;;  %v743_v62 = vrot.slane %v742_v59, 4 }
 0x281   :  { %9112 = vst [vmem:[#allocation20_spill] sm:$0xff] %v5820_v2  ;;  %v711_v8 = vadd.f32 %v5822_v54, %v5820_v2  ;;  %v758_v14 = vmax.f32 %v5820_v2, %v5822_v54  ;;  %v720_v52 = vadd.f32 %v5851_v43, %v5849_v34 }
 0x282   :  { %v697_v0 = vadd.f32 %v696_v61, %v695_v48  ;;  %v744_v1 = vmax.f32 %v742_v59, %v743_v62  ;;  %9116 = vst [vmem:[#allocation24_spill] sm:$0xff] %v5849_v34  ;;  %v5352_v61 = vld [vmem:[#allocation4 + $0x8] sm:$0xff] }
 0x283   :  { %v670_v5 = vpop.permute.xlu1 %669  ;;  %v5861_v62 = vmul.f32 %v5352_v61, %v5792_v37 }
 0x284   :  { %v698_v6 = vrot.slane %v697_v0, 2  ;;  %v745_v11 = vrot.slane %v744_v1, 2  ;;  %v5824_v13 = vmul.f32 %v5346_v10, %v670_v5  ;;  %v5853_v49 = vmul.f32 %v5350_v45, %v670_v5  ;;  %v5354_v5 = vld [vmem:[#allocation4 + $0x28] sm:$0xff]  ;;  %v5355_v10 = vld [vmem:[#allocation4 + $0x38] sm:$0xff] }
 0x285   :  { %9120 = vst [vmem:[#allocation28_spill] sm:$0xff] %v5861_v62 }
 0x286   :  { %9114 = vst [vmem:[#allocation22_spill] sm:$0xff] %v5824_v13  ;;  %v699_v55 = vadd.f32 %v698_v6, %v697_v0  ;;  %v746_v7 = vmax.f32 %v744_v1, %v745_v11  ;;  %v675_v15 = vpop.permute.xlu0 %674  ;;  %v712_v20 = vadd.f32 %v711_v8, %v5824_v13  ;;  %v759_v21 = vmax.f32 %v758_v14, %v5824_v13  ;;  %v5353_v1 = vld [vmem:[#allocation4 + $0x18] sm:$0xff] }
 0x287   :  { %v5834_v23 = vmul.f32 %v5347_v22, %v675_v15  ;;  %9118 = vst [vmem:[#allocation26_spill] sm:$0xff] %v5853_v49  ;;  %v5857_v56 = vmul.f32 %v5351_v53, %v675_v15  ;;  %v721_v59 = vadd.f32 %v720_v52, %v5853_v49  ;;  %v5866_v42 = vmul.f32 %v5353_v1, %v5794_v38 }
 0x288   :  { %v700_v17 = vrot.slane %v699_v55, 1  ;;  %v747_v18 = vrot.slane %v746_v7, 1  ;;  %v5869_v6 = vmul.f32 %v5354_v5, %v5799_v41  ;;  %v767_v11 = vmax.f32 %v5849_v34, %v5851_v43 }
 0x289   :  { %9115 = vst [vmem:[#allocation23_spill] sm:$0xff] %v5834_v23  ;;  %v713_v25 = vadd.f32 %v712_v20, %v5834_v23  ;;  %v760_v4 = vmax.f32 %v759_v21, %v5834_v23  ;;  %v722_v47 = vadd.f32 %v721_v59, %v5857_v56  ;;  %v702_v3 = vadd.f32 %v5866_v42, %v5861_v62 }
 0x28a   :  { %v701_v9 = vadd.f32 %v700_v17, %v699_v55  ;;  %v748_v26 = vmax.f32 %v746_v7, %v747_v18  ;;  %9119 = vst [vmem:[#allocation27_spill] sm:$0xff] %v5857_v56  ;;  %v5880_v55 = vmul.f32 %v5355_v10, %v5811_v51  ;;  %v768_v38 = vmax.f32 %v767_v11, %v5853_v49 }
 0x28b   :  { %v714_v27 = vrot.slane %v713_v25, 4  ;;  %v761_v28 = vrot.slane %v760_v4, 4  ;;  %9121 = vst [vmem:[#allocation29_spill] sm:$0xff] %v5866_v42  ;;  %v723_v7 = vrot.slane %v722_v47, 4  ;;  %v703_v41 = vadd.f32 %v702_v3, %v5869_v6 }
 0x28c   :  { %v736_v24 = vmul.f32 %v5830_v19, %v701_v9  ;;  %9122 = vst [vmem:[#allocation30_spill] sm:$0xff] %v5869_v6  ;;  %v769_v8 = vmax.f32 %v768_v38, %v5857_v56  ;;  %v749_v51 = vmax.f32 %v5861_v62, %v5866_v42 }
 0x28d   :  { %v715_v30 = vadd.f32 %v714_v27, %v713_v25  ;;  %v762_v31 = vmax.f32 %v760_v4, %v761_v28  ;;  %9123 = vst [vmem:[#allocation31_spill] sm:$0xff] %v5880_v55  ;;  %v704_v14 = vadd.f32 %v703_v41, %v5880_v55  ;;  %v724_v15 = vadd.f32 %v723_v7, %v722_v47 }
 0x28e   :  { %v5840_v16 = vsel %vm776_vm3, %v736_v24, %v748_v26  ;;  %v770_v17 = vrot.slane %v769_v8, 4  ;;  %v750_v18 = vmax.f32 %v749_v51, %v5869_v6 }
 0x28f   :  { %v5843_v29 = vperm.slane %v5840_v16, 0  ;;  %v716_v36 = vrot.slane %v715_v30, 2  ;;  %v763_v39 = vrot.slane %v762_v31, 2  ;;  %v705_v20 = vrot.slane %v704_v14, 4 }
 0x290   :  { %v725_v21 = vrot.slane %v724_v15, 2  ;;  %v751_v22 = vmax.f32 %v750_v18, %v5880_v55  ;;  %v771_v9 = vmax.f32 %v769_v8, %v770_v17 }
 0x291   :  { %820 = vrot.lane.b32.xlu1 %v5843_v29, %s5491_s4  ;;  %803 = vrot.lane.b32.xlu2 %v5843_v29, %s5492_s14  ;;  %v717_v32 = vadd.f32 %v716_v36, %v715_v30  ;;  %v764_v50 = vmax.f32 %v762_v31, %v763_v39  ;;  %v706_v25 = vadd.f32 %v705_v20, %v704_v14 }
 0x292   :  { %v726_v4 = vadd.f32 %v725_v21, %v724_v15  ;;  %v752_v24 = vrot.slane %v751_v22, 4  ;;  %v772_v26 = vrot.slane %v771_v9, 2 }
 0x293   :  { %v718_v58 = vrot.slane %v717_v32, 1  ;;  %v765_v48 = vrot.slane %v764_v50, 1  ;;  %v707_v27 = vrot.slane %v706_v25, 2 }
 0x294   :  { %v727_v28 = vrot.slane %v726_v4, 1  ;;  %v753_v30 = vmax.f32 %v751_v22, %v752_v24  ;;  %v773_v31 = vmax.f32 %v771_v9, %v772_v26 }
 0x295   :  { %v719_v60 = vadd.f32 %v718_v58, %v717_v32  ;;  %v766_v0 = vmax.f32 %v764_v50, %v765_v48  ;;  %v708_v33 = vadd.f32 %v707_v27, %v706_v25 }
 0x296   :  { %v728_v36 = vadd.f32 %v727_v28, %v726_v4  ;;  %v754_v39 = vrot.slane %v753_v30, 2  ;;  %v774_v40 = vrot.slane %v773_v31, 1 }
 0x297   :  { %v738_v63 = vmul.f32 %v5830_v19, %v719_v60  ;;  %v709_v45 = vrot.slane %v708_v33, 1 }
 0x298   :  { %v739_v32 = vmul.f32 %v5830_v19, %v728_v36  ;;  %v755_v50 = vmax.f32 %v753_v30, %v754_v39  ;;  %v775_v52 = vmax.f32 %v773_v31, %v774_v40  ;;  %v1574_v36 = vstv %s5128_s19  ;;  %s5185_s19 = sld [smem:[#allocation8 + $0x3a]] }
 0x299   :  { %v5874_v12 = vsel %vm776_vm3, %v738_v63, %v766_v0  ;;  %v710_v53 = vadd.f32 %v709_v45, %v708_v33  ;;  %v797_v63 = vrot.slane %v5840_v16, 1 }
 0x29a   :  { %v801_v37 = vperm.slane %v5874_v12, 0  ;;  %v5910_v58 = vsel %vm776_vm3, %v739_v32, %v775_v52  ;;  %v756_v48 = vrot.slane %v755_v50, 1  ;;  %v798_v1 = vrot.slane %v5874_v12, 1 }
 0x29b   :  { %v938_v59 = vperm.slane %v5910_v58, 0  ;;  %v737_v60 = vmul.f32 %v5830_v19, %v710_v53  ;;  %v5499_v19 = vmov 0.0   ;;  %v800_v0 = vperm.slane %v797_v63, 0 }
 0x29c   :  { %840 = vrot.lane.b32.xlu1 %v801_v37, %s5493_s5  ;;  %824 = vrot.lane.b32.xlu2 %v801_v37, %s5491_s4  ;;  %v757_v61 = vmax.f32 %v755_v50, %v756_v48  ;;  %782 = vst.msk [vmem:[#allocation2] sm:$0xff] %vm781_vm4, %v5499_v19  ;;  %v802_v11 = vperm.slane %v798_v1, 0  ;;  %v935_v14 = vrot.slane %v5910_v58, 1 }
 0x29d   :  { %807 = vrot.lane.b32.xlu0 %v801_v37, %s5492_s14  ;;  %783 = vst.msk [vmem:[#allocation2 + $0x8] sm:$0xff] %vm781_vm4, %v5499_v19 }
 0x29e   :  { %v5918_v47 = vsel %vm776_vm3, %v737_v60, %v757_v61  ;;  %786 = vst.msk [vmem:[#allocation2 + $0x18] sm:$0xff] %vm781_vm4, %v5499_v19  ;;  %v939_v18 = vperm.slane %v935_v14, 0 }
 0x29f   :  { %787 = vst.msk [vmem:[#allocation2 + $0x20] sm:$0xff] %vm781_vm4, %v5499_v19  ;;  %v934_v10 = vrot.slane %v5918_v47, 1 }
 0x2a0   :  { %789 = vst.msk [vmem:[#allocation2 + $0x30] sm:$0xff] %vm781_vm4, %v5499_v19 }
 0x2a1   :  { %790 = vst.msk [vmem:[#allocation2 + $0x38] sm:$0xff] %vm781_vm4, %v5499_v19  ;;  %v937_v8 = vperm.slane %v934_v10, 0 }
 0x2a2   :  { %792 = vst.msk [vmem:[#allocation2 + $0x48] sm:$0xff] %vm781_vm4, %v5499_v19 }
 0x2a3   :  { %793 = vst.msk [vmem:[#allocation2 + $0x50] sm:$0xff] %vm781_vm4, %v5499_v19 }
 0x2a4   :  { %868 = vrot.lane.b32.xlu1 %v5843_v29, %s5494_s6  ;;  %852 = vrot.lane.b32.xlu2 %v5843_v29, %s5495_s15  ;;  %791 = vst.msk [vmem:[#allocation2 + $0x40] sm:$0x3f] %vm784_vm6, %v5499_v19 }
 0x2a5   :  { %836 = vrot.lane.b32.xlu0 %v5843_v29, %s5493_s5  ;;  %785 = vst.msk [vmem:[#allocation2 + $0x10] sm:$0x3f] %vm784_vm6, %v5499_v19 }
 0x2a6   :  { %788 = vst.msk [vmem:[#allocation2 + $0x28] sm:$0x3f] %vm784_vm6, %v5499_v19 }
 0x2a7   :  { %794 = vst.msk [vmem:[#allocation2 + $0x58] sm:$0x3f] %vm784_vm6, %v5499_v19 }
 0x2ac   :  { %888 = vrot.lane.b32.xlu1 %v801_v37, %s5496_s16  ;;  %872 = vrot.lane.b32.xlu2 %v801_v37, %s5494_s6 }
 0x2ad   :  { %856 = vrot.lane.b32.xlu0 %v801_v37, %s5495_s15 }
 0x2b4   :  { %916 = vrot.lane.b32.xlu1 %v5843_v29, %s5497_s17  ;;  %900 = vrot.lane.b32.xlu2 %v5843_v29, %s5498_s18 }
 0x2b5   :  { %884 = vrot.lane.b32.xlu0 %v5843_v29, %s5496_s16  ;;  %v936_v29 = vperm.slane %v5918_v47, 0 }
 0x2bc   :  { %944 = vrot.lane.b32.xlu1 %v938_v59, %s5492_s14  ;;  %920 = vrot.lane.b32.xlu2 %v801_v37, %s5497_s17 }
 0x2bd   :  { %904 = vrot.lane.b32.xlu0 %v801_v37, %s5498_s18 }
 0x2c4   :  { %972 = vrot.lane.b32.xlu1 %v936_v29, %s5493_s5  ;;  %956 = vrot.lane.b32.xlu2 %v936_v29, %s5491_s4 }
 0x2c5   :  { %940 = vrot.lane.b32.xlu0 %v936_v29, %s5492_s14 }
 0x2cc   :  { %992 = vrot.lane.b32.xlu1 %v938_v59, %s5495_s15  ;;  %976 = vrot.lane.b32.xlu2 %v938_v59, %s5493_s5 }
 0x2cd   :  { %960 = vrot.lane.b32.xlu0 %v938_v59, %s5491_s4 }
 0x2d4   :  { %1020 = vrot.lane.b32.xlu1 %v936_v29, %s5496_s16  ;;  %1004 = vrot.lane.b32.xlu2 %v936_v29, %s5494_s6 }
 0x2d5   :  { %988 = vrot.lane.b32.xlu0 %v936_v29, %s5495_s15 }
 0x2dc   :  { %1040 = vrot.lane.b32.xlu1 %v938_v59, %s5498_s18  ;;  %1024 = vrot.lane.b32.xlu2 %v938_v59, %s5496_s16 }
 0x2dd   :  { %1008 = vrot.lane.b32.xlu0 %v938_v59, %s5494_s6 }
 0x2e4   :  { %805 = vrot.lane.b32.xlu1 %v800_v0, %s5492_s14  ;;  %1052 = vrot.lane.b32.xlu2 %v936_v29, %s5497_s17 }
 0x2e5   :  { %1036 = vrot.lane.b32.xlu0 %v936_v29, %s5498_s18 }
 0x2eb   :  { %v804_v5 = vpop.permute.xlu2 %803 }
 0x2ec   :  { %816 = vst.msk [vmem:[#allocation2 + $0x3] sm:$0x1] %vm815_vm5, %v804_v5  ;;  %826 = vrot.lane.b32.xlu1 %v802_v11, %s5491_s4  ;;  %809 = vrot.lane.b32.xlu2 %v802_v11, %s5492_s14 }
 0x2ed   :  { %1056 = vrot.lane.b32.xlu0 %v938_v59, %s5497_s17  ;;  %v2092_v59 = vstv %s5129_s1  ;;  %s5192_s1 = sld [smem:[#allocation8 + $0x41]] }
 0x2f4   :  { %854 = vrot.lane.b32.xlu1 %v800_v0, %s5495_s15  ;;  %838 = vrot.lane.b32.xlu2 %v800_v0, %s5493_s5 }
 0x2f5   :  { %822 = vrot.lane.b32.xlu0 %v800_v0, %s5491_s4 }
 0x2f6   :  { %v825_v16 = vpop.permute.xlu2 %824 }
 0x2f7   :  { %834 = vst.msk [vmem:[#allocation2 + $0x34] sm:$0x1] %vm815_vm5, %v825_v16 }
 0x2fc   :  { %874 = vrot.lane.b32.xlu1 %v802_v11, %s5494_s6  ;;  %858 = vrot.lane.b32.xlu2 %v802_v11, %s5495_s15 }
 0x2fd   :  { %842 = vrot.lane.b32.xlu0 %v802_v11, %s5493_s5 }
 0x2fe   :  { %v853_v12 = vpop.permute.xlu2 %852 }
 0x2ff   :  { %864 = vst.msk [vmem:[#allocation2 + $0x6] sm:$0x1] %vm815_vm5, %v853_v12 }
 0x303   :  { %v821_v37 = vpop.permute.xlu1 %820 }
 0x304   :  { %832 = vst.msk [vmem:[#allocation2 + $0x4] sm:$0x1] %vm815_vm5, %v821_v37  ;;  %902 = vrot.lane.b32.xlu1 %v800_v0, %s5498_s18  ;;  %886 = vrot.lane.b32.xlu2 %v800_v0, %s5496_s16 }
 0x305   :  { %870 = vrot.lane.b32.xlu0 %v800_v0, %s5494_s6 }
 0x306   :  { %v873_v3 = vpop.permute.xlu2 %872 }
 0x307   :  { %882 = vst.msk [vmem:[#allocation2 + $0x37] sm:$0x1] %vm815_vm5, %v873_v3  ;;  %v2610_v3 = vstv %s5130_s2  ;;  %s5199_s2 = sld [smem:[#allocation8 + $0x48]] }
 0x30c   :  { %922 = vrot.lane.b32.xlu1 %v802_v11, %s5497_s17  ;;  %906 = vrot.lane.b32.xlu2 %v802_v11, %s5498_s18 }
 0x30d   :  { %890 = vrot.lane.b32.xlu0 %v802_v11, %s5496_s16 }
 0x30e   :  { %v841_v38 = vpop.permute.xlu1 %840  ;;  %v901_v7 = vpop.permute.xlu2 %900 }
 0x30f   :  { %850 = vst.msk [vmem:[#allocation2 + $0x35] sm:$0x1] %vm815_vm5, %v841_v38  ;;  %v808_v41 = vpop.permute.xlu0 %807 }
 0x310   :  { %912 = vst.msk [vmem:[#allocation2 + $0x9] sm:$0x1] %vm815_vm5, %v901_v7 }
 0x311   :  { %818 = vst.msk [vmem:[#allocation2 + $0x33] sm:$0x1] %vm815_vm5, %v808_v41 }
 0x314   :  { %958 = vrot.lane.b32.xlu1 %v937_v8, %s5491_s4  ;;  %942 = vrot.lane.b32.xlu2 %v937_v8, %s5492_s14 }
 0x315   :  { %918 = vrot.lane.b32.xlu0 %v800_v0, %s5497_s17 }
 0x316   :  { %v869_v15 = vpop.permute.xlu1 %868  ;;  %v921_v51 = vpop.permute.xlu2 %920 }
 0x317   :  { %880 = vst.msk [vmem:[#allocation2 + $0x7] sm:$0x1] %vm815_vm5, %v869_v15  ;;  %v837_v17 = vpop.permute.xlu0 %836 }
 0x318   :  { %930 = vst.msk [vmem:[#allocation2 + $0x3a] sm:$0x1] %vm815_vm5, %v921_v51 }
 0x319   :  { %848 = vst.msk [vmem:[#allocation2 + $0x5] sm:$0x1] %vm815_vm5, %v837_v17 }
 0x31c   :  { %978 = vrot.lane.b32.xlu1 %v939_v18, %s5493_s5  ;;  %962 = vrot.lane.b32.xlu2 %v939_v18, %s5491_s4  ;;  %s5171_s4 = sld [smem:[#allocation8 + $0x2c]] }
 0x31d   :  { %946 = vrot.lane.b32.xlu0 %v939_v18, %s5492_s14  ;;  %s5137_s14 = sld [smem:[#allocation8 + $0xa]] }
 0x31e   :  { %v889_v20 = vpop.permute.xlu1 %888  ;;  %v957_v21 = vpop.permute.xlu2 %956 }
 0x31f   :  { %898 = vst.msk [vmem:[#allocation2 + $0x38] sm:$0x1] %vm815_vm5, %v889_v20  ;;  %v857_v22 = vpop.permute.xlu0 %856 }
 0x320   :  { %968 = vst.msk [vmem:[#allocation2 + $0xc] sm:$0x1] %vm815_vm5, %v957_v21  ;;  %v6002_v31 = vld [vmem:[#allocation2] sm:$0xff] }
 0x321   :  { %866 = vst.msk [vmem:[#allocation2 + $0x36] sm:$0x1] %vm815_vm5, %v857_v22  ;;  %v1575_v39 = vmul.f32 %v1574_v36, %v6002_v31  ;;  %v2093_v60 = vmul.f32 %v2092_v59, %v6002_v31  ;;  %v2611_v41 = vmul.f32 %v2610_v3, %v6002_v31 }
 0x322   :  { %v6394_v55 = vstv %s5171_s4  ;;  %s6986_s4 = sld [smem:[#allocation8 + $0x15]] }
 0x324   :  { %1006 = vrot.lane.b32.xlu1 %v937_v8, %s5494_s6  ;;  %990 = vrot.lane.b32.xlu2 %v937_v8, %s5495_s15 }
 0x325   :  { %974 = vrot.lane.b32.xlu0 %v937_v8, %s5493_s5  ;;  %s5184_s5 = sld [smem:[#allocation8 + $0x39]] }
 0x326   :  { %v917_v9 = vpop.permute.xlu1 %916  ;;  %v977_v25 = vpop.permute.xlu2 %976 }
 0x327   :  { %928 = vst.msk [vmem:[#allocation2 + $0xa] sm:$0x1] %vm815_vm5, %v917_v9  ;;  %v885_v4 = vpop.permute.xlu0 %884 }
 0x328   :  { %986 = vst.msk [vmem:[#allocation2 + $0x3d] sm:$0x1] %vm815_vm5, %v977_v25  ;;  %v6011_v32 = vld [vmem:[#allocation2 + $0x30] sm:$0xff]  ;;  %v1599_v25 = vstv %s5177_s23  ;;  %s5213_s23 = sld [smem:[#allocation8 + $0x56]] }
 0x329   :  { %896 = vst.msk [vmem:[#allocation2 + $0x8] sm:$0x1] %vm815_vm5, %v885_v4  ;;  %v1577_v52 = vmul.f32 %v1574_v36, %v6011_v32  ;;  %v2095_v16 = vmul.f32 %v2092_v59, %v6011_v32  ;;  %v2613_v20 = vmul.f32 %v2610_v3, %v6011_v32 }
 0x32c   :  { %1026 = vrot.lane.b32.xlu1 %v939_v18, %s5496_s16  ;;  %1010 = vrot.lane.b32.xlu2 %v939_v18, %s5494_s6  ;;  %s5191_s6 = sld [smem:[#allocation8 + $0x40]] }
 0x32d   :  { %994 = vrot.lane.b32.xlu0 %v939_v18, %s5495_s15  ;;  %s5198_s15 = sld [smem:[#allocation8 + $0x47]] }
 0x32e   :  { %v945_v24 = vpop.permute.xlu1 %944  ;;  %v1005_v26 = vpop.permute.xlu2 %1004 }
 0x32f   :  { %954 = vst.msk [vmem:[#allocation2 + $0x3b] sm:$0x1] %vm815_vm5, %v945_v24  ;;  %v905_v27 = vpop.permute.xlu0 %904 }
 0x330   :  { %1016 = vst.msk [vmem:[#allocation2 + $0xf] sm:$0x1] %vm815_vm5, %v1005_v26 }
 0x331   :  { %914 = vst.msk [vmem:[#allocation2 + $0x39] sm:$0x1] %vm815_vm5, %v905_v27 }
 0x334   :  { %1054 = vrot.lane.b32.xlu1 %v937_v8, %s5497_s17  ;;  %1038 = vrot.lane.b32.xlu2 %v937_v8, %s5498_s18 }
 0x335   :  { %1022 = vrot.lane.b32.xlu0 %v937_v8, %s5496_s16  ;;  %s5205_s16 = sld [smem:[#allocation8 + $0x4e]] }
 0x336   :  { %v973_v28 = vpop.permute.xlu1 %972  ;;  %v1025_v30 = vpop.permute.xlu2 %1024 }
 0x337   :  { %984 = vst.msk [vmem:[#allocation2 + $0xd] sm:$0x1] %vm815_vm5, %v973_v28  ;;  %v941_v33 = vpop.permute.xlu0 %940 }
 0x338   :  { %1034 = vst.msk [vmem:[#allocation2 + $0x40] sm:$0x1] %vm815_vm5, %v1025_v30 }
 0x339   :  { %952 = vst.msk [vmem:[#allocation2 + $0xb] sm:$0x1] %vm815_vm5, %v941_v33 }
 0x33c   :  { %1583 = vrot.lane.b32.xlu1 %v1575_v39, %s5500_s20  ;;  %1058 = vrot.lane.b32.xlu2 %v939_v18, %s5497_s17  ;;  %s5212_s17 = sld [smem:[#allocation8 + $0x55]] }
 0x33d   :  { %1042 = vrot.lane.b32.xlu0 %v939_v18, %s5498_s18  ;;  %s5219_s18 = sld [smem:[#allocation8 + $0x5c]] }
 0x33e   :  { %v993_v40 = vpop.permute.xlu1 %992  ;;  %v1053_v45 = vpop.permute.xlu2 %1052 }
 0x33f   :  { %1002 = vst.msk [vmem:[#allocation2 + $0x3e] sm:$0x1] %vm815_vm5, %v993_v40  ;;  %v961_v50 = vpop.permute.xlu0 %960  ;;  %v2117_v40 = vstv %s5178_s24  ;;  %s5220_s24 = sld [smem:[#allocation8 + $0x5d]] }
 0x340   :  { %1064 = vst.msk [vmem:[#allocation2 + $0x12] sm:$0x1] %vm815_vm5, %v1053_v45 }
 0x341   :  { %970 = vst.msk [vmem:[#allocation2 + $0x3c] sm:$0x1] %vm815_vm5, %v961_v50 }
 0x344   :  { %1587 = vrot.lane.b32.xlu2 %v1577_v52, %s5500_s20 }
 0x346   :  { %v1021_v53 = vpop.permute.xlu1 %1020  ;;  %v810_v58 = vpop.permute.xlu2 %809 }
 0x347   :  { %1032 = vst.msk [vmem:[#allocation2 + $0x10] sm:$0x1] %vm815_vm5, %v1021_v53  ;;  %v989_v48 = vpop.permute.xlu0 %988 }
 0x348   :  { %1000 = vst.msk [vmem:[#allocation2 + $0xe] sm:$0x1] %vm815_vm5, %v989_v48 }
 0x349   :  { %819 = vst.msk [vmem:[#allocation2 + $0x4b] sm:$0x1] %vm815_vm5, %v810_v58 }
 0x34c   :  { %2101 = vrot.lane.b32.xlu2 %v2093_v60, %s5501_s21 }
 0x34e   :  { %v1041_v61 = vpop.permute.xlu1 %1040  ;;  %v839_v47 = vpop.permute.xlu2 %838 }
 0x34f   :  { %v6023_v29 = vld [vmem:[#allocation2 + $0x8] sm:$0xff]  ;;  %1050 = vst.msk [vmem:[#allocation2 + $0x41] sm:$0x1] %vm815_vm5, %v1041_v61  ;;  %v1009_v19 = vpop.permute.xlu0 %1008 }
 0x350   :  { %1018 = vst.msk [vmem:[#allocation2 + $0x3f] sm:$0x1] %vm815_vm5, %v1009_v19  ;;  %v1576_v63 = vmul.f32 %v1574_v36, %v6023_v29  ;;  %v2094_v8 = vmul.f32 %v2092_v59, %v6023_v29  ;;  %v2612_v14 = vmul.f32 %v2610_v3, %v6023_v29  ;;  %v2534_v6 = vmul.f32 %v6394_v55, %v6023_v29 }
 0x351   :  { %849 = vst.msk [vmem:[#allocation2 + $0x1d] sm:$0x1] %vm815_vm5, %v839_v47 }
 0x352   :  { %1585 = vrot.lane.b32.xlu0 %v1576_v63, %s5500_s20 }
 0x356   :  { %v806_v0 = vpop.permute.xlu1 %805  ;;  %v859_v1 = vpop.permute.xlu2 %858 }
 0x357   :  { %v6030_v5 = vld [vmem:[#allocation2 + $0x38] sm:$0xff]  ;;  %817 = vst.msk [vmem:[#allocation2 + $0x1b] sm:$0x1] %vm815_vm5, %v806_v0  ;;  %v1037_v11 = vpop.permute.xlu0 %1036 }
 0x358   :  { %1048 = vst.msk [vmem:[#allocation2 + $0x11] sm:$0x1] %vm815_vm5, %v1037_v11  ;;  %v1578_v12 = vmul.f32 %v1574_v36, %v6030_v5  ;;  %v2096_v37 = vmul.f32 %v2092_v59, %v6030_v5  ;;  %v2614_v18 = vmul.f32 %v2610_v3, %v6030_v5 }
 0x359   :  { %867 = vst.msk [vmem:[#allocation2 + $0x4e] sm:$0x1] %vm815_vm5, %v859_v1 }
 0x35a   :  { %2105 = vrot.lane.b32.xlu0 %v2095_v16, %s5501_s21  ;;  %1589 = vrot.lane.b32.xlu1 %v1578_v12, %s5500_s20 }
 0x35b   :  { %2107 = vrot.lane.b32.xlu2 %v2096_v37, %s5501_s21 }
 0x35e   :  { %v827_v10 = vpop.permute.xlu1 %826  ;;  %v887_v38 = vpop.permute.xlu2 %886 }
 0x35f   :  { %v1057_v7 = vpop.permute.xlu0 %1056  ;;  %835 = vst.msk [vmem:[#allocation2 + $0x4c] sm:$0x1] %vm815_vm5, %v827_v10 }
 0x360   :  { %1066 = vst.msk [vmem:[#allocation2 + $0x42] sm:$0x1] %vm815_vm5, %v1057_v7  ;;  %v6101_v7 = vld [vmem:[#allocation2 + $0x10] sm:$0x3f] }
 0x361   :  { %897 = vst.msk [vmem:[#allocation2 + $0x20] sm:$0x1] %vm815_vm5, %v887_v38  ;;  %v2535_v62 = vmul.f32 %v6394_v55, %v6101_v7 }
 0x362   :  { %2619 = vrot.lane.b32.xlu0 %v2611_v41, %s5502_s22  ;;  %2103 = vrot.lane.b32.xlu1 %v2094_v8, %s5501_s21  ;;  %v2635_v8 = vstv %s5179_s25  ;;  %s5186_s25 = sld [smem:[#allocation8 + $0x3b]] }
 0x363   :  { %2621 = vrot.lane.b32.xlu2 %v2612_v14, %s5502_s22 }
 0x366   :  { %v855_v15 = vpop.permute.xlu1 %854  ;;  %v907_v51 = vpop.permute.xlu2 %906 }
 0x367   :  { %v823_v17 = vpop.permute.xlu0 %822  ;;  %865 = vst.msk [vmem:[#allocation2 + $0x1e] sm:$0x1] %vm815_vm5, %v855_v15  ;;  %v1624_v15 = vstv %s5135_s26  ;;  %s5144_s26 = sld [smem:[#allocation8 + $0x11]] }
 0x368   :  { %833 = vst.msk [vmem:[#allocation2 + $0x1c] sm:$0x1] %vm815_vm5, %v823_v17 }
 0x369   :  { %915 = vst.msk [vmem:[#allocation2 + $0x51] sm:$0x1] %vm815_vm5, %v907_v51 }
 0x36a   :  { %2625 = vrot.lane.b32.xlu0 %v2614_v18, %s5502_s22  ;;  %2623 = vrot.lane.b32.xlu1 %v2613_v20, %s5502_s22  ;;  %v1626_v18 = vmul.f32 %v1624_v15, %v6023_v29  ;;  %v1627_v20 = vmul.f32 %v1624_v15, %v6101_v7 }
 0x36e   :  { %v875_v21 = vpop.permute.xlu1 %874  ;;  %v943_v22 = vpop.permute.xlu2 %942 }
 0x36f   :  { %v843_v9 = vpop.permute.xlu0 %842  ;;  %883 = vst.msk [vmem:[#allocation2 + $0x4f] sm:$0x1] %vm815_vm5, %v875_v21  ;;  %v1625_v21 = vmul.f32 %v1624_v15, %v6002_v31 }
 0x370   :  { %851 = vst.msk [vmem:[#allocation2 + $0x4d] sm:$0x1] %vm815_vm5, %v843_v9  ;;  %v6113_v9 = vld [vmem:[#allocation2 + $0x40] sm:$0x3f] }
 0x371   :  { %953 = vst.msk [vmem:[#allocation2 + $0x23] sm:$0x1] %vm815_vm5, %v943_v22  ;;  %v1638_v22 = vrot.slane %v1626_v18, 1 }
 0x376   :  { %v903_v4 = vpop.permute.xlu1 %902  ;;  %v963_v24 = vpop.permute.xlu2 %962 }
 0x377   :  { %v6060_v26 = vld [vmem:[#allocation2 + $0x48] sm:$0xff]  ;;  %v871_v27 = vpop.permute.xlu0 %870  ;;  %913 = vst.msk [vmem:[#allocation2 + $0x21] sm:$0x1] %vm815_vm5, %v903_v4  ;;  %v1637_v4 = vrot.slane %v1625_v21, 1 }
 0x378   :  { %881 = vst.msk [vmem:[#allocation2 + $0x1f] sm:$0x1] %vm815_vm5, %v871_v27  ;;  %v1602_v28 = vmul.f32 %v1599_v25, %v6060_v26  ;;  %v2120_v3 = vmul.f32 %v2117_v40, %v6060_v26  ;;  %v2638_v27 = vmul.f32 %v2635_v8, %v6060_v26 }
 0x379   :  { %971 = vst.msk [vmem:[#allocation2 + $0x54] sm:$0x1] %vm815_vm5, %v963_v24  ;;  %v1639_v24 = vsel %vm1209_vm7, %v1637_v4, %v1638_v22  ;;  %v1858_v4 = vstv %s5156_s3  ;;  %s5158_s3 = sld [smem:[#allocation8 + $0x1f]] }
 0x37a   :  { %1612 = vrot.lane.b32.xlu1 %v1602_v28, %s5500_s20  ;;  %v1630_v28 = vmul.f32 %v1624_v15, %v6113_v9 }
 0x37e   :  { %v923_v30 = vpop.permute.xlu1 %922  ;;  %v991_v33 = vpop.permute.xlu2 %990 }
 0x37f   :  { %v6067_v36 = vld [vmem:[#allocation2 + $0x18] sm:$0xff]  ;;  %v891_v39 = vpop.permute.xlu0 %890  ;;  %931 = vst.msk [vmem:[#allocation2 + $0x52] sm:$0x1] %vm815_vm5, %v923_v30  ;;  %v1702_v30 = vstv %s5142_s27  ;;  %s5193_s27 = sld [smem:[#allocation8 + $0x42]] }
 0x380   :  { %899 = vst.msk [vmem:[#allocation2 + $0x50] sm:$0x1] %vm815_vm5, %v891_v39  ;;  %v1600_v45 = vmul.f32 %v1599_v25, %v6067_v36  ;;  %v2118_v50 = vmul.f32 %v2117_v40, %v6067_v36  ;;  %v2636_v14 = vmul.f32 %v2635_v8, %v6067_v36  ;;  %v6121_v39 = vmul.f32 %v1702_v30, %v6030_v5 }
 0x381   :  { %1001 = vst.msk [vmem:[#allocation2 + $0x26] sm:$0x1] %vm815_vm5, %v991_v33  ;;  %v1703_v18 = vmul.f32 %v1702_v30, %v6002_v31 }
 0x382   :  { %1608 = vrot.lane.b32.xlu0 %v1600_v45, %s5500_s20  ;;  %2126 = vrot.lane.b32.xlu1 %v2118_v50, %s5501_s21  ;;  %v1706_v45 = vmul.f32 %v1702_v30, %v6011_v32  ;;  %v1645_v50 = vrot.slane %v1630_v28, 1 }
 0x386   :  { %v959_v52 = vpop.permute.xlu1 %958  ;;  %v1011_v53 = vpop.permute.xlu2 %1010 }
 0x387   :  { %v919_v58 = vpop.permute.xlu0 %918  ;;  %969 = vst.msk [vmem:[#allocation2 + $0x24] sm:$0x1] %vm815_vm5, %v959_v52  ;;  %v1721_v52 = vrot.slane %v6121_v39, 2  ;;  %v1861_v39 = vmul.f32 %v1858_v4, %v6101_v7 }
 0x388   :  { %929 = vst.msk [vmem:[#allocation2 + $0x22] sm:$0x1] %vm815_vm5, %v919_v58  ;;  %v1720_v58 = vrot.slane %v1706_v45, 2  ;;  %v1859_v45 = vmul.f32 %v1858_v4, %v6002_v31 }
 0x389   :  { %1019 = vst.msk [vmem:[#allocation2 + $0x57] sm:$0x1] %vm815_vm5, %v1011_v53 }
 0x38e   :  { %v979_v48 = vpop.permute.xlu1 %978  ;;  %v1039_v59 = vpop.permute.xlu2 %1038 }
 0x38f   :  { %v947_v60 = vpop.permute.xlu0 %946  ;;  %987 = vst.msk [vmem:[#allocation2 + $0x55] sm:$0x1] %vm815_vm5, %v979_v48  ;;  %v1780_v48 = vstv %s5149_s28  ;;  %s5200_s28 = sld [smem:[#allocation8 + $0x49]] }
 0x390   :  { %955 = vst.msk [vmem:[#allocation2 + $0x53] sm:$0x1] %vm815_vm5, %v947_v60 }
 0x391   :  { %1049 = vst.msk [vmem:[#allocation2 + $0x29] sm:$0x1] %vm815_vm5, %v1039_v59 }
 0x396   :  { %v1007_v61 = vpop.permute.xlu1 %1006  ;;  %v1059_v47 = vpop.permute.xlu2 %1058 }
 0x397   :  { %v975_v19 = vpop.permute.xlu0 %974  ;;  %1017 = vst.msk [vmem:[#allocation2 + $0x27] sm:$0x1] %vm815_vm5, %v1007_v61  ;;  %v1705_v61 = vmul.f32 %v1702_v30, %v6101_v7 }
 0x398   :  { %985 = vst.msk [vmem:[#allocation2 + $0x25] sm:$0x1] %vm815_vm5, %v975_v19  ;;  %v6134_v19 = vmul.f32 %v1780_v48, %v6023_v29 }
 0x399   :  { %1067 = vst.msk [vmem:[#allocation2 + $0x5a] sm:$0x1] %vm815_vm5, %v1059_v47  ;;  %v1722_v47 = vsel %vm1272_vm8, %v1720_v58, %v1721_v52 }
 0x39e   :  { %v1027_v63 = vpop.permute.xlu1 %1026 }
 0x39f   :  { %v6085_v0 = vld [vmem:[#allocation2 + $0x20] sm:$0xff]  ;;  %v995_v1 = vpop.permute.xlu0 %994  ;;  %1035 = vst.msk [vmem:[#allocation2 + $0x58] sm:$0x1] %vm815_vm5, %v1027_v63  ;;  %v1704_v63 = vmul.f32 %v1702_v30, %v6023_v29 }
 0x3a0   :  { %1003 = vst.msk [vmem:[#allocation2 + $0x56] sm:$0x1] %vm815_vm5, %v995_v1  ;;  %v1601_v11 = vmul.f32 %v1599_v25, %v6085_v0  ;;  %v2637_v51 = vmul.f32 %v2635_v8, %v6085_v0  ;;  %v2119_v17 = vmul.f32 %v2117_v40, %v6085_v0  ;;  %v1781_v1 = vmul.f32 %v1780_v48, %v6002_v31 }
 0x3a2   :  { %1610 = vrot.lane.b32.xlu2 %v1601_v11, %s5500_s20  ;;  %v1628_v11 = vmul.f32 %v1624_v15, %v6011_v32 }
 0x3a6   :  { %v1055_v16 = vpop.permute.xlu1 %1054 }
 0x3a7   :  { %v6091_v12 = vld [vmem:[#allocation2 + $0x50] sm:$0xff]  ;;  %v1023_v37 = vpop.permute.xlu0 %1022  ;;  %1065 = vst.msk [vmem:[#allocation2 + $0x2a] sm:$0x1] %vm815_vm5, %v1055_v16  ;;  %v1718_v16 = vrot.slane %v1705_v61, 2 }
 0x3a8   :  { %1033 = vst.msk [vmem:[#allocation2 + $0x28] sm:$0x1] %vm815_vm5, %v1023_v37  ;;  %v2121_v10 = vmul.f32 %v2117_v40, %v6091_v12  ;;  %v1603_v38 = vmul.f32 %v1599_v25, %v6091_v12  ;;  %v1640_v25 = vrot.slane %v1627_v20, 1  ;;  %v1629_v40 = vmul.f32 %v1624_v15, %v6030_v5 }
 0x3a9   :  { %v2639_v60 = vmul.f32 %v2635_v8, %v6091_v12  ;;  %v1794_v37 = vrot.slane %v6134_v19, 3  ;;  %v1785_v8 = vmul.f32 %v1780_v48, %v6030_v5 }
 0x3aa   :  { %2130 = vrot.lane.b32.xlu2 %v2120_v3, %s5501_s21  ;;  %2132 = vrot.lane.b32.xlu1 %v2121_v10, %s5501_s21  ;;  %v1641_v33 = vsel %vm1209_vm7, %v1638_v22, %v1640_v25  ;;  %v1643_v53 = vrot.slane %v1629_v40, 1  ;;  %v1716_v3 = vrot.slane %v1704_v63, 2  ;;  %v1793_v10 = vrot.slane %v1781_v1, 3 }
 0x3ab   :  { %1614 = vrot.lane.b32.xlu0 %v1603_v38, %s5500_s20  ;;  %v1642_v38 = vrot.slane %v1628_v11, 1  ;;  %v1799_v20 = vrot.slane %v1785_v8, 3  ;;  %v1715_v25 = vrot.slane %v1703_v18, 2  ;;  %v1708_v40 = vmul.f32 %v1702_v30, %v6113_v9 }
 0x3ac   :  { %v1646_v59 = vsel %vm1209_vm7, %v1643_v53, %v1645_v50  ;;  %v6168_v63 = vstv %s5163_s29  ;;  %s5207_s29 = sld [smem:[#allocation8 + $0x50]] }
 0x3ad   :  { %v1644_v15 = vsel %vm1209_vm7, %v1642_v38, %v1643_v53  ;;  %v1874_v53 = vrot.slane %v1861_v39, 4  ;;  %v1723_v58 = vrot.slane %v1708_v40, 2  ;;  %v6175_v11 = vmul.f32 %v6168_v63, %v6030_v5 }
 0x3af   :  { %v1043_v41 = vpop.permute.xlu0 %1042  ;;  %v1724_v1 = vsel %vm1272_vm8, %v1721_v52, %v1723_v58 }
 0x3b0   :  { %1051 = vst.msk [vmem:[#allocation2 + $0x59] sm:$0x1] %vm815_vm5, %v1043_v41  ;;  %v1719_v41 = vsel %vm1272_vm8, %v1716_v3, %v1718_v16  ;;  %v1783_v16 = vmul.f32 %v1780_v48, %v6101_v7 }
 0x3b2   :  { %2644 = vrot.lane.b32.xlu2 %v2636_v14, %s5502_s22  ;;  %2646 = vrot.lane.b32.xlu1 %v2637_v51, %s5502_s22  ;;  %v1795_v14 = vsel %vm1335_vm9, %v1793_v10, %v1794_v37  ;;  %v1786_v51 = vmul.f32 %v1780_v48, %v6113_v9  ;;  %v1940_v10 = vmul.f32 %v6168_v63, %v6011_v32  ;;  %v1796_v8 = vrot.slane %v1783_v16, 3 }
 0x3b3   :  { %2128 = vrot.lane.b32.xlu0 %v2119_v17, %s5501_s21  ;;  %v1784_v17 = vmul.f32 %v1780_v48, %v6011_v32  ;;  %v1939_v48 = vmul.f32 %v6168_v63, %v6101_v7 }
 0x3b4   :  { %v1801_v21 = vrot.slane %v1786_v51, 3  ;;  %v6187_v51 = vstv %s5170_s30  ;;  %s5165_s30 = sld [smem:[#allocation8 + $0x26]] }
 0x3b5   :  { %v1798_v22 = vrot.slane %v1784_v17, 3  ;;  %v2020_v58 = vmul.f32 %v6187_v51, %v6113_v9 }
 0x3b6   :  { %v1802_v28 = vsel %vm1335_vm9, %v1799_v20, %v1801_v21  ;;  %v6200_v21 = vmul.f32 %v6187_v51, %v6023_v29 }
 0x3b8   :  { %v2028_v19 = vrot.slane %v6200_v21, 6 }
 0x3ba   :  { %1647 = vrot.lane.b32.xlu2 %v1639_v24, %s5500_s20  ;;  %1649 = vrot.lane.b32.xlu1 %v1641_v33, %s5500_s20  ;;  %v1800_v24 = vsel %vm1335_vm9, %v1798_v22, %v1799_v20  ;;  %v1717_v33 = vsel %vm1272_vm8, %v1715_v25, %v1716_v3  ;;  %v1863_v3 = vmul.f32 %v1858_v4, %v6030_v5 }
 0x3bb   :  { %2648 = vrot.lane.b32.xlu0 %v2638_v27, %s5502_s22  ;;  %v1860_v27 = vmul.f32 %v1858_v4, %v6023_v29  ;;  %v1797_v20 = vsel %vm1335_vm9, %v1794_v37, %v1796_v8  ;;  %v1938_v22 = vmul.f32 %v6168_v63, %v6023_v29  ;;  %v2015_v25 = vmul.f32 %v6187_v51, %v6002_v31  ;;  %v6210_v37 = vpop.permute.xlu1 %1583 }
 0x3bc   :  { %v1877_v52 = vrot.slane %v1863_v3, 4  ;;  %9126 = vst [vmem:[#allocation34_spill] sm:$0xff] %v6210_v37 }
 0x3bd   :  { %v1872_v50 = vrot.slane %v1860_v27, 4  ;;  %v1952_v27 = vrot.slane %v1939_v48, 5 }
 0x3bf   :  { %v1875_v30 = vsel %vm1398_vm10, %v1872_v50, %v1874_v53 }
 0x3c2   :  { %1653 = vrot.lane.b32.xlu2 %v1646_v59, %s5500_s20  ;;  %1729 = vrot.lane.b32.xlu1 %v1722_v47, %s5500_s20  ;;  %v1871_v59 = vrot.slane %v1859_v45, 4  ;;  %v1864_v47 = vmul.f32 %v1858_v4, %v6113_v9  ;;  %v2019_v45 = vmul.f32 %v6187_v51, %v6030_v5 }
 0x3c3   :  { %2650 = vrot.lane.b32.xlu0 %v2639_v60, %s5502_s22  ;;  %v6164_v60 = vpop.permute.xlu2 %1587 }
 0x3c4   :  { %9124 = vst [vmem:[#allocation32_spill] sm:$0xff] %v6164_v60  ;;  %v1873_v61 = vsel %vm1398_vm10, %v1871_v59, %v1872_v50  ;;  %v1879_v38 = vrot.slane %v1864_v47, 4  ;;  %v2018_v59 = vmul.f32 %v6187_v51, %v6011_v32  ;;  %v2033_v47 = vrot.slane %v2019_v45, 6 }
 0x3c6   :  { %v2032_v3 = vrot.slane %v2018_v59, 6 }
 0x3c8   :  { %v2034_v8 = vsel %vm1524_vm12, %v2032_v3, %v2033_v47 }
 0x3ca   :  { %1727 = vrot.lane.b32.xlu2 %v1719_v41, %s5500_s20  ;;  %1803 = vrot.lane.b32.xlu1 %v1795_v14, %s5500_s20  ;;  %v1955_v41 = vrot.slane %v6175_v11, 5  ;;  %v1954_v14 = vrot.slane %v1940_v10, 5 }
 0x3cb   :  { %1651 = vrot.lane.b32.xlu0 %v1644_v15, %s5500_s20  ;;  %v1880_v15 = vsel %vm1398_vm10, %v1877_v52, %v1879_v38  ;;  %v6189_v17 = vpop.permute.xlu2 %2101  ;;  %v6234_v38 = vstv %s5136_s8  ;;  %s5214_s8 = sld [smem:[#allocation8 + $0x57]] }
 0x3cc   :  { %9125 = vst [vmem:[#allocation33_spill] sm:$0xff] %v6189_v17  ;;  %v1956_v18 = vsel %vm1461_vm11, %v1954_v14, %v1955_v41  ;;  %v6232_v16 = vpop.permute.xlu1 %1589  ;;  %v6244_v48 = vmul.f32 %v6234_v38, %v6030_v5  ;;  %v2143_v21 = vmul.f32 %v6234_v38, %v6002_v31  ;;  %v2337_v17 = vstv %s5199_s2  ;;  %s5503_s2 = smov 124  }
 0x3cd   :  { %9129 = vst [vmem:[#allocation37_spill] sm:$0xff] %v6232_v16 }
 0x3d2   :  { %1807 = vrot.lane.b32.xlu2 %v1800_v24, %s5500_s20  ;;  %1809 = vrot.lane.b32.xlu1 %v1802_v28, %s5500_s20  ;;  %v1862_v24 = vmul.f32 %v1858_v4, %v6011_v32  ;;  %v1950_v28 = vrot.slane %v1938_v22, 5 }
 0x3d3   :  { %1725 = vrot.lane.b32.xlu0 %v1717_v33, %s5500_s20  ;;  %v2027_v33 = vrot.slane %v2015_v25, 6  ;;  %v6215_v50 = vpop.permute.xlu2 %2107  ;;  %v2146_v25 = vmul.f32 %v6234_v38, %v6011_v32 }
 0x3d4   :  { %v1876_v39 = vrot.slane %v1862_v24, 4  ;;  %v1953_v40 = vsel %vm1461_vm11, %v1950_v28, %v1952_v27  ;;  %9127 = vst [vmem:[#allocation35_spill] sm:$0xff] %v6215_v50  ;;  %v2161_v27 = vrot.slane %v6244_v48, 1  ;;  %v6261_v45 = vpop.permute.xlu1 %2103  ;;  %v6787_v50 = vld [vmem:[#allocation2 + $0x10] sm:$0x3f] }
 0x3d5   :  { %v2029_v4 = vsel %vm1524_vm12, %v2027_v33, %v2028_v19  ;;  %9132 = vst [vmem:[#allocation40_spill] sm:$0xff] %v6261_v45 }
 0x3d6   :  { %v1878_v53 = vsel %vm1398_vm10, %v1876_v39, %v1877_v52  ;;  %v2145_v52 = vmul.f32 %v6234_v38, %v6101_v7  ;;  %v2160_v39 = vrot.slane %v2146_v25, 1 }
 0x3d8   :  { %v2158_v24 = vrot.slane %v2145_v52, 1 }
 0x3da   :  { %1881 = vrot.lane.b32.xlu2 %v1873_v61, %s5500_s20  ;;  %1883 = vrot.lane.b32.xlu1 %v1875_v30, %s5500_s20  ;;  %v1937_v61 = vmul.f32 %v6168_v63, %v6002_v31  ;;  %v2035_v30 = vrot.slane %v2020_v58, 6  ;;  %v2162_v58 = vsel %vm1209_vm7, %v2160_v39, %v2161_v27 }
 0x3db   :  { %1731 = vrot.lane.b32.xlu0 %v1724_v1, %s5500_s20  ;;  %v6230_v1 = vpop.permute.xlu0 %1585  ;;  %v6252_v22 = vpop.permute.xlu2 %2621 }
 0x3dc   :  { %9128 = vst [vmem:[#allocation36_spill] sm:$0xff] %v6230_v1  ;;  %v1949_v10 = vrot.slane %v1937_v61, 5  ;;  %v2036_v14 = vsel %vm1524_vm12, %v2033_v47, %v2035_v30  ;;  %v2017_v47 = vmul.f32 %v6187_v51, %v6101_v7  ;;  %v6304_v39 = vpop.permute.xlu1 %2623 }
 0x3dd   :  { %9130 = vst [vmem:[#allocation38_spill] sm:$0xff] %v6252_v22 }
 0x3de   :  { %9135 = vst [vmem:[#allocation43_spill] sm:$0xff] %v6304_v39 }
 0x3e2   :  { %1887 = vrot.lane.b32.xlu2 %v1880_v15, %s5500_s20  ;;  %1963 = vrot.lane.b32.xlu1 %v1956_v18, %s5500_s20  ;;  %v1951_v15 = vsel %vm1461_vm11, %v1949_v10, %v1950_v28  ;;  %v1942_v18 = vmul.f32 %v6168_v63, %v6113_v9 }
 0x3e3   :  { %1805 = vrot.lane.b32.xlu0 %v1797_v20, %s5500_s20  ;;  %v2144_v20 = vmul.f32 %v6234_v38, %v6023_v29  ;;  %v6259_v63 = vpop.permute.xlu0 %2105 }
 0x3e4   :  { %v1957_v28 = vrot.slane %v1942_v18, 5  ;;  %9131 = vst [vmem:[#allocation39_spill] sm:$0xff] %v6259_v63 }
 0x3e5   :  { %v2156_v33 = vrot.slane %v2144_v20, 1 }
 0x3e6   :  { %v1958_v59 = vsel %vm1461_vm11, %v1955_v41, %v1957_v28 }
 0x3ea   :  { %1961 = vrot.lane.b32.xlu2 %v1953_v40, %s5500_s20  ;;  %2037 = vrot.lane.b32.xlu1 %v2029_v4, %s5500_s20  ;;  %v6257_v40 = vstv %s5143_s11  ;;  %v2159_v4 = vsel %vm1209_vm7, %v2156_v33, %v2158_v24  ;;  %s5172_s11 = sld [smem:[#allocation8 + $0x2d]] }
 0x3eb   :  { %1885 = vrot.lane.b32.xlu0 %v1878_v53, %s5500_s20  ;;  %v2225_v53 = vmul.f32 %v6257_v40, %v6030_v5  ;;  %v6275_v61 = vmul.f32 %v6257_v40, %v6023_v29  ;;  %v2224_v30 = vmul.f32 %v6257_v40, %v6011_v32  ;;  %v2221_v11 = vmul.f32 %v6257_v40, %v6002_v31  ;;  %v6302_v28 = vpop.permute.xlu0 %2619 }
 0x3ec   :  { %v2226_v24 = vmul.f32 %v6257_v40, %v6113_v9  ;;  %9134 = vst [vmem:[#allocation42_spill] sm:$0xff] %v6302_v28 }
 0x3ed   :  { %v2239_v41 = vrot.slane %v2225_v53, 2  ;;  %v2234_v10 = vrot.slane %v6275_v61, 2  ;;  %v2238_v52 = vrot.slane %v2224_v30, 2 }
 0x3ef   :  { %v2240_v51 = vsel %vm1272_vm8, %v2238_v52, %v2239_v41 }
 0x3f2   :  { %2041 = vrot.lane.b32.xlu2 %v2034_v8, %s5500_s20  ;;  %2043 = vrot.lane.b32.xlu1 %v2036_v14, %s5500_s20  ;;  %v2030_v8 = vrot.slane %v2017_v47, 6  ;;  %v2233_v14 = vrot.slane %v2221_v11, 2  ;;  %v2155_v47 = vrot.slane %v2143_v21, 1 }
 0x3f3   :  { %1959 = vrot.lane.b32.xlu0 %v1951_v15, %s5500_s20  ;;  %v6288_v15 = vstv %s5150_s12  ;;  %s5134_s12 = sld [smem:[#allocation8 + $0x7]] }
 0x3f4   :  { %v2300_v18 = vmul.f32 %v6288_v15, %v6023_v29  ;;  %v2235_v20 = vsel %vm1272_vm8, %v2233_v14, %v2234_v10  ;;  %v2031_v25 = vsel %vm1524_vm12, %v2028_v19, %v2030_v8  ;;  %v2304_v11 = vmul.f32 %v6288_v15, %v6113_v9 }
 0x3f5   :  { %v2157_v52 = vsel %vm1209_vm7, %v2155_v47, %v2156_v33  ;;  %v2301_v14 = vmul.f32 %v6288_v15, %v6101_v7  ;;  %v2302_v61 = vmul.f32 %v6288_v15, %v6011_v32 }
 0x3f6   :  { %v2312_v19 = vrot.slane %v2300_v18, 3  ;;  %v6324_v18 = vpop.permute.xlu1 %1612  ;;  %v2319_v33 = vrot.slane %v2304_v11, 3 }
 0x3f7   :  { %9137 = vst [vmem:[#allocation45_spill] sm:$0xff] %v6324_v18 }
 0x3fa   :  { %2167 = vrot.lane.b32.xlu2 %v2159_v4, %s5501_s21  ;;  %2169 = vrot.lane.b32.xlu1 %v2162_v58, %s5501_s21  ;;  %v2299_v4 = vmul.f32 %v6288_v15, %v6002_v31  ;;  %v2241_v58 = vrot.slane %v2226_v24, 2  ;;  %v2314_v24 = vrot.slane %v2301_v14, 3 }
 0x3fb   :  { %1965 = vrot.lane.b32.xlu0 %v1958_v59, %s5500_s20 }
 0x3fc   :  { %v6283_v3 = vpop.permute.xlu2 %1610  ;;  %v2311_v59 = vrot.slane %v2299_v4, 3  ;;  %v2242_v8 = vsel %vm1272_vm8, %v2239_v41, %v2241_v58  ;;  %v6332_v41 = vpop.permute.xlu0 %2625  ;;  %v6334_v58 = vstv %s5157_s13  ;;  %v2315_v47 = vsel %vm1335_vm9, %v2312_v19, %v2314_v24  ;;  %s5221_s13 = sld [smem:[#allocation8 + $0x5e]] }
 0x3fd   :  { %9133 = vst [vmem:[#allocation41_spill] sm:$0xff] %v6283_v3  ;;  %v6346_v11 = vmul.f32 %v6334_v58, %v6030_v5  ;;  %v2380_v48 = vmul.f32 %v6334_v58, %v6011_v32 }
 0x3fe   :  { %v2313_v30 = vsel %vm1335_vm9, %v2311_v59, %v2312_v19  ;;  %9139 = vst [vmem:[#allocation47_spill] sm:$0xff] %v6332_v41  ;;  %v2379_v59 = vmul.f32 %v6334_v58, %v6101_v7  ;;  %v6360_v19 = vpop.permute.xlu1 %2126 }
 0x3ff   :  { %9142 = vst [vmem:[#allocation50_spill] sm:$0xff] %v6360_v19  ;;  %v2394_v24 = vrot.slane %v2380_v48, 4  ;;  %v2181_v19 = vstv %s5185_s19  ;;  %s7154_s19 = sld [smem:[#allocation8 + $0x38]] }
 0x402   :  { %2247 = vrot.lane.b32.xlu2 %v2240_v51, %s5501_s21  ;;  %2243 = vrot.lane.b32.xlu1 %v2235_v20, %s5501_s21  ;;  %v2148_v51 = vmul.f32 %v6234_v38, %v6113_v9  ;;  %v2303_v20 = vmul.f32 %v6288_v15, %v6030_v5 }
 0x403   :  { %2039 = vrot.lane.b32.xlu0 %v2031_v25, %s5500_s20 }
 0x404   :  { %v6310_v53 = vpop.permute.xlu2 %2130  ;;  %v2163_v4 = vrot.slane %v2148_v51, 1  ;;  %v2317_v21 = vrot.slane %v2303_v20, 3  ;;  %v2392_v51 = vrot.slane %v2379_v59, 4  ;;  %v9075_v20 = vrot.slane %v6346_v11, 4 }
 0x405   :  { %9136 = vst [vmem:[#allocation44_spill] sm:$0xff] %v6310_v53 }
 0x406   :  { %v2320_v38 = vsel %vm1335_vm9, %v2317_v21, %v2319_v33 }
 0x40a   :  { %2321 = vrot.lane.b32.xlu2 %v2313_v30, %s5501_s21  ;;  %2249 = vrot.lane.b32.xlu1 %v2242_v8, %s5501_s21  ;;  %v2164_v30 = vsel %vm1209_vm7, %v2161_v27, %v2163_v4  ;;  %v2223_v8 = vmul.f32 %v6257_v40, %v6101_v7  ;;  %v6358_v27 = vpop.permute.xlu0 %1608  ;;  %v6363_v4 = vstv %s5164_s0  ;;  %s6980_s0 = sld [smem:[#allocation8 + $0xe]] }
 0x40b   :  { %2165 = vrot.lane.b32.xlu0 %v2157_v52, %s5501_s21  ;;  %v2378_v52 = vmul.f32 %v6334_v58, %v6023_v29  ;;  %9141 = vst [vmem:[#allocation49_spill] sm:$0xff] %v6358_v27 }
 0x40c   :  { %v6330_v25 = vpop.permute.xlu2 %2644  ;;  %v2236_v40 = vrot.slane %v2223_v8, 2  ;;  %v6377_v8 = vmul.f32 %v6363_v4, %v6023_v29 }
 0x40d   :  { %9138 = vst [vmem:[#allocation46_spill] sm:$0xff] %v6330_v25  ;;  %v2390_v33 = vrot.slane %v2378_v52, 4  ;;  %v2458_v52 = vmul.f32 %v6363_v4, %v6011_v32 }
 0x40e   :  { %v2237_v59 = vsel %vm1272_vm8, %v2234_v10, %v2236_v40 }
 0x412   :  { %2327 = vrot.lane.b32.xlu2 %v2320_v38, %s5501_s21  ;;  %2323 = vrot.lane.b32.xlu1 %v2315_v47, %s5501_s21  ;;  %v2393_v38 = vsel %vm1398_vm10, %v2390_v33, %v2392_v51  ;;  %v2459_v47 = vmul.f32 %v6363_v4, %v6030_v5  ;;  %v2455_v51 = vmul.f32 %v6363_v4, %v6002_v31 }
 0x413   :  { %2171 = vrot.lane.b32.xlu0 %v2164_v30, %s5501_s21  ;;  %v2396_v30 = vsel %vm1398_vm10, %v2394_v24, %v9075_v20  ;;  %v2316_v20 = vrot.slane %v2302_v61, 3 }
 0x414   :  { %v6354_v14 = vpop.permute.xlu2 %1647  ;;  %v2473_v24 = vrot.slane %v2459_v47, 5 }
 0x415   :  { %9140 = vst [vmem:[#allocation48_spill] sm:$0xff] %v6354_v14  ;;  %v2318_v47 = vsel %vm1335_vm9, %v2316_v20, %v2317_v21  ;;  %v2546_v21 = vrot.slane %v2534_v6, 6  ;;  %v2382_v6 = vmul.f32 %v6334_v58, %v6113_v9 }
 0x41a   :  { %2401 = vrot.lane.b32.xlu2 %v2393_v38, %s5501_s21  ;;  %2403 = vrot.lane.b32.xlu1 %v2396_v30, %s5501_s21  ;;  %v9079_v38 = vrot.slane %v6377_v8, 5  ;;  %v2472_v30 = vrot.slane %v2458_v52, 5  ;;  %v2460_v52 = vmul.f32 %v6363_v4, %v6113_v9 }
 0x41b   :  { %2245 = vrot.lane.b32.xlu0 %v2237_v59, %s5501_s21  ;;  %v2467_v59 = vrot.slane %v2455_v51, 5  ;;  %v2533_v51 = vmul.f32 %v6394_v55, %v6002_v31 }
 0x41c   :  { %v6383_v48 = vpop.permute.xlu2 %1653  ;;  %v6389_v10 = vpop.permute.xlu1 %2132  ;;  %v2474_v57 = vsel %vm1461_vm11, %v2472_v30, %v2473_v24  ;;  %v2475_v20 = vrot.slane %v2460_v52, 5 }
 0x41d   :  { %9143 = vst [vmem:[#allocation51_spill] sm:$0xff] %v6383_v48  ;;  %v6391_v40 = vpop.permute.xlu0 %1614  ;;  %v2469_v15 = vsel %vm1461_vm11, %v2467_v59, %v9079_v38  ;;  %v2545_v38 = vrot.slane %v2533_v51, 6 }
 0x41e   :  { %9144 = vst [vmem:[#allocation52_spill] sm:$0xff] %v6389_v10  ;;  %v2476_v42 = vsel %vm1461_vm11, %v2473_v24, %v2475_v20 }
 0x41f   :  { %9145 = vst [vmem:[#allocation53_spill] sm:$0xff] %v6391_v40 }
 0x422   :  { %2481 = vrot.lane.b32.xlu2 %v2474_v57, %s5501_s21  ;;  %2477 = vrot.lane.b32.xlu1 %v2469_v15, %s5501_s21  ;;  %v2377_v57 = vmul.f32 %v6334_v58, %v6002_v31  ;;  %v2547_v15 = vsel %vm1524_vm12, %v2545_v38, %v2546_v21  ;;  %v2537_v38 = vmul.f32 %v6394_v55, %v6030_v5  ;;  %v9152_v58 = vrot.slane %v6346_v11, 4 }
 0x423   :  { %2325 = vrot.lane.b32.xlu0 %v2318_v47, %s5501_s21  ;;  %v2538_v47 = vmul.f32 %v6394_v55, %v6113_v9 }
 0x424   :  { %v6410_v61 = vpop.permute.xlu2 %1727  ;;  %v6414_v30 = vpop.permute.xlu1 %2646  ;;  %v2389_v46 = vrot.slane %v2377_v57, 4  ;;  %v2397_v57 = vrot.slane %v2382_v6, 4  ;;  %v2551_v20 = vrot.slane %v2537_v38, 6 }
 0x425   :  { %9146 = vst [vmem:[#allocation54_spill] sm:$0xff] %v6410_v61  ;;  %v6416_v59 = vpop.permute.xlu0 %2128 }
 0x426   :  { %9147 = vst [vmem:[#allocation55_spill] sm:$0xff] %v6414_v30  ;;  %v2391_v44 = vsel %vm1398_vm10, %v2389_v46, %v2390_v33  ;;  %v2553_v46 = vrot.slane %v2538_v47, 6  ;;  %v2548_v33 = vrot.slane %v2535_v62, 6  ;;  %v2398_v35 = vsel %vm1398_vm10, %v9152_v58, %v2397_v57 }
 0x427   :  { %9148 = vst [vmem:[#allocation56_spill] sm:$0xff] %v6416_v59  ;;  %v2457_v47 = vmul.f32 %v6363_v4, %v6101_v7  ;;  %v9156_v4 = vrot.slane %v6377_v8, 5  ;;  %v6653_v59 = vld [vmem:[#allocation2 + $0x20] sm:$0xff] }
 0x428   :  { %v2554_v9 = vsel %vm1524_vm12, %v2551_v20, %v2553_v46 }
 0x42a   :  { %2555 = vrot.lane.b32.xlu2 %v2547_v15, %s5501_s21  ;;  %2483 = vrot.lane.b32.xlu1 %v2476_v42, %s5501_s21  ;;  %v6438_v15 = vstv %s5137_s14  ;;  %v2549_v42 = vsel %vm1524_vm12, %v2546_v21, %v2548_v33  ;;  %v2470_v33 = vrot.slane %v2457_v47, 5  ;;  %v2536_v47 = vmul.f32 %v6394_v55, %v6011_v32  ;;  %s5155_s14 = sld [smem:[#allocation8 + $0x1c]] }
 0x42b   :  { %2399 = vrot.lane.b32.xlu0 %v2391_v44, %s5501_s21  ;;  %v2662_v44 = vmul.f32 %v6438_v15, %v6023_v29  ;;  %v2663_v62 = vmul.f32 %v6438_v15, %v6101_v7  ;;  %v2661_v29 = vmul.f32 %v6438_v15, %v6002_v31  ;;  %v6465_v7 = vmul.f32 %v6438_v15, %v6030_v5 }
 0x42c   :  { %v6432_v52 = vpop.permute.xlu2 %1807  ;;  %v6434_v51 = vpop.permute.xlu1 %1649  ;;  %v2664_v58 = vmul.f32 %v6438_v15, %v6011_v32 }
 0x42d   :  { %9149 = vst [vmem:[#allocation57_spill] sm:$0xff] %v6432_v52  ;;  %v6436_v24 = vpop.permute.xlu0 %2648  ;;  %v2674_v38 = vrot.slane %v2662_v44, 1  ;;  %v2676_v46 = vrot.slane %v2663_v62, 1  ;;  %v2673_v57 = vrot.slane %v2661_v29, 1 }
 0x42e   :  { %9150 = vst [vmem:[#allocation58_spill] sm:$0xff] %v6434_v51 }
 0x42f   :  { %9151 = vst [vmem:[#allocation59_spill] sm:$0xff] %v6436_v24  ;;  %v2677_v31 = vsel %vm1209_vm7, %v2674_v38, %v2676_v46 }
 0x432   :  { %2561 = vrot.lane.b32.xlu2 %v2554_v9, %s5501_s21  ;;  %2557 = vrot.lane.b32.xlu1 %v2549_v42, %s5501_s21  ;;  %v2675_v9 = vsel %vm1209_vm7, %v2673_v57, %v2674_v38  ;;  %v2471_v42 = vsel %vm1461_vm11, %v9156_v4, %v2470_v33  ;;  %v9087_v38 = vrot.slane %v6465_v7, 1  ;;  %v6487_v33 = vld [vmem:[#allocation2 + $0x28] sm:$0x3f]  ;;  %v6489_v57 = vld [vmem:[#allocation2 + $0x58] sm:$0x3f]  ;;  %v2550_v4 = vrot.slane %v2536_v47, 6 }
 0x433   :  { %2405 = vrot.lane.b32.xlu0 %v2398_v35, %s5501_s21  ;;  %v1663_v35 = vstv %s5184_s5  ;;  %s5162_s5 = sld [smem:[#allocation8 + $0x23]] }
 0x434   :  { %v6456_v6 = vpop.permute.xlu2 %1881  ;;  %v6458_v21 = vpop.permute.xlu1 %1729  ;;  %v1665_v44 = vmul.f32 %v1663_v35, %v6085_v0  ;;  %v1664_v62 = vmul.f32 %v1663_v35, %v6067_v36  ;;  %v1668_v55 = vmul.f32 %v1663_v35, %v6091_v12  ;;  %v1666_v56 = vmul.f32 %v1663_v35, %v6487_v33 }
 0x435   :  { %9153 = vst [vmem:[#allocation60_spill] sm:$0xff] %v6456_v6  ;;  %v6460_v11 = vpop.permute.xlu0 %2650  ;;  %v1669_v23 = vmul.f32 %v1663_v35, %v6489_v57 }
 0x436   :  { %9154 = vst [vmem:[#allocation61_spill] sm:$0xff] %v6458_v21  ;;  %v1677_v46 = vrot.slane %v1665_v44, 1  ;;  %v2552_v44 = vsel %vm1524_vm12, %v2550_v4, %v2551_v20  ;;  %v1741_v4 = vstv %s5191_s6  ;;  %s5169_s6 = sld [smem:[#allocation8 + $0x2a]] }
 0x437   :  { %9155 = vst [vmem:[#allocation62_spill] sm:$0xff] %v6460_v11  ;;  %v1743_v13 = vmul.f32 %v1741_v4, %v6085_v0  ;;  %v1744_v43 = vmul.f32 %v1741_v4, %v6487_v33 }
 0x43a   :  { %2683 = vrot.lane.b32.xlu2 %v2675_v9, %s5502_s22  ;;  %2685 = vrot.lane.b32.xlu1 %v2677_v31, %s5502_s22  ;;  %v2678_v9 = vrot.slane %v2664_v58, 1  ;;  %v1676_v31 = vrot.slane %v1664_v62, 1  ;;  %v1667_v58 = vmul.f32 %v1663_v35, %v6060_v26 }
 0x43b   :  { %2479 = vrot.lane.b32.xlu0 %v2471_v42, %s5501_s21 }
 0x43c   :  { %v6477_v5 = vpop.permute.xlu2 %1887  ;;  %v6482_v29 = vpop.permute.xlu1 %1803  ;;  %v2680_v42 = vsel %vm1209_vm7, %v2678_v9, %v9087_v38  ;;  %v1678_v32 = vsel %vm1209_vm7, %v1676_v31, %v1677_v46  ;;  %v1679_v31 = vrot.slane %v1666_v56, 1  ;;  %v1684_v38 = vrot.slane %v1669_v23, 1 }
 0x43d   :  { %9157 = vst [vmem:[#allocation63_spill] sm:$0xff] %v6477_v5  ;;  %v6484_v8 = vpop.permute.xlu0 %1651  ;;  %v1681_v20 = vrot.slane %v1667_v58, 1  ;;  %v1742_v23 = vmul.f32 %v1741_v4, %v6067_v36 }
 0x43e   :  { %9158 = vst [vmem:[#allocation64_spill] sm:$0xff] %v6482_v29  ;;  %v1680_v35 = vsel %vm1209_vm7, %v1677_v46, %v1679_v31  ;;  %v1755_v46 = vrot.slane %v1743_v13, 2 }
 0x43f   :  { %9159 = vst [vmem:[#allocation65_spill] sm:$0xff] %v6484_v8  ;;  %v1754_v31 = vrot.slane %v1742_v23, 2 }
 0x441   :  { %v1756_v54 = vsel %vm1272_vm8, %v1754_v31, %v1755_v46 }
 0x442   :  { %2687 = vrot.lane.b32.xlu2 %v2680_v42, %s5502_s22  ;;  %1686 = vrot.lane.b32.xlu1 %v1678_v32, %s5500_s20  ;;  %v1682_v42 = vrot.slane %v1668_v55, 1  ;;  %v1745_v55 = vmul.f32 %v1741_v4, %v6060_v26 }
 0x443   :  { %2559 = vrot.lane.b32.xlu0 %v2552_v44, %s5501_s21  ;;  %v1746_v44 = vmul.f32 %v1741_v4, %v6091_v12 }
 0x444   :  { %v6503_v62 = vpop.permute.xlu2 %1961  ;;  %v6505_v47 = vpop.permute.xlu1 %1809  ;;  %v1683_v49 = vsel %vm1209_vm7, %v1681_v20, %v1682_v42  ;;  %v1685_v32 = vsel %vm1209_vm7, %v1682_v42, %v1684_v38  ;;  %v1757_v42 = vrot.slane %v1744_v43, 2  ;;  %v1759_v20 = vrot.slane %v1745_v55, 2 }
 0x445   :  { %9160 = vst [vmem:[#allocation66_spill] sm:$0xff] %v6503_v62  ;;  %v6507_v9 = vpop.permute.xlu0 %1725  ;;  %v1760_v38 = vrot.slane %v1746_v44, 2 }
 0x446   :  { %9161 = vst [vmem:[#allocation67_spill] sm:$0xff] %v6505_v47  ;;  %v1758_v2 = vsel %vm1272_vm8, %v1755_v46, %v1757_v42 }
 0x447   :  { %9162 = vst [vmem:[#allocation68_spill] sm:$0xff] %v6507_v9  ;;  %v1761_v34 = vsel %vm1272_vm8, %v1759_v20, %v1760_v38 }
 0x44a   :  { %1690 = vrot.lane.b32.xlu2 %v1683_v49, %s5500_s20  ;;  %1692 = vrot.lane.b32.xlu1 %v1685_v32, %s5500_s20  ;;  %v1747_v32 = vmul.f32 %v1741_v4, %v6489_v57 }
 0x44b   :  { %1688 = vrot.lane.b32.xlu0 %v1680_v35, %s5500_s20  ;;  %v1819_v35 = vstv %s5198_s15  ;;  %s1068_s15 = sld [smem:[#allocation8]] }
 0x44c   :  { %v6519_v56 = vpop.permute.xlu2 %2041  ;;  %v6522_v58 = vpop.permute.xlu1 %1883  ;;  %v1821_v25 = vmul.f32 %v1819_v35, %v6085_v0  ;;  %v1824_v13 = vmul.f32 %v1819_v35, %v6091_v12  ;;  %v1820_v44 = vmul.f32 %v1819_v35, %v6067_v36  ;;  %v1823_v4 = vmul.f32 %v1819_v35, %v6060_v26 }
 0x44d   :  { %9163 = vst [vmem:[#allocation69_spill] sm:$0xff] %v6519_v56  ;;  %v6524_v49 = vpop.permute.xlu0 %1731  ;;  %v1762_v55 = vrot.slane %v1747_v32, 2  ;;  %v1825_v11 = vmul.f32 %v1819_v35, %v6489_v57 }
 0x44e   :  { %9164 = vst [vmem:[#allocation70_spill] sm:$0xff] %v6522_v58  ;;  %v1833_v46 = vrot.slane %v1821_v25, 3  ;;  %v1838_v42 = vrot.slane %v1824_v13, 3  ;;  %v1832_v31 = vrot.slane %v1820_v44, 3  ;;  %v1837_v20 = vrot.slane %v1823_v4, 3 }
 0x44f   :  { %9165 = vst [vmem:[#allocation71_spill] sm:$0xff] %v6524_v49  ;;  %v1763_v28 = vsel %vm1272_vm8, %v1760_v38, %v1762_v55 }
 0x450   :  { %v1834_v24 = vsel %vm1335_vm9, %v1832_v31, %v1833_v46  ;;  %v1839_v30 = vsel %vm1335_vm9, %v1837_v20, %v1838_v42 }
 0x452   :  { %1764 = vrot.lane.b32.xlu2 %v1756_v54, %s5500_s20  ;;  %1766 = vrot.lane.b32.xlu1 %v1758_v2, %s5500_s20  ;;  %v1897_v2 = vstv %s5205_s16  ;;  %s7041_s16 = sld [smem:[#allocation8 + $0x4]] }
 0x453   :  { %1768 = vrot.lane.b32.xlu0 %v1761_v34, %s5500_s20  ;;  %v1822_v34 = vmul.f32 %v1819_v35, %v6487_v33  ;;  %v1899_v39 = vmul.f32 %v1897_v2, %v6085_v0  ;;  %v1898_v38 = vmul.f32 %v1897_v2, %v6067_v36  ;;  %v1902_v31 = vmul.f32 %v1897_v2, %v6091_v12 }
 0x454   :  { %v6535_v43 = vpop.permute.xlu2 %2167  ;;  %v6539_v23 = vpop.permute.xlu1 %1963  ;;  %v1900_v20 = vmul.f32 %v1897_v2, %v6487_v33  ;;  %v1903_v22 = vmul.f32 %v1897_v2, %v6489_v57 }
 0x455   :  { %9166 = vst [vmem:[#allocation72_spill] sm:$0xff] %v6535_v43  ;;  %v6541_v54 = vpop.permute.xlu0 %1805  ;;  %v1835_v44 = vrot.slane %v1822_v34, 3  ;;  %v1911_v4 = vrot.slane %v1899_v39, 4  ;;  %v1910_v55 = vrot.slane %v1898_v38, 4  ;;  %v1901_v39 = vmul.f32 %v1897_v2, %v6060_v26 }
 0x456   :  { %9167 = vst [vmem:[#allocation73_spill] sm:$0xff] %v6539_v23  ;;  %v1913_v38 = vrot.slane %v1900_v20, 4  ;;  %v6813_v23 = vld [vmem:[#allocation2 + $0x38] sm:$0xff] }
 0x457   :  { %9168 = vst [vmem:[#allocation74_spill] sm:$0xff] %v6541_v54  ;;  %v1836_v35 = vsel %vm1335_vm9, %v1833_v46, %v1835_v44  ;;  %v1918_v44 = vrot.slane %v1903_v22, 4 }
 0x458   :  { %v7118_v5 = vstv %s7041_s16  ;;  %s5195_s16 = sld [smem:[#allocation8 + $0x44]] }
 0x45a   :  { %1770 = vrot.lane.b32.xlu2 %v1763_v28, %s5500_s20  ;;  %1846 = vrot.lane.b32.xlu1 %v1839_v30, %s5500_s20  ;;  %v1840_v28 = vrot.slane %v1825_v11, 3  ;;  %v1912_v30 = vsel %vm1398_vm10, %v1910_v55, %v1911_v4  ;;  %v1975_v55 = vstv %s5212_s17  ;;  %s7133_s17 = sld [smem:[#allocation8 + $0x31]] }
 0x45b   :  { %1842 = vrot.lane.b32.xlu0 %v1834_v24, %s5500_s20  ;;  %v1977_v41 = vmul.f32 %v1975_v55, %v6085_v0  ;;  %v1976_v22 = vmul.f32 %v1975_v55, %v6067_v36  ;;  %v1979_v20 = vmul.f32 %v1975_v55, %v6060_v26 }
 0x45c   :  { %v6552_v25 = vpop.permute.xlu2 %2247  ;;  %v6555_v32 = vpop.permute.xlu1 %2037  ;;  %v1841_v24 = vsel %vm1335_vm9, %v1838_v42, %v1840_v28  ;;  %v1916_v42 = vrot.slane %v1902_v31, 4  ;;  %v1915_v28 = vrot.slane %v1901_v39, 4 }
 0x45d   :  { %9169 = vst [vmem:[#allocation75_spill] sm:$0xff] %v6552_v25  ;;  %v6557_v13 = vpop.permute.xlu0 %1885 }
 0x45e   :  { %9170 = vst [vmem:[#allocation76_spill] sm:$0xff] %v6555_v32  ;;  %v1919_v2 = vsel %vm1398_vm10, %v1916_v42, %v1918_v44 }
 0x45f   :  { %9171 = vst [vmem:[#allocation77_spill] sm:$0xff] %v6557_v13 }
 0x462   :  { %1844 = vrot.lane.b32.xlu2 %v1836_v35, %s5500_s20  ;;  %1920 = vrot.lane.b32.xlu1 %v1912_v30, %s5500_s20  ;;  %v1917_v35 = vsel %vm1398_vm10, %v1915_v28, %v1916_v42  ;;  %v1980_v30 = vmul.f32 %v1975_v55, %v6091_v12  ;;  %v1988_v28 = vrot.slane %v1976_v22, 5  ;;  %v6606_v22 = vld [vmem:[#allocation2 + $0x48] sm:$0xff] }
 0x463   :  { %1848 = vrot.lane.b32.xlu0 %v1841_v24, %s5500_s20  ;;  %v1914_v24 = vsel %vm1398_vm10, %v1911_v4, %v1913_v38  ;;  %v1989_v38 = vrot.slane %v1977_v41, 5 }
 0x464   :  { %v6569_v11 = vpop.permute.xlu2 %2321  ;;  %v6571_v46 = vpop.permute.xlu1 %2043  ;;  %v1994_v42 = vrot.slane %v1980_v30, 5  ;;  %v6603_v30 = vld [vmem:[#allocation2 + $0x18] sm:$0xff] }
 0x465   :  { %9172 = vst [vmem:[#allocation78_spill] sm:$0xff] %v6569_v11  ;;  %v6573_v34 = vpop.permute.xlu0 %1959  ;;  %v1978_v11 = vmul.f32 %v1975_v55, %v6487_v33  ;;  %v1990_v25 = vsel %vm1461_vm11, %v1988_v28, %v1989_v38 }
 0x466   :  { %9173 = vst [vmem:[#allocation79_spill] sm:$0xff] %v6571_v46 }
 0x467   :  { %9174 = vst [vmem:[#allocation80_spill] sm:$0xff] %v6573_v34  ;;  %v1991_v44 = vrot.slane %v1978_v11, 5  ;;  %v2777_v34 = vstv %s5193_s27  ;;  %s7463_s27 = sld [smem:[#allocation8 + $0x12]] }
 0x469   :  { %v1992_v26 = vsel %vm1461_vm11, %v1989_v38, %v1991_v44 }
 0x46a   :  { %1924 = vrot.lane.b32.xlu2 %v1917_v35, %s5500_s20  ;;  %1926 = vrot.lane.b32.xlu1 %v1919_v2, %s5500_s20  ;;  %v1993_v35 = vrot.slane %v1979_v20, 5  ;;  %v1981_v2 = vmul.f32 %v1975_v55, %v6489_v57 }
 0x46b   :  { %1922 = vrot.lane.b32.xlu0 %v1914_v24, %s5500_s20  ;;  %v2053_v24 = vstv %s5219_s18  ;;  %s7152_s18 = sld [smem:[#allocation8 + $0x35]] }
 0x46c   :  { %v6585_v31 = vpop.permute.xlu2 %2327  ;;  %v6588_v39 = vpop.permute.xlu1 %2169  ;;  %v1995_v36 = vsel %vm1461_vm11, %v1993_v35, %v1994_v42  ;;  %v2058_v41 = vmul.f32 %v2053_v24, %v6091_v12  ;;  %v2054_v55 = vmul.f32 %v6603_v30, %v2053_v24  ;;  %v1996_v44 = vrot.slane %v1981_v2, 5 }
 0x46d   :  { %9175 = vst [vmem:[#allocation81_spill] sm:$0xff] %v6585_v31  ;;  %v6590_v4 = vpop.permute.xlu0 %1965  ;;  %v2055_v31 = vmul.f32 %v2053_v24, %v6085_v0  ;;  %v2184_v2 = vmul.f32 %v2181_v19, %v6487_v33 }
 0x46e   :  { %9176 = vst [vmem:[#allocation82_spill] sm:$0xff] %v6588_v39  ;;  %v2072_v28 = vrot.slane %v2058_v41, 6  ;;  %v2066_v35 = vrot.slane %v2054_v55, 6 }
 0x46f   :  { %9177 = vst [vmem:[#allocation83_spill] sm:$0xff] %v6590_v4  ;;  %v2067_v12 = vrot.slane %v2055_v31, 6 }
 0x471   :  { %v2068_v39 = vsel %vm1524_vm12, %v2066_v35, %v2067_v12  ;;  %v2197_v35 = vrot.slane %v2184_v2, 1 }
 0x472   :  { %1998 = vrot.lane.b32.xlu2 %v1990_v25, %s5500_s20  ;;  %2000 = vrot.lane.b32.xlu1 %v1992_v26, %s5500_s20  ;;  %v2057_v25 = vmul.f32 %v6606_v22, %v2053_v24  ;;  %v1997_v26 = vsel %vm1461_vm11, %v1994_v42, %v1996_v44  ;;  %v2183_v42 = vmul.f32 %v2181_v19, %v6085_v0 }
 0x473   :  { %2002 = vrot.lane.b32.xlu0 %v1995_v36, %s5500_s20 }
 0x474   :  { %v6601_v11 = vpop.permute.xlu2 %2401  ;;  %v6609_v20 = vpop.permute.xlu1 %2243  ;;  %v2071_v36 = vrot.slane %v2057_v25, 6 }
 0x475   :  { %9178 = vst [vmem:[#allocation84_spill] sm:$0xff] %v6601_v11  ;;  %v6611_v38 = vpop.permute.xlu0 %2039  ;;  %v2056_v11 = vmul.f32 %v2053_v24, %v6487_v33 }
 0x476   :  { %9179 = vst [vmem:[#allocation85_spill] sm:$0xff] %v6609_v20  ;;  %v2073_v43 = vsel %vm1524_vm12, %v2071_v36, %v2072_v28  ;;  %v2059_v20 = vmul.f32 %v2053_v24, %v6489_v57  ;;  %v2195_v36 = vrot.slane %v2183_v42, 1 }
 0x477   :  { %9180 = vst [vmem:[#allocation86_spill] sm:$0xff] %v6611_v38  ;;  %v2069_v25 = vrot.slane %v2056_v11, 6  ;;  %v2182_v11 = vmul.f32 %v6603_v30, %v2181_v19 }
 0x478   :  { %v2074_v44 = vrot.slane %v2059_v20, 6 }
 0x479   :  { %v2070_v24 = vsel %vm1524_vm12, %v2067_v12, %v2069_v25  ;;  %v2185_v12 = vmul.f32 %v6606_v22, %v2181_v19 }
 0x47a   :  { %2004 = vrot.lane.b32.xlu2 %v1997_v26, %s5500_s20  ;;  %2080 = vrot.lane.b32.xlu1 %v2073_v43, %s5500_s20  ;;  %v2259_v26 = vstv %s5192_s1  ;;  %v2198_v43 = vsel %vm1209_vm7, %v2195_v36, %v2197_v35  ;;  %v2194_v35 = vrot.slane %v2182_v11, 1  ;;  %s7170_s1 = sld [smem:[#allocation8 + $0x3f]] }
 0x47b   :  { %2076 = vrot.lane.b32.xlu0 %v2068_v39, %s5500_s20  ;;  %v2075_v39 = vsel %vm1524_vm12, %v2072_v28, %v2074_v44  ;;  %v2263_v28 = vmul.f32 %v6606_v22, %v2259_v26 }
 0x47c   :  { %v6622_v31 = vpop.permute.xlu2 %2481  ;;  %v6625_v41 = vpop.permute.xlu1 %2249 }
 0x47d   :  { %9181 = vst [vmem:[#allocation87_spill] sm:$0xff] %v6622_v31  ;;  %v6627_v55 = vpop.permute.xlu0 %2165  ;;  %v6633_v31 = vld [vmem:[#allocation2 + $0x50] sm:$0xff] }
 0x47e   :  { %9182 = vst [vmem:[#allocation88_spill] sm:$0xff] %v6625_v41  ;;  %v2186_v0 = vmul.f32 %v6633_v31, %v2181_v19  ;;  %v2264_v41 = vmul.f32 %v6633_v31, %v2259_v26 }
 0x47f   :  { %9183 = vst [vmem:[#allocation89_spill] sm:$0xff] %v6627_v55  ;;  %v2277_v55 = vrot.slane %v2263_v28, 2 }
 0x480   :  { %v2200_v25 = vrot.slane %v2186_v0, 1  ;;  %v2278_v44 = vrot.slane %v2264_v41, 2  ;;  %v2339_v41 = vmul.f32 %v6653_v59, %v2337_v17  ;;  %v2338_v0 = vmul.f32 %v6603_v30, %v2337_v17 }
 0x482   :  { %2078 = vrot.lane.b32.xlu2 %v2070_v24, %s5500_s20  ;;  %2206 = vrot.lane.b32.xlu1 %v2198_v43, %s5501_s21  ;;  %v2199_v24 = vrot.slane %v2185_v12, 1  ;;  %v2187_v43 = vmul.f32 %v2181_v19, %v6489_v57  ;;  %v2279_v53 = vsel %vm1272_vm8, %v2277_v55, %v2278_v44  ;;  %v2260_v19 = vmul.f32 %v6603_v30, %v2259_v26 }
 0x483   :  { %2082 = vrot.lane.b32.xlu0 %v2075_v39, %s5500_s20  ;;  %v2196_v39 = vsel %vm1209_vm7, %v2194_v35, %v2195_v36  ;;  %v2351_v35 = vrot.slane %v2339_v41, 3  ;;  %s5206_s20 = sld [smem:[#allocation8 + $0x4f]] }
 0x484   :  { %v6640_v20 = vpop.permute.xlu2 %2555  ;;  %v6644_v2 = vpop.permute.xlu1 %2323  ;;  %v2202_v55 = vrot.slane %v2187_v43, 1 }
 0x485   :  { %9184 = vst [vmem:[#allocation90_spill] sm:$0xff] %v6640_v20  ;;  %v6646_v42 = vpop.permute.xlu0 %2171  ;;  %v2201_v20 = vsel %vm1209_vm7, %v2199_v24, %v2200_v25  ;;  %v2272_v24 = vrot.slane %v2260_v19, 2 }
 0x486   :  { %9185 = vst [vmem:[#allocation91_spill] sm:$0xff] %v6644_v2  ;;  %v2261_v2 = vmul.f32 %v6653_v59, %v2259_v26 }
 0x487   :  { %9186 = vst [vmem:[#allocation92_spill] sm:$0xff] %v6646_v42  ;;  %v2203_v42 = vsel %vm1209_vm7, %v2200_v25, %v2202_v55  ;;  %v2342_v25 = vmul.f32 %v6633_v31, %v2337_v17 }
 0x488   :  { %v2273_v28 = vrot.slane %v2261_v2, 2 }
 0x489   :  { %v2356_v55 = vrot.slane %v2342_v25, 3 }
 0x48a   :  { %2204 = vrot.lane.b32.xlu2 %v2196_v39, %s5501_s21  ;;  %2286 = vrot.lane.b32.xlu1 %v2279_v53, %s5501_s21  ;;  %v2350_v39 = vrot.slane %v2338_v0, 3  ;;  %v2274_v53 = vsel %vm1272_vm8, %v2272_v24, %v2273_v28  ;;  %v2415_v24 = vstv %s5206_s20  ;;  %s7183_s20 = sld [smem:[#allocation8 + $0x46]] }
 0x48b   :  { %2208 = vrot.lane.b32.xlu0 %v2201_v20, %s5501_s21  ;;  %v2262_v20 = vmul.f32 %v2259_v26, %v6487_v33 }
 0x48c   :  { %v6659_v36 = vpop.permute.xlu2 %2561  ;;  %v6663_v11 = vpop.permute.xlu1 %2403 }
 0x48d   :  { %9187 = vst [vmem:[#allocation93_spill] sm:$0xff] %v6659_v36  ;;  %v6665_v12 = vpop.permute.xlu0 %2245  ;;  %v2352_v36 = vsel %vm1335_vm9, %v2350_v39, %v2351_v35  ;;  %v2275_v19 = vrot.slane %v2262_v20, 2 }
 0x48e   :  { %9188 = vst [vmem:[#allocation94_spill] sm:$0xff] %v6663_v11  ;;  %v2265_v11 = vmul.f32 %v2259_v26, %v6489_v57 }
 0x48f   :  { %9189 = vst [vmem:[#allocation95_spill] sm:$0xff] %v6665_v12  ;;  %v2343_v12 = vmul.f32 %v2337_v17, %v6489_v57  ;;  %v2276_v26 = vsel %vm1272_vm8, %v2273_v28, %v2275_v19  ;;  %v2417_v28 = vmul.f32 %v6653_v59, %v2415_v24 }
 0x491   :  { %v2358_v0 = vrot.slane %v2343_v12, 3 }
 0x492   :  { %2210 = vrot.lane.b32.xlu2 %v2203_v42, %s5501_s21  ;;  %2360 = vrot.lane.b32.xlu1 %v2352_v36, %s5501_s21  ;;  %v2280_v42 = vrot.slane %v2265_v11, 2  ;;  %v2341_v11 = vmul.f32 %v6606_v22, %v2337_v17 }
 0x493   :  { %2282 = vrot.lane.b32.xlu0 %v2274_v53, %s5501_s21  ;;  %v2359_v36 = vsel %vm1335_vm9, %v2356_v55, %v2358_v0  ;;  %v2340_v53 = vmul.f32 %v2337_v17, %v6487_v33  ;;  %v2429_v0 = vrot.slane %v2417_v28, 4 }
 0x494   :  { %v6676_v2 = vpop.permute.xlu2 %2683  ;;  %v6679_v43 = vpop.permute.xlu1 %2477  ;;  %v2281_v39 = vsel %vm1272_vm8, %v2278_v44, %v2280_v42  ;;  %v2355_v42 = vrot.slane %v2341_v11, 3 }
 0x495   :  { %9190 = vst [vmem:[#allocation96_spill] sm:$0xff] %v6676_v2  ;;  %v6681_v41 = vpop.permute.xlu0 %2325  ;;  %v2418_v2 = vmul.f32 %v2415_v24, %v6487_v33  ;;  %v2353_v25 = vrot.slane %v2340_v53, 3 }
 0x496   :  { %9191 = vst [vmem:[#allocation97_spill] sm:$0xff] %v6679_v43  ;;  %v2493_v43 = vstv %s5213_s23  ;;  %s7197_s23 = sld [smem:[#allocation8 + $0x4d]] }
 0x497   :  { %9192 = vst [vmem:[#allocation98_spill] sm:$0xff] %v6681_v41  ;;  %v2431_v19 = vrot.slane %v2418_v2, 4  ;;  %v2416_v2 = vmul.f32 %v6603_v30, %v2415_v24 }
 0x499   :  { %v2432_v17 = vsel %vm1398_vm10, %v2429_v0, %v2431_v19 }
 0x49a   :  { %2284 = vrot.lane.b32.xlu2 %v2276_v26, %s5501_s21  ;;  %2366 = vrot.lane.b32.xlu1 %v2359_v36, %s5501_s21  ;;  %v2357_v26 = vsel %vm1335_vm9, %v2355_v42, %v2356_v55  ;;  %v2420_v36 = vmul.f32 %v6633_v31, %v2415_v24  ;;  %v2419_v55 = vmul.f32 %v6606_v22, %v2415_v24  ;;  %v2428_v42 = vrot.slane %v2416_v2, 4 }
 0x49b   :  { %2288 = vrot.lane.b32.xlu0 %v2281_v39, %s5501_s21  ;;  %v2354_v39 = vsel %vm1335_vm9, %v2351_v35, %v2353_v25  ;;  %v2497_v35 = vmul.f32 %v6606_v22, %v2493_v43 }
 0x49c   :  { %v6692_v12 = vpop.permute.xlu2 %2687  ;;  %v6695_v20 = vpop.permute.xlu1 %2483  ;;  %v2434_v25 = vrot.slane %v2420_v36, 4 }
 0x49d   :  { %9193 = vst [vmem:[#allocation99_spill] sm:$0xff] %v6692_v12  ;;  %v6697_v44 = vpop.permute.xlu0 %2399  ;;  %v2498_v12 = vmul.f32 %v6633_v31, %v2493_v43 }
 0x49e   :  { %9194 = vst [vmem:[#allocation100_spill] sm:$0xff] %v6695_v20  ;;  %v2511_v20 = vrot.slane %v2497_v35, 5 }
 0x49f   :  { %9195 = vst [vmem:[#allocation101_spill] sm:$0xff] %v6697_v44  ;;  %v2512_v19 = vrot.slane %v2498_v12, 5  ;;  %v2571_v44 = vstv %s5220_s24  ;;  %s7205_s24 = sld [smem:[#allocation8 + $0x54]] }
 0x4a1   :  { %v2513_v10 = vsel %vm1461_vm11, %v2511_v20, %v2512_v19 }
 0x4a2   :  { %2364 = vrot.lane.b32.xlu2 %v2357_v26, %s5501_s21  ;;  %2440 = vrot.lane.b32.xlu1 %v2432_v17, %s5501_s21  ;;  %v2433_v26 = vrot.slane %v2419_v55, 4  ;;  %v2421_v17 = vmul.f32 %v2415_v24, %v6489_v57  ;;  %v2572_v24 = vmul.f32 %v6603_v30, %v2571_v44 }
 0x4a3   :  { %2362 = vrot.lane.b32.xlu0 %v2354_v39, %s5501_s21  ;;  %v2430_v39 = vsel %vm1398_vm10, %v2428_v42, %v2429_v0  ;;  %v2494_v0 = vmul.f32 %v6603_v30, %v2493_v43 }
 0x4a4   :  { %v6708_v53 = vpop.permute.xlu2 %1690  ;;  %v6712_v11 = vpop.permute.xlu1 %2557  ;;  %v2435_v41 = vsel %vm1398_vm10, %v2433_v26, %v2434_v25  ;;  %v2436_v55 = vrot.slane %v2421_v17, 4  ;;  %v2584_v26 = vrot.slane %v2572_v24, 6 }
 0x4a5   :  { %9196 = vst [vmem:[#allocation102_spill] sm:$0xff] %v6708_v53  ;;  %v6714_v28 = vpop.permute.xlu0 %2405  ;;  %v2506_v42 = vrot.slane %v2494_v0, 5 }
 0x4a6   :  { %9197 = vst [vmem:[#allocation103_spill] sm:$0xff] %v6712_v11  ;;  %v2495_v11 = vmul.f32 %v6653_v59, %v2493_v43 }
 0x4a7   :  { %9198 = vst [vmem:[#allocation104_spill] sm:$0xff] %v6714_v28  ;;  %v2573_v28 = vmul.f32 %v6653_v59, %v2571_v44 }
 0x4a8   :  { %v2507_v20 = vrot.slane %v2495_v11, 5 }
 0x4a9   :  { %v2585_v35 = vrot.slane %v2573_v28, 6  ;;  %v2576_v28 = vmul.f32 %v6633_v31, %v2571_v44 }
 0x4aa   :  { %2438 = vrot.lane.b32.xlu2 %v2430_v39, %s5501_s21  ;;  %2520 = vrot.lane.b32.xlu1 %v2513_v10, %s5501_s21  ;;  %v2437_v39 = vsel %vm1398_vm10, %v2434_v25, %v2436_v55  ;;  %v2508_v10 = vsel %vm1461_vm11, %v2506_v42, %v2507_v20 }
 0x4ab   :  { %2442 = vrot.lane.b32.xlu0 %v2435_v41, %s5501_s21  ;;  %v2496_v41 = vmul.f32 %v2493_v43, %v6487_v33  ;;  %v2586_v63 = vsel %vm1524_vm12, %v2584_v26, %v2585_v35  ;;  %v2590_v42 = vrot.slane %v2576_v28, 6  ;;  %v2699_v26 = vstv %s5186_s25  ;;  %s7218_s25 = sld [smem:[#allocation8 + $0x5b]] }
 0x4ac   :  { %v6725_v12 = vpop.permute.xlu2 %1764  ;;  %v6729_v36 = vpop.permute.xlu1 %2685  ;;  %v2701_v45 = vmul.f32 %v6653_v59, %v2699_v26  ;;  %v2702_v32 = vmul.f32 %v2699_v26, %v6487_v33 }
 0x4ad   :  { %9199 = vst [vmem:[#allocation105_spill] sm:$0xff] %v6725_v12  ;;  %v6731_v2 = vpop.permute.xlu0 %2479  ;;  %v2509_v0 = vrot.slane %v2496_v41, 5 }
 0x4ae   :  { %9200 = vst [vmem:[#allocation106_spill] sm:$0xff] %v6729_v36  ;;  %v2499_v36 = vmul.f32 %v2493_v43, %v6489_v57 }
 0x4af   :  { %9201 = vst [vmem:[#allocation107_spill] sm:$0xff] %v6731_v2  ;;  %v2577_v2 = vmul.f32 %v2571_v44, %v6489_v57  ;;  %v2510_v43 = vsel %vm1461_vm11, %v2507_v20, %v2509_v0  ;;  %v2700_v20 = vmul.f32 %v6603_v30, %v2699_v26  ;;  %v2713_v0 = vrot.slane %v2701_v45, 1 }
 0x4b0   :  { %v2514_v24 = vrot.slane %v2499_v36, 5  ;;  %v2575_v36 = vmul.f32 %v6606_v22, %v2571_v44  ;;  %v2704_v45 = vmul.f32 %v6633_v31, %v2699_v26 }
 0x4b1   :  { %v2592_v55 = vrot.slane %v2577_v2, 6  ;;  %v7342_v60 = vstv %s7218_s25  ;;  %s5133_s25 = sld [smem:[#allocation8 + $0x6]] }
 0x4b2   :  { %2444 = vrot.lane.b32.xlu2 %v2437_v39, %s5501_s21  ;;  %2594 = vrot.lane.b32.xlu1 %v2586_v63, %s5501_s21  ;;  %v2515_v39 = vsel %vm1461_vm11, %v2512_v19, %v2514_v24  ;;  %v2589_v24 = vrot.slane %v2575_v36, 6 }
 0x4b3   :  { %2516 = vrot.lane.b32.xlu0 %v2508_v10, %s5501_s21  ;;  %v2593_v63 = vsel %vm1524_vm12, %v2590_v42, %v2592_v55  ;;  %v2574_v10 = vmul.f32 %v2571_v44, %v6487_v33  ;;  %v2712_v55 = vrot.slane %v2700_v20, 1  ;;  %v2715_v20 = vrot.slane %v2702_v32, 1 }
 0x4b4   :  { %v6742_v11 = vpop.permute.xlu2 %1770  ;;  %v6745_v25 = vpop.permute.xlu1 %1686 }
 0x4b5   :  { %9202 = vst [vmem:[#allocation108_spill] sm:$0xff] %v6742_v11  ;;  %v6747_v17 = vpop.permute.xlu0 %2559  ;;  %v2587_v28 = vrot.slane %v2574_v10, 6  ;;  %v2703_v10 = vmul.f32 %v6606_v22, %v2699_v26  ;;  %v2716_v56 = vsel %vm1209_vm7, %v2713_v0, %v2715_v20 }
 0x4b6   :  { %9203 = vst [vmem:[#allocation109_spill] sm:$0xff] %v6745_v25 }
 0x4b7   :  { %9204 = vst [vmem:[#allocation110_spill] sm:$0xff] %v6747_v17  ;;  %v2714_v17 = vsel %vm1209_vm7, %v2712_v55, %v2713_v0  ;;  %v2738_v55 = vstv %s5144_s26  ;;  %s7267_s26 = sld [smem:[#allocation8 + $0xb]] }
 0x4b8   :  { %v2743_v62 = vmul.f32 %v6813_v23, %v2738_v55 }
 0x4ba   :  { %2518 = vrot.lane.b32.xlu2 %v2510_v43, %s5501_s21  ;;  %2600 = vrot.lane.b32.xlu1 %v2593_v63, %s5501_s21  ;;  %v2591_v43 = vsel %vm1524_vm12, %v2589_v24, %v2590_v42  ;;  %v2588_v63 = vsel %vm1524_vm12, %v2585_v35, %v2587_v28  ;;  %v2718_v28 = vrot.slane %v2704_v45, 1  ;;  %v2717_v24 = vrot.slane %v2703_v10, 1  ;;  %v6801_v10 = vld [vmem:[#allocation2] sm:$0xff] }
 0x4bb   :  { %2522 = vrot.lane.b32.xlu0 %v2515_v39, %s5501_s21  ;;  %v6766_v39 = vld [vmem:[#allocation2 + $0x40] sm:$0x3f]  ;;  %v2705_v45 = vmul.f32 %v2699_v26, %v6489_v57  ;;  %v2739_v0 = vmul.f32 %v6801_v10, %v2738_v55 }
 0x4bc   :  { %v6758_v2 = vpop.permute.xlu2 %1844  ;;  %v6763_v19 = vpop.permute.xlu1 %1692  ;;  %v2666_v44 = vmul.f32 %v6766_v39, %v6438_v15  ;;  %v2719_v38 = vsel %vm1209_vm7, %v2717_v24, %v2718_v28  ;;  %v2744_v13 = vmul.f32 %v6766_v39, %v2738_v55 }
 0x4bd   :  { %9205 = vst [vmem:[#allocation111_spill] sm:$0xff] %v6758_v2  ;;  %v6761_v41 = vpop.permute.xlu0 %1688  ;;  %v2751_v46 = vrot.slane %v2739_v0, 2  ;;  %v6822_v0 = vld [vmem:[#allocation2 + $0x30] sm:$0xff] }
 0x4be   :  { %9206 = vst [vmem:[#allocation112_spill] sm:$0xff] %v6761_v41  ;;  %v2681_v35 = vrot.slane %v2666_v44, 1  ;;  %v6793_v44 = vld [vmem:[#allocation2 + $0x8] sm:$0xff] }
 0x4bf   :  { %9207 = vst [vmem:[#allocation113_spill] sm:$0xff] %v6763_v19  ;;  %v2740_v32 = vmul.f32 %v6793_v44, %v2738_v55  ;;  %v7263_v19 = vstv %s7152_s18  ;;  %s5202_s18 = sld [smem:[#allocation8 + $0x4b]] }
 0x4c2   :  { %2598 = vrot.lane.b32.xlu2 %v2591_v43, %s5501_s21  ;;  %2722 = vrot.lane.b32.xlu1 %v2714_v17, %s5502_s22  ;;  %v9211_v43 = vrot.slane %v6465_v7, 1  ;;  %v2741_v17 = vmul.f32 %v6787_v50, %v2738_v55 }
 0x4c3   :  { %2596 = vrot.lane.b32.xlu0 %v2588_v63, %s5501_s21  ;;  %s5151_s21 = sld [smem:[#allocation8 + $0x18]] }
 0x4c4   :  { %v6777_v42 = vpop.permute.xlu2 %1924  ;;  %v6782_v15 = vpop.permute.xlu1 %1766  ;;  %v2682_v63 = vsel %vm1209_vm7, %v9211_v43, %v2681_v35  ;;  %v2754_v24 = vrot.slane %v2741_v17, 2  ;;  %v2752_v43 = vrot.slane %v2740_v32, 2  ;;  %v2780_v17 = vmul.f32 %v2777_v34, %v6487_v33 }
 0x4c5   :  { %9208 = vst [vmem:[#allocation114_spill] sm:$0xff] %v6777_v42  ;;  %v6780_v36 = vpop.permute.xlu0 %1768  ;;  %v2778_v32 = vmul.f32 %v6603_v30, %v2777_v34 }
 0x4c6   :  { %9209 = vst [vmem:[#allocation115_spill] sm:$0xff] %v6780_v36  ;;  %v2755_v26 = vsel %vm1272_vm8, %v2752_v43, %v2754_v24 }
 0x4c7   :  { %9210 = vst [vmem:[#allocation116_spill] sm:$0xff] %v6782_v15  ;;  %v2790_v6 = vrot.slane %v2778_v32, 2 }
 0x4c9   :  { %v2816_v42 = vstv %s5151_s21  ;;  %s7594_s21 = sld [smem:[#allocation8 + $0x43]] }
 0x4ca   :  { %2689 = vrot.lane.b32.xlu2 %v2682_v63, %s5502_s22  ;;  %2726 = vrot.lane.b32.xlu1 %v2719_v38, %s5502_s22  ;;  %v2720_v63 = vrot.slane %v2705_v45, 1  ;;  %v2753_v38 = vsel %vm1272_vm8, %v2751_v46, %v2752_v43  ;;  %v2742_v46 = vmul.f32 %v6822_v0, %v2738_v55 }
 0x4cb   :  { %2724 = vrot.lane.b32.xlu0 %v2716_v56, %s5502_s22  ;;  %v2779_v56 = vmul.f32 %v6653_v59, %v2777_v34 }
 0x4cc   :  { %v6799_v7 = vpop.permute.xlu2 %1998  ;;  %v6806_v20 = vpop.permute.xlu1 %1846  ;;  %v2756_v4 = vrot.slane %v2742_v46, 2  ;;  %v2759_v46 = vrot.slane %v2744_v13, 2 }
 0x4cd   :  { %9212 = vst [vmem:[#allocation117_spill] sm:$0xff] %v6799_v7  ;;  %v6804_v35 = vpop.permute.xlu0 %1842  ;;  %v2721_v7 = vsel %vm1209_vm7, %v2718_v28, %v2720_v63  ;;  %v2791_v43 = vrot.slane %v2779_v56, 2  ;;  %v2757_v63 = vrot.slane %v2743_v62, 2  ;;  %v2781_v62 = vmul.f32 %v6606_v22, %v2777_v34 }
 0x4ce   :  { %9213 = vst [vmem:[#allocation118_spill] sm:$0xff] %v6804_v35  ;;  %v2817_v56 = vmul.f32 %v6801_v10, %v2816_v42 }
 0x4cf   :  { %9214 = vst [vmem:[#allocation119_spill] sm:$0xff] %v6806_v20  ;;  %v2795_v55 = vrot.slane %v2781_v62, 2 }
 0x4d2   :  { %2763 = vrot.lane.b32.xlu2 %v2755_v26, %s5502_s22  ;;  %2728 = vrot.lane.b32.xlu1 %v2721_v7, %s5502_s22  ;;  %v2793_v26 = vrot.slane %v2780_v17, 2  ;;  %v2782_v7 = vmul.f32 %v6633_v31, %v2777_v34 }
 0x4d3   :  { %2761 = vrot.lane.b32.xlu0 %v2753_v38, %s5502_s22  ;;  %v2792_v38 = vsel %vm1272_vm8, %v2790_v6, %v2791_v43 }
 0x4d4   :  { %v6820_v45 = vpop.permute.xlu2 %2004  ;;  %v6827_v28 = vpop.permute.xlu1 %1920  ;;  %v2794_v35 = vsel %vm1272_vm8, %v2791_v43, %v2793_v26  ;;  %v2796_v32 = vrot.slane %v2782_v7, 2  ;;  %v2829_v26 = vrot.slane %v2817_v56, 3 }
 0x4d5   :  { %9215 = vst [vmem:[#allocation120_spill] sm:$0xff] %v6820_v45  ;;  %v6825_v24 = vpop.permute.xlu0 %1848  ;;  %v2758_v45 = vsel %vm1272_vm8, %v2756_v4, %v2757_v63 }
 0x4d6   :  { %9216 = vst [vmem:[#allocation121_spill] sm:$0xff] %v6825_v24 }
 0x4d7   :  { %9217 = vst [vmem:[#allocation122_spill] sm:$0xff] %v6827_v28  ;;  %v2818_v28 = vmul.f32 %v6793_v44, %v2816_v42 }
 0x4d9   :  { %v2830_v43 = vrot.slane %v2818_v28, 3  ;;  %v2820_v28 = vmul.f32 %v6822_v0, %v2816_v42 }
 0x4da   :  { %2800 = vrot.lane.b32.xlu2 %v2792_v38, %s5502_s22  ;;  %2802 = vrot.lane.b32.xlu1 %v2794_v35, %s5502_s22  ;;  %v2783_v35 = vmul.f32 %v2777_v34, %v6489_v57  ;;  %v2760_v38 = vsel %vm1272_vm8, %v2757_v63, %v2759_v46 }
 0x4db   :  { %2765 = vrot.lane.b32.xlu0 %v2758_v45, %s5502_s22  ;;  %v2797_v45 = vsel %vm1272_vm8, %v2795_v55, %v2796_v32  ;;  %v2834_v46 = vrot.slane %v2820_v28, 3  ;;  %v2855_v55 = vstv %s5200_s28  ;;  %s7654_s28 = sld [smem:[#allocation8 + $0x19]] }
 0x4dc   :  { %v6839_v6 = vpop.permute.xlu2 %2078  ;;  %v6844_v4 = vpop.permute.xlu1 %1926  ;;  %v2798_v63 = vrot.slane %v2783_v35, 2 }
 0x4dd   :  { %9218 = vst [vmem:[#allocation123_spill] sm:$0xff] %v6839_v6  ;;  %v6842_v17 = vpop.permute.xlu0 %1922  ;;  %v2831_v6 = vsel %vm1335_vm9, %v2829_v26, %v2830_v43 }
 0x4de   :  { %9219 = vst [vmem:[#allocation124_spill] sm:$0xff] %v6842_v17  ;;  %v2819_v17 = vmul.f32 %v6787_v50, %v2816_v42  ;;  %v2799_v26 = vsel %vm1272_vm8, %v2796_v32, %v2798_v63 }
 0x4df   :  { %9220 = vst [vmem:[#allocation125_spill] sm:$0xff] %v6844_v4  ;;  %v2821_v4 = vmul.f32 %v6813_v23, %v2816_v42 }
 0x4e0   :  { %v2832_v62 = vrot.slane %v2819_v17, 3 }
 0x4e1   :  { %v2835_v56 = vrot.slane %v2821_v4, 3  ;;  %v2856_v4 = vmul.f32 %v6603_v30, %v2855_v55 }
 0x4e2   :  { %2804 = vrot.lane.b32.xlu2 %v2797_v45, %s5502_s22  ;;  %2839 = vrot.lane.b32.xlu1 %v2831_v6, %s5502_s22  ;;  %v2858_v45 = vmul.f32 %v2855_v55, %v6487_v33  ;;  %v2833_v6 = vsel %vm1335_vm9, %v2830_v43, %v2832_v62 }
 0x4e3   :  { %2767 = vrot.lane.b32.xlu0 %v2760_v38, %s5502_s22  ;;  %v2836_v38 = vsel %vm1335_vm9, %v2834_v46, %v2835_v56  ;;  %v2868_v62 = vrot.slane %v2856_v4, 3  ;;  %v2894_v46 = vstv %s5158_s3  ;;  %s7711_s3 = sld [smem:[#allocation8 + $0x4a]] }
 0x4e4   :  { %v6855_v13 = vpop.permute.xlu2 %2204  ;;  %v6860_v34 = vpop.permute.xlu1 %2000  ;;  %v2871_v43 = vrot.slane %v2858_v45, 3  ;;  %v2859_v45 = vmul.f32 %v6606_v22, %v2855_v55 }
 0x4e5   :  { %9221 = vst [vmem:[#allocation126_spill] sm:$0xff] %v6855_v13  ;;  %v6858_v7 = vpop.permute.xlu0 %2002  ;;  %v2857_v13 = vmul.f32 %v6653_v59, %v2855_v55 }
 0x4e6   :  { %9222 = vst [vmem:[#allocation127_spill] sm:$0xff] %v6858_v7  ;;  %v2822_v7 = vmul.f32 %v6766_v39, %v2816_v42  ;;  %v2896_v42 = vmul.f32 %v6793_v44, %v2894_v46 }
 0x4e7   :  { %9223 = vst [vmem:[#allocation128_spill] sm:$0xff] %v6860_v34  ;;  %v2869_v28 = vrot.slane %v2857_v13, 3  ;;  %v2895_v13 = vmul.f32 %v6801_v10, %v2894_v46 }
 0x4e8   :  { %v2837_v63 = vrot.slane %v2822_v7, 3 }
 0x4ea   :  { %2806 = vrot.lane.b32.xlu2 %v2799_v26, %s5502_s22  ;;  %2843 = vrot.lane.b32.xlu1 %v2836_v38, %s5502_s22  ;;  %v2872_v26 = vsel %vm1335_vm9, %v2869_v28, %v2871_v43  ;;  %v2838_v38 = vsel %vm1335_vm9, %v2835_v56, %v2837_v63 }
 0x4eb   :  { %2841 = vrot.lane.b32.xlu0 %v2833_v6, %s5502_s22  ;;  %v2870_v6 = vsel %vm1335_vm9, %v2868_v62, %v2869_v28  ;;  %v2908_v28 = vrot.slane %v2896_v42, 4  ;;  %v2907_v62 = vrot.slane %v2895_v13, 4 }
 0x4ec   :  { %v6871_v17 = vpop.permute.xlu2 %2210  ;;  %v6876_v35 = vpop.permute.xlu1 %2080 }
 0x4ed   :  { %9224 = vst [vmem:[#allocation129_spill] sm:$0xff] %v6871_v17  ;;  %v6874_v32 = vpop.permute.xlu0 %2076  ;;  %v2860_v17 = vmul.f32 %v6633_v31, %v2855_v55 }
 0x4ee   :  { %9225 = vst [vmem:[#allocation130_spill] sm:$0xff] %v6874_v32  ;;  %v2897_v32 = vmul.f32 %v6787_v50, %v2894_v46 }
 0x4ef   :  { %9226 = vst [vmem:[#allocation131_spill] sm:$0xff] %v6876_v35  ;;  %v2874_v56 = vrot.slane %v2860_v17, 3  ;;  %v2909_v35 = vsel %vm1398_vm10, %v2907_v62, %v2908_v28  ;;  %v2898_v17 = vmul.f32 %v6822_v0, %v2894_v46 }
 0x4f0   :  { %v2910_v63 = vrot.slane %v2897_v32, 4 }
 0x4f2   :  { %2880 = vrot.lane.b32.xlu2 %v2872_v26, %s5502_s22  ;;  %2845 = vrot.lane.b32.xlu1 %v2838_v38, %s5502_s22  ;;  %v2873_v26 = vrot.slane %v2859_v45, 3  ;;  %v2933_v38 = vstv %s5207_s29  ;;  %s7808_s29 = sld [smem:[#allocation8 + $0x20]] }
 0x4f3   :  { %2878 = vrot.lane.b32.xlu0 %v2870_v6, %s5502_s22  ;;  %v2899_v6 = vmul.f32 %v6813_v23, %v2894_v46  ;;  %v2934_v42 = vmul.f32 %v6603_v30, %v2933_v38 }
 0x4f4   :  { %v6888_v7 = vpop.permute.xlu2 %2284  ;;  %v6893_v43 = vpop.permute.xlu1 %2206  ;;  %v2875_v34 = vsel %vm1335_vm9, %v2873_v26, %v2874_v56 }
 0x4f5   :  { %9227 = vst [vmem:[#allocation132_spill] sm:$0xff] %v6888_v7  ;;  %v6891_v4 = vpop.permute.xlu0 %2082  ;;  %v2911_v7 = vsel %vm1398_vm10, %v2908_v28, %v2910_v63  ;;  %v2946_v62 = vrot.slane %v2934_v42, 4 }
 0x4f6   :  { %9228 = vst [vmem:[#allocation133_spill] sm:$0xff] %v6891_v4  ;;  %v2861_v4 = vmul.f32 %v2855_v55, %v6489_v57  ;;  %v2912_v55 = vrot.slane %v2898_v17, 4 }
 0x4f7   :  { %9229 = vst [vmem:[#allocation134_spill] sm:$0xff] %v6893_v43  ;;  %v2935_v43 = vmul.f32 %v6653_v59, %v2933_v38 }
 0x4f8   :  { %v2876_v28 = vrot.slane %v2861_v4, 3 }
 0x4f9   :  { %v2947_v63 = vrot.slane %v2935_v43, 4  ;;  %v2937_v43 = vmul.f32 %v6606_v22, %v2933_v38 }
 0x4fa   :  { %2917 = vrot.lane.b32.xlu2 %v2909_v35, %s5502_s22  ;;  %2919 = vrot.lane.b32.xlu1 %v2911_v7, %s5502_s22  ;;  %v2913_v35 = vrot.slane %v2899_v6, 4  ;;  %v2900_v7 = vmul.f32 %v6766_v39, %v2894_v46  ;;  %v2877_v26 = vsel %vm1335_vm9, %v2874_v56, %v2876_v28 }
 0x4fb   :  { %2882 = vrot.lane.b32.xlu0 %v2875_v34, %s5502_s22  ;;  %v2951_v28 = vrot.slane %v2937_v43, 4 }
 0x4fc   :  { %v6905_v32 = vpop.permute.xlu2 %2364  ;;  %v6910_v45 = vpop.permute.xlu1 %2286  ;;  %v2914_v34 = vsel %vm1398_vm10, %v2912_v55, %v2913_v35  ;;  %v2915_v56 = vrot.slane %v2900_v7, 4  ;;  %v2972_v55 = vstv %s5165_s30  ;;  %s7857_s30 = sld [smem:[#allocation8 + $0x51]] }
 0x4fd   :  { %9230 = vst [vmem:[#allocation135_spill] sm:$0xff] %v6905_v32  ;;  %v6908_v13 = vpop.permute.xlu0 %2208  ;;  %v2948_v32 = vsel %vm1398_vm10, %v2946_v62, %v2947_v63  ;;  %v2975_v62 = vmul.f32 %v6787_v50, %v2972_v55 }
 0x4fe   :  { %9231 = vst [vmem:[#allocation136_spill] sm:$0xff] %v6908_v13  ;;  %v2936_v13 = vmul.f32 %v2933_v38, %v6487_v33  ;;  %v2916_v33 = vsel %vm1398_vm10, %v2913_v35, %v2915_v56 }
 0x4ff   :  { %9232 = vst [vmem:[#allocation137_spill] sm:$0xff] %v6910_v45  ;;  %v2938_v45 = vmul.f32 %v6633_v31, %v2933_v38 }
 0x500   :  { %v2949_v17 = vrot.slane %v2936_v13, 4 }
 0x501   :  { %v2952_v42 = vrot.slane %v2938_v45, 4  ;;  %v2973_v45 = vmul.f32 %v6801_v10, %v2972_v55 }
 0x502   :  { %2921 = vrot.lane.b32.xlu2 %v2914_v34, %s5502_s22  ;;  %2956 = vrot.lane.b32.xlu1 %v2948_v32, %s5502_s22  ;;  %v2950_v32 = vsel %vm1398_vm10, %v2947_v63, %v2949_v17  ;;  %v2988_v63 = vrot.slane %v2975_v62, 5 }
 0x503   :  { %2884 = vrot.lane.b32.xlu0 %v2877_v26, %s5502_s22  ;;  %v2953_v34 = vsel %vm1398_vm10, %v2951_v28, %v2952_v42  ;;  %v2974_v26 = vmul.f32 %v6793_v44, %v2972_v55  ;;  %v2985_v17 = vrot.slane %v2973_v45, 5  ;;  %v3011_v28 = vstv %s5214_s8  ;;  %s7900_s8 = sld [smem:[#allocation8 + $0x27]] }
 0x504   :  { %v6921_v4 = vpop.permute.xlu2 %2438  ;;  %v6926_v46 = vpop.permute.xlu1 %2360  ;;  %v2976_v45 = vmul.f32 %v6822_v0, %v2972_v55 }
 0x505   :  { %9233 = vst [vmem:[#allocation138_spill] sm:$0xff] %v6921_v4  ;;  %v6924_v6 = vpop.permute.xlu0 %2282  ;;  %v2939_v4 = vmul.f32 %v2933_v38, %v6489_v57  ;;  %v2986_v43 = vrot.slane %v2974_v26, 5  ;;  %v3013_v57 = vmul.f32 %v6653_v59, %v3011_v28 }
 0x506   :  { %9234 = vst [vmem:[#allocation139_spill] sm:$0xff] %v6924_v6 }
 0x507   :  { %9235 = vst [vmem:[#allocation140_spill] sm:$0xff] %v6926_v46  ;;  %v2954_v56 = vrot.slane %v2939_v4, 4  ;;  %v2987_v38 = vsel %vm1461_vm11, %v2985_v17, %v2986_v43  ;;  %v3012_v4 = vmul.f32 %v6603_v30, %v3011_v28  ;;  %v2990_v46 = vrot.slane %v2976_v45, 5 }
 0x50a   :  { %2923 = vrot.lane.b32.xlu2 %v2916_v33, %s5502_s22  ;;  %2960 = vrot.lane.b32.xlu1 %v2953_v34, %s5502_s22  ;;  %v2989_v33 = vsel %vm1461_vm11, %v2986_v43, %v2988_v63  ;;  %v2977_v34 = vmul.f32 %v6813_v23, %v2972_v55  ;;  %v3025_v43 = vrot.slane %v3013_v57, 5  ;;  %v3015_v57 = vmul.f32 %v6606_v22, %v3011_v28 }
 0x50b   :  { %2958 = vrot.lane.b32.xlu0 %v2950_v32, %s5502_s22  ;;  %v2955_v32 = vsel %vm1398_vm10, %v2952_v42, %v2954_v56 }
 0x50c   :  { %v6937_v13 = vpop.permute.xlu2 %2444  ;;  %v6942_v7 = vpop.permute.xlu1 %2366  ;;  %v2991_v56 = vrot.slane %v2977_v34, 5 }
 0x50d   :  { %9236 = vst [vmem:[#allocation141_spill] sm:$0xff] %v6937_v13  ;;  %v6940_v35 = vpop.permute.xlu0 %2288  ;;  %v6950_v13 = vld [vmem:[#allocation2 + $0x28] sm:$0x3f] }
 0x50e   :  { %9237 = vst [vmem:[#allocation142_spill] sm:$0xff] %v6940_v35  ;;  %v3014_v62 = vmul.f32 %v6950_v13, %v3011_v28  ;;  %v2992_v6 = vsel %vm1461_vm11, %v2990_v46, %v2991_v56 }
 0x50f   :  { %9238 = vst [vmem:[#allocation143_spill] sm:$0xff] %v6942_v7 }
 0x510   :  { %v3027_v17 = vrot.slane %v3014_v62, 5 }
 0x512   :  { %2997 = vrot.lane.b32.xlu2 %v2989_v33, %s5502_s22  ;;  %2962 = vrot.lane.b32.xlu1 %v2955_v32, %s5502_s22  ;;  %v3024_v33 = vrot.slane %v3012_v4, 5  ;;  %v3016_v32 = vmul.f32 %v6633_v31, %v3011_v28 }
 0x513   :  { %2995 = vrot.lane.b32.xlu0 %v2987_v38, %s5502_s22  ;;  %v3050_v38 = vstv %s5172_s11  ;;  %s5215_s11 = sld [smem:[#allocation8 + $0x58]] }
 0x514   :  { %v6956_v26 = vpop.permute.xlu2 %2518  ;;  %v6961_v42 = vpop.permute.xlu1 %2440  ;;  %v3026_v7 = vsel %vm1461_vm11, %v3024_v33, %v3025_v43  ;;  %v3051_v62 = vmul.f32 %v6801_v10, %v3050_v38  ;;  %v3030_v45 = vrot.slane %v3016_v32, 5 }
 0x515   :  { %9239 = vst [vmem:[#allocation144_spill] sm:$0xff] %v6956_v26  ;;  %v6959_v63 = vpop.permute.xlu0 %2362  ;;  %v3028_v26 = vsel %vm1461_vm11, %v3025_v43, %v3027_v17 }
 0x516   :  { %9240 = vst [vmem:[#allocation145_spill] sm:$0xff] %v6959_v63  ;;  %v2978_v63 = vmul.f32 %v6766_v39, %v2972_v55  ;;  %v3029_v55 = vrot.slane %v3015_v57, 5  ;;  %v3063_v17 = vrot.slane %v3051_v62, 6 }
 0x517   :  { %9241 = vst [vmem:[#allocation146_spill] sm:$0xff] %v6961_v42  ;;  %v3052_v42 = vmul.f32 %v6793_v44, %v3050_v38 }
 0x519   :  { %v3064_v43 = vrot.slane %v3052_v42, 6  ;;  %v3055_v42 = vmul.f32 %v6813_v23, %v3050_v38 }
 0x51a   :  { %3034 = vrot.lane.b32.xlu2 %v3026_v7, %s5502_s22  ;;  %3036 = vrot.lane.b32.xlu1 %v3028_v26, %s5502_s22  ;;  %v2993_v7 = vrot.slane %v2978_v63, 5  ;;  %v6983_v26 = vld [vmem:[#allocation2 + $0x58] sm:$0x3f]  ;;  %v3053_v63 = vmul.f32 %v6787_v50, %v3050_v38 }
 0x51b   :  { %2999 = vrot.lane.b32.xlu0 %v2992_v6, %s5502_s22  ;;  %v3031_v6 = vsel %vm1461_vm11, %v3029_v55, %v3030_v45  ;;  %v3017_v33 = vmul.f32 %v6983_v26, %v3011_v28  ;;  %v3065_v32 = vsel %vm1524_vm12, %v3063_v17, %v3064_v43  ;;  %v3054_v28 = vmul.f32 %v6822_v0, %v3050_v38 }
 0x51c   :  { %v6973_v34 = vpop.permute.xlu2 %2598  ;;  %v6978_v46 = vpop.permute.xlu1 %2520  ;;  %v3066_v55 = vrot.slane %v3053_v63, 6  ;;  %v3069_v17 = vrot.slane %v3055_v42, 6  ;;  %v3056_v63 = vmul.f32 %v6766_v39, %v3050_v38  ;;  %v7016_v42 = vstv %s6980_s0  ;;  %s5132_s0 = sld [smem:[#allocation8 + $0x5]] }
 0x51d   :  { %9242 = vst [vmem:[#allocation147_spill] sm:$0xff] %v6973_v34  ;;  %v6976_v4 = vpop.permute.xlu0 %2442  ;;  %v2994_v34 = vsel %vm1461_vm11, %v2991_v56, %v2993_v7  ;;  %v3032_v7 = vrot.slane %v3017_v33, 5  ;;  %v7162_v36 = vmul.f32 %v6813_v23, %v7016_v42 }
 0x51e   :  { %9243 = vst [vmem:[#allocation148_spill] sm:$0xff] %v6976_v4 }
 0x51f   :  { %9244 = vst [vmem:[#allocation149_spill] sm:$0xff] %v6978_v46 }
 0x522   :  { %3038 = vrot.lane.b32.xlu2 %v3031_v6, %s5502_s22  ;;  %3073 = vrot.lane.b32.xlu1 %v3065_v32, %s5502_s22  ;;  %v3068_v6 = vrot.slane %v3054_v28, 6  ;;  %v7004_v32 = vstv %s5134_s12  ;;  %v7023_v28 = vstv %s5155_s14  ;;  %s5173_s12 = sld [smem:[#allocation8 + $0x2e]] }
 0x523   :  { %3001 = vrot.lane.b32.xlu0 %v2994_v34, %s5502_s22  ;;  %v7002_v34 = vstv %s5221_s13  ;;  %v7035_v38 = vmul.f32 %v6801_v10, %v7004_v32  ;;  %v7143_v54 = vmul.f32 %v6793_v44, %v7023_v28  ;;  %v7188_v15 = vmul.f32 %v6813_v23, %v7023_v28  ;;  %s5222_s13 = sld [smem:[#allocation8 + $0x5f]] }
 0x524   :  { %v6995_v57 = vpop.permute.xlu2 %2689  ;;  %v7000_v62 = vpop.permute.xlu1 %2594  ;;  %v3092_v46 = vmul.f32 %v6950_v13, %v7002_v34  ;;  %v3070_v4 = vsel %vm1524_vm12, %v3068_v6, %v3069_v17  ;;  %v3091_v33 = vmul.f32 %v6653_v59, %v7002_v34  ;;  %v7031_v59 = vstv %s5169_s6  ;;  %s5181_s14 = sld [smem:[#allocation8 + $0x36]] }
 0x525   :  { %9245 = vst [vmem:[#allocation150_spill] sm:$0xff] %v6995_v57  ;;  %v6998_v56 = vpop.permute.xlu0 %2516  ;;  %v3033_v57 = vsel %vm1461_vm11, %v3030_v45, %v3032_v7  ;;  %v7021_v45 = vstv %s6986_s4  ;;  %v7029_v7 = vstv %s5162_s5  ;;  %v7043_v6 = vstv %s1068_s15  ;;  %s5139_s4 = sld [smem:[#allocation8 + $0xc]]  ;;  %s5504_s5 = smov 123  }
 0x526   :  { %9246 = vst [vmem:[#allocation151_spill] sm:$0xff] %v6998_v56  ;;  %v3067_v56 = vsel %vm1524_vm12, %v3064_v43, %v3066_v55  ;;  %v3105_v55 = vrot.slane %v3092_v46, 6  ;;  %v7051_v35 = vmul.f32 %v6801_v10, %v7021_v45  ;;  %v7059_v46 = vmul.f32 %v6801_v10, %v7029_v7  ;;  %s5188_s6 = sld [smem:[#allocation8 + $0x3d]] }
 0x527   :  { %9247 = vst [vmem:[#allocation152_spill] sm:$0xff] %v7000_v62  ;;  %v3071_v62 = vrot.slane %v3056_v63, 6  ;;  %v7077_v12 = vmul.f32 %v6633_v31, %v7002_v34  ;;  %v7126_v63 = vmul.f32 %v6822_v0, %v7031_v59  ;;  %v7139_v52 = vmul.f32 %v6793_v44, %v7021_v45  ;;  %s5146_s15 = sld [smem:[#allocation8 + $0x13]] }
 0x528   :  { %v7148_v9 = vmul.f32 %v6793_v44, %v7029_v7  ;;  %v7166_v47 = vmul.f32 %v6813_v23, %v7021_v45  ;;  %v7175_v11 = vmul.f32 %v6793_v44, %v7031_v59  ;;  %v3095_v61 = vmul.f32 %v6983_v26, %v7002_v34 }
 0x529   :  { %v3072_v2 = vsel %vm1524_vm12, %v3069_v17, %v3071_v62  ;;  %9255 = vst [vmem:[#allocation160_spill] sm:$0xff] %v7126_v63  ;;  %v9257_v25 = vrot.slane %v7077_v12, 6  ;;  %v7192_v49 = vmul.f32 %v6813_v23, %v7029_v7  ;;  %v9273_v8 = vrot.slane %v7059_v46, 5 }
 0x52a   :  { %3040 = vrot.lane.b32.xlu2 %v3033_v57, %s5502_s22  ;;  %3077 = vrot.lane.b32.xlu1 %v3070_v4, %s5502_s22  ;;  %v3090_v57 = vmul.f32 %v6603_v30, %v7002_v34  ;;  %v7047_v30 = vmul.f32 %v6801_v10, %v7016_v42  ;;  %9256 = vst [vmem:[#allocation161_spill] sm:$0xff] %v7175_v11  ;;  %v3110_v41 = vrot.slane %v3095_v61, 6 }
 0x52b   :  { %3075 = vrot.lane.b32.xlu0 %v3067_v56, %s5502_s22  ;;  %v9282_v18 = vrot.slane %v7192_v49, 5 }
 0x52c   :  { %v7025_v43 = vpop.permute.xlu2 %2763  ;;  %v7039_v4 = vpop.permute.xlu1 %2600  ;;  %v3102_v58 = vrot.slane %v3090_v57, 6  ;;  %v7081_v57 = vmul.f32 %v6822_v0, %v7004_v32 }
 0x52d   :  { %9248 = vst [vmem:[#allocation153_spill] sm:$0xff] %v7025_v43  ;;  %v7037_v56 = vpop.permute.xlu0 %2522  ;;  %v3103_v43 = vrot.slane %v3091_v33, 6  ;;  %v7067_v33 = vmul.f32 %v6801_v10, %v7043_v6 }
 0x52e   :  { %9249 = vst [vmem:[#allocation154_spill] sm:$0xff] %v7037_v56  ;;  %v7055_v56 = vmul.f32 %v6801_v10, %v7023_v28 }
 0x52f   :  { %9250 = vst [vmem:[#allocation155_spill] sm:$0xff] %v7039_v4  ;;  %v7063_v4 = vmul.f32 %v6801_v10, %v7031_v59  ;;  %v3106_v29 = vsel %vm1524_vm12, %v3103_v43, %v3105_v55  ;;  %v3104_v20 = vsel %vm1524_vm12, %v3102_v58, %v3103_v43  ;;  %v7085_v55 = vmul.f32 %v6822_v0, %v7016_v42 }
 0x530   :  { %v3093_v43 = vmul.f32 %v6606_v22, %v7002_v34  ;;  %v7103_v58 = vmul.f32 %v6822_v0, %v7043_v6  ;;  %v7122_v22 = vmul.f32 %v6822_v0, %v7029_v7 }
 0x531   :  { %9251 = vst [vmem:[#allocation156_spill] sm:$0xff] %v7063_v4 }
 0x532   :  { %3114 = vrot.lane.b32.xlu2 %v3106_v29, %s5502_s22  ;;  %3079 = vrot.lane.b32.xlu1 %v3072_v2, %s5502_s22  ;;  %v7093_v29 = vmul.f32 %v6793_v44, %v7004_v32  ;;  %v7107_v2 = vmul.f32 %v6822_v0, %v7021_v45  ;;  %v3107_v24 = vrot.slane %v3093_v43, 6  ;;  %v3130_v43 = vmul.f32 %v6793_v44, %v7118_v5 }
 0x533   :  { %3112 = vrot.lane.b32.xlu0 %v3104_v20, %s5502_s22  ;;  %v7111_v20 = vmul.f32 %v6822_v0, %v7023_v28  ;;  %v1467_v34 = vrot.slane %v7122_v22, 5 }
 0x534   :  { %v7097_v17 = vpop.permute.xlu2 %2800  ;;  %v7115_v62 = vpop.permute.xlu1 %2722  ;;  %v3109_v21 = vsel %vm1524_vm12, %v3107_v24, %v9257_v25  ;;  %v1341_v14 = vrot.slane %v7107_v2, 3 }
 0x535   :  { %9252 = vst [vmem:[#allocation157_spill] sm:$0xff] %v7097_v17  ;;  %v7113_v31 = vpop.permute.xlu0 %2596  ;;  %v7130_v17 = vmul.f32 %v6793_v44, %v7016_v42  ;;  %v1404_v24 = vrot.slane %v7111_v20, 4  ;;  %v7212_v20 = vmul.f32 %v6793_v44, %v7043_v6  ;;  %v7306_v37 = vsel %vm1461_vm11, %v1467_v34, %v9282_v18 }
 0x536   :  { %9253 = vst [vmem:[#allocation158_spill] sm:$0xff] %v7113_v31  ;;  %v1278_v31 = vrot.slane %v7085_v55, 2  ;;  %v7158_v55 = vmul.f32 %v6813_v23, %v7004_v32  ;;  %v1514_v18 = vmul.f32 %v6787_v50, %v7031_v59 }
 0x537   :  { %9254 = vst [vmem:[#allocation159_spill] sm:$0xff] %v7115_v62  ;;  %v1215_v62 = vrot.slane %v7081_v57, 1  ;;  %v3129_v57 = vmul.f32 %v6801_v10, %v7118_v5 }
 0x538   :  { %9283 = vst [vmem:[#allocation171_spill] sm:$0xff] %v7306_v37  ;;  %v1328_v37 = vmul.f32 %v6766_v39, %v7021_v45 }
 0x53a   :  { %3137 = vrot.lane.b32.xlu2 %v3129_v57, %s5503_s2  ;;  %3139 = vrot.lane.b32.xlu1 %v3130_v43, %s5503_s2  ;;  %v9261_v57 = vrot.slane %v7093_v29, 1  ;;  %v9264_v43 = vrot.slane %v7047_v30, 2 }
 0x53b   :  { %3116 = vrot.lane.b32.xlu0 %v3109_v21, %s5502_s22  ;;  %v9263_v21 = vrot.slane %v7130_v17, 2 }
 0x53c   :  { %v7203_v53 = vpop.permute.xlu2 %2804  ;;  %v7216_v2 = vpop.permute.xlu1 %2726 }
 0x53d   :  { %9258 = vst [vmem:[#allocation162_spill] sm:$0xff] %v7203_v53  ;;  %v7214_v22 = vpop.permute.xlu0 %2724  ;;  %v9262_v53 = vrot.slane %v7035_v38, 1  ;;  %v7232_v27 = vsel %vm1272_vm8, %v9264_v43, %v9263_v21  ;;  %v7239_v38 = vmul.f32 %v6813_v23, %v7031_v59  ;;  %v9269_v21 = vrot.slane %v7143_v54, 4 }
 0x53e   :  { %9259 = vst [vmem:[#allocation163_spill] sm:$0xff] %v7214_v22  ;;  %v9270_v43 = vrot.slane %v7055_v56, 4  ;;  %v9272_v22 = vrot.slane %v7148_v9, 5 }
 0x53f   :  { %9260 = vst [vmem:[#allocation164_spill] sm:$0xff] %v7216_v2  ;;  %v7225_v25 = vsel %vm1209_vm7, %v9262_v53, %v9261_v57  ;;  %v9266_v53 = vrot.slane %v7139_v52, 3  ;;  %v9267_v57 = vrot.slane %v7051_v35, 3  ;;  %v3131_v35 = vmul.f32 %v6822_v0, %v7118_v5 }
 0x540   :  { %9265 = vst [vmem:[#allocation165_spill] sm:$0xff] %v7239_v38  ;;  %v7253_v61 = vsel %vm1398_vm10, %v9270_v43, %v9269_v21  ;;  %v7260_v2 = vsel %vm1461_vm11, %v9273_v8, %v9272_v22  ;;  %v9277_v8 = vrot.slane %v7166_v47, 3  ;;  %v7284_v21 = vld [vmem:[#allocation2 + $0x18] sm:$0xff] }
 0x541   :  { %v7246_v30 = vsel %vm1335_vm9, %v9267_v57, %v9266_v53  ;;  %9271 = vst [vmem:[#allocation167_spill] sm:$0xff] %v7253_v61  ;;  %v9275_v53 = vrot.slane %v7158_v55, 1  ;;  %v9276_v57 = vrot.slane %v7162_v36, 2  ;;  %v3154_v43 = vmul.f32 %v7284_v21, %v7263_v19 }
 0x542   :  { %9268 = vst [vmem:[#allocation166_spill] sm:$0xff] %v7246_v30  ;;  %v7282_v22 = vsel %vm1335_vm9, %v1341_v14, %v9277_v8  ;;  %3141 = vrot.lane.b32.xlu2 %v3131_v35, %s5503_s2  ;;  %v9280_v8 = vrot.slane %v7188_v15, 4  ;;  %v7317_v35 = vstv %s7154_s19  ;;  %s8403_s19 = sld [smem:[#allocation8 + $0x21]] }
 0x543   :  { %9274 = vst [vmem:[#allocation168_spill] sm:$0xff] %v7260_v2  ;;  %v7272_v56 = vsel %vm1209_vm7, %v1215_v62, %v9275_v53  ;;  %v7277_v46 = vsel %vm1272_vm8, %v1278_v31, %v9276_v57  ;;  %v1199_v62 = vmul.f32 %v6787_v50, %v7004_v32  ;;  %v1262_v53 = vmul.f32 %v6787_v50, %v7016_v42 }
 0x544   :  { %9278 = vst [vmem:[#allocation169_spill] sm:$0xff] %v7282_v22  ;;  %v1325_v31 = vmul.f32 %v6787_v50, %v7021_v45  ;;  %v9279_v57 = vrot.slane %v7077_v12, 6  ;;  %v7301_v51 = vsel %vm1398_vm10, %v1404_v24, %v9280_v8  ;;  %v1388_v12 = vmul.f32 %v6787_v50, %v7023_v28  ;;  %3162 = vrot.lane.b32.xlu1 %v3154_v43, %s5503_s2  ;;  %v7323_v34 = vpop.permute.xlu2 %2806  ;;  %v7339_v3 = vpop.permute.xlu1 %2728 }
 0x545   :  { %9281 = vst [vmem:[#allocation170_spill] sm:$0xff] %v7301_v51  ;;  %v1451_v24 = vmul.f32 %v6787_v50, %v7029_v7  ;;  %v7329_v8 = vstv %s7183_s20  ;;  %v7335_v43 = vstv %s7205_s24  ;;  %v7337_v48 = vpop.permute.xlu0 %2761  ;;  %v1213_v1 = vrot.slane %v1199_v62, 1  ;;  %s8561_s20 = sld [smem:[#allocation8 + $0x59]] }
 0x546   :  { %v3111_v14 = vsel %vm1524_vm12, %v9279_v57, %v3110_v41  ;;  %v7314_v41 = vstv %s7133_s17  ;;  %9284 = vst [vmem:[#allocation172_spill] sm:$0xff] %v7323_v34  ;;  %v7326_v57 = vstv %s7170_s1  ;;  %v1276_v40 = vrot.slane %v1262_v53, 2  ;;  %v7359_v53 = vld [vmem:[#allocation2 + $0x20] sm:$0xff]  ;;  %s8321_s17 = sld [smem:[#allocation8 + $0x1a]] }
 0x547   :  { %3118 = vrot.lane.b32.xlu0 %v3111_v14, %s5502_s22  ;;  %v7332_v14 = vstv %s7197_s23  ;;  %9285 = vst [vmem:[#allocation173_spill] sm:$0xff] %v7337_v48  ;;  %v1339_v16 = vrot.slane %v1325_v31, 3  ;;  %v1402_v4 = vrot.slane %v1388_v12, 4  ;;  %v1202_v34 = vmul.f32 %v6766_v39, %v7004_v32  ;;  %s7355_s22 = sld [smem:[#allocation8 + $0x3c]] }
 0x548   :  { %9286 = vst [vmem:[#allocation174_spill] sm:$0xff] %v7339_v3  ;;  %v1265_v2 = vmul.f32 %v6766_v39, %v7016_v42  ;;  %v1465_v61 = vrot.slane %v1451_v24, 5  ;;  %v1528_v51 = vrot.slane %v1514_v18, 6  ;;  %v3132_v48 = vmul.f32 %v6813_v23, %v7118_v5  ;;  %v7363_v42 = vld [vmem:[#allocation2 + $0x48] sm:$0xff]  ;;  %s5209_s1 = sld [smem:[#allocation8 + $0x52]] }
 0x549   :  { %v7353_v3 = vstv %s7267_s26  ;;  %v1391_v62 = vmul.f32 %v6766_v39, %v7023_v28  ;;  %v3155_v32 = vmul.f32 %v7359_v53, %v7263_v19  ;;  %v3156_v45 = vmul.f32 %v7363_v42, %v7263_v19  ;;  %s5174_s23 = sld [smem:[#allocation8 + $0x2f]]  ;;  %s5505_s26 = smov 122  }
 0x54a   :  { %v3181_v5 = vmul.f32 %v6787_v50, %v7353_v3  ;;  %v9287_v31 = vrot.slane %v7093_v29, 1  ;;  %v1454_v28 = vmul.f32 %v6766_v39, %v7029_v7  ;;  %v1517_v24 = vmul.f32 %v6766_v39, %v7031_v59  ;;  %3143 = vrot.lane.b32.xlu2 %v3132_v48, %s5503_s2  ;;  %s5223_s24 = sld [smem:[#allocation8 + $0x60]] }
 0x54b   :  { %v3180_v18 = vmul.f32 %v6793_v44, %v7353_v3  ;;  %v9288_v22 = vrot.slane %v7130_v17, 2  ;;  %v1218_v29 = vrot.slane %v1202_v34, 1  ;;  %v1281_v30 = vrot.slane %v1265_v2, 2 }
 0x54c   :  { %v7372_v12 = vsel %vm1209_vm7, %v9287_v31, %v1213_v1  ;;  %v1344_v1 = vrot.slane %v1328_v37, 3  ;;  %3166 = vrot.lane.b32.xlu1 %v3156_v45, %s5503_s2  ;;  %v9289_v7 = vrot.slane %v7139_v52, 3  ;;  %v9290_v48 = vrot.slane %v7143_v54, 4  ;;  %v7403_v37 = vpop.permute.xlu2 %2880 }
 0x54d   :  { %v7384_v50 = vsel %vm1272_vm8, %v9288_v22, %v1276_v40  ;;  %v9291_v40 = vrot.slane %v7148_v9, 5  ;;  %9292 = vst [vmem:[#allocation175_spill] sm:$0xff] %v7403_v37  ;;  %v3179_v2 = vmul.f32 %v6801_v10, %v7353_v3  ;;  %v9293_v52 = vrot.slane %v7175_v11, 6  ;;  %v7416_v9 = vpop.permute.xlu0 %2765 }
 0x54e   :  { %v7391_v59 = vsel %vm1335_vm9, %v9289_v7, %v1339_v16  ;;  %v7396_v31 = vsel %vm1398_vm10, %v9290_v48, %v1402_v4  ;;  %v7414_v54 = vmul.f32 %v6813_v23, %v7043_v6  ;;  %v1407_v4 = vrot.slane %v1391_v62, 4  ;;  %9295 = vst [vmem:[#allocation177_spill] sm:$0xff] %v7416_v9 }
 0x54f   :  { %3164 = vrot.lane.b32.xlu0 %v3155_v32, %s5503_s2  ;;  %v7401_v17 = vsel %vm1461_vm11, %v9291_v40, %v1465_v61  ;;  %v7410_v16 = vsel %vm1524_vm12, %v9293_v52, %v1528_v51  ;;  %v7418_v61 = vpop.permute.xlu1 %2802  ;;  %v3194_v22 = vrot.slane %v3181_v5, 1  ;;  %v1190_v34 = vmul.f32 %v7363_v42, %v7314_v41 }
 0x550   :  { %9294 = vst [vmem:[#allocation176_spill] sm:$0xff] %v7410_v16  ;;  %v1470_v32 = vrot.slane %v1454_v28, 5  ;;  %v1533_v45 = vrot.slane %v1517_v24, 6  ;;  %v3192_v7 = vrot.slane %v3180_v18, 1  ;;  %v7424_v51 = vmul.f32 %v7363_v42, %v7317_v35 }
 0x551   :  { %9296 = vst [vmem:[#allocation178_spill] sm:$0xff] %v7418_v61  ;;  %v9297_v6 = vrot.slane %v7158_v55, 1  ;;  %v9298_v62 = vrot.slane %v7162_v36, 2  ;;  %v9299_v5 = vrot.slane %v7166_v47, 3  ;;  %v7443_v24 = vmul.f32 %v7363_v42, %v7326_v57 }
 0x552   :  { %v7447_v55 = vmul.f32 %v7363_v42, %v7329_v8  ;;  %v3191_v18 = vrot.slane %v3179_v2, 1  ;;  %v7454_v36 = vmul.f32 %v7363_v42, %v7332_v14  ;;  %v1194_v2 = vadd.f32 %v1190_v34, %v7103_v58 }
 0x553   :  { %v7429_v48 = vsel %vm1209_vm7, %v9297_v6, %v1218_v29  ;;  %v7434_v40 = vsel %vm1272_vm8, %v9298_v62, %v1281_v30  ;;  %v7439_v28 = vsel %vm1335_vm9, %v9299_v5, %v1344_v1  ;;  %v7450_v29 = vstv %s7355_s22  ;;  %v7456_v30 = vld [vmem:[#allocation2 + $0x50] sm:$0xff]  ;;  %s5182_s22 = sld [smem:[#allocation8 + $0x37]] }
 0x554   :  { %v3157_v47 = vmul.f32 %v7456_v30, %v7263_v19  ;;  %v3195_v1 = vsel %vm1209_vm7, %v3192_v7, %v3194_v22  ;;  %v3219_v52 = vmul.f32 %v7359_v53, %v7450_v29  ;;  %v3193_v6 = vsel %vm1209_vm7, %v3191_v18, %v3192_v7 }
 0x555   :  { %3203 = vrot.lane.b32.xlu2 %v3195_v1, %s5503_s2  ;;  %v7470_v62 = vmul.f32 %v6813_v23, %v7353_v3  ;;  %v3220_v19 = vmul.f32 %v6950_v13, %v7450_v29  ;;  %v9300_v5 = vrot.slane %v7188_v15, 4  ;;  %v9301_v58 = vrot.slane %v7192_v49, 5 }
 0x556   :  { %3168 = vrot.lane.b32.xlu1 %v3157_v47, %s5503_s2  ;;  %v3218_v7 = vmul.f32 %v7284_v21, %v7450_v29  ;;  %v7491_v18 = vmul.f32 %v7363_v42, %v7335_v43  ;;  %v7495_v15 = vmul.f32 %v7363_v42, %v7342_v60  ;;  %v9303_v49 = vrot.slane %v7239_v38, 6 }
 0x557   :  { %v7478_v37 = vsel %vm1398_vm10, %v9300_v5, %v1407_v4  ;;  %v7483_v34 = vsel %vm1461_vm11, %v9301_v58, %v1470_v32  ;;  %3201 = vrot.lane.b32.xlu0 %v3193_v6, %s5503_s2  ;;  %v7502_v32 = vpop.permute.xlu2 %2917  ;;  %v3182_v47 = vmul.f32 %v6822_v0, %v7353_v3  ;;  %v7509_v58 = vpop.permute.xlu0 %2767  ;;  %v3231_v61 = vrot.slane %v3219_v52, 1 }
 0x558   :  { %9302 = vst [vmem:[#allocation179_spill] sm:$0xff] %v7495_v15  ;;  %v7500_v4 = vsel %vm1524_vm12, %v9303_v49, %v1533_v45  ;;  %v7511_v22 = vpop.permute.xlu1 %2839  ;;  %v7514_v45 = vadd.f32 %v7272_v56, %v1194_v2  ;;  %v3233_v9 = vrot.slane %v3220_v19, 1  ;;  %v1188_v1 = vmul.f32 %v7284_v21, %v7314_v41 }
 0x559   :  { %9304 = vst [vmem:[#allocation180_spill] sm:$0xff] %v7500_v4  ;;  %v1229_v5 = vmul.f32 %v7284_v21, %v7317_v35  ;;  %v7524_v6 = vmul.f32 %v7284_v21, %v7326_v57  ;;  %v7528_v56 = vmul.f32 %v7359_v53, %v7317_v35  ;;  %v7532_v52 = vmul.f32 %v7284_v21, %v7329_v8 }
 0x55a   :  { %9305 = vst [vmem:[#allocation181_spill] sm:$0xff] %v7502_v32  ;;  %v3197_v32 = vrot.slane %v7470_v62, 1  ;;  %v1191_v2 = vmul.f32 %v7456_v30, %v7314_v41  ;;  %v3196_v62 = vrot.slane %v3182_v47, 1  ;;  %v1234_v19 = vmul.f32 %v6983_v26, %v7317_v35 }
 0x55b   :  { %9306 = vst [vmem:[#allocation182_spill] sm:$0xff] %v7509_v58  ;;  %v7540_v58 = vstv %s7463_s27  ;;  %v3234_v15 = vsel %vm1209_vm7, %v3231_v61, %v3233_v9  ;;  %v3184_v47 = vmul.f32 %v6766_v39, %v7353_v3  ;;  %v1192_v38 = vadd.f32 %v1188_v1, %v7067_v33  ;;  %s5140_s27 = sld [smem:[#allocation8 + $0xd]] }
 0x55c   :  { %9307 = vst [vmem:[#allocation183_spill] sm:$0xff] %v7511_v22  ;;  %v3230_v22 = vrot.slane %v3218_v7, 1  ;;  %v7544_v7 = vmul.f32 %v7456_v30, %v7450_v29  ;;  %v3198_v11 = vsel %vm1209_vm7, %v3196_v62, %v3197_v32  ;;  %v7553_v16 = vmul.f32 %v6793_v44, %v7540_v58 }
 0x55d   :  { %v3221_v9 = vmul.f32 %v7363_v42, %v7450_v29  ;;  %v1242_v3 = vrot.slane %v7528_v56, 1  ;;  %v1189_v39 = vmul.f32 %v7359_v53, %v7314_v41  ;;  %v1231_v44 = vmul.f32 %v6950_v13, %v7317_v35 }
 0x55e   :  { %v3232_v49 = vsel %vm1209_vm7, %v3230_v22, %v3231_v61  ;;  %v1233_v22 = vmul.f32 %v7456_v30, %v7317_v35  ;;  %3242 = vrot.lane.b32.xlu1 %v3234_v15, %s5503_s2  ;;  %v3257_v33 = vmul.f32 %v6801_v10, %v7540_v58  ;;  %v1195_v15 = vadd.f32 %v1191_v2, %v7414_v54 }
 0x55f   :  { %3240 = vrot.lane.b32.xlu2 %v3232_v49, %s5503_s2  ;;  %3205 = vrot.lane.b32.xlu0 %v3198_v11, %s5503_s2  ;;  %v7568_v61 = vpop.permute.xlu2 %2921  ;;  %v7574_v11 = vmul.f32 %v7284_v21, %v7332_v14  ;;  %v1249_v1 = vrot.slane %v1234_v19, 1  ;;  %v7577_v49 = vpop.permute.xlu0 %2841  ;;  %v3236_v41 = vrot.slane %v7544_v7, 1  ;;  %v1241_v62 = vrot.slane %v1229_v5, 1 }
 0x560   :  { %9308 = vst [vmem:[#allocation184_spill] sm:$0xff] %v7568_v61  ;;  %v7579_v56 = vpop.permute.xlu1 %2843  ;;  %v7584_v35 = vmul.f32 %v7284_v21, %v7335_v43  ;;  %v3199_v63 = vrot.slane %v3184_v47, 1  ;;  %v3270_v10 = vrot.slane %v7553_v16, 2  ;;  %v1247_v61 = vrot.slane %v1233_v22, 1 }
 0x561   :  { %9309 = vst [vmem:[#allocation185_spill] sm:$0xff] %v7577_v49  ;;  %v1224_v4 = vadd.f32 %v7225_v25, %v1192_v38  ;;  %v7590_v54 = vmul.f32 %v7284_v21, %v7342_v60  ;;  %v3235_v2 = vrot.slane %v3221_v9, 1  ;;  %v1243_v19 = vsel %vm1209_vm7, %v1241_v62, %v1242_v3 }
 0x562   :  { %9310 = vst [vmem:[#allocation186_spill] sm:$0xff] %v7579_v56  ;;  %v1193_v7 = vadd.f32 %v1189_v39, %v7212_v20  ;;  %v1244_v5 = vrot.slane %v1231_v44, 1  ;;  %v3269_v56 = vrot.slane %v3257_v33, 2  ;;  %v1227_v47 = vadd.f32 %v7429_v48, %v1195_v15  ;;  %v7604_v20 = vld [vmem:[#allocation2 + $0x10] sm:$0x3f] }
 0x563   :  { %v1250_v16 = vsel %vm1209_vm7, %v1247_v61, %v1249_v1  ;;  %v3237_v22 = vsel %vm1209_vm7, %v3235_v2, %v3236_v41  ;;  %v3223_v25 = vmul.f32 %v6983_v26, %v7450_v29  ;;  %v3200_v38 = vsel %vm1209_vm7, %v3197_v32, %v3199_v63 }
 0x564   :  { %v3271_v9 = vsel %vm1272_vm8, %v3269_v56, %v3270_v10  ;;  %v3259_v39 = vmul.f32 %v7604_v20, %v7540_v58  ;;  %v7610_v48 = vmul.f32 %v6813_v23, %v7540_v58  ;;  %v1255_v44 = vadd.f32 %v1243_v19, %v1224_v4 }
 0x565   :  { %v7614_v33 = vmul.f32 %v7359_v53, %v7326_v57  ;;  %v1304_v63 = vrot.slane %v7524_v6, 2  ;;  %v1297_v29 = vmul.f32 %v6983_v26, %v7326_v57  ;;  %v7623_v32 = vmul.f32 %v7359_v53, %v7329_v8 }
 0x566   :  { %3279 = vrot.lane.b32.xlu1 %v3271_v9, %s5503_s2  ;;  %v1258_v4 = vadd.f32 %v1250_v16, %v1227_v47  ;;  %v3260_v1 = vmul.f32 %v6822_v0, %v7540_v58  ;;  %v1296_v6 = vmul.f32 %v7456_v30, %v7326_v57  ;;  %v7634_v56 = vmul.f32 %v7359_v53, %v7332_v14 }
 0x567   :  { %3244 = vrot.lane.b32.xlu2 %v3237_v22, %s5503_s2  ;;  %3207 = vrot.lane.b32.xlu0 %v3200_v38, %s5503_s2  ;;  %v7626_v15 = vpop.permute.xlu2 %2923  ;;  %v1245_v62 = vsel %vm1209_vm7, %v1242_v3, %v1244_v5  ;;  %v7637_v2 = vpop.permute.xlu0 %2878  ;;  %v3238_v47 = vrot.slane %v3223_v25, 1  ;;  %v9313_v16 = vrot.slane %v7424_v51, 1  ;;  %v1225_v0 = vadd.f32 %v7372_v12, %v1193_v7 }
 0x568   :  { %9311 = vst [vmem:[#allocation187_spill] sm:$0xff] %v7626_v15  ;;  %v7639_v19 = vpop.permute.xlu1 %2845  ;;  %v3272_v38 = vrot.slane %v3259_v39, 2  ;;  %v3275_v9 = vrot.slane %v7610_v48, 2  ;;  %v1287_v23 = vadd.f32 %v7232_v27, %v1255_v44  ;;  %v1305_v15 = vrot.slane %v7614_v33, 2  ;;  %v7665_v48 = vld [vmem:[#allocation2 + $0x40] sm:$0x3f] }
 0x569   :  { %9312 = vst [vmem:[#allocation188_spill] sm:$0xff] %v7637_v2  ;;  %v1248_v22 = vsel %vm1209_vm7, %v9313_v16, %v1247_v61  ;;  %v1294_v3 = vmul.f32 %v6950_v13, %v7326_v57  ;;  %v1312_v5 = vrot.slane %v1297_v29, 2  ;;  %v1256_v2 = vadd.f32 %v1245_v62, %v1225_v0 }
 0x56a   :  { %v1290_v25 = vadd.f32 %v7434_v40, %v1258_v4  ;;  %v3274_v49 = vrot.slane %v3260_v1, 2  ;;  %v7652_v51 = vstv %s7594_s21  ;;  %v1257_v12 = vadd.f32 %v1248_v22, %v7514_v45  ;;  %s5189_s21 = sld [smem:[#allocation8 + $0x3e]] }
 0x56b   :  { %v1310_v61 = vrot.slane %v1296_v6, 2  ;;  %v3239_v7 = vsel %vm1209_vm7, %v3236_v41, %v3238_v47  ;;  %v3298_v27 = vmul.f32 %v6950_v13, %v7652_v51  ;;  %v3273_v39 = vsel %vm1272_vm8, %v3270_v10, %v3272_v38 }
 0x56c   :  { %v3276_v57 = vsel %vm1272_vm8, %v3274_v49, %v3275_v9  ;;  %v3297_v40 = vmul.f32 %v7359_v53, %v7652_v51  ;;  %v3262_v45 = vmul.f32 %v7665_v48, %v7540_v58  ;;  %v7671_v41 = vmul.f32 %v7359_v53, %v7335_v43 }
 0x56d   :  { %v1307_v44 = vrot.slane %v1294_v3, 2  ;;  %v1313_v33 = vsel %vm1272_vm8, %v1310_v61, %v1312_v5  ;;  %v1360_v49 = vmul.f32 %v6983_v26, %v7329_v8  ;;  %v1368_v10 = vrot.slane %v7623_v32, 3 }
 0x56e   :  { %3283 = vrot.lane.b32.xlu1 %v3276_v57, %s5503_s2  ;;  %v1288_v29 = vadd.f32 %v7384_v50, %v1256_v2  ;;  %v1321_v4 = vadd.f32 %v1313_v33, %v1290_v25  ;;  %v3296_v1 = vmul.f32 %v7284_v21, %v7652_v51  ;;  %v1289_v6 = vadd.f32 %v7277_v46, %v1257_v12 }
 0x56f   :  { %3246 = vrot.lane.b32.xlu2 %v3239_v7, %s5503_s2  ;;  %3281 = vrot.lane.b32.xlu0 %v3273_v39, %s5503_s2  ;;  %v7680_v58 = vpop.permute.xlu2 %2997  ;;  %v1359_v62 = vmul.f32 %v7456_v30, %v7329_v8  ;;  %v1306_v47 = vsel %vm1272_vm8, %v1304_v63, %v1305_v15  ;;  %v7688_v16 = vpop.permute.xlu0 %2882  ;;  %v3311_v32 = vrot.slane %v3298_v27, 2  ;;  %v7694_v50 = vmul.f32 %v7456_v30, %v7332_v14 }
 0x570   :  { %v7690_v22 = vpop.permute.xlu1 %2919  ;;  %v1318_v2 = vadd.f32 %v1306_v47, %v1287_v23  ;;  %v3309_v0 = vrot.slane %v3297_v40, 2  ;;  %v3277_v38 = vrot.slane %v3262_v45, 2  ;;  %v9314_v46 = vrot.slane %v7443_v24, 2  ;;  %v7707_v45 = vld [vmem:[#allocation2 + $0x8] sm:$0xff] }
 0x571   :  { %v1308_v5 = vsel %vm1272_vm8, %v1305_v15, %v1307_v44  ;;  %v1357_v63 = vmul.f32 %v6950_v13, %v7329_v8  ;;  %v1375_v25 = vrot.slane %v1360_v49, 3  ;;  %v1353_v7 = vadd.f32 %v7439_v28, %v1321_v4  ;;  %v9315_v4 = vld [vmem:[#allocation166_spill] sm:$0xff] }
 0x572   :  { %v1311_v3 = vsel %vm1272_vm8, %v9314_v46, %v1310_v61  ;;  %v1319_v12 = vadd.f32 %v1308_v5, %v1288_v29  ;;  %v3308_v27 = vrot.slane %v3296_v1, 2  ;;  %v7704_v39 = vstv %s7654_s28  ;;  %s5147_s28 = sld [smem:[#allocation8 + $0x14]] }
 0x573   :  { %v1320_v57 = vadd.f32 %v1311_v3, %v1289_v6  ;;  %v1373_v23 = vrot.slane %v1359_v62, 3  ;;  %v3312_v40 = vsel %vm1272_vm8, %v3309_v0, %v3311_v32  ;;  %v3336_v24 = vmul.f32 %v7707_v45, %v7704_v39 }
 0x574   :  { %v3310_v8 = vsel %vm1272_vm8, %v3308_v27, %v3309_v0  ;;  %v3278_v15 = vsel %vm1272_vm8, %v3275_v9, %v3277_v38  ;;  %v7718_v28 = vmul.f32 %v7456_v30, %v7652_v51  ;;  %v3337_v61 = vmul.f32 %v7604_v20, %v7704_v39  ;;  %v7727_v9 = vld [vmem:[#allocation2] sm:$0xff]  ;;  %v9316_v0 = vld [vmem:[#allocation169_spill] sm:$0xff] }
 0x575   :  { %v1370_v44 = vrot.slane %v1357_v63, 3  ;;  %v1376_v33 = vsel %vm1335_vm9, %v1373_v23, %v1375_v25  ;;  %v1423_v49 = vmul.f32 %v6983_v26, %v7332_v14  ;;  %v3335_v29 = vmul.f32 %v7727_v9, %v7704_v39 }
 0x576   :  { %3285 = vrot.lane.b32.xlu1 %v3278_v15, %s5503_s2  ;;  %v1350_v1 = vadd.f32 %v9315_v4, %v1318_v2  ;;  %v1351_v6 = vadd.f32 %v7391_v59, %v1319_v12  ;;  %v1384_v62 = vadd.f32 %v1376_v33, %v1353_v7  ;;  %v3299_v32 = vmul.f32 %v7363_v42, %v7652_v51 }
 0x577   :  { %3320 = vrot.lane.b32.xlu2 %v3312_v40, %s5503_s2  ;;  %3318 = vrot.lane.b32.xlu0 %v3310_v8, %s5503_s2  ;;  %v7733_v47 = vpop.permute.xlu2 %3034  ;;  %v1352_v38 = vadd.f32 %v9316_v0, %v1320_v57  ;;  %v9317_v46 = vrot.slane %v7532_v52, 3  ;;  %v1431_v5 = vrot.slane %v7634_v56, 4  ;;  %v7742_v63 = vpop.permute.xlu0 %2884  ;;  %v3348_v59 = vrot.slane %v3336_v24, 3 }
 0x578   :  { %v7744_v25 = vpop.permute.xlu1 %2956  ;;  %v9318_v2 = vrot.slane %v7447_v55, 3  ;;  %v1436_v7 = vrot.slane %v7694_v50, 4  ;;  %v3314_v27 = vrot.slane %v7718_v28, 2  ;;  %v3350_v57 = vrot.slane %v3337_v61, 3  ;;  %v7759_v50 = vld [vmem:[#allocation2 + $0x38] sm:$0xff] }
 0x579   :  { %v1369_v3 = vsel %vm1335_vm9, %v9317_v46, %v1368_v10  ;;  %v1371_v52 = vsel %vm1335_vm9, %v1368_v10, %v1370_v44  ;;  %v1420_v56 = vmul.f32 %v6950_v13, %v7332_v14  ;;  %v1438_v40 = vrot.slane %v1423_v49, 4 }
 0x57a   :  { %v1374_v12 = vsel %vm1335_vm9, %v9318_v2, %v1373_v23  ;;  %v3347_v8 = vrot.slane %v3335_v29, 3  ;;  %v1381_v15 = vadd.f32 %v1369_v3, %v1350_v1  ;;  %v1382_v33 = vadd.f32 %v1371_v52, %v1351_v6  ;;  %v7779_v1 = vld [vmem:[#allocation2 + $0x30] sm:$0xff] }
 0x57b   :  { %v1416_v24 = vadd.f32 %v7478_v37, %v1384_v62  ;;  %v3313_v4 = vrot.slane %v3299_v32, 2  ;;  %v1383_v55 = vadd.f32 %v1374_v12, %v1352_v38  ;;  %v7757_v0 = vstv %s7711_s3  ;;  %v9319_v3 = vld [vmem:[#allocation170_spill] sm:$0xff]  ;;  %s5196_s3 = sld [smem:[#allocation8 + $0x45]] }
 0x57c   :  { %v3349_v23 = vsel %vm1335_vm9, %v3347_v8, %v3348_v59  ;;  %v7763_v10 = vmul.f32 %v7759_v50, %v7704_v39  ;;  %v3351_v28 = vsel %vm1335_vm9, %v3348_v59, %v3350_v57  ;;  %v3301_v37 = vmul.f32 %v6983_v26, %v7652_v51 }
 0x57d   :  { %v3315_v14 = vsel %vm1272_vm8, %v3313_v4, %v3314_v27  ;;  %v7772_v61 = vmul.f32 %v7359_v53, %v7757_v0  ;;  %v1433_v44 = vrot.slane %v1420_v56, 4  ;;  %v1439_v49 = vsel %vm1398_vm10, %v1436_v7, %v1438_v40 }
 0x57e   :  { %v1486_v29 = vmul.f32 %v6983_v26, %v7335_v43  ;;  %3359 = vrot.lane.b32.xlu1 %v3351_v28, %s5503_s2  ;;  %v3338_v6 = vmul.f32 %v7779_v1, %v7704_v39  ;;  %v1430_v51 = vrot.slane %v7574_v11, 4  ;;  %v1414_v62 = vadd.f32 %v7396_v31, %v1382_v33  ;;  %v9320_v31 = vld [vmem:[#allocation167_spill] sm:$0xff] }
 0x57f   :  { %3357 = vrot.lane.b32.xlu2 %v3349_v23, %s5503_s2  ;;  %3322 = vrot.lane.b32.xlu0 %v3315_v14, %s5503_s2  ;;  %v1447_v32 = vadd.f32 %v1439_v49, %v1416_v24  ;;  %v7785_v38 = vpop.permute.xlu2 %3038  ;;  %v3374_v46 = vmul.f32 %v7284_v21, %v7757_v0  ;;  %v1415_v59 = vadd.f32 %v9319_v3, %v1383_v55  ;;  %v1494_v12 = vrot.slane %v7671_v41, 5  ;;  %v7793_v57 = vpop.permute.xlu0 %2958 }
 0x580   :  { %v1485_v2 = vmul.f32 %v7456_v30, %v7335_v43  ;;  %v7795_v52 = vpop.permute.xlu1 %2960  ;;  %v3353_v11 = vrot.slane %v7763_v10, 3  ;;  %v1413_v56 = vadd.f32 %v9320_v31, %v1381_v15  ;;  %v1432_v40 = vsel %vm1398_vm10, %v1430_v51, %v1431_v5 }
 0x581   :  { %v3316_v8 = vrot.slane %v3301_v37, 2  ;;  %v3387_v33 = vrot.slane %v7772_v61, 3  ;;  %v1434_v24 = vsel %vm1398_vm10, %v1431_v5, %v1433_v44  ;;  %v1483_v4 = vmul.f32 %v6950_v13, %v7335_v43 }
 0x582   :  { %v1501_v55 = vrot.slane %v1486_v29, 5  ;;  %v3352_v41 = vrot.slane %v3338_v6, 3  ;;  %v9321_v23 = vrot.slane %v7454_v36, 4  ;;  %v1445_v28 = vadd.f32 %v1434_v24, %v1414_v62 }
 0x583   :  { %v1479_v10 = vadd.f32 %v7483_v34, %v1447_v32  ;;  %v3386_v15 = vrot.slane %v3374_v46, 3  ;;  %v1499_v49 = vrot.slane %v1485_v2, 5  ;;  %v3340_v5 = vmul.f32 %v7665_v48, %v7704_v39  ;;  %v9322_v46 = vld [vmem:[#allocation171_spill] sm:$0xff] }
 0x584   :  { %v1437_v14 = vsel %vm1398_vm10, %v9321_v23, %v1436_v7  ;;  %v3354_v61 = vsel %vm1335_vm9, %v3352_v41, %v3353_v11  ;;  %v3317_v43 = vsel %vm1272_vm8, %v3314_v27, %v3316_v8  ;;  %v3376_v36 = vmul.f32 %v6950_v13, %v7757_v0 }
 0x585   :  { %v1446_v37 = vadd.f32 %v1437_v14, %v1415_v59  ;;  %v3388_v44 = vsel %vm1335_vm9, %v3386_v15, %v3387_v33  ;;  %v7820_v34 = vmul.f32 %v7456_v30, %v7757_v0  ;;  %v1444_v7 = vadd.f32 %v1432_v40, %v1413_v56  ;;  %v7849_v14 = vld [vmem:[#allocation2 + $0x28] sm:$0x3f] }
 0x586   :  { %v1496_v29 = vrot.slane %v1483_v4, 5  ;;  %v1502_v6 = vsel %vm1461_vm11, %v1499_v49, %v1501_v55  ;;  %v1549_v39 = vmul.f32 %v6983_v26, %v7342_v60  ;;  %3396 = vrot.lane.b32.xlu1 %v3388_v44, %s5503_s2  ;;  %v1493_v27 = vrot.slane %v7584_v35, 5  ;;  %v9324_v55 = vld [vmem:[#allocation168_spill] sm:$0xff] }
 0x587   :  { %3361 = vrot.lane.b32.xlu2 %v3354_v61, %s5503_s2  ;;  %3324 = vrot.lane.b32.xlu0 %v3317_v43, %s5503_s2  ;;  %v1477_v51 = vadd.f32 %v7401_v17, %v1445_v28  ;;  %v1510_v13 = vadd.f32 %v1502_v6, %v1479_v10  ;;  %v7829_v62 = vpop.permute.xlu2 %3040  ;;  %v3377_v32 = vmul.f32 %v7363_v42, %v7757_v0  ;;  %v7838_v31 = vpop.permute.xlu0 %2995  ;;  %v3355_v17 = vrot.slane %v3340_v5, 3 }
 0x588   :  { %v1478_v3 = vadd.f32 %v9322_v46, %v1446_v37  ;;  %v1548_v59 = vmul.f32 %v7456_v30, %v7342_v60  ;;  %v1545_v2 = vmul.f32 %v7359_v53, %v7342_v60  ;;  %v7840_v35 = vpop.permute.xlu1 %2962  ;;  %v9323_v56 = vrot.slane %v7491_v18, 5  ;;  %v9325_v37 = vld [vmem:[#allocation180_spill] sm:$0xff] }
 0x589   :  { %v1495_v8 = vsel %vm1461_vm11, %v1493_v27, %v1494_v12  ;;  %v3389_v24 = vrot.slane %v3376_v36, 3  ;;  %v3392_v4 = vrot.slane %v7820_v34, 3  ;;  %v1476_v41 = vadd.f32 %v9324_v55, %v1444_v7  ;;  %v9330_v46 = vld [vmem:[#allocation176_spill] sm:$0xff] }
 0x58a   :  { %v1500_v40 = vsel %vm1461_vm11, %v9323_v56, %v1499_v49  ;;  %v1497_v23 = vsel %vm1461_vm11, %v1494_v12, %v1496_v29  ;;  %v1546_v28 = vmul.f32 %v7849_v14, %v7342_v60  ;;  %v1564_v10 = vrot.slane %v1549_v39, 6 }
 0x58b   :  { %v1508_v15 = vadd.f32 %v1497_v23, %v1477_v51  ;;  %v1542_v18 = vadd.f32 %v9325_v37, %v1510_v13  ;;  %v3391_v61 = vrot.slane %v3377_v32, 3  ;;  %v7855_v49 = vstv %s7808_s29  ;;  %v9328_v51 = vld [vmem:[#allocation160_spill] sm:$0xff]  ;;  %s5154_s29 = sld [smem:[#allocation8 + $0x1b]] }
 0x58c   :  { %v1509_v5 = vadd.f32 %v1500_v40, %v1478_v3  ;;  %v1562_v43 = vrot.slane %v1548_v59, 6  ;;  %v3356_v44 = vsel %vm1335_vm9, %v3353_v11, %v3355_v17  ;;  %v3415_v12 = vmul.f32 %v7604_v20, %v7855_v49 }
 0x58d   :  { %v3390_v36 = vsel %vm1335_vm9, %v3387_v33, %v3389_v24  ;;  %v3393_v60 = vsel %vm1335_vm9, %v3391_v61, %v3392_v4  ;;  %v3414_v34 = vmul.f32 %v7707_v45, %v7855_v49  ;;  %v3379_v7 = vmul.f32 %v6983_v26, %v7757_v0  ;;  %v9326_v33 = vld [vmem:[#allocation165_spill] sm:$0xff] }
 0x58e   :  { %v1507_v29 = vadd.f32 %v1495_v8, %v1476_v41  ;;  %v1557_v6 = vrot.slane %v1545_v2, 6  ;;  %v1559_v39 = vrot.slane %v1546_v28, 6  ;;  %v1565_v11 = vsel %vm1524_vm12, %v1562_v43, %v1564_v10  ;;  %3400 = vrot.lane.b32.xlu1 %v3393_v60, %s5503_s2  ;;  %v9331_v2 = vld [vmem:[#allocation179_spill] sm:$0xff]  ;;  %v9332_v41 = vld [vmem:[#allocation161_spill] sm:$0xff]  ;;  %v9334_v28 = vld [vmem:[#allocation156_spill] sm:$0xff] }
 0x58f   :  { %3363 = vrot.lane.b32.xlu2 %v3356_v44, %s5503_s2  ;;  %3398 = vrot.lane.b32.xlu0 %v3390_v36, %s5503_s2  ;;  %v9327_v27 = vrot.slane %v9326_v33, 6  ;;  %v9329_v13 = vrot.slane %v9328_v51, 6  ;;  %v1540_v3 = vadd.f32 %v9330_v46, %v1508_v15  ;;  %v1573_v59 = vadd.f32 %v1565_v11, %v1542_v18  ;;  %v7878_v17 = vpop.permute.xlu2 %3114  ;;  %v7884_v8 = vpop.permute.xlu0 %2999  ;;  %v9336_v60 = vld [vmem:[#allocation37_spill] sm:$0xff] }
 0x590   :  { %v3413_v26 = vmul.f32 %v7727_v9, %v7855_v49  ;;  %v1561_v56 = vrot.slane %v9331_v2, 6  ;;  %v1556_v40 = vrot.slane %v7590_v54, 6  ;;  %v7886_v24 = vpop.permute.xlu1 %3036  ;;  %v3428_v55 = vrot.slane %v3415_v12, 4 }
 0x591   :  { %v1532_v32 = vsel %vm1524_vm12, %v9329_v13, %v9327_v27  ;;  %v9333_v23 = vrot.slane %v9332_v41, 6  ;;  %v9335_v10 = vrot.slane %v9334_v28, 6  ;;  %v3426_v37 = vrot.slane %v3414_v34, 4 }
 0x592   :  { %v1541_v0 = vadd.f32 %v1532_v32, %v1509_v5  ;;  %v3394_v18 = vrot.slane %v3379_v7, 3  ;;  %v1563_v61 = vsel %vm1524_vm12, %v1561_v56, %v1562_v43  ;;  %v1558_v44 = vsel %vm1524_vm12, %v1556_v40, %v1557_v6  ;;  %v9337_v7 = vld [vmem:[#allocation53_spill] sm:$0xff] }
 0x593   :  { %v1527_v15 = vsel %vm1524_vm12, %v9335_v10, %v9333_v23  ;;  %v1560_v54 = vsel %vm1524_vm12, %v1557_v6, %v1559_v39  ;;  %v1598_v11 = vadd.f32 %v9336_v60, %v1573_v59  ;;  %v3425_v33 = vrot.slane %v3413_v26, 4  ;;  %v9338_v59 = vld [vmem:[#allocation36_spill] sm:$0xff]  ;;  %v9341_v23 = vld [vmem:[#allocation41_spill] sm:$0xff]  ;;  %v9342_v10 = vld [vmem:[#allocation51_spill] sm:$0xff] }
 0x594   :  { %v1539_v5 = vadd.f32 %v1527_v15, %v1507_v29  ;;  %v1571_v36 = vadd.f32 %v1560_v54, %v1540_v3  ;;  %v7898_v12 = vstv %s7857_s30  ;;  %v1572_v27 = vadd.f32 %v1563_v61, %v1541_v0  ;;  %v9344_v54 = vld [vmem:[#allocation45_spill] sm:$0xff]  ;;  %v9345_v60 = vld [vmem:[#allocation58_spill] sm:$0xff]  ;;  %s5203_s30 = sld [smem:[#allocation8 + $0x4c]] }
 0x595   :  { %v3429_v51 = vsel %vm1398_vm10, %v3426_v37, %v3428_v55  ;;  %v7905_v34 = vmul.f32 %v7759_v50, %v7855_v49  ;;  %v3453_v43 = vmul.f32 %v7359_v53, %v7898_v12  ;;  %v1623_v29 = vadd.f32 %v9337_v7, %v1598_v11  ;;  %v9340_v55 = vld [vmem:[#allocation32_spill] sm:$0xff] }
 0x596   :  { %v3427_v6 = vsel %vm1398_vm10, %v3425_v33, %v3426_v37  ;;  %v3395_v39 = vsel %vm1335_vm9, %v3392_v4, %v3394_v18  ;;  %v3454_v13 = vmul.f32 %v7849_v14, %v7898_v12  ;;  %v1570_v32 = vadd.f32 %v1558_v44, %v1539_v5  ;;  %v9343_v18 = vld [vmem:[#allocation34_spill] sm:$0xff]  ;;  %v9346_v33 = vld [vmem:[#allocation113_spill] sm:$0xff] }
 0x597   :  { %3437 = vrot.lane.b32.xlu2 %v3429_v51, %s5503_s2  ;;  %3435 = vrot.lane.b32.xlu0 %v3427_v6, %s5503_s2  ;;  %v3416_v46 = vmul.f32 %v7779_v1, %v7855_v49  ;;  %v3452_v3 = vmul.f32 %v7284_v21, %v7898_v12  ;;  %v1596_v26 = vadd.f32 %v9338_v59, %v1571_v36  ;;  %v7922_v4 = vpop.permute.xlu2 %3137  ;;  %v7924_v0 = vpop.permute.xlu0 %3001  ;;  %v3431_v56 = vrot.slane %v7905_v34, 4  ;;  %v9347_v6 = vld [vmem:[#allocation65_spill] sm:$0xff] }
 0x598   :  { %3402 = vrot.lane.b32.xlu1 %v3395_v39, %s5503_s2  ;;  %9339 = vst [vmem:[#allocation166_spill] sm:$0xff] %v7922_v4  ;;  %v7926_v2 = vpop.permute.xlu1 %3073  ;;  %v3465_v40 = vrot.slane %v3453_v43, 4  ;;  %v1597_v41 = vadd.f32 %v9340_v55, %v1572_v27  ;;  %v1662_v15 = vadd.f32 %v9342_v10, %v1623_v29  ;;  %v3467_v37 = vrot.slane %v3454_v13, 4  ;;  %v9348_v13 = vld [vmem:[#allocation112_spill] sm:$0xff]  ;;  %v9349_v55 = vld [vmem:[#allocation49_spill] sm:$0xff] }
 0x599   :  { %v1621_v28 = vadd.f32 %v9341_v23, %v1596_v26  ;;  %v1595_v61 = vadd.f32 %v9343_v18, %v1570_v32  ;;  %v3430_v5 = vrot.slane %v3416_v46, 4  ;;  %v3464_v44 = vrot.slane %v3452_v3, 4  ;;  %v9350_v23 = vld [vmem:[#allocation102_spill] sm:$0xff] }
 0x59a   :  { %v1622_v36 = vadd.f32 %v9344_v54, %v1597_v41  ;;  %v1701_v51 = vadd.f32 %v9346_v33, %v1662_v15  ;;  %v7937_v7 = vstv %s7900_s8  ;;  %v3456_v29 = vmul.f32 %v7456_v30, %v7898_v12  ;;  %s5161_s8 = sld [smem:[#allocation8 + $0x22]] }
 0x59b   :  { %v1660_v11 = vadd.f32 %v9345_v60, %v1621_v28  ;;  %v3432_v34 = vsel %vm1398_vm10, %v3430_v5, %v3431_v56  ;;  %v3466_v27 = vsel %vm1398_vm10, %v3464_v44, %v3465_v40  ;;  %v7943_v43 = vmul.f32 %v7707_v45, %v7937_v7  ;;  %v9353_v44 = vld [vmem:[#allocation48_spill] sm:$0xff] }
 0x59c   :  { %v1661_v39 = vadd.f32 %v9347_v6, %v1622_v36  ;;  %v3468_v46 = vsel %vm1398_vm10, %v3465_v40, %v3467_v37  ;;  %v3418_v3 = vmul.f32 %v7665_v48, %v7855_v49  ;;  %v3491_v59 = vmul.f32 %v7727_v9, %v7937_v7  ;;  %v9351_v40 = vld [vmem:[#allocation71_spill] sm:$0xff]  ;;  %v9354_v36 = vld [vmem:[#allocation54_spill] sm:$0xff]  ;;  %v9356_v6 = vld [vmem:[#allocation109_spill] sm:$0xff] }
 0x59d   :  { %v1699_v32 = vadd.f32 %v9348_v13, %v1660_v11  ;;  %v3455_v26 = vmul.f32 %v7363_v42, %v7898_v12  ;;  %v1620_v41 = vadd.f32 %v9349_v55, %v1595_v61  ;;  %v1740_v10 = vadd.f32 %v9351_v40, %v1701_v51 }
 0x59e   :  { %v1700_v28 = vadd.f32 %v9350_v23, %v1661_v39  ;;  %v3504_v18 = vrot.slane %v7943_v43, 5  ;;  %v3470_v5 = vrot.slane %v3456_v29, 4  ;;  %v3433_v11 = vrot.slane %v3418_v3, 4  ;;  %v9357_v39 = vld [vmem:[#allocation108_spill] sm:$0xff]  ;;  %v7977_v29 = vld [vmem:[#allocation2 + $0x58] sm:$0x3f] }
 0x59f   :  { %3474 = vrot.lane.b32.xlu2 %v3466_v27, %s5503_s2  ;;  %3439 = vrot.lane.b32.xlu0 %v3432_v34, %s5503_s2  ;;  %v7962_v15 = vpop.permute.xlu2 %3141  ;;  %v7964_v37 = vpop.permute.xlu0 %3075  ;;  %v1659_v54 = vadd.f32 %v9353_v44, %v1620_v41  ;;  %v1738_v60 = vadd.f32 %v9354_v36, %v1699_v32  ;;  %v3503_v33 = vrot.slane %v3491_v59, 5  ;;  %v3469_v61 = vrot.slane %v3455_v26, 4  ;;  %v9355_v34 = vld [vmem:[#allocation61_spill] sm:$0xff]  ;;  %v9359_v3 = vld [vmem:[#allocation115_spill] sm:$0xff] }
 0x5a0   :  { %3476 = vrot.lane.b32.xlu1 %v3468_v46, %s5503_s2  ;;  %9352 = vst [vmem:[#allocation169_spill] sm:$0xff] %v7962_v15  ;;  %v7966_v49 = vpop.permute.xlu1 %3077  ;;  %v1739_v27 = vadd.f32 %v9355_v34, %v1700_v28  ;;  %v1779_v13 = vadd.f32 %v9357_v39, %v1740_v10  ;;  %v9358_v46 = vld [vmem:[#allocation116_spill] sm:$0xff]  ;;  %v3457_v32 = vmul.f32 %v7977_v29, %v7898_v12  ;;  %v9361_v44 = vld [vmem:[#allocation67_spill] sm:$0xff]  ;;  %v9364_v34 = vld [vmem:[#allocation57_spill] sm:$0xff] }
 0x5a1   :  { %v1698_v51 = vadd.f32 %v9356_v6, %v1659_v54  ;;  %v1777_v55 = vadd.f32 %v9358_v46, %v1738_v60  ;;  %v3505_v23 = vsel %vm1461_vm11, %v3503_v33, %v3504_v18  ;;  %v3471_v43 = vsel %vm1398_vm10, %v3469_v61, %v3470_v5  ;;  %v9360_v12 = vld [vmem:[#allocation68_spill] sm:$0xff]  ;;  %v9365_v6 = vld [vmem:[#allocation121_spill] sm:$0xff] }
 0x5a2   :  { %v1778_v59 = vadd.f32 %v9359_v3, %v1739_v27  ;;  %v3434_v26 = vsel %vm1398_vm10, %v3431_v56, %v3433_v11  ;;  %v3493_v41 = vmul.f32 %v7604_v20, %v7937_v7  ;;  %v3495_v28 = vmul.f32 %v7759_v50, %v7937_v7  ;;  %v9362_v56 = vld [vmem:[#allocation74_spill] sm:$0xff]  ;;  %v9366_v3 = vld [vmem:[#allocation105_spill] sm:$0xff] }
 0x5a3   :  { %v3494_v40 = vmul.f32 %v7779_v1, %v7937_v7  ;;  %v1737_v10 = vadd.f32 %v9360_v12, %v1698_v51  ;;  %v1818_v54 = vadd.f32 %v9361_v44, %v1779_v13  ;;  %v1816_v36 = vadd.f32 %v9362_v56, %v1777_v55  ;;  %v9368_v12 = vld [vmem:[#allocation119_spill] sm:$0xff] }
 0x5a4   :  { %v3472_v61 = vrot.slane %v3457_v32, 4  ;;  %v1817_v27 = vadd.f32 %v9364_v34, %v1778_v59  ;;  %v3506_v46 = vrot.slane %v3493_v41, 5  ;;  %v8006_v44 = vstv %s5215_s11  ;;  %v9369_v41 = vld [vmem:[#allocation63_spill] sm:$0xff]  ;;  %s5210_s11 = sld [smem:[#allocation8 + $0x53]] }
 0x5a5   :  { %v1857_v39 = vadd.f32 %v9365_v6, %v1818_v54  ;;  %v1776_v51 = vadd.f32 %v9366_v3, %v1737_v10  ;;  %v3496_v32 = vmul.f32 %v7665_v48, %v7937_v7  ;;  %v3532_v59 = vmul.f32 %v7849_v14, %v8006_v44  ;;  %v9373_v6 = vld [vmem:[#allocation125_spill] sm:$0xff] }
 0x5a6   :  { %v1856_v55 = vadd.f32 %v9368_v12, %v1817_v27  ;;  %v3473_v56 = vsel %vm1398_vm10, %v3470_v5, %v3472_v61  ;;  %v3531_v54 = vmul.f32 %v7359_v53, %v8006_v44  ;;  %v3530_v7 = vmul.f32 %v7284_v21, %v8006_v44  ;;  %v9370_v5 = vld [vmem:[#allocation64_spill] sm:$0xff]  ;;  %v9371_v61 = vld [vmem:[#allocation70_spill] sm:$0xff]  ;;  %v9372_v27 = vld [vmem:[#allocation77_spill] sm:$0xff] }
 0x5a7   :  { %3478 = vrot.lane.b32.xlu2 %v3471_v43, %s5503_s2  ;;  %3441 = vrot.lane.b32.xlu0 %v3434_v26, %s5503_s2  ;;  %v7995_v60 = vpop.permute.xlu2 %3143  ;;  %v7997_v11 = vpop.permute.xlu0 %3112  ;;  %v3508_v43 = vrot.slane %v3494_v40, 5  ;;  %v9367_v26 = vld [vmem:[#allocation111_spill] sm:$0xff]  ;;  %v3507_v40 = vsel %vm1461_vm11, %v3504_v18, %v3506_v46  ;;  %v3545_v12 = vrot.slane %v3532_v59, 5 }
 0x5a8   :  { %3513 = vrot.lane.b32.xlu1 %v3505_v23, %s5503_s2  ;;  %9363 = vst [vmem:[#allocation170_spill] sm:$0xff] %v7997_v11  ;;  %v7999_v33 = vpop.permute.xlu1 %3079  ;;  %v3509_v23 = vrot.slane %v3495_v28, 5  ;;  %v1855_v13 = vadd.f32 %v9367_v26, %v1816_v36  ;;  %v1896_v28 = vadd.f32 %v9369_v41, %v1857_v39  ;;  %v1815_v36 = vadd.f32 %v9370_v5, %v1776_v51  ;;  %v9377_v51 = vld [vmem:[#allocation114_spill] sm:$0xff] }
 0x5a9   :  { %v1895_v18 = vadd.f32 %v9372_v27, %v1856_v55  ;;  %v3511_v26 = vrot.slane %v3496_v32, 5  ;;  %v3542_v55 = vrot.slane %v3530_v7, 5  ;;  %v8037_v27 = vstv %s5173_s12  ;;  %s5168_s12 = sld [smem:[#allocation8 + $0x29]] }
 0x5aa   :  { %v3510_v10 = vsel %vm1461_vm11, %v3508_v43, %v3509_v23  ;;  %v1894_v34 = vadd.f32 %v9371_v61, %v1855_v13  ;;  %v1935_v39 = vadd.f32 %v9373_v6, %v1896_v28  ;;  %v9378_v13 = vld [vmem:[#allocation83_spill] sm:$0xff]  ;;  %v3570_v32 = vmul.f32 %v7707_v45, %v8037_v27 }
 0x5ab   :  { %v1934_v5 = vadd.f32 %v9377_v51, %v1895_v18  ;;  %v3512_v28 = vsel %vm1461_vm11, %v3509_v23, %v3511_v26  ;;  %v3571_v59 = vmul.f32 %v7604_v20, %v8037_v27  ;;  %v3534_v7 = vmul.f32 %v7456_v30, %v8006_v44  ;;  %v9384_v51 = vld [vmem:[#allocation128_spill] sm:$0xff] }
 0x5ac   :  { %v1974_v61 = vadd.f32 %v9378_v13, %v1935_v39  ;;  %v3533_v23 = vmul.f32 %v7363_v42, %v8006_v44  ;;  %v3569_v26 = vmul.f32 %v7727_v9, %v8037_v27  ;;  %v9387_v42 = vld [vmem:[#allocation127_spill] sm:$0xff] }
 0x5ae   :  { %v3547_v4 = vrot.slane %v3533_v23, 5  ;;  %v3581_v11 = vrot.slane %v3569_v26, 6  ;;  %v9392_v23 = vld [vmem:[#allocation133_spill] sm:$0xff] }
 0x5af   :  { %3480 = vrot.lane.b32.xlu2 %v3473_v56, %s5503_s2  ;;  %3515 = vrot.lane.b32.xlu0 %v3507_v40, %s5503_s2  ;;  %v8027_v46 = vpop.permute.xlu2 %3203  ;;  %v8029_v43 = vpop.permute.xlu0 %3116  ;;  %v9375_v56 = vld [vmem:[#allocation118_spill] sm:$0xff]  ;;  %v9376_v40 = vld [vmem:[#allocation124_spill] sm:$0xff] }
 0x5b0   :  { %3517 = vrot.lane.b32.xlu1 %v3510_v10, %s5503_s2  ;;  %9374 = vst [vmem:[#allocation167_spill] sm:$0xff] %v8027_v46  ;;  %v8031_v3 = vpop.permute.xlu1 %3139  ;;  %v1854_v41 = vadd.f32 %v9375_v56, %v1815_v36  ;;  %v1933_v21 = vadd.f32 %v9376_v40, %v1894_v34  ;;  %v3543_v10 = vrot.slane %v3531_v54, 5  ;;  %v9379_v36 = vld [vmem:[#allocation60_spill] sm:$0xff]  ;;  %v9380_v34 = vld [vmem:[#allocation66_spill] sm:$0xff]  ;;  %v3548_v46 = vrot.slane %v3534_v7, 5 }
 0x5b2   :  { %v3546_v6 = vsel %vm1461_vm11, %v3543_v10, %v3545_v12  ;;  %v1893_v54 = vadd.f32 %v9379_v36, %v1854_v41  ;;  %v1972_v18 = vadd.f32 %v9380_v34, %v1933_v21  ;;  %v3544_v39 = vsel %vm1461_vm11, %v3542_v55, %v3543_v10  ;;  %v9381_v12 = vld [vmem:[#allocation73_spill] sm:$0xff]  ;;  %v9382_v41 = vld [vmem:[#allocation122_spill] sm:$0xff]  ;;  %v9383_v21 = vld [vmem:[#allocation120_spill] sm:$0xff] }
 0x5b3   :  { %v1973_v56 = vadd.f32 %v9381_v12, %v1934_v5  ;;  %v2013_v10 = vadd.f32 %v9383_v21, %v1974_v61  ;;  %v3584_v34 = vrot.slane %v3571_v59, 6  ;;  %v9388_v5 = vld [vmem:[#allocation80_spill] sm:$0xff]  ;;  %v9390_v61 = vld [vmem:[#allocation86_spill] sm:$0xff]  ;;  %v9391_v59 = vld [vmem:[#allocation69_spill] sm:$0xff] }
 0x5b4   :  { %v1932_v40 = vadd.f32 %v9382_v41, %v1893_v54  ;;  %v2011_v13 = vadd.f32 %v9384_v51, %v1972_v18  ;;  %v9389_v54 = vld [vmem:[#allocation79_spill] sm:$0xff]  ;;  %v3607_v18 = vstv %s5222_s13  ;;  %s5217_s13 = sld [smem:[#allocation8 + $0x5a]] }
 0x5b5   :  { %v2052_v41 = vadd.f32 %v9389_v54, %v2013_v10  ;;  %v3610_v15 = vmul.f32 %v7849_v14, %v3607_v18 }
 0x5b6   :  { %v1971_v12 = vadd.f32 %v9388_v5, %v1932_v40  ;;  %v2050_v21 = vadd.f32 %v9390_v61, %v2011_v13  ;;  %v3535_v40 = vmul.f32 %v7977_v29, %v8006_v44  ;;  %v9394_v13 = vld [vmem:[#allocation123_spill] sm:$0xff] }
 0x5b7   :  { %3554 = vrot.lane.b32.xlu2 %v3546_v6, %s5503_s2  ;;  %3552 = vrot.lane.b32.xlu0 %v3544_v39, %s5503_s2  ;;  %v2012_v39 = vadd.f32 %v9387_v42, %v1973_v56  ;;  %v2091_v26 = vadd.f32 %v9392_v23, %v2052_v41  ;;  %v3549_v56 = vsel %vm1461_vm11, %v3547_v4, %v3548_v46  ;;  %v8091_v4 = vld [vmem:[#allocation2 + $0x18] sm:$0xff]  ;;  %v9400_v23 = vld [vmem:[#allocation76_spill] sm:$0xff] }
 0x5b8   :  { %3519 = vrot.lane.b32.xlu1 %v3512_v28, %s5503_s2  ;;  %v8065_v36 = vpop.permute.xlu1 %3162  ;;  %v3582_v28 = vrot.slane %v3570_v32, 6  ;;  %v3573_v32 = vmul.f32 %v7759_v50, %v8037_v27  ;;  %v9399_v41 = vld [vmem:[#allocation35_spill] sm:$0xff] }
 0x5b9   :  { %v8061_v55 = vpop.permute.xlu2 %3240  ;;  %v8063_v6 = vpop.permute.xlu0 %3118  ;;  %9386 = vst [vmem:[#allocation168_spill] sm:$0xff] %v8065_v36  ;;  %v3609_v36 = vmul.f32 %v7359_v53, %v3607_v18  ;;  %v2051_v7 = vadd.f32 %v9391_v59, %v2012_v39  ;;  %v3572_v53 = vmul.f32 %v7779_v1, %v8037_v27  ;;  %v2116_v61 = vadd.f32 %v9399_v41, %v2091_v26  ;;  %v9403_v26 = vld [vmem:[#allocation130_spill] sm:$0xff]  ;;  %v9406_v41 = vld [vmem:[#allocation44_spill] sm:$0xff] }
 0x5ba   :  { %9385 = vst [vmem:[#allocation171_spill] sm:$0xff] %v8061_v55  ;;  %v3585_v51 = vsel %vm1524_vm12, %v3582_v28, %v3584_v34  ;;  %v3583_v55 = vsel %vm1524_vm12, %v3581_v11, %v3582_v28  ;;  %v9393_v11 = vld [vmem:[#allocation117_spill] sm:$0xff]  ;;  %v2089_v28 = vadd.f32 %v9394_v13, %v2050_v21  ;;  %v9395_v34 = vld [vmem:[#allocation131_spill] sm:$0xff]  ;;  %v3587_v54 = vrot.slane %v3573_v32, 6 }
 0x5bb   :  { %v2010_v10 = vadd.f32 %v9393_v11, %v1971_v12  ;;  %v2090_v42 = vadd.f32 %v9395_v34, %v2051_v7  ;;  %v3621_v59 = vrot.slane %v3609_v36, 6  ;;  %v3586_v12 = vrot.slane %v3572_v53, 6  ;;  %v9402_v11 = vld [vmem:[#allocation39_spill] sm:$0xff]  ;;  %v9404_v36 = vld [vmem:[#allocation52_spill] sm:$0xff] }
 0x5bc   :  { %v3574_v32 = vmul.f32 %v7665_v48, %v8037_v27  ;;  %v2141_v53 = vadd.f32 %v9404_v36, %v2116_v61 }
 0x5bd   :  { %v2049_v21 = vadd.f32 %v9400_v23, %v2010_v10  ;;  %v2115_v13 = vadd.f32 %v9402_v11, %v2090_v42  ;;  %v8114_v42 = vld [vmem:[#allocation2 + $0x48] sm:$0xff] }
 0x5bf   :  { %3591 = vrot.lane.b32.xlu2 %v3583_v55, %s5503_s2  ;;  %3556 = vrot.lane.b32.xlu0 %v3549_v56, %s5503_s2  ;;  %v3608_v55 = vmul.f32 %v8091_v4, %v3607_v18  ;;  %v9401_v56 = vld [vmem:[#allocation40_spill] sm:$0xff] }
 0x5c0   :  { %3593 = vrot.lane.b32.xlu1 %v3585_v51, %s5503_s2  ;;  %v8096_v5 = vpop.permute.xlu1 %3166  ;;  %v3550_v51 = vrot.slane %v3535_v40, 5  ;;  %v2114_v7 = vadd.f32 %v9401_v56, %v2089_v28  ;;  %v2088_v40 = vadd.f32 %v9403_v26, %v2049_v21  ;;  %v3589_v21 = vrot.slane %v3574_v32, 6  ;;  %v9409_v56 = vld [vmem:[#allocation33_spill] sm:$0xff] }
 0x5c1   :  { %v8089_v39 = vpop.permute.xlu2 %3244  ;;  %v8094_v44 = vpop.permute.xlu0 %3164  ;;  %9398 = vst [vmem:[#allocation160_spill] sm:$0xff] %v8096_v5  ;;  %v3620_v34 = vrot.slane %v3608_v55, 6  ;;  %v9405_v55 = vld [vmem:[#allocation56_spill] sm:$0xff] }
 0x5c2   :  { %9396 = vst [vmem:[#allocation180_spill] sm:$0xff] %v8089_v39  ;;  %v3588_v39 = vsel %vm1524_vm12, %v3586_v12, %v3587_v54  ;;  %v3551_v10 = vsel %vm1461_vm11, %v3548_v46, %v3550_v51  ;;  %v2139_v27 = vadd.f32 %v9405_v55, %v2114_v7  ;;  %v2140_v12 = vadd.f32 %v9406_v41, %v2115_v13  ;;  %v9412_v7 = vld [vmem:[#allocation82_spill] sm:$0xff] }
 0x5c3   :  { %9397 = vst [vmem:[#allocation165_spill] sm:$0xff] %v8094_v44  ;;  %v3612_v44 = vmul.f32 %v7456_v30, %v3607_v18  ;;  %v3622_v28 = vsel %vm1524_vm12, %v3620_v34, %v3621_v59  ;;  %v3611_v30 = vmul.f32 %v8114_v42, %v3607_v18  ;;  %v3623_v51 = vrot.slane %v3610_v15, 6  ;;  %v9410_v34 = vld [vmem:[#allocation92_spill] sm:$0xff] }
 0x5c4   :  { %v2113_v11 = vadd.f32 %v9409_v56, %v2088_v40  ;;  %v2180_v26 = vadd.f32 %v9410_v34, %v2141_v53  ;;  %v2179_v55 = vadd.f32 %v9412_v7, %v2140_v12  ;;  %v3613_v15 = vmul.f32 %v7977_v29, %v3607_v18  ;;  %v9415_v40 = vld [vmem:[#allocation134_spill] sm:$0xff]  ;;  %v9416_v53 = vld [vmem:[#allocation136_spill] sm:$0xff]  ;;  %v9422_v34 = vld [vmem:[#allocation95_spill] sm:$0xff] }
 0x5c5   :  { %v3625_v36 = vrot.slane %v3611_v30, 6  ;;  %v3624_v13 = vsel %vm1524_vm12, %v3621_v59, %v3623_v51  ;;  %v3646_v18 = vstv %s5132_s0  ;;  %v9420_v51 = vld [vmem:[#allocation89_spill] sm:$0xff]  ;;  %s5175_s0 = sld [smem:[#allocation8 + $0x30]] }
 0x5c6   :  { %v2218_v30 = vadd.f32 %v9416_v53, %v2179_v55  ;;  %v3628_v12 = vrot.slane %v3613_v15, 6  ;;  %v3648_v7 = vmul.f32 %v7707_v45, %v3646_v18  ;;  %v3647_v55 = vmul.f32 %v7727_v9, %v3646_v18 }
 0x5c7   :  { %3595 = vrot.lane.b32.xlu2 %v3588_v39, %s5503_s2  ;;  %3558 = vrot.lane.b32.xlu0 %v3551_v10, %s5503_s2  ;;  %v3626_v39 = vrot.slane %v3612_v44, 6  ;;  %v9411_v10 = vld [vmem:[#allocation72_spill] sm:$0xff]  ;;  %v9413_v44 = vld [vmem:[#allocation50_spill] sm:$0xff] }
 0x5c8   :  { %3630 = vrot.lane.b32.xlu1 %v3622_v28, %s5503_s2  ;;  %v8123_v46 = vpop.permute.xlu1 %3168  ;;  %v2178_v28 = vadd.f32 %v9411_v10, %v2139_v27  ;;  %v2138_v32 = vadd.f32 %v9413_v44, %v2113_v11  ;;  %v9424_v10 = vld [vmem:[#allocation142_spill] sm:$0xff]  ;;  %v9426_v44 = vld [vmem:[#allocation132_spill] sm:$0xff] }
 0x5c9   :  { %v8119_v23 = vpop.permute.xlu2 %3246  ;;  %v8121_v61 = vpop.permute.xlu0 %3201  ;;  %v3627_v41 = vsel %vm1524_vm12, %v3625_v36, %v3626_v39  ;;  %v9423_v36 = vld [vmem:[#allocation75_spill] sm:$0xff] }
 0x5ca   :  { %9407 = vst [vmem:[#allocation176_spill] sm:$0xff] %v8119_v23  ;;  %v9414_v23 = vld [vmem:[#allocation129_spill] sm:$0xff]  ;;  %v2217_v56 = vadd.f32 %v9415_v40, %v2178_v28 }
 0x5cb   :  { %9408 = vst [vmem:[#allocation179_spill] sm:$0xff] %v8121_v61  ;;  %v3590_v61 = vsel %vm1524_vm12, %v3587_v54, %v3589_v21  ;;  %v2219_v5 = vadd.f32 %v9414_v23, %v2180_v26  ;;  %v2177_v23 = vadd.f32 %v9420_v51, %v2138_v32  ;;  %v9421_v21 = vld [vmem:[#allocation88_spill] sm:$0xff]  ;;  %v9427_v40 = vld [vmem:[#allocation137_spill] sm:$0xff] }
 0x5cc   :  { %v2256_v26 = vadd.f32 %v9422_v34, %v2217_v56  ;;  %v9428_v56 = vld [vmem:[#allocation81_spill] sm:$0xff]  ;;  %v9433_v34 = vld [vmem:[#allocation91_spill] sm:$0xff] }
 0x5cd   :  { %v2258_v11 = vadd.f32 %v9421_v21, %v2219_v5  ;;  %v3629_v5 = vsel %vm1524_vm12, %v3626_v39, %v3628_v12  ;;  %v9432_v21 = vld [vmem:[#allocation85_spill] sm:$0xff]  ;;  %v9434_v39 = vld [vmem:[#allocation98_spill] sm:$0xff] }
 0x5ce   :  { %v2295_v15 = vadd.f32 %v9426_v44, %v2256_v26  ;;  %v9437_v44 = vld [vmem:[#allocation145_spill] sm:$0xff] }
 0x5cf   :  { %3597 = vrot.lane.b32.xlu2 %v3590_v61, %s5503_s2  ;;  %3632 = vrot.lane.b32.xlu0 %v3624_v13, %s5503_s2  ;;  %v2257_v61 = vadd.f32 %v9423_v36, %v2218_v30  ;;  %v2297_v28 = vadd.f32 %v9424_v10, %v2258_v11  ;;  %v9425_v13 = vld [vmem:[#allocation126_spill] sm:$0xff]  ;;  %v3671_v36 = vstv %s5181_s14  ;;  %v9435_v10 = vld [vmem:[#allocation139_spill] sm:$0xff] }
 0x5d0   :  { %3634 = vrot.lane.b32.xlu1 %v3627_v41, %s5503_s2  ;;  %v8144_v54 = vpop.permute.xlu1 %3242  ;;  %v2216_v41 = vadd.f32 %v9425_v13, %v2177_v23  ;;  %v2334_v26 = vadd.f32 %v9433_v34, %v2295_v15 }
 0x5d1   :  { %v8140_v59 = vpop.permute.xlu2 %3320  ;;  %v8142_v27 = vpop.permute.xlu0 %3205  ;;  %9419 = vst [vmem:[#allocation37_spill] sm:$0xff] %v8144_v54  ;;  %v2296_v32 = vadd.f32 %v9427_v40, %v2257_v61  ;;  %v2336_v53 = vadd.f32 %v9428_v56, %v2297_v28  ;;  %v3696_v61 = vstv %s5139_s4  ;;  %v3672_v40 = vmul.f32 %v8091_v4, %v3671_v36  ;;  %v8175_v56 = vld [vmem:[#allocation2 + $0x20] sm:$0xff]  ;;  %s5224_s4 = sld [smem:[#allocation8 + $0x61]] }
 0x5d2   :  { %9417 = vst [vmem:[#allocation161_spill] sm:$0xff] %v8140_v59  ;;  %v2255_v11 = vadd.f32 %v9432_v21, %v2216_v41  ;;  %v2373_v28 = vadd.f32 %v9437_v44, %v2334_v26  ;;  %v3673_v41 = vmul.f32 %v8175_v56, %v3671_v36  ;;  %v9438_v21 = vld [vmem:[#allocation135_spill] sm:$0xff]  ;;  %v9440_v26 = vld [vmem:[#allocation104_spill] sm:$0xff] }
 0x5d3   :  { %9418 = vst [vmem:[#allocation156_spill] sm:$0xff] %v8142_v27  ;;  %v2335_v12 = vadd.f32 %v9434_v39, %v2296_v32  ;;  %v3698_v32 = vmul.f32 %v7707_v45, %v3696_v61  ;;  %v9446_v59 = vld [vmem:[#allocation140_spill] sm:$0xff]  ;;  %v8218_v27 = vstv %s5188_s6 }
 0x5d5   :  { %v2374_v15 = vadd.f32 %v9438_v21, %v2335_v12 }
 0x5d7   :  { %3657 = vrot.lane.b32.xlu2 %v3648_v7, %s5504_s5  ;;  %3655 = vrot.lane.b32.xlu0 %v3647_v55, %s5504_s5  ;;  %v2294_v7 = vadd.f32 %v9435_v10, %v2255_v11  ;;  %v9436_v55 = vld [vmem:[#allocation143_spill] sm:$0xff]  ;;  %v9439_v11 = vld [vmem:[#allocation78_spill] sm:$0xff]  ;;  %v9441_v10 = vld [vmem:[#allocation84_spill] sm:$0xff] }
 0x5d8   :  { %3636 = vrot.lane.b32.xlu1 %v3629_v5, %s5503_s2  ;;  %v8165_v23 = vpop.permute.xlu1 %3279  ;;  %v2375_v13 = vadd.f32 %v9436_v55, %v2336_v53  ;;  %v3649_v5 = vmul.f32 %v7779_v1, %v3646_v18  ;;  %v3697_v53 = vmul.f32 %v7727_v9, %v3696_v61  ;;  %v2412_v55 = vadd.f32 %v9441_v10, %v2373_v28  ;;  %v9449_v28 = vld [vmem:[#allocation148_spill] sm:$0xff]  ;;  %s8521_s2 = sld [smem:[#allocation8 + $0x28]] }
 0x5d9   :  { %v8161_v30 = vpop.permute.xlu2 %3357  ;;  %v8163_v51 = vpop.permute.xlu0 %3207  ;;  %9431 = vst [vmem:[#allocation32_spill] sm:$0xff] %v8165_v23  ;;  %v2333_v34 = vadd.f32 %v9439_v11, %v2294_v7  ;;  %v3710_v23 = vrot.slane %v3698_v32, 1  ;;  %v9447_v7 = vld [vmem:[#allocation141_spill] sm:$0xff]  ;;  %v3701_v32 = vmul.f32 %v7759_v50, %v3696_v61 }
 0x5da   :  { %9429 = vst [vmem:[#allocation53_spill] sm:$0xff] %v8161_v30  ;;  %v2414_v39 = vadd.f32 %v9440_v26, %v2375_v13  ;;  %v9448_v13 = vld [vmem:[#allocation146_spill] sm:$0xff] }
 0x5db   :  { %9430 = vst [vmem:[#allocation36_spill] sm:$0xff] %v8163_v51  ;;  %v2372_v54 = vadd.f32 %v9446_v59, %v2333_v34  ;;  %v2451_v26 = vadd.f32 %v9448_v13, %v2412_v55  ;;  %v3700_v59 = vmul.f32 %v7779_v1, %v3696_v61  ;;  %v9457_v13 = vld [vmem:[#allocation154_spill] sm:$0xff] }
 0x5dc   :  { %v2453_v11 = vadd.f32 %v9447_v7, %v2414_v39  ;;  %v9451_v39 = vld [vmem:[#allocation100_spill] sm:$0xff] }
 0x5de   :  { %v2492_v55 = vadd.f32 %v9451_v39, %v2453_v11  ;;  %v9460_v39 = vld [vmem:[#allocation149_spill] sm:$0xff] }
 0x5df   :  { %3680 = vrot.lane.b32.xlu2 %v3672_v40, %s5504_s5  ;;  %3659 = vrot.lane.b32.xlu0 %v3649_v5, %s5504_s5  ;;  %v9445_v40 = vld [vmem:[#allocation94_spill] sm:$0xff]  ;;  %v3709_v5 = vrot.slane %v3697_v53, 1  ;;  %v9450_v53 = vld [vmem:[#allocation101_spill] sm:$0xff] }
 0x5e0   :  { %3682 = vrot.lane.b32.xlu1 %v3673_v41, %s5504_s5  ;;  %v8191_v12 = vpop.permute.xlu1 %3283  ;;  %v2413_v21 = vadd.f32 %v9445_v40, %v2374_v15  ;;  %v3674_v41 = vmul.f32 %v8114_v42, %v3671_v36  ;;  %v3699_v15 = vmul.f32 %v7604_v20, %v3696_v61  ;;  %v2411_v34 = vadd.f32 %v9450_v53, %v2372_v54  ;;  %v9452_v40 = vld [vmem:[#allocation107_spill] sm:$0xff]  ;;  %v9458_v54 = vld [vmem:[#allocation138_spill] sm:$0xff]  ;;  %v9459_v53 = vld [vmem:[#allocation144_spill] sm:$0xff] }
 0x5e1   :  { %v8187_v44 = vpop.permute.xlu2 %3361  ;;  %v8189_v30 = vpop.permute.xlu0 %3281  ;;  %9444 = vst [vmem:[#allocation34_spill] sm:$0xff] %v8191_v12  ;;  %v3714_v12 = vrot.slane %v3700_v59, 1  ;;  %v9461_v59 = vld [vmem:[#allocation93_spill] sm:$0xff] }
 0x5e2   :  { %9442 = vst [vmem:[#allocation41_spill] sm:$0xff] %v8187_v44  ;;  %v2452_v10 = vadd.f32 %v9449_v28, %v2413_v21  ;;  %v3650_v44 = vmul.f32 %v7759_v50, %v3646_v18  ;;  %v2490_v18 = vadd.f32 %v9452_v40, %v2451_v26  ;;  %v9453_v21 = vld [vmem:[#allocation87_spill] sm:$0xff]  ;;  %v3712_v28 = vrot.slane %v3699_v15, 1  ;;  %v8223_v40 = vld [vmem:[#allocation2 + $0x50] sm:$0xff] }
 0x5e3   :  { %9443 = vst [vmem:[#allocation51_spill] sm:$0xff] %v8189_v30  ;;  %v3711_v30 = vsel %vm1209_vm7, %v3709_v5, %v3710_v23  ;;  %v2450_v11 = vadd.f32 %v9458_v54, %v2411_v34  ;;  %v3702_v15 = vmul.f32 %v7665_v48, %v3696_v61  ;;  %v9463_v61 = vld [vmem:[#allocation103_spill] sm:$0xff]  ;;  %v9464_v54 = vld [vmem:[#allocation110_spill] sm:$0xff] }
 0x5e4   :  { %v2491_v5 = vadd.f32 %v9453_v21, %v2452_v10  ;;  %v2529_v26 = vadd.f32 %v9459_v53, %v2490_v18  ;;  %v3675_v21 = vmul.f32 %v8223_v40, %v3671_v36  ;;  %v3713_v34 = vsel %vm1209_vm7, %v3710_v23, %v3712_v28 }
 0x5e5   :  { %v3736_v36 = vmul.f32 %v8091_v4, %v8218_v27 }
 0x5e6   :  { %v2530_v10 = vadd.f32 %v9460_v39, %v2491_v5  ;;  %v9462_v5 = vld [vmem:[#allocation97_spill] sm:$0xff]  ;;  %v3717_v39 = vrot.slane %v3702_v15, 1 }
 0x5e7   :  { %3684 = vrot.lane.b32.xlu2 %v3674_v41, %s5504_s5  ;;  %3661 = vrot.lane.b32.xlu0 %v3650_v44, %s5504_s5  ;;  %v2531_v44 = vadd.f32 %v9457_v13, %v2492_v55  ;;  %v2489_v48 = vadd.f32 %v9462_v5, %v2450_v11  ;;  %v2568_v13 = vadd.f32 %v9463_v61, %v2529_v26  ;;  %v3748_v11 = vrot.slane %v3736_v36, 1  ;;  %v9470_v26 = vld [vmem:[#allocation147_spill] sm:$0xff] }
 0x5e8   :  { %3719 = vrot.lane.b32.xlu1 %v3711_v30, %s5504_s5  ;;  %v8215_v20 = vpop.permute.xlu1 %3285  ;;  %v3715_v30 = vrot.slane %v3701_v32, 1  ;;  %v3738_v32 = vmul.f32 %v7849_v14, %v8218_v27  ;;  %v2569_v53 = vadd.f32 %v9464_v54, %v2530_v10  ;;  %v8251_v5 = vstv %s5146_s15 }
 0x5e9   :  { %v8211_v7 = vpop.permute.xlu2 %3363  ;;  %v8213_v41 = vpop.permute.xlu0 %3318  ;;  %9456 = vst [vmem:[#allocation113_spill] sm:$0xff] %v8215_v20  ;;  %v2570_v55 = vadd.f32 %v9461_v59, %v2531_v44  ;;  %v9467_v59 = vld [vmem:[#allocation151_spill] sm:$0xff]  ;;  %v9469_v20 = vld [vmem:[#allocation158_spill] sm:$0xff]  ;;  %v3776_v61 = vmul.f32 %v7707_v45, %v8251_v5  ;;  %v3740_v45 = vmul.f32 %v8223_v40, %v8218_v27 }
 0x5ea   :  { %9454 = vst [vmem:[#allocation45_spill] sm:$0xff] %v8211_v7  ;;  %v3716_v18 = vsel %vm1209_vm7, %v3714_v12, %v3715_v30  ;;  %v2607_v51 = vadd.f32 %v9469_v20, %v2568_v13  ;;  %v2608_v10 = vadd.f32 %v9470_v26, %v2569_v53  ;;  %v9473_v53 = vld [vmem:[#allocation38_spill] sm:$0xff]  ;;  %v9477_v26 = vld [vmem:[#allocation152_spill] sm:$0xff] }
 0x5eb   :  { %9455 = vst [vmem:[#allocation58_spill] sm:$0xff] %v8213_v41  ;;  %v3737_v41 = vmul.f32 %v8175_v56, %v8218_v27 }
 0x5ed   :  { %v3749_v28 = vrot.slane %v3737_v41, 1  ;;  %v3718_v41 = vsel %vm1209_vm7, %v3715_v30, %v3717_v39  ;;  %v3775_v30 = vmul.f32 %v7727_v9, %v8251_v5  ;;  %v3754_v9 = vrot.slane %v3740_v45, 1 }
 0x5ef   :  { %3686 = vrot.lane.b32.xlu2 %v3675_v21, %s5504_s5  ;;  %3721 = vrot.lane.b32.xlu0 %v3713_v34, %s5504_s5  ;;  %v3751_v21 = vrot.slane %v3738_v32, 1  ;;  %v2528_v34 = vadd.f32 %v9467_v59, %v2489_v48  ;;  %v3750_v54 = vsel %vm1209_vm7, %v3748_v11, %v3749_v28  ;;  %v8259_v32 = vld [vmem:[#allocation2 + $0x10] sm:$0x3f]  ;;  %v9472_v48 = vld [vmem:[#allocation47_spill] sm:$0xff]  ;;  %v2632_v59 = vadd.f32 %v9473_v53, %v2607_v51 }
 0x5f0   :  { %3723 = vrot.lane.b32.xlu1 %v3716_v18, %s5504_s5  ;;  %v8246_v12 = vpop.permute.xlu1 %3359  ;;  %v9468_v18 = vld [vmem:[#allocation155_spill] sm:$0xff]  ;;  %v3777_v20 = vmul.f32 %v8259_v32, %v8251_v5  ;;  %v3787_v53 = vrot.slane %v3775_v30, 2  ;;  %v9482_v30 = vld [vmem:[#allocation150_spill] sm:$0xff] }
 0x5f1   :  { %v8242_v44 = vpop.permute.xlu2 %3437  ;;  %v8244_v23 = vpop.permute.xlu0 %3322  ;;  %9466 = vst [vmem:[#allocation112_spill] sm:$0xff] %v8246_v12  ;;  %v2609_v7 = vadd.f32 %v9468_v18, %v2570_v55  ;;  %v3752_v15 = vsel %vm1209_vm7, %v3749_v28, %v3751_v21  ;;  %v9471_v55 = vld [vmem:[#allocation90_spill] sm:$0xff]  ;;  %v9474_v28 = vld [vmem:[#allocation43_spill] sm:$0xff]  ;;  %v3788_v18 = vrot.slane %v3776_v61, 2  ;;  %v8288_v12 = vstv %s5195_s16 }
 0x5f2   :  { %9465 = vst [vmem:[#allocation65_spill] sm:$0xff] %v8242_v44  ;;  %v2567_v36 = vadd.f32 %v9471_v55, %v2528_v34  ;;  %v2633_v39 = vadd.f32 %v9474_v28, %v2608_v10  ;;  %v3790_v11 = vrot.slane %v3777_v20, 2  ;;  %v9479_v55 = vld [vmem:[#allocation55_spill] sm:$0xff]  ;;  %v3778_v10 = vmul.f32 %v7779_v1, %v8251_v5  ;;  %v9481_v1 = vld [vmem:[#allocation42_spill] sm:$0xff] }
 0x5f3   :  { %v2634_v13 = vadd.f32 %v9472_v48, %v2609_v7  ;;  %v3739_v7 = vmul.f32 %v8114_v42, %v8218_v27  ;;  %v2657_v48 = vadd.f32 %v9479_v55, %v2632_v59  ;;  %v9480_v28 = vld [vmem:[#allocation59_spill] sm:$0xff]  ;;  %v8292_v61 = vmul.f32 %v7759_v50, %v8251_v5 }
 0x5f4   :  { %v3791_v20 = vsel %vm1272_vm8, %v3788_v18, %v3790_v11  ;;  %v8300_v59 = vmul.f32 %v8175_v56, %v8288_v12 }
 0x5f5   :  { %v3753_v44 = vrot.slane %v3739_v7, 1  ;;  %v9483_v7 = vld [vmem:[#allocation106_spill] sm:$0xff] }
 0x5f7   :  { %3760 = vrot.lane.b32.xlu2 %v3752_v15, %s5504_s5  ;;  %3758 = vrot.lane.b32.xlu0 %v3750_v54, %s5504_s5  ;;  %v2606_v54 = vadd.f32 %v9477_v26, %v2567_v36  ;;  %v9478_v15 = vld [vmem:[#allocation62_spill] sm:$0xff]  ;;  %v3789_v36 = vsel %vm1272_vm8, %v3787_v53, %v3788_v18  ;;  %v2696_v26 = vadd.f32 %v9483_v7, %v2657_v48  ;;  %v9484_v18 = vld [vmem:[#allocation99_spill] sm:$0xff]  ;;  %v9490_v7 = vld [vmem:[#allocation164_spill] sm:$0xff] }
 0x5f8   :  { %3725 = vrot.lane.b32.xlu1 %v3718_v41, %s5504_s5  ;;  %v8280_v34 = vpop.permute.xlu1 %3396  ;;  %v2659_v41 = vadd.f32 %v9478_v15, %v2634_v13  ;;  %v3741_v13 = vmul.f32 %v7977_v29, %v8218_v27  ;;  %v3755_v50 = vsel %vm1209_vm7, %v3753_v44, %v3754_v9  ;;  %v3814_v27 = vmul.f32 %v8091_v4, %v8288_v12  ;;  %v9485_v15 = vld [vmem:[#allocation174_spill] sm:$0xff] }
 0x5f9   :  { %v8274_v21 = vpop.permute.xlu2 %3474  ;;  %v8278_v51 = vpop.permute.xlu0 %3324  ;;  %9476 = vst [vmem:[#allocation102_spill] sm:$0xff] %v8280_v34  ;;  %v2631_v45 = vadd.f32 %v9481_v1, %v2606_v54 }
 0x5fa   :  { %9475 = vst [vmem:[#allocation49_spill] sm:$0xff] %v8274_v21  ;;  %v2658_v21 = vadd.f32 %v9480_v28, %v2633_v39  ;;  %v2698_v39 = vadd.f32 %v9482_v30, %v2659_v41  ;;  %v3793_v41 = vrot.slane %v8292_v61, 2  ;;  %v3756_v53 = vrot.slane %v3741_v13, 1  ;;  %v9489_v30 = vld [vmem:[#allocation163_spill] sm:$0xff]  ;;  %v9492_v61 = vld [vmem:[#allocation177_spill] sm:$0xff] }
 0x5fb   :  { %v3827_v28 = vrot.slane %v8300_v59, 2  ;;  %v8334_v59 = vmul.f32 %v8223_v40, %v8288_v12 }
 0x5fc   :  { %v2697_v11 = vadd.f32 %v9484_v18, %v2658_v21  ;;  %v2737_v55 = vadd.f32 %v9485_v15, %v2698_v39  ;;  %v2735_v21 = vadd.f32 %v9489_v30, %v2696_v26  ;;  %v3826_v15 = vrot.slane %v3814_v27, 2  ;;  %v9495_v30 = vld [vmem:[#allocation172_spill] sm:$0xff] }
 0x5fe   :  { %v2736_v39 = vadd.f32 %v9490_v7, %v2697_v11  ;;  %v3828_v13 = vsel %vm1272_vm8, %v3826_v15, %v3827_v28  ;;  %v9493_v11 = vld [vmem:[#allocation96_spill] sm:$0xff]  ;;  %v3757_v7 = vsel %vm1209_vm7, %v3754_v9, %v3756_v53  ;;  %v9497_v15 = vld [vmem:[#allocation162_spill] sm:$0xff] }
 0x5ff   :  { %3797 = vrot.lane.b32.xlu2 %v3789_v36, %s5504_s5  ;;  %3762 = vrot.lane.b32.xlu0 %v3755_v50, %s5504_s5  ;;  %v3792_v36 = vrot.slane %v3778_v10, 2  ;;  %v9491_v50 = vld [vmem:[#allocation182_spill] sm:$0xff]  ;;  %v3816_v10 = vmul.f32 %v7849_v14, %v8288_v12 }
 0x600   :  { %3799 = vrot.lane.b32.xlu1 %v3791_v20, %s5504_s5  ;;  %v8318_v44 = vpop.permute.xlu1 %3400  ;;  %v9488_v20 = vld [vmem:[#allocation46_spill] sm:$0xff]  ;;  %v2776_v18 = vadd.f32 %v9491_v50, %v2737_v55  ;;  %v9494_v55 = vld [vmem:[#allocation153_spill] sm:$0xff]  ;;  %v9496_v50 = vld [vmem:[#allocation159_spill] sm:$0xff] }
 0x601   :  { %v8313_v54 = vpop.permute.xlu2 %3478  ;;  %v8316_v48 = vpop.permute.xlu0 %3398  ;;  %9487 = vst [vmem:[#allocation48_spill] sm:$0xff] %v8318_v44  ;;  %v2656_v1 = vadd.f32 %v9488_v20, %v2631_v45  ;;  %v3794_v34 = vsel %vm1272_vm8, %v3792_v36, %v3793_v41  ;;  %v8336_v45 = vld [vmem:[#allocation2 + $0x40] sm:$0x3f]  ;;  %v2774_v20 = vadd.f32 %v9494_v55, %v2735_v21  ;;  %v3829_v53 = vrot.slane %v3816_v10, 2 }
 0x602   :  { %9486 = vst [vmem:[#allocation71_spill] sm:$0xff] %v8313_v54  ;;  %v2775_v54 = vadd.f32 %v9492_v61, %v2736_v39  ;;  %v3780_v26 = vmul.f32 %v8336_v45, %v8251_v5  ;;  %v2815_v36 = vadd.f32 %v9495_v30, %v2776_v18  ;;  %v3817_v39 = vmul.f32 %v8114_v42, %v8288_v12  ;;  %v9498_v61 = vld [vmem:[#allocation178_spill] sm:$0xff] }
 0x603   :  { %v2695_v27 = vadd.f32 %v9493_v11, %v2656_v1  ;;  %v2813_v21 = vadd.f32 %v9498_v61, %v2774_v20  ;;  %v8361_v30 = vstv %s8321_s17  ;;  %v8367_v61 = vld [vmem:[#allocation2 + $0x8] sm:$0xff] }
 0x604   :  { %v2814_v1 = vadd.f32 %v9497_v15, %v2775_v54  ;;  %v2854_v18 = vadd.f32 %v7639_v19, %v2815_v36  ;;  %v3795_v55 = vrot.slane %v3780_v26, 2  ;;  %v9503_v15 = vld [vmem:[#allocation186_spill] sm:$0xff]  ;;  %v3831_v36 = vrot.slane %v3817_v39, 2 }
 0x605   :  { %v2734_v5 = vadd.f32 %v9496_v50, %v2695_v27  ;;  %v9502_v50 = vld [vmem:[#allocation185_spill] sm:$0xff]  ;;  %v3855_v39 = vmul.f32 %v8259_v32, %v8361_v30 }
 0x606   :  { %v2852_v54 = vadd.f32 %v9502_v50, %v2813_v21  ;;  %v2853_v20 = vadd.f32 %v9503_v15, %v2814_v1  ;;  %v2893_v19 = vadd.f32 %v7742_v63, %v2854_v18  ;;  %v3796_v1 = vsel %vm1272_vm8, %v3793_v41, %v3795_v55  ;;  %v9504_v21 = vld [vmem:[#allocation157_spill] sm:$0xff]  ;;  %v9506_v50 = vld [vmem:[#allocation187_spill] sm:$0xff] }
 0x607   :  { %3801 = vrot.lane.b32.xlu2 %v3794_v34, %s5504_s5  ;;  %3764 = vrot.lane.b32.xlu0 %v3757_v7, %s5504_s5  ;;  %v9501_v7 = vld [vmem:[#allocation173_spill] sm:$0xff]  ;;  %v3819_v63 = vmul.f32 %v7977_v29, %v8288_v12  ;;  %v9507_v55 = vld [vmem:[#allocation183_spill] sm:$0xff] }
 0x608   :  { %3836 = vrot.lane.b32.xlu1 %v3828_v13, %s5504_s5  ;;  %v3832_v13 = vrot.slane %v8334_v59, 2  ;;  %v2773_v27 = vadd.f32 %v9501_v7, %v2734_v5  ;;  %v2892_v10 = vadd.f32 %v7688_v16, %v2853_v20  ;;  %v8372_v59 = vld [vmem:[#allocation2] sm:$0xff]  ;;  %v2932_v15 = vadd.f32 %v9506_v50, %v2893_v19 }
 0x609   :  { %v8353_v11 = vpop.permute.xlu2 %3480  ;;  %v8355_v9 = vpop.permute.xlu0 %3435  ;;  %v3853_v26 = vmul.f32 %v8372_v59, %v8361_v30  ;;  %v9505_v7 = vld [vmem:[#allocation175_spill] sm:$0xff]  ;;  %v3830_v20 = vsel %vm1272_vm8, %v3827_v28, %v3829_v53 }
 0x60a   :  { %9499 = vst [vmem:[#allocation54_spill] sm:$0xff] %v8353_v11  ;;  %v8357_v34 = vpop.permute.xlu1 %3402  ;;  %v3833_v5 = vsel %vm1272_vm8, %v3831_v36, %v3832_v13  ;;  %v2812_v18 = vadd.f32 %v9504_v21, %v2773_v27  ;;  %v2891_v16 = vadd.f32 %v9505_v7, %v2852_v54  ;;  %v9508_v36 = vld [vmem:[#allocation184_spill] sm:$0xff]  ;;  %v2971_v27 = vadd.f32 %v7840_v35, %v2932_v15  ;;  %v8427_v15 = vld [vmem:[#allocation2 + $0x30] sm:$0xff] }
 0x60b   :  { %9500 = vst [vmem:[#allocation61_spill] sm:$0xff] %v8355_v9  ;;  %v3854_v9 = vmul.f32 %v8367_v61, %v8361_v30  ;;  %v2931_v11 = vadd.f32 %v9508_v36, %v2892_v10  ;;  %v3865_v53 = vrot.slane %v3853_v26, 3  ;;  %v3868_v21 = vrot.slane %v3855_v39, 3  ;;  %v9509_v7 = vld [vmem:[#allocation188_spill] sm:$0xff] }
 0x60c   :  { %v2851_v12 = vadd.f32 %v9507_v55, %v2812_v18  ;;  %v2930_v44 = vadd.f32 %v7690_v22, %v2891_v16  ;;  %v3010_v10 = vadd.f32 %v7924_v0, %v2971_v27  ;;  %v8407_v16 = vstv %s5202_s18  ;;  %v9510_v0 = vld [vmem:[#allocation181_spill] sm:$0xff]  ;;  %s4760_s18 = sld [smem:[#allocation9]] }
 0x60d   :  { %v3866_v41 = vrot.slane %v3854_v9, 3  ;;  %v2970_v18 = vadd.f32 %v7795_v52, %v2931_v11  ;;  %v3894_v52 = vmul.f32 %v7849_v14, %v8407_v16  ;;  %v3892_v14 = vmul.f32 %v8091_v4, %v8407_v16 }
 0x60e   :  { %v2969_v9 = vadd.f32 %v7793_v57, %v2930_v44  ;;  %v3893_v57 = vmul.f32 %v8175_v56, %v8407_v16  ;;  %v3049_v11 = vadd.f32 %v7829_v62, %v3010_v10 }
 0x60f   :  { %3803 = vrot.lane.b32.xlu2 %v3796_v1, %s5504_s5  ;;  %3838 = vrot.lane.b32.xlu0 %v3830_v20, %s5504_s5  ;;  %v3834_v1 = vrot.slane %v3819_v63, 2  ;;  %v3009_v22 = vadd.f32 %v7884_v8, %v2970_v18  ;;  %v3867_v35 = vsel %vm1335_vm9, %v3865_v53, %v3866_v41  ;;  %v3869_v26 = vsel %vm1335_vm9, %v3866_v41, %v3868_v21  ;;  %v8410_v63 = vld [vmem:[#allocation2 + $0x38] sm:$0xff] }
 0x610   :  { %3840 = vrot.lane.b32.xlu1 %v3833_v5, %s5504_s5  ;;  %v2890_v5 = vadd.f32 %v9509_v7, %v2851_v12  ;;  %v8414_v39 = vmul.f32 %v8410_v63, %v8361_v30  ;;  %v3008_v44 = vadd.f32 %v7680_v58, %v2969_v9  ;;  %v3856_v20 = vmul.f32 %v8427_v15, %v8361_v30 }
 0x611   :  { %v8393_v54 = vpop.permute.xlu2 %3554  ;;  %v8395_v19 = vpop.permute.xlu0 %3439  ;;  %v3835_v50 = vsel %vm1272_vm8, %v3832_v13, %v3834_v1  ;;  %v3048_v62 = vadd.f32 %v7785_v38, %v3009_v22  ;;  %v3088_v41 = vadd.f32 %v7999_v33, %v3049_v11  ;;  %v3905_v53 = vrot.slane %v3893_v57, 3 }
 0x612   :  { %v8397_v28 = vpop.permute.xlu1 %3476  ;;  %v2929_v8 = vadd.f32 %v9510_v0, %v2890_v5  ;;  %v3047_v13 = vadd.f32 %v7886_v24, %v3008_v44  ;;  %v3871_v27 = vrot.slane %v8414_v39, 3  ;;  %v3907_v1 = vrot.slane %v3894_v52, 3  ;;  %v9511_v39 = vld [vmem:[#allocation169_spill] sm:$0xff] }
 0x613   :  { %v3087_v38 = vadd.f32 %v7966_v49, %v3048_v62  ;;  %v3127_v24 = vadd.f32 %v8063_v6, %v3088_v41  ;;  %v3870_v7 = vrot.slane %v3856_v20, 3  ;;  %v3904_v33 = vrot.slane %v3892_v14, 3  ;;  %v9512_v20 = vld [vmem:[#allocation170_spill] sm:$0xff]  ;;  %v9514_v62 = vld [vmem:[#allocation160_spill] sm:$0xff] }
 0x614   :  { %v2968_v58 = vadd.f32 %v7744_v25, %v2929_v8  ;;  %v3086_v25 = vadd.f32 %v7964_v37, %v3047_v13  ;;  %v8449_v5 = vstv %s8403_s19  ;;  %v3858_v37 = vmul.f32 %v8336_v45, %v8361_v30  ;;  %v9515_v13 = vld [vmem:[#allocation36_spill] sm:$0xff]  ;;  %s5225_s19 = sld [smem:[#allocation9 + $0x1]] }
 0x615   :  { %v3126_v9 = vadd.f32 %v8029_v43, %v3087_v38  ;;  %v8454_v18 = vmul.f32 %v8367_v61, %v8449_v5  ;;  %v3872_v10 = vsel %vm1335_vm9, %v3870_v7, %v3871_v27  ;;  %v3896_v49 = vmul.f32 %v8223_v40, %v8407_v16 }
 0x616   :  { %v3007_v21 = vadd.f32 %v7838_v31, %v2968_v58  ;;  %v3906_v31 = vsel %vm1335_vm9, %v3904_v33, %v3905_v53  ;;  %v3125_v22 = vadd.f32 %v7878_v17, %v3086_v25  ;;  %v3152_v43 = vadd.f32 %v7995_v60, %v3127_v24  ;;  %v9513_v58 = vld [vmem:[#allocation165_spill] sm:$0xff] }
 0x617   :  { %3877 = vrot.lane.b32.xlu2 %v3869_v26, %s5504_s5  ;;  %3875 = vrot.lane.b32.xlu0 %v3867_v35, %s5504_s5  ;;  %v3908_v35 = vsel %vm1335_vm9, %v3905_v53, %v3907_v1  ;;  %v3931_v30 = vmul.f32 %v8372_v59, %v8449_v5  ;;  %v3895_v26 = vmul.f32 %v8114_v42, %v8407_v16  ;;  %v3873_v44 = vrot.slane %v3858_v37, 3 }
 0x618   :  { %3842 = vrot.lane.b32.xlu1 %v3835_v50, %s5504_s5  ;;  %v3046_v6 = vadd.f32 %v7733_v47, %v3007_v21  ;;  %v3150_v17 = vadd.f32 %v8031_v3, %v3125_v22  ;;  %v3151_v60 = vadd.f32 %v9511_v39, %v3126_v9  ;;  %v3177_v57 = vadd.f32 %v8123_v46, %v3152_v43  ;;  %v9516_v21 = vld [vmem:[#allocation156_spill] sm:$0xff] }
 0x619   :  { %v8437_v55 = vpop.permute.xlu2 %3591  ;;  %v8439_v12 = vpop.permute.xlu0 %3441  ;;  %v3944_v11 = vrot.slane %v8454_v18, 4  ;;  %v3910_v50 = vrot.slane %v3896_v49, 3  ;;  %v3943_v53 = vrot.slane %v3931_v30, 4  ;;  %v3909_v46 = vrot.slane %v3895_v26, 3  ;;  %v9517_v18 = vld [vmem:[#allocation166_spill] sm:$0xff]  ;;  %v9519_v49 = vld [vmem:[#allocation176_spill] sm:$0xff] }
 0x61a   :  { %v8441_v36 = vpop.permute.xlu1 %3513  ;;  %v3085_v47 = vadd.f32 %v7926_v2, %v3046_v6  ;;  %v3175_v2 = vadd.f32 %v9513_v58, %v3150_v17  ;;  %v3176_v3 = vadd.f32 %v9514_v62, %v3151_v60  ;;  %v3216_v41 = vadd.f32 %v9515_v13, %v3177_v57  ;;  %v9521_v26 = vld [vmem:[#allocation37_spill] sm:$0xff]  ;;  %v9524_v58 = vld [vmem:[#allocation179_spill] sm:$0xff]  ;;  %v9526_v13 = vld [vmem:[#allocation34_spill] sm:$0xff] }
 0x61b   :  { %v8490_v1 = vmul.f32 %v8410_v63, %v8449_v5  ;;  %v3934_v38 = vmul.f32 %v8427_v15, %v8449_v5  ;;  %v3945_v24 = vsel %vm1398_vm10, %v3943_v53, %v3944_v11  ;;  %v3911_v7 = vsel %vm1335_vm9, %v3909_v46, %v3910_v50  ;;  %v9523_v17 = vld [vmem:[#allocation113_spill] sm:$0xff]  ;;  %v9525_v62 = vld [vmem:[#allocation51_spill] sm:$0xff] }
 0x61c   :  { %v3124_v14 = vadd.f32 %v9512_v20, %v3085_v47  ;;  %v3215_v25 = vadd.f32 %v9516_v21, %v3176_v3  ;;  %v3933_v33 = vmul.f32 %v8259_v32, %v8449_v5  ;;  %v3897_v9 = vmul.f32 %v7977_v29, %v8407_v16  ;;  %v9522_v16 = vld [vmem:[#allocation180_spill] sm:$0xff] }
 0x61d   :  { %v3255_v6 = vadd.f32 %v9519_v49, %v3216_v41  ;;  %v3874_v22 = vsel %vm1335_vm9, %v3871_v27, %v3873_v44  ;;  %v3949_v43 = vrot.slane %v8490_v1, 4  ;;  %v3948_v20 = vrot.slane %v3934_v38, 4 }
 0x61e   :  { %v3254_v47 = vadd.f32 %v9522_v16, %v3215_v25  ;;  %v3946_v44 = vrot.slane %v3933_v33, 4  ;;  %v8525_v21 = vstv %s5209_s1  ;;  %v9527_v33 = vld [vmem:[#allocation171_spill] sm:$0xff] }
 0x61f   :  { %3914 = vrot.lane.b32.xlu2 %v3906_v31, %s5504_s5  ;;  %3879 = vrot.lane.b32.xlu0 %v3872_v10, %s5504_s5  ;;  %v3149_v10 = vadd.f32 %v9517_v18, %v3124_v14  ;;  %v9518_v31 = vld [vmem:[#allocation167_spill] sm:$0xff]  ;;  %v3294_v39 = vadd.f32 %v9523_v17, %v3255_v6  ;;  %v3912_v14 = vrot.slane %v3897_v9, 3  ;;  %v3950_v1 = vsel %vm1398_vm10, %v3948_v20, %v3949_v43  ;;  %v9531_v6 = vld [vmem:[#allocation112_spill] sm:$0xff] }
 0x620   :  { %3916 = vrot.lane.b32.xlu1 %v3908_v35, %s5504_s5  ;;  %v3214_v37 = vadd.f32 %v9518_v31, %v3175_v2  ;;  %v9520_v35 = vld [vmem:[#allocation168_spill] sm:$0xff]  ;;  %v3293_v41 = vadd.f32 %v9526_v13, %v3254_v47  ;;  %v3971_v38 = vmul.f32 %v8175_v56, %v8525_v21 }
 0x621   :  { %v8477_v52 = vpop.permute.xlu2 %3595  ;;  %v8479_v0 = vpop.permute.xlu0 %3515  ;;  %v3174_v30 = vadd.f32 %v9520_v35, %v3149_v10  ;;  %v3333_v53 = vadd.f32 %v8278_v51, %v3294_v39  ;;  %v3913_v25 = vsel %vm1335_vm9, %v3910_v50, %v3912_v14  ;;  %v9529_v10 = vld [vmem:[#allocation45_spill] sm:$0xff]  ;;  %v9530_v50 = vld [vmem:[#allocation32_spill] sm:$0xff] }
 0x622   :  { %v8481_v8 = vpop.permute.xlu1 %3517  ;;  %v3253_v29 = vadd.f32 %v9521_v26, %v3214_v37  ;;  %v3332_v46 = vadd.f32 %v8244_v23, %v3293_v41  ;;  %v9528_v23 = vld [vmem:[#allocation161_spill] sm:$0xff]  ;;  %v3947_v37 = vsel %vm1398_vm10, %v3944_v11, %v3946_v44  ;;  %v3983_v47 = vrot.slane %v3971_v38, 4  ;;  %v9533_v44 = vld [vmem:[#allocation58_spill] sm:$0xff] }
 0x623   :  { %v3213_v2 = vadd.f32 %v9524_v58, %v3174_v30  ;;  %v3372_v31 = vadd.f32 %v9529_v10, %v3333_v53  ;;  %v9532_v35 = vld [vmem:[#allocation41_spill] sm:$0xff]  ;;  %v9534_v58 = vld [vmem:[#allocation48_spill] sm:$0xff] }
 0x624   :  { %v3292_v3 = vadd.f32 %v9525_v62, %v3253_v29  ;;  %v3371_v30 = vadd.f32 %v9532_v35, %v3332_v46 }
 0x625   :  { %v3252_v9 = vadd.f32 %v9527_v33, %v3213_v2  ;;  %v3411_v26 = vadd.f32 %v8357_v34, %v3372_v31  ;;  %v9539_v31 = vld [vmem:[#allocation71_spill] sm:$0xff] }
 0x626   :  { %v3331_v18 = vadd.f32 %v9528_v23, %v3292_v3  ;;  %v3410_v2 = vadd.f32 %v9534_v58, %v3371_v30  ;;  %v8556_v3 = vstv %s8521_s2  ;;  %v9538_v23 = vld [vmem:[#allocation102_spill] sm:$0xff]  ;;  %v4047_v58 = vstv %s8561_s20  ;;  %s5507_s2 = smov 32   ;;  %s5508_s20 = smov 48  }
 0x627   :  { %3918 = vrot.lane.b32.xlu2 %v3911_v7, %s5504_s5  ;;  %3881 = vrot.lane.b32.xlu0 %v3874_v22, %s5504_s5  ;;  %v8532_v7 = vld [vmem:[#allocation2 + $0x28] sm:$0x3f]  ;;  %v3291_v49 = vadd.f32 %v9530_v50, %v3252_v9  ;;  %v3450_v62 = vadd.f32 %v8439_v12, %v3411_v26  ;;  %v4010_v41 = vmul.f32 %v8367_v61, %v8556_v3 }
 0x628   :  { %3953 = vrot.lane.b32.xlu1 %v3945_v24, %s5504_s5  ;;  %v3936_v24 = vmul.f32 %v8336_v45, %v8449_v5  ;;  %v3972_v51 = vmul.f32 %v8532_v7, %v8525_v21  ;;  %v3970_v5 = vmul.f32 %v8091_v4, %v8525_v21  ;;  %v3370_v22 = vadd.f32 %v9531_v6, %v3331_v18  ;;  %v9540_v26 = vld [vmem:[#allocation61_spill] sm:$0xff] }
 0x629   :  { %v8513_v60 = vpop.permute.xlu2 %3597  ;;  %v8515_v57 = vpop.permute.xlu0 %3552  ;;  %v3330_v20 = vadd.f32 %v9533_v44, %v3291_v49  ;;  %v3449_v13 = vadd.f32 %v8395_v19, %v3410_v2  ;;  %v4011_v12 = vmul.f32 %v8259_v32, %v8556_v3  ;;  %v9536_v19 = vld [vmem:[#allocation65_spill] sm:$0xff]  ;;  %v4009_v9 = vmul.f32 %v8372_v59, %v8556_v3 }
 0x62a   :  { %v3520_v27 = vpop.permute.xlu1 %3519  ;;  %v3951_v17 = vrot.slane %v3936_v24, 4  ;;  %v3985_v39 = vrot.slane %v3972_v51, 4  ;;  %v3409_v14 = vadd.f32 %v8316_v48, %v3370_v22  ;;  %v3982_v34 = vrot.slane %v3970_v5, 4  ;;  %v9537_v24 = vld [vmem:[#allocation54_spill] sm:$0xff] }
 0x62b   :  { %v8567_v48 = vmul.f32 %v8223_v40, %v8525_v21  ;;  %v3489_v51 = vadd.f32 %v9537_v24, %v3450_v62  ;;  %v4022_v35 = vrot.slane %v4010_v41, 5  ;;  %v4024_v30 = vrot.slane %v4011_v12, 5 }
 0x62c   :  { %v3952_v53 = vsel %vm1398_vm10, %v3949_v43, %v3951_v17  ;;  %v3986_v46 = vsel %vm1398_vm10, %v3983_v47, %v3985_v39  ;;  %v3448_v38 = vadd.f32 %v9536_v19, %v3409_v14  ;;  %v3984_v33 = vsel %vm1398_vm10, %v3982_v34, %v3983_v47  ;;  %v9541_v34 = vld [vmem:[#allocation49_spill] sm:$0xff] }
 0x62d   :  { %v3973_v43 = vmul.f32 %v8114_v42, %v8525_v21  ;;  %v3528_v5 = vadd.f32 %v3520_v27, %v3489_v51  ;;  %v3988_v22 = vrot.slane %v8567_v48, 4  ;;  %v4025_v27 = vsel %vm1461_vm11, %v4022_v35, %v4024_v30 }
 0x62e   :  { %v3487_v10 = vadd.f32 %v8397_v28, %v3448_v38  ;;  %v4021_v28 = vrot.slane %v4009_v9, 5  ;;  %v4049_v62 = vmul.f32 %v8175_v56, %v4047_v58  ;;  %v4012_v48 = vmul.f32 %v8427_v15, %v8556_v3 }
 0x62f   :  { %3920 = vrot.lane.b32.xlu2 %v3913_v25, %s5504_s5  ;;  %3955 = vrot.lane.b32.xlu0 %v3947_v37, %s5504_s5  ;;  %v3488_v37 = vadd.f32 %v9539_v31, %v3449_v13  ;;  %v3987_v14 = vrot.slane %v3973_v43, 4  ;;  %v4013_v13 = vmul.f32 %v8410_v63, %v8556_v3  ;;  %v4052_v31 = vmul.f32 %v8223_v40, %v4047_v58 }
 0x630   :  { %3957 = vrot.lane.b32.xlu1 %v3950_v1, %s5504_s5  ;;  %v9535_v1 = vld [vmem:[#allocation53_spill] sm:$0xff]  ;;  %v3526_v17 = vadd.f32 %v8479_v0, %v3487_v10  ;;  %v4023_v2 = vsel %vm1461_vm11, %v4021_v28, %v4022_v35  ;;  %v4061_v24 = vrot.slane %v4049_v62, 5  ;;  %v4086_v28 = vstv %s5174_s23  ;;  %s5509_s23 = smov 64  }
 0x631   :  { %v8549_v29 = vpop.permute.xlu2 %3657  ;;  %v3557_v11 = vpop.permute.xlu0 %3556  ;;  %v3369_v25 = vadd.f32 %v9535_v1, %v3330_v20  ;;  %v3527_v39 = vadd.f32 %v8481_v8, %v3488_v37  ;;  %v3989_v8 = vsel %vm1398_vm10, %v3987_v14, %v3988_v22  ;;  %v4089_v14 = vmul.f32 %v8259_v32, %v4086_v28 }
 0x632   :  { %v3594_v16 = vpop.permute.xlu1 %3593  ;;  %v3565_v0 = vadd.f32 %v8393_v54, %v3526_v17  ;;  %v4066_v17 = vrot.slane %v4052_v31, 5  ;;  %v4087_v62 = vmul.f32 %v8372_v59, %v4086_v28 }
 0x633   :  { %v3408_v18 = vadd.f32 %v9538_v23, %v3369_v25  ;;  %v3566_v20 = vadd.f32 %v3557_v11, %v3527_v39  ;;  %v8601_v11 = vld [vmem:[#allocation2 + $0x58] sm:$0x3f]  ;;  %v4026_v23 = vrot.slane %v4012_v48, 5 }
 0x634   :  { %v3604_v12 = vadd.f32 %v3594_v16, %v3565_v0  ;;  %v4099_v48 = vrot.slane %v4087_v62, 6 }
 0x635   :  { %v3447_v47 = vadd.f32 %v9540_v26, %v3408_v18  ;;  %v3605_v1 = vadd.f32 %v8477_v52, %v3566_v20  ;;  %v4014_v52 = vmul.f32 %v8336_v45, %v8556_v3  ;;  %v4051_v3 = vmul.f32 %v8114_v42, %v4047_v58 }
 0x636   :  { %v4088_v42 = vmul.f32 %v8367_v61, %v4086_v28 }
 0x637   :  { %3994 = vrot.lane.b32.xlu2 %v3986_v46, %s5504_s5  ;;  %3992 = vrot.lane.b32.xlu0 %v3984_v33, %s5504_s5  ;;  %v3486_v41 = vadd.f32 %v9541_v34, %v3447_v47  ;;  %v4048_v46 = vmul.f32 %v8091_v4, %v4047_v58  ;;  %v4029_v30 = vrot.slane %v4014_v52, 5  ;;  %v4065_v39 = vrot.slane %v4051_v3, 5 }
 0x638   :  { %3959 = vrot.lane.b32.xlu1 %v3952_v53, %s5504_s5  ;;  %v3975_v53 = vmul.f32 %v8601_v11, %v8525_v21  ;;  %v4027_v21 = vrot.slane %v4013_v13, 5 }
 0x639   :  { %v8585_v50 = vpop.permute.xlu2 %3680  ;;  %v3559_v49 = vpop.permute.xlu0 %3558  ;;  %v3525_v54 = vadd.f32 %v8441_v36, %v3486_v41  ;;  %v4060_v4 = vrot.slane %v4048_v46, 5  ;;  %v4102_v41 = vrot.slane %v4089_v14, 6 }
 0x63a   :  { %v3631_v6 = vpop.permute.xlu1 %3630  ;;  %v3567_v44 = vadd.f32 %v3559_v49, %v3528_v5  ;;  %v3990_v9 = vrot.slane %v3975_v53, 4  ;;  %v4028_v36 = vsel %vm1461_vm11, %v4026_v23, %v4027_v21  ;;  %v4030_v20 = vsel %vm1461_vm11, %v4027_v21, %v4029_v30 }
 0x63b   :  { %v3564_v51 = vadd.f32 %v8515_v57, %v3525_v54  ;;  %v4062_v18 = vsel %vm1461_vm11, %v4060_v4, %v4061_v24  ;;  %v4050_v57 = vmul.f32 %v8532_v7, %v4047_v58  ;;  %v4100_v53 = vrot.slane %v4088_v42, 6 }
 0x63c   :  { %v3991_v10 = vsel %vm1398_vm10, %v3988_v22, %v3990_v9  ;;  %v3606_v5 = vadd.f32 %v8513_v60, %v3567_v44  ;;  %v4067_v60 = vsel %vm1461_vm11, %v4065_v39, %v4066_v17  ;;  %v4053_v44 = vmul.f32 %v8601_v11, %v4047_v58 }
 0x63d   :  { %v3603_v16 = vadd.f32 %v8437_v55, %v3564_v51  ;;  %v4063_v47 = vrot.slane %v4050_v57, 5  ;;  %v4125_v54 = vstv %s5223_s24  ;;  %v4103_v58 = vsel %vm1524_vm12, %v4100_v53, %v4102_v41  ;;  %s5510_s24 = smov 80  }
 0x63e   :  { %v4068_v46 = vrot.slane %v4053_v44, 5 }
 0x63f   :  { %4031 = vrot.lane.b32.xlu2 %v4023_v2, %s5504_s5  ;;  %3996 = vrot.lane.b32.xlu0 %v3989_v8, %s5504_s5  ;;  %v3642_v37 = vadd.f32 %v3631_v6, %v3603_v16  ;;  %v4064_v6 = vsel %vm1461_vm11, %v4061_v24, %v4063_v47  ;;  %v8648_v24 = vld [vmem:[#allocation2 + $0x18] sm:$0xff] }
 0x640   :  { %4033 = vrot.lane.b32.xlu1 %v4025_v27, %s5504_s5  ;;  %v4126_v21 = vmul.f32 %v8648_v24, %v4125_v54 }
 0x641   :  { %v8612_v25 = vpop.permute.xlu2 %3684  ;;  %v3633_v19 = vpop.permute.xlu0 %3632 }
 0x642   :  { %v3635_v38 = vpop.permute.xlu1 %3634  ;;  %v3643_v33 = vadd.f32 %v3633_v19, %v3604_v12  ;;  %v4127_v12 = vmul.f32 %v8175_v56, %v4125_v54  ;;  %v4091_v19 = vmul.f32 %v8410_v63, %v4086_v28 }
 0x643   :  { %v3644_v43 = vadd.f32 %v3635_v38, %v3605_v1  ;;  %v4101_v1 = vsel %vm1524_vm12, %v4099_v48, %v4100_v53  ;;  %v4128_v38 = vmul.f32 %v8532_v7, %v4125_v54 }
 0x644   :  { %v3668_v27 = vadd.f32 %v8549_v29, %v3643_v33  ;;  %v4069_v29 = vsel %vm1461_vm11, %v4066_v17, %v4068_v46  ;;  %v4139_v23 = vrot.slane %v4127_v12, 6  ;;  %v4105_v52 = vrot.slane %v4091_v19, 6 }
 0x645   :  { %v4141_v16 = vrot.slane %v4128_v38, 6  ;;  %v4189_v19 = vstv %s5182_s22  ;;  %s5513_s22 = smov [#allocation11]  }
 0x646   :  { %v4191_v38 = vmul.f32 %v8175_v56, %v4189_v19 }
 0x647   :  { %4035 = vrot.lane.b32.xlu2 %v4028_v36, %s5504_s5  ;;  %3998 = vrot.lane.b32.xlu0 %v3991_v10, %s5504_s5  ;;  %v4138_v10 = vrot.slane %v4126_v21, 6  ;;  %v4142_v3 = vsel %vm1524_vm12, %v4139_v23, %v4141_v16  ;;  %v4214_v21 = vstv %s5140_s27  ;;  %s5111_s27 = sshll.u32 %s5513_s22, 4  ;;  %s5112_s27 = int_to_ptr.vmem [resolvable:$true] %s5111_s27 }
 0x648   :  { %4070 = vrot.lane.b32.xlu1 %v4062_v18, %s5504_s5 }
 0x649   :  { %v3687_v49 = vpop.permute.xlu2 %3686  ;;  %v3656_v35 = vpop.permute.xlu0 %3655 }
 0x64a   :  { %v3637_v55 = vpop.permute.xlu1 %3636  ;;  %v3667_v22 = vadd.f32 %v3656_v35, %v3642_v37  ;;  %v4140_v37 = vsel %vm1524_vm12, %v4138_v10, %v4139_v23  ;;  %v4092_v35 = vmul.f32 %v8336_v45, %v4086_v28  ;;  %v4215_v23 = vmul.f32 %v8372_v59, %v4214_v21 }
 0x64b   :  { %v3645_v26 = vadd.f32 %v3637_v55, %v3606_v5  ;;  %v4130_v5 = vmul.f32 %v8223_v40, %v4125_v54  ;;  %v8661_v55 = vld [vmem:[#allocation2 + $0x48] sm:$0xff] }
 0x64c   :  { %v3692_v51 = vadd.f32 %v8585_v50, %v3667_v22  ;;  %v4107_v14 = vrot.slane %v4092_v35, 6  ;;  %v4219_v35 = vmul.f32 %v8410_v63, %v4214_v21 }
 0x64d   :  { %v4144_v17 = vrot.slane %v4130_v5, 6  ;;  %v4192_v5 = vmul.f32 %v8661_v55, %v4189_v19 }
 0x64e   :  { %v4108_v62 = vsel %vm1524_vm12, %v4105_v52, %v4107_v14  ;;  %v4233_v14 = vrot.slane %v4219_v35, 1 }
 0x64f   :  { %4037 = vrot.lane.b32.xlu2 %v4030_v20, %s5504_s5  ;;  %4072 = vrot.lane.b32.xlu0 %v4064_v6, %s5504_s5  ;;  %v4164_v6 = vstv %s5133_s25  ;;  %s5511_s25 = smov 96  }
 0x650   :  { %4074 = vrot.lane.b32.xlu1 %v4067_v60, %s5504_s5  ;;  %v4165_v42 = vmul.f32 %v8372_v59, %v4164_v6  ;;  %v4166_v53 = vmul.f32 %v8367_v61, %v4164_v6  ;;  %v4167_v46 = vmul.f32 %v8427_v15, %v4164_v6 }
 0x651   :  { %v3761_v2 = vpop.permute.xlu2 %3760  ;;  %v3660_v13 = vpop.permute.xlu0 %3659 }
 0x652   :  { %v3683_v34 = vpop.permute.xlu1 %3682  ;;  %v3669_v0 = vadd.f32 %v3660_v13, %v3644_v43  ;;  %v4090_v43 = vmul.f32 %v8427_v15, %v4086_v28 }
 0x653   :  { %v3693_v8 = vadd.f32 %v3683_v34, %v3668_v27  ;;  %v4131_v27 = vmul.f32 %v8601_v11, %v4125_v54 }
 0x654   :  { %v4104_v57 = vrot.slane %v4090_v43, 6  ;;  %v3694_v30 = vadd.f32 %v8612_v25, %v3669_v0  ;;  %v4168_v43 = vmul.f32 %v8410_v63, %v4164_v6 }
 0x655   :  { %v4146_v41 = vrot.slane %v4131_v27, 6 }
 0x656   :  { %v4106_v50 = vsel %vm1524_vm12, %v4104_v57, %v4105_v52 }
 0x657   :  { %4111 = vrot.lane.b32.xlu2 %v4103_v58, %s5504_s5  ;;  %4109 = vrot.lane.b32.xlu0 %v4101_v1, %s5504_s5  ;;  %v4147_v48 = vsel %vm1524_vm12, %v4144_v17, %v4146_v41 }
 0x658   :  { %4076 = vrot.lane.b32.xlu1 %v4069_v29, %s5504_s5 }
 0x659   :  { %v3798_v33 = vpop.permute.xlu2 %3797  ;;  %v3662_v9 = vpop.permute.xlu0 %3661 }
 0x65a   :  { %v3720_v4 = vpop.permute.xlu1 %3719  ;;  %v3670_v18 = vadd.f32 %v3662_v9, %v3645_v26  ;;  %v4216_v9 = vmul.f32 %v8367_v61, %v4214_v21 }
 0x65b   :  { %v3731_v36 = vadd.f32 %v3720_v4, %v3692_v51  ;;  %v4217_v4 = vmul.f32 %v8259_v32, %v4214_v21 }
 0x65c   :  { %v3695_v31 = vadd.f32 %v3687_v49, %v3670_v18  ;;  %v4129_v49 = vmul.f32 %v8661_v55, %v4125_v54  ;;  %v4228_v52 = vrot.slane %v4216_v9, 1 }
 0x65d   :  { %v4230_v57 = vrot.slane %v4217_v4, 1 }
 0x65e   :  { %v4143_v60 = vrot.slane %v4129_v49, 6 }
 0x65f   :  { %4148 = vrot.lane.b32.xlu2 %v4140_v37, %s5504_s5  ;;  %4113 = vrot.lane.b32.xlu0 %v4106_v50, %s5504_s5  ;;  %v4231_v49 = vsel %vm1209_vm7, %v4228_v52, %v4230_v57 }
 0x660   :  { %4150 = vrot.lane.b32.xlu1 %v4142_v3, %s5504_s5  ;;  %v4145_v44 = vsel %vm1524_vm12, %v4143_v60, %v4144_v17  ;;  %v4253_v3 = vstv %s5189_s21 }
 0x661   :  { %v3802_v22 = vpop.permute.xlu2 %3801  ;;  %v3722_v26 = vpop.permute.xlu0 %3721  ;;  %v4254_v17 = vmul.f32 %v8648_v24, %v4253_v3  ;;  %v4256_v41 = vmul.f32 %v8532_v7, %v4253_v3  ;;  %v4259_v9 = vmul.f32 %v8601_v11, %v4253_v3 }
 0x662   :  { %v3724_v47 = vpop.permute.xlu1 %3723  ;;  %v3732_v39 = vadd.f32 %v3722_v26, %v3693_v8  ;;  %v4218_v26 = vmul.f32 %v8427_v15, %v4214_v21 }
 0x663   :  { %v3733_v20 = vadd.f32 %v3724_v47, %v3694_v30  ;;  %v8692_v30 = vld [vmem:[#allocation2 + $0x20] sm:$0xff] }
 0x664   :  { %v3771_v28 = vadd.f32 %v3761_v2, %v3732_v39 }
 0x667   :  { %4152 = vrot.lane.b32.xlu2 %v4145_v44, %s5504_s5  ;;  %4115 = vrot.lane.b32.xlu0 %v4108_v62, %s5504_s5  ;;  %v4266_v44 = vrot.slane %v4254_v17, 1  ;;  %v4193_v62 = vmul.f32 %v8223_v40, %v4189_v19 }
 0x668   :  { %4173 = vrot.lane.b32.xlu1 %v4165_v42, %s5505_s26  ;;  %v4232_v42 = vrot.slane %v4218_v26, 1 }
 0x669   :  { %v3804_v25 = vpop.permute.xlu2 %3803  ;;  %v3759_v13 = vpop.permute.xlu0 %3758 }
 0x66a   :  { %v3726_v34 = vpop.permute.xlu1 %3725  ;;  %v3770_v2 = vadd.f32 %v3759_v13, %v3731_v36  ;;  %v4220_v13 = vmul.f32 %v8336_v45, %v4214_v21 }
 0x66b   :  { %v3734_v0 = vadd.f32 %v3726_v34, %v3695_v31  ;;  %v4227_v31 = vrot.slane %v4215_v23, 1 }
 0x66c   :  { %v3809_v8 = vadd.f32 %v3798_v33, %v3770_v2  ;;  %v4190_v33 = vmul.f32 %v8648_v24, %v4189_v19  ;;  %v4258_v2 = vmul.f32 %v8223_v40, %v4253_v3  ;;  %v4292_v19 = vstv %s5147_s28 }
 0x66d   :  { %v4229_v50 = vsel %vm1209_vm7, %v4227_v31, %v4228_v52  ;;  %v4295_v21 = vmul.f32 %v8259_v32, %v4292_v19  ;;  %v4293_v23 = vmul.f32 %v8372_v59, %v4292_v19  ;;  %v4331_v31 = vstv %s5196_s3  ;;  %s5113_s3 = sshll.u32 %s9074_s7, 4  ;;  %s5114_s3 = int_to_ptr.hbm [resolvable:$true] %s5113_s3 }
 0x66e   :  { %v4332_v26 = vmul.f32 %v8648_v24, %v4331_v31  ;;  %v4296_v17 = vmul.f32 %v8427_v15, %v4292_v19 }
 0x66f   :  { %4154 = vrot.lane.b32.xlu2 %v4147_v48, %s5504_s5  ;;  %4175 = vrot.lane.b32.xlu0 %v4166_v53, %s5505_s26  ;;  %v4235_v48 = vrot.slane %v4220_v13, 1  ;;  %v4308_v32 = vrot.slane %v4295_v21, 2  ;;  %v4305_v57 = vrot.slane %v4293_v23, 2  ;;  %v4370_v13 = vstv %s5154_s29 }
 0x670   :  { %4177 = vrot.lane.b32.xlu1 %v4167_v46, %s5505_s26 }
 0x671   :  { %v3878_v54 = vpop.permute.xlu2 %3877  ;;  %v3763_v58 = vpop.permute.xlu0 %3762  ;;  %v4236_v40 = vsel %vm1209_vm7, %v4233_v14, %v4235_v48 }
 0x672   :  { %v3800_v12 = vpop.permute.xlu1 %3799  ;;  %v3772_v1 = vadd.f32 %v3763_v58, %v3733_v20 }
 0x673   :  { %v3810_v29 = vadd.f32 %v3800_v12, %v3771_v28  ;;  %v4269_v12 = vrot.slane %v4256_v41, 1 }
 0x674   :  { %v3811_v51 = vadd.f32 %v3802_v22, %v3772_v1  ;;  %v4255_v22 = vmul.f32 %v8692_v30, %v4253_v3  ;;  %v4272_v1 = vrot.slane %v4258_v2, 1 }
 0x676   :  { %v4267_v28 = vrot.slane %v4255_v22, 1  ;;  %v4334_v22 = vmul.f32 %v8532_v7, %v4331_v31 }
 0x677   :  { %4200 = vrot.lane.b32.xlu2 %v4191_v38, %s5505_s26  ;;  %4198 = vrot.lane.b32.xlu0 %v4190_v33, %s5505_s26 }
 0x678   :  { %4179 = vrot.lane.b32.xlu1 %v4168_v43, %s5505_s26  ;;  %v4268_v34 = vsel %vm1209_vm7, %v4266_v44, %v4267_v28  ;;  %v4294_v43 = vmul.f32 %v8367_v61, %v4292_v19  ;;  %v4344_v44 = vrot.slane %v4332_v26, 2 }
 0x679   :  { %v3915_v56 = vpop.permute.xlu2 %3914  ;;  %v3765_v18 = vpop.permute.xlu0 %3764 }
 0x67a   :  { %v3837_v36 = vpop.permute.xlu1 %3836  ;;  %v3773_v16 = vadd.f32 %v3765_v18, %v3734_v0 }
 0x67b   :  { %v3848_v10 = vadd.f32 %v3837_v36, %v3809_v8  ;;  %v4257_v8 = vmul.f32 %v8661_v55, %v4253_v3 }
 0x67c   :  { %v3812_v37 = vadd.f32 %v3804_v25, %v3773_v16  ;;  %v4234_v25 = vsel %vm1209_vm7, %v4232_v42, %v4233_v14  ;;  %v4306_v16 = vrot.slane %v4294_v43, 2  ;;  %v4347_v42 = vrot.slane %v4334_v22, 2 }
 0x67e   :  { %v4307_v3 = vsel %vm1272_vm8, %v4305_v57, %v4306_v16 }
 0x67f   :  { %4237 = vrot.lane.b32.xlu2 %v4229_v50, %s5505_s26  ;;  %4202 = vrot.lane.b32.xlu0 %v4192_v5, %s5505_s26  ;;  %v4309_v5 = vsel %vm1272_vm8, %v4306_v16, %v4308_v32  ;;  %v4333_v50 = vmul.f32 %v8692_v30, %v4331_v31 }
 0x680   :  { %4239 = vrot.lane.b32.xlu1 %v4231_v49, %s5505_s26  ;;  %v4297_v49 = vmul.f32 %v8410_v63, %v4292_v19 }
 0x681   :  { %v3919_v47 = vpop.permute.xlu2 %3918  ;;  %v3839_v39 = vpop.permute.xlu0 %3838  ;;  %v4345_v14 = vrot.slane %v4333_v50, 2 }
 0x682   :  { %v3841_v20 = vpop.permute.xlu1 %3840  ;;  %v3849_v6 = vadd.f32 %v3839_v39, %v3810_v29  ;;  %v4271_v29 = vrot.slane %v4257_v8, 1 }
 0x683   :  { %v3850_v60 = vadd.f32 %v3841_v20, %v3811_v51  ;;  %v4270_v51 = vsel %vm1209_vm7, %v4267_v28, %v4269_v12  ;;  %v4311_v28 = vrot.slane %v4297_v49, 2  ;;  %v4348_v8 = vsel %vm1272_vm8, %v4345_v14, %v4347_v42 }
 0x684   :  { %v3888_v27 = vadd.f32 %v3878_v54, %v3849_v6  ;;  %v4273_v33 = vsel %vm1209_vm7, %v4271_v29, %v4272_v1 }
 0x687   :  { %4241 = vrot.lane.b32.xlu2 %v4234_v25, %s5505_s26  ;;  %4204 = vrot.lane.b32.xlu0 %v4193_v62, %s5505_s26  ;;  %v4346_v25 = vsel %vm1272_vm8, %v4344_v44, %v4345_v14 }
 0x688   :  { %4276 = vrot.lane.b32.xlu1 %v4268_v34, %s5505_s26  ;;  %v8731_v34 = vld [vmem:[#allocation2 + $0x50] sm:$0xff] }
 0x689   :  { %v3921_v0 = vpop.permute.xlu2 %3920  ;;  %v3876_v53 = vpop.permute.xlu0 %3875  ;;  %v4336_v41 = vmul.f32 %v8731_v34, %v4331_v31 }
 0x68a   :  { %v3843_v46 = vpop.permute.xlu1 %3842  ;;  %v3887_v54 = vadd.f32 %v3876_v53, %v3848_v10  ;;  %v4274_v10 = vrot.slane %v4259_v9, 1  ;;  %v4298_v53 = vmul.f32 %v8336_v45, %v4292_v19 }
 0x68b   :  { %v3851_v58 = vadd.f32 %v3843_v46, %v3812_v37  ;;  %v4372_v46 = vmul.f32 %v8367_v61, %v4370_v13 }
 0x68c   :  { %v3926_v38 = vadd.f32 %v3915_v56, %v3887_v54  ;;  %v4275_v35 = vsel %vm1209_vm7, %v4272_v1, %v4274_v10  ;;  %v4371_v54 = vmul.f32 %v8372_v59, %v4370_v13  ;;  %v4350_v1 = vrot.slane %v4336_v41, 2  ;;  %v8748_v59 = vld [vmem:[#allocation2 + $0x10] sm:$0x3f] }
 0x68d   :  { %v4384_v21 = vrot.slane %v4372_v46, 3  ;;  %v4373_v23 = vmul.f32 %v8748_v59, %v4370_v13 }
 0x68e   :  { %v4383_v45 = vrot.slane %v4371_v54, 3 }
 0x68f   :  { %4243 = vrot.lane.b32.xlu2 %v4236_v40, %s5505_s26  ;;  %4278 = vrot.lane.b32.xlu0 %v4270_v51, %s5505_s26  ;;  %v4313_v40 = vrot.slane %v4298_v53, 2  ;;  %v4386_v57 = vrot.slane %v4373_v23, 3  ;;  %v4487_v23 = vstv %s5210_s11 }
 0x690   :  { %4280 = vrot.lane.b32.xlu1 %v4273_v33, %s5505_s26  ;;  %v4337_v33 = vmul.f32 %v8601_v11, %v4331_v31  ;;  %v4385_v9 = vsel %vm1335_vm9, %v4383_v45, %v4384_v21 }
 0x691   :  { %v3995_v4 = vpop.permute.xlu2 %3994  ;;  %v3880_v56 = vpop.permute.xlu0 %3879  ;;  %v4314_v43 = vsel %vm1272_vm8, %v4311_v28, %v4313_v40  ;;  %v4387_v49 = vsel %vm1335_vm9, %v4384_v21, %v4386_v57 }
 0x692   :  { %v3917_v18 = vpop.permute.xlu1 %3916  ;;  %v3889_v36 = vadd.f32 %v3880_v56, %v3850_v60  ;;  %v4375_v56 = vmul.f32 %v8410_v63, %v4370_v13 }
 0x693   :  { %v3927_v52 = vadd.f32 %v3917_v18, %v3888_v27  ;;  %v4310_v27 = vrot.slane %v4296_v17, 2  ;;  %v4374_v18 = vmul.f32 %v8427_v15, %v4370_v13  ;;  %v8761_v17 = vld [vmem:[#allocation2 + $0x40] sm:$0x3f] }
 0x694   :  { %v3928_v37 = vadd.f32 %v3919_v47, %v3889_v36 }
 0x695   :  { %v4312_v2 = vsel %vm1272_vm8, %v4310_v27, %v4311_v28 }
 0x697   :  { %4317 = vrot.lane.b32.xlu2 %v4309_v5, %s5505_s26  ;;  %4315 = vrot.lane.b32.xlu0 %v4307_v3, %s5505_s26  ;;  %v4409_v5 = vstv %s5203_s30 }
 0x698   :  { %4282 = vrot.lane.b32.xlu1 %v4275_v35, %s5505_s26  ;;  %v4412_v35 = vmul.f32 %v8532_v7, %v4409_v5  ;;  %v4411_v26 = vmul.f32 %v8692_v30, %v4409_v5 }
 0x699   :  { %v4032_v47 = vpop.permute.xlu2 %4031  ;;  %v3882_v39 = vpop.permute.xlu0 %3881 }
 0x69a   :  { %v3954_v20 = vpop.permute.xlu1 %3953  ;;  %v3890_v6 = vadd.f32 %v3882_v39, %v3851_v58  ;;  %v4376_v39 = vmul.f32 %v8761_v17, %v4370_v13  ;;  %v4423_v44 = vrot.slane %v4411_v26, 3  ;;  %v8768_v13 = vld [vmem:[#allocation2 + $0x8] sm:$0xff] }
 0x69b   :  { %v3965_v60 = vadd.f32 %v3954_v20, %v3926_v38  ;;  %v4410_v20 = vmul.f32 %v8648_v24, %v4409_v5 }
 0x69c   :  { %v3929_v62 = vadd.f32 %v3921_v0, %v3890_v6  ;;  %v4335_v0 = vmul.f32 %v8661_v55, %v4331_v31  ;;  %v4389_v31 = vrot.slane %v4375_v56, 3  ;;  %v4391_v27 = vrot.slane %v4376_v39, 3 }
 0x69e   :  { %v4349_v51 = vrot.slane %v4335_v0, 2  ;;  %v4392_v46 = vsel %vm1335_vm9, %v4389_v31, %v4391_v27  ;;  %v4414_v0 = vmul.f32 %v8731_v34, %v4409_v5 }
 0x69f   :  { %4354 = vrot.lane.b32.xlu2 %v4346_v25, %s5505_s26  ;;  %4319 = vrot.lane.b32.xlu0 %v4312_v2, %s5505_s26  ;;  %v4448_v25 = vstv %s5161_s8 }
 0x6a0   :  { %4356 = vrot.lane.b32.xlu1 %v4348_v8, %s5505_s26  ;;  %v4351_v61 = vsel %vm1272_vm8, %v4349_v51, %v4350_v1  ;;  %v4450_v8 = vmul.f32 %v8768_v13, %v4448_v25  ;;  %v4451_v54 = vmul.f32 %v8748_v59, %v4448_v25  ;;  %v4428_v45 = vrot.slane %v4414_v0, 3 }
 0x6a1   :  { %v4036_v48 = vpop.permute.xlu2 %4035  ;;  %v3956_v58 = vpop.permute.xlu0 %3955  ;;  %v4453_v56 = vmul.f32 %v8410_v63, %v4448_v25  ;;  %v4454_v39 = vmul.f32 %v8761_v17, %v4448_v25 }
 0x6a2   :  { %v3958_v12 = vpop.permute.xlu1 %3957  ;;  %v3966_v29 = vadd.f32 %v3956_v58, %v3927_v52  ;;  %v4352_v52 = vrot.slane %v4337_v33, 2  ;;  %v4462_v40 = vrot.slane %v4450_v8, 4  ;;  %v4526_v8 = vstv %s5168_s12 }
 0x6a3   :  { %v3967_v38 = vadd.f32 %v3958_v12, %v3928_v37  ;;  %v4388_v37 = vrot.slane %v4374_v18, 3  ;;  %v4529_v0 = vmul.f32 %v8748_v59, %v4526_v8 }
 0x6a4   :  { %v4005_v19 = vadd.f32 %v3995_v4, %v3966_v29  ;;  %v4353_v3 = vsel %vm1272_vm8, %v4350_v1, %v4352_v52  ;;  %v4413_v1 = vmul.f32 %v8661_v55, %v4409_v5  ;;  %v4489_v52 = vmul.f32 %v8692_v30, %v4487_v23 }
 0x6a5   :  { %v4390_v22 = vsel %vm1335_vm9, %v4388_v37, %v4389_v31  ;;  %v4467_v31 = vrot.slane %v4453_v56, 4 }
 0x6a6   :  { %v4427_v33 = vrot.slane %v4413_v1, 3  ;;  %v4528_v1 = vmul.f32 %v8768_v13, %v4526_v8 }
 0x6a7   :  { %4358 = vrot.lane.b32.xlu2 %v4351_v61, %s5505_s26  ;;  %4321 = vrot.lane.b32.xlu0 %v4314_v43, %s5505_s26 }
 0x6a8   :  { %4393 = vrot.lane.b32.xlu1 %v4385_v9, %s5505_s26  ;;  %v4429_v18 = vsel %vm1335_vm9, %v4427_v33, %v4428_v45 }
 0x6a9   :  { %v4038_v4 = vpop.permute.xlu2 %4037  ;;  %v3993_v32 = vpop.permute.xlu0 %3992 }
 0x6aa   :  { %v3960_v36 = vpop.permute.xlu1 %3959  ;;  %v4004_v16 = vadd.f32 %v3993_v32, %v3965_v60  ;;  %v4425_v60 = vrot.slane %v4412_v35, 3  ;;  %v4501_v35 = vrot.slane %v4489_v52, 4  ;;  %v5400_v52 = vld [vmem:[#allocation2 + $0x38] sm:$0xff] }
 0x6ab   :  { %v3968_v10 = vadd.f32 %v3960_v36, %v3929_v62  ;;  %v4422_v62 = vrot.slane %v4410_v20, 3  ;;  %v4415_v36 = vmul.f32 %v8601_v11, %v4409_v5 }
 0x6ac   :  { %v4043_v50 = vadd.f32 %v4032_v47, %v4004_v16  ;;  %v4426_v2 = vsel %vm1335_vm9, %v4423_v44, %v4425_v60  ;;  %v4491_v60 = vmul.f32 %v8661_v55, %v4487_v23 }
 0x6ad   :  { %v4424_v53 = vsel %vm1335_vm9, %v4422_v62, %v4423_v44  ;;  %v4469_v44 = vrot.slane %v4454_v39, 4 }
 0x6af   :  { %4360 = vrot.lane.b32.xlu2 %v4353_v3, %s5505_s26  ;;  %4395 = vrot.lane.b32.xlu0 %v4387_v49, %s5505_s26  ;;  %v4430_v3 = vrot.slane %v4415_v36, 3 }
 0x6b0   :  { %4397 = vrot.lane.b32.xlu1 %v4390_v22, %s5505_s26 }
 0x6b1   :  { %v4112_v47 = vpop.permute.xlu2 %4111  ;;  %v3997_v14 = vpop.permute.xlu0 %3996 }
 0x6b2   :  { %v4034_v6 = vpop.permute.xlu1 %4033  ;;  %v4006_v28 = vadd.f32 %v3997_v14, %v3967_v38  ;;  %v4490_v14 = vmul.f32 %v8532_v7, %v4487_v23 }
 0x6b3   :  { %v4044_v42 = vadd.f32 %v4034_v6, %v4005_v19  ;;  %v4464_v19 = vrot.slane %v4451_v54, 4  ;;  %v4492_v6 = vmul.f32 %v8731_v34, %v4487_v23 }
 0x6b4   :  { %v4045_v41 = vadd.f32 %v4036_v48, %v4006_v28  ;;  %v8778_v48 = vld [vmem:[#allocation2] sm:$0xff] }
 0x6b5   :  { %v4449_v58 = vmul.f32 %v8778_v48, %v4448_v25  ;;  %v4465_v32 = vsel %vm1398_vm10, %v4462_v40, %v4464_v19 }
 0x6b7   :  { %4434 = vrot.lane.b32.xlu2 %v4426_v2, %s5505_s26  ;;  %4432 = vrot.lane.b32.xlu0 %v4424_v53, %s5505_s26  ;;  %v4461_v61 = vrot.slane %v4449_v58, 4  ;;  %v4505_v2 = vrot.slane %v4491_v60, 4 }
 0x6b8   :  { %4399 = vrot.lane.b32.xlu1 %v4392_v46, %s5505_s26  ;;  %v4470_v46 = vsel %vm1398_vm10, %v4467_v31, %v4469_v44 }
 0x6b9   :  { %v4149_v12 = vpop.permute.xlu2 %4148  ;;  %v3999_v29 = vpop.permute.xlu0 %3998  ;;  %v4463_v9 = vsel %vm1398_vm10, %v4461_v61, %v4462_v40  ;;  %v4540_v61 = vrot.slane %v4528_v1, 5 }
 0x6ba   :  { %v4071_v38 = vpop.permute.xlu1 %4070  ;;  %v4007_v21 = vadd.f32 %v3999_v29, %v3968_v10  ;;  %v4488_v10 = vmul.f32 %v8648_v24, %v4487_v23  ;;  %v4493_v29 = vmul.f32 %v8601_v11, %v4487_v23 }
 0x6bb   :  { %v4082_v51 = vadd.f32 %v4071_v38, %v4043_v50  ;;  %v4527_v38 = vmul.f32 %v8778_v48, %v4526_v8 }
 0x6bc   :  { %v4046_v43 = vadd.f32 %v4038_v4, %v4007_v21  ;;  %v4452_v4 = vmul.f32 %v8427_v15, %v4448_v25  ;;  %v4500_v5 = vrot.slane %v4488_v10, 4  ;;  %v4431_v15 = vsel %vm1335_vm9, %v4428_v45, %v4430_v3 }
 0x6bd   :  { %v4503_v25 = vrot.slane %v4490_v14, 4  ;;  %v4508_v33 = vrot.slane %v4493_v29, 4 }
 0x6be   :  { %v4466_v49 = vrot.slane %v4452_v4, 4  ;;  %v4502_v20 = vsel %vm1398_vm10, %v4500_v5, %v4501_v35  ;;  %v4531_v4 = vmul.f32 %v5400_v52, %v4526_v8 }
 0x6bf   :  { %4471 = vrot.lane.b32.xlu2 %v4463_v9, %s5505_s26  ;;  %4436 = vrot.lane.b32.xlu0 %v4429_v18, %s5505_s26  ;;  %v4504_v54 = vsel %vm1398_vm10, %v4501_v35, %v4503_v25  ;;  %v4565_v9 = vstv %s5217_s13 }
 0x6c0   :  { %4473 = vrot.lane.b32.xlu1 %v4465_v32, %s5505_s26  ;;  %v4468_v26 = vsel %vm1398_vm10, %v4466_v49, %v4467_v31  ;;  %v4567_v23 = vmul.f32 %v8692_v30, %v4565_v9  ;;  %v4568_v10 = vmul.f32 %v8532_v7, %v4565_v9  ;;  %v4545_v5 = vrot.slane %v4531_v4, 5 }
 0x6c1   :  { %v4153_v16 = vpop.permute.xlu2 %4152  ;;  %v4073_v63 = vpop.permute.xlu0 %4072  ;;  %v4570_v14 = vmul.f32 %v8731_v34, %v4565_v9  ;;  %v4571_v1 = vmul.f32 %v8601_v11, %v4565_v9 }
 0x6c2   :  { %v4075_v57 = vpop.permute.xlu1 %4074  ;;  %v4083_v37 = vadd.f32 %v4073_v63, %v4044_v42  ;;  %v4579_v3 = vrot.slane %v4567_v23, 5 }
 0x6c3   :  { %v4084_v50 = vadd.f32 %v4075_v57, %v4045_v41  ;;  %v4506_v41 = vrot.slane %v4492_v6, 4  ;;  %v5401_v57 = vld [vmem:[#allocation2 + $0x30] sm:$0xff] }
 0x6c4   :  { %v4122_v22 = vadd.f32 %v4112_v47, %v4083_v37  ;;  %v4530_v31 = vmul.f32 %v5401_v57, %v4526_v8 }
 0x6c5   :  { %v4507_v58 = vsel %vm1398_vm10, %v4505_v2, %v4506_v41  ;;  %v4509_v36 = vsel %vm1398_vm10, %v4506_v41, %v4508_v33  ;;  %v4584_v41 = vrot.slane %v4570_v14, 5 }
 0x6c6   :  { %v4544_v39 = vrot.slane %v4530_v31, 5 }
 0x6c7   :  { %4475 = vrot.lane.b32.xlu2 %v4468_v26, %s5505_s26  ;;  %4438 = vrot.lane.b32.xlu0 %v4431_v15, %s5505_s26 }
 0x6c8   :  { %4510 = vrot.lane.b32.xlu1 %v4502_v20, %s5505_s26  ;;  %v4604_v20 = vstv %s5175_s0  ;;  %v4546_v6 = vsel %vm1461_vm11, %v4544_v39, %v4545_v5 }
 0x6c9   :  { %v4155_v47 = vpop.permute.xlu2 %4154  ;;  %v4110_v28 = vpop.permute.xlu0 %4109 }
 0x6ca   :  { %v4077_v42 = vpop.permute.xlu1 %4076  ;;  %v4121_v27 = vadd.f32 %v4110_v28, %v4082_v51  ;;  %v4542_v51 = vrot.slane %v4529_v0, 5  ;;  %v4532_v28 = vmul.f32 %v8761_v17, %v4526_v8 }
 0x6cb   :  { %v4085_v62 = vadd.f32 %v4077_v42, %v4046_v43  ;;  %v4539_v43 = vrot.slane %v4527_v38, 5  ;;  %v4606_v42 = vmul.f32 %v8768_v13, %v4604_v20 }
 0x6cc   :  { %v4160_v53 = vadd.f32 %v4149_v12, %v4121_v27  ;;  %v4543_v18 = vsel %vm1461_vm11, %v4540_v61, %v4542_v51  ;;  %v4605_v27 = vmul.f32 %v8778_v48, %v4604_v20  ;;  %v4607_v48 = vmul.f32 %v8748_v59, %v4604_v20  ;;  %v5402_v59 = vld [vmem:[#allocation2 + $0x28] sm:$0x3f] }
 0x6cd   :  { %v4541_v32 = vsel %vm1461_vm11, %v4539_v43, %v4540_v61  ;;  %v4618_v0 = vrot.slane %v4606_v42, 6 }
 0x6ce   :  { %v4617_v8 = vrot.slane %v4605_v27, 6  ;;  %v4620_v43 = vrot.slane %v4607_v48, 6 }
 0x6cf   :  { %4477 = vrot.lane.b32.xlu2 %v4470_v46, %s5505_s26  ;;  %4512 = vrot.lane.b32.xlu0 %v4504_v54, %s5505_s26  ;;  %v4547_v46 = vrot.slane %v4532_v28, 5 }
 0x6d0   :  { %4514 = vrot.lane.b32.xlu1 %v4507_v58, %s5505_s26  ;;  %v4619_v38 = vsel %vm1524_vm12, %v4617_v8, %v4618_v0 }
 0x6d1   :  { %v4201_v12 = vpop.permute.xlu2 %4200  ;;  %v4114_v40 = vpop.permute.xlu0 %4113  ;;  %v4548_v29 = vsel %vm1461_vm11, %v4545_v5, %v4547_v46 }
 0x6d2   :  { %v4151_v21 = vpop.permute.xlu1 %4150  ;;  %v4123_v45 = vadd.f32 %v4114_v40, %v4084_v50  ;;  %v4609_v40 = vmul.f32 %v5400_v52, %v4604_v20  ;;  %v4621_v52 = vsel %vm1524_vm12, %v4618_v0, %v4620_v43 }
 0x6d3   :  { %v4161_v19 = vadd.f32 %v4151_v21, %v4122_v22  ;;  %v4581_v22 = vrot.slane %v4568_v10, 5 }
 0x6d4   :  { %v4162_v56 = vadd.f32 %v4153_v16, %v4123_v45  ;;  %v4566_v16 = vmul.f32 %v8648_v24, %v4565_v9 }
 0x6d5   :  { %v4582_v60 = vsel %vm1461_vm11, %v4579_v3, %v4581_v22 }
 0x6d6   :  { %v4578_v26 = vrot.slane %v4566_v16, 5  ;;  %v4610_v16 = vmul.f32 %v8761_v17, %v4604_v20 }
 0x6d7   :  { %4551 = vrot.lane.b32.xlu2 %v4543_v18, %s5505_s26  ;;  %4549 = vrot.lane.b32.xlu0 %v4541_v32, %s5505_s26  ;;  %v4643_v18 = vstv %s5224_s4 }
 0x6d8   :  { %4516 = vrot.lane.b32.xlu1 %v4509_v36, %s5505_s26  ;;  %v4580_v7 = vsel %vm1461_vm11, %v4578_v26, %v4579_v3  ;;  %v4646_v36 = vmul.f32 %v5402_v59, %v4643_v18  ;;  %v4645_v10 = vmul.f32 %v8692_v30, %v4643_v18  ;;  %v4625_v5 = vrot.slane %v4610_v16, 6 }
 0x6d9   :  { %v4238_v63 = vpop.permute.xlu2 %4237  ;;  %v4116_v37 = vpop.permute.xlu0 %4115  ;;  %v4649_v17 = vmul.f32 %v8601_v11, %v4643_v18 }
 0x6da   :  { %v4174_v50 = vpop.permute.xlu1 %4173  ;;  %v4124_v35 = vadd.f32 %v4116_v37, %v4085_v62 }
 0x6db   :  { %v4185_v49 = vadd.f32 %v4174_v50, %v4160_v53  ;;  %v4659_v50 = vrot.slane %v4646_v36, 6 }
 0x6dc   :  { %v4163_v15 = vadd.f32 %v4155_v47, %v4124_v35  ;;  %v4569_v47 = vmul.f32 %v8661_v55, %v4565_v9  ;;  %v4623_v9 = vrot.slane %v4609_v40, 6 }
 0x6de   :  { %v4583_v54 = vrot.slane %v4569_v47, 5 }
 0x6df   :  { %4588 = vrot.lane.b32.xlu2 %v4580_v7, %s5505_s26  ;;  %4553 = vrot.lane.b32.xlu0 %v4546_v6, %s5505_s26 }
 0x6e0   :  { %4590 = vrot.lane.b32.xlu1 %v4582_v60, %s5505_s26  ;;  %v4585_v13 = vsel %vm1461_vm11, %v4583_v54, %v4584_v41  ;;  %v4664_v60 = vrot.slane %v4649_v17, 6 }
 0x6e1   :  { %v4242_v44 = vpop.permute.xlu2 %4241  ;;  %v4176_v62 = vpop.permute.xlu0 %4175 }
 0x6e2   :  { %v4178_v25 = vpop.permute.xlu1 %4177  ;;  %v4186_v2 = vadd.f32 %v4176_v62, %v4161_v19  ;;  %v4586_v19 = vrot.slane %v4571_v1, 5 }
 0x6e3   :  { %v4187_v53 = vadd.f32 %v4178_v25, %v4162_v56 }
 0x6e4   :  { %v4211_v58 = vadd.f32 %v4201_v12, %v4186_v2  ;;  %v4608_v12 = vmul.f32 %v5401_v57, %v4604_v20  ;;  %v4587_v32 = vsel %vm1461_vm11, %v4584_v41, %v4586_v19  ;;  %v4647_v20 = vmul.f32 %v8661_v55, %v4643_v18 }
 0x6e6   :  { %v4622_v56 = vrot.slane %v4608_v12, 6  ;;  %v4661_v47 = vrot.slane %v4647_v20, 6 }
 0x6e7   :  { %4592 = vrot.lane.b32.xlu2 %v4585_v13, %s5505_s26  ;;  %4555 = vrot.lane.b32.xlu0 %v4548_v29, %s5505_s26 }
 0x6e8   :  { %4627 = vrot.lane.b32.xlu1 %v4619_v38, %s5505_s26  ;;  %v4624_v4 = vsel %vm1524_vm12, %v4622_v56, %v4623_v9 }
 0x6e9   :  { %v4244_v21 = vpop.permute.xlu2 %4243  ;;  %v4199_v51 = vpop.permute.xlu0 %4198 }
 0x6ea   :  { %v4180_v45 = vpop.permute.xlu1 %4179  ;;  %v4210_v61 = vadd.f32 %v4199_v51, %v4185_v49  ;;  %v4657_v49 = vrot.slane %v4645_v10, 6 }
 0x6eb   :  { %v4188_v33 = vadd.f32 %v4180_v45, %v4163_v15  ;;  %v4626_v15 = vsel %vm1524_vm12, %v4623_v9, %v4625_v5 }
 0x6ec   :  { %v4249_v23 = vadd.f32 %v4238_v63, %v4210_v61  ;;  %v4644_v63 = vmul.f32 %v8648_v24, %v4643_v18  ;;  %v4660_v30 = vsel %vm1524_vm12, %v4657_v49, %v4659_v50  ;;  %v4648_v24 = vmul.f32 %v8731_v34, %v4643_v18 }
 0x6ee   :  { %v4656_v22 = vrot.slane %v4644_v63, 6  ;;  %v4662_v42 = vrot.slane %v4648_v24, 6 }
 0x6ef   :  { %4594 = vrot.lane.b32.xlu2 %v4587_v32, %s5505_s26  ;;  %4629 = vrot.lane.b32.xlu0 %v4621_v52, %s5505_s26 }
 0x6f0   :  { %4631 = vrot.lane.b32.xlu1 %v4624_v4, %s5505_s26  ;;  %v4658_v39 = vsel %vm1524_vm12, %v4656_v22, %v4657_v49  ;;  %v4665_v27 = vsel %vm1524_vm12, %v4662_v42, %v4664_v60  ;;  %v4663_v62 = vsel %vm1524_vm12, %v4661_v47, %v4662_v42 }
 0x6f1   :  { %v4318_v57 = vpop.permute.xlu2 %4317  ;;  %v4203_v31 = vpop.permute.xlu0 %4202 }
 0x6f2   :  { %v4240_v37 = vpop.permute.xlu1 %4239  ;;  %v4212_v3 = vadd.f32 %v4203_v31, %v4187_v53 }
 0x6f3   :  { %v4250_v35 = vadd.f32 %v4240_v37, %v4211_v58 }
 0x6f4   :  { %v4251_v26 = vadd.f32 %v4242_v44, %v4212_v3 }
 0x6f7   :  { %4668 = vrot.lane.b32.xlu2 %v4660_v30, %s5505_s26  ;;  %4666 = vrot.lane.b32.xlu0 %v4658_v39, %s5505_s26 }
 0x6f8   :  { %4633 = vrot.lane.b32.xlu1 %v4626_v15, %s5505_s26 }
 0x6f9   :  { %v4355_v7 = vpop.permute.xlu2 %4354  ;;  %v4205_v14 = vpop.permute.xlu0 %4204 }
 0x6fa   :  { %v4277_v6 = vpop.permute.xlu1 %4276  ;;  %v4213_v28 = vadd.f32 %v4205_v14, %v4188_v33 }
 0x6fb   :  { %v4288_v11 = vadd.f32 %v4277_v6, %v4249_v23 }
 0x6fc   :  { %v4252_v44 = vadd.f32 %v4244_v21, %v4213_v28 }
 0x6ff   :  { %4672 = vrot.lane.b32.xlu2 %v4665_v27, %s5505_s26  ;;  %4670 = vrot.lane.b32.xlu0 %v4663_v62, %s5505_s26  ;;  %s5512_s26 = smov 112  }
 0x701   :  { %v4279_v34 = vpop.permute.xlu0 %4278  ;;  %v4359_v2 = vpop.permute.xlu2 %4358 }
 0x702   :  { %v4281_v25 = vpop.permute.xlu1 %4280  ;;  %v4289_v41 = vadd.f32 %v4279_v34, %v4250_v35 }
 0x703   :  { %v4290_v55 = vadd.f32 %v4281_v25, %v4251_v26 }
 0x704   :  { %v4328_v53 = vadd.f32 %v4318_v57, %v4289_v41 }
 0x709   :  { %v4316_v46 = vpop.permute.xlu0 %4315  ;;  %v4361_v58 = vpop.permute.xlu2 %4360 }
 0x70a   :  { %v4283_v0 = vpop.permute.xlu1 %4282  ;;  %v4327_v54 = vadd.f32 %v4316_v46, %v4288_v11 }
 0x70b   :  { %v4291_v8 = vadd.f32 %v4283_v0, %v4252_v44 }
 0x70c   :  { %v4366_v13 = vadd.f32 %v4355_v7, %v4327_v54 }
 0x711   :  { %v4320_v1 = vpop.permute.xlu0 %4319  ;;  %v4435_v21 = vpop.permute.xlu2 %4434 }
 0x712   :  { %v4357_v29 = vpop.permute.xlu1 %4356  ;;  %v4329_v38 = vadd.f32 %v4320_v1, %v4290_v55 }
 0x713   :  { %v4367_v48 = vadd.f32 %v4357_v29, %v4328_v53 }
 0x714   :  { %v4368_v40 = vadd.f32 %v4359_v2, %v4329_v38 }
 0x719   :  { %v4322_v12 = vpop.permute.xlu0 %4321  ;;  %v4472_v33 = vpop.permute.xlu2 %4471 }
 0x71a   :  { %v4394_v51 = vpop.permute.xlu1 %4393  ;;  %v4330_v45 = vadd.f32 %v4322_v12, %v4291_v8 }
 0x71b   :  { %v4405_v19 = vadd.f32 %v4394_v51, %v4366_v13 }
 0x71c   :  { %v4369_v61 = vadd.f32 %v4361_v58, %v4330_v45 }
 0x721   :  { %v4396_v43 = vpop.permute.xlu0 %4395  ;;  %v4476_v32 = vpop.permute.xlu2 %4475 }
 0x722   :  { %v4398_v9 = vpop.permute.xlu1 %4397  ;;  %v4406_v56 = vadd.f32 %v4396_v43, %v4367_v48 }
 0x723   :  { %v4407_v15 = vadd.f32 %v4398_v9, %v4368_v40 }
 0x724   :  { %v4445_v39 = vadd.f32 %v4435_v21, %v4406_v56 }
 0x729   :  { %v4433_v18 = vpop.permute.xlu0 %4432  ;;  %v4478_v52 = vpop.permute.xlu2 %4477 }
 0x72a   :  { %v4400_v23 = vpop.permute.xlu1 %4399  ;;  %v4444_v26 = vadd.f32 %v4433_v18, %v4405_v19  ;;  %v5506_v18 = vmov 512.0  }
 0x72b   :  { %v4408_v17 = vadd.f32 %v4400_v23, %v4369_v61  ;;  %5320 = vrcp.f32 %v5506_v18 }
 0x72c   :  { %v4483_v20 = vadd.f32 %v4472_v33, %v4444_v26 }
 0x731   :  { %v4437_v59 = vpop.permute.xlu0 %4436  ;;  %v4552_v16 = vpop.permute.xlu2 %4551 }
 0x732   :  { %v4474_v36 = vpop.permute.xlu1 %4473  ;;  %v4446_v60 = vadd.f32 %v4437_v59, %v4407_v15  ;;  %v5321_v23 = vpop.eup %5320 }
 0x733   :  { %v4484_v24 = vadd.f32 %v4474_v36, %v4445_v39  ;;  %vm4704_vm14 = vweird.f32 %v5321_v23 }
 0x734   :  { %v4485_v44 = vadd.f32 %v4476_v32, %v4446_v60  ;;  %v4700_v32 = vmul.f32 512.0, %v5321_v23 }
 0x736   :  { %v4701_v59 = vsub.f32 1.0, %v4700_v32 }
 0x739   :  { %v4439_v4 = vpop.permute.xlu0 %4438  ;;  %v4589_v31 = vpop.permute.xlu2 %4588 }
 0x73a   :  { %v4511_v10 = vpop.permute.xlu1 %4510  ;;  %v4447_v7 = vadd.f32 %v4439_v4, %v4408_v17 }
 0x73b   :  { %v4522_v28 = vadd.f32 %v4511_v10, %v4483_v20  ;;  %v4702_v10 = vmul.f32 %v5321_v23, %v4701_v59 }
 0x73c   :  { %v4486_v47 = vadd.f32 %v4478_v52, %v4447_v7 }
 0x741   :  { %v4513_v57 = vpop.permute.xlu0 %4512  ;;  %v4593_v49 = vpop.permute.xlu2 %4592 }
 0x742   :  { %v4515_v63 = vpop.permute.xlu1 %4514  ;;  %v4523_v11 = vadd.f32 %v4513_v57, %v4484_v24 }
 0x743   :  { %v4524_v25 = vadd.f32 %v4515_v63, %v4485_v44  ;;  %v4703_v63 = vadd.f32 %v5321_v23, %v4702_v10 }
 0x744   :  { %v4562_v62 = vadd.f32 %v4552_v16, %v4523_v11 }
 0x749   :  { %v4550_v37 = vpop.permute.xlu0 %4549  ;;  %v4595_v30 = vpop.permute.xlu2 %4594 }
 0x74a   :  { %v4517_v50 = vpop.permute.xlu1 %4516  ;;  %v4561_v42 = vadd.f32 %v4550_v37, %v4522_v28 }
 0x74b   :  { %v4525_v27 = vadd.f32 %v4517_v50, %v4486_v47  ;;  %v4705_v50 = vsel %vm4704_vm14, %v5321_v23, %v4703_v63 }
 0x74c   :  { %v4600_v2 = vadd.f32 %v4589_v31, %v4561_v42 }
 0x751   :  { %v4554_v3 = vpop.permute.xlu0 %4553  ;;  %v4669_v34 = vpop.permute.xlu2 %4668 }
 0x752   :  { %v4591_v35 = vpop.permute.xlu1 %4590  ;;  %v4563_v46 = vadd.f32 %v4554_v3, %v4524_v25 }
 0x753   :  { %v4601_v41 = vadd.f32 %v4591_v35, %v4562_v62 }
 0x754   :  { %v4602_v29 = vadd.f32 %v4593_v49, %v4563_v46 }
 0x759   :  { %v4556_v5 = vpop.permute.xlu0 %4555  ;;  %v4673_v21 = vpop.permute.xlu2 %4672 }
 0x75a   :  { %v4628_v22 = vpop.permute.xlu1 %4627  ;;  %v4564_v55 = vadd.f32 %v4556_v5, %v4525_v27 }
 0x75b   :  { %v4639_v0 = vadd.f32 %v4628_v22, %v4600_v2 }
 0x75c   :  { %v4603_v13 = vadd.f32 %v4595_v30, %v4564_v55 }
 0x761   :  { %v4630_v14 = vpop.permute.xlu0 %4629 }
 0x762   :  { %v4632_v6 = vpop.permute.xlu1 %4631  ;;  %v4640_v54 = vadd.f32 %v4630_v14, %v4601_v41 }
 0x763   :  { %v4641_v48 = vadd.f32 %v4632_v6, %v4602_v29 }
 0x764   :  { %v4679_v1 = vadd.f32 %v4669_v34, %v4640_v54 }
 0x766   :  { %v4684_v51 = vsel %vm4682_vm13, %v4679_v1, 0.0 }
 0x769   :  { %v4667_v53 = vpop.permute.xlu0 %4666 }
 0x76a   :  { %v4634_v8 = vpop.permute.xlu1 %4633  ;;  %v4678_v58 = vadd.f32 %v4667_v53, %v4639_v0 }
 0x76b   :  { %v4642_v38 = vadd.f32 %v4634_v8, %v4603_v13  ;;  %v4761_v8 = vstv %s4760_s18 }
 0x76c   :  { %v4683_v40 = vsel %vm4682_vm13, %v4678_v58, 0.0 }
 0x76d   :  { %v4681_v45 = vadd.f32 %v4673_v21, %v4642_v38  ;;  %v4685_v61 = vadd.f32 %v4684_v51, %v4683_v40  ;;  %v4767_v38 = vstv %s5225_s19 }
 0x76f   :  { %v4688_v9 = vsel %vm4682_vm13, %v4681_v45, 0.0 }
 0x771   :  { %v4671_v12 = vpop.permute.xlu0 %4670 }
 0x772   :  { %v4680_v19 = vadd.f32 %v4671_v12, %v4641_v48 }
 0x774   :  { %v4686_v33 = vsel %vm4682_vm13, %v4680_v19, 0.0 }
 0x775   :  { %v4687_v43 = vadd.f32 %v4686_v33, %v4685_v61 }
 0x777   :  { %v4689_v56 = vadd.f32 %v4688_v9, %v4687_v43 }
 0x779   :  { %4690 = vadd.xlane.f32.xlu1 %v4689_v56 }
 0x7ec   :  { %v4691_v36 = vpop.xlane.xlu1 %4690 }
 0x7ed   :  { %v4692_v52 = vrot.slane %v4691_v36, 4 }
 0x7ef   :  { %v4693_v4 = vadd.f32 %v4692_v52, %v4691_v36 }
 0x7f1   :  { %v4694_v16 = vrot.slane %v4693_v4, 2 }
 0x7f3   :  { %v4695_v57 = vadd.f32 %v4694_v16, %v4693_v4 }
 0x7f5   :  { %v4696_v31 = vrot.slane %v4695_v57, 1 }
 0x7f7   :  { %v4697_v37 = vadd.f32 %v4696_v31, %v4695_v57 }
 0x7f9   :  { %5226 = vpush %v4697_v37 }
 0x7fa   :  { %5228 = vpush %v4705_v50 }
 0x82a   :  { %s5227_s14 = spop %5226 }
 0x82b   :  { %s8867_s5 = spop %5228 }
 0x82c   :  { %s4707_s6 = smul.f32 %s8867_s5, %s5227_s14 }
 0x82e   :  { %v4708_v3 = vstv %s4707_s6 }
 0x82f   :  { %v4709_v35 = vsub.f32 %v4678_v58, %v4708_v3  ;;  %v4710_v49 = vsub.f32 %v4679_v1, %v4708_v3  ;;  %v4711_v5 = vsub.f32 %v4680_v19, %v4708_v3  ;;  %v4712_v22 = vsub.f32 %v4681_v45, %v4708_v3 }
 0x831   :  { %v4713_v26 = vmul.f32 %v4709_v35, %v4709_v35  ;;  %v4714_v30 = vmul.f32 %v4710_v49, %v4710_v49  ;;  %v4715_v17 = vmul.f32 %v4711_v5, %v4711_v5  ;;  %v4716_v39 = vmul.f32 %v4712_v22, %v4712_v22 }
 0x833   :  { %v4717_v15 = vsel %vm4682_vm13, %v4713_v26, 0.0  ;;  %v4718_v24 = vsel %vm4682_vm13, %v4714_v30, 0.0  ;;  %v4720_v20 = vsel %vm4682_vm13, %v4715_v17, 0.0  ;;  %v4722_v6 = vsel %vm4682_vm13, %v4716_v39, 0.0 }
 0x834   :  { %v4719_v7 = vadd.f32 %v4718_v24, %v4717_v15 }
 0x836   :  { %v4721_v14 = vadd.f32 %v4720_v20, %v4719_v7 }
 0x838   :  { %v4723_v60 = vadd.f32 %v4722_v6, %v4721_v14 }
 0x83a   :  { %4724 = vadd.xlane.f32.xlu0 %v4723_v60 }
 0x8ad   :  { %v4725_v28 = vpop.xlane.xlu0 %4724 }
 0x8ae   :  { %v4726_v11 = vrot.slane %v4725_v28, 4 }
 0x8b0   :  { %v4727_v42 = vadd.f32 %v4726_v11, %v4725_v28 }
 0x8b2   :  { %v4728_v47 = vrot.slane %v4727_v42, 2 }
 0x8b4   :  { %v4729_v44 = vadd.f32 %v4728_v47, %v4727_v42 }
 0x8b6   :  { %v4730_v27 = vrot.slane %v4729_v44, 1 }
 0x8b8   :  { %v4731_v62 = vadd.f32 %v4730_v27, %v4729_v44 }
 0x8ba   :  { %5230 = vpush %v4731_v62 }
 0x8eb   :  { %s5231_s15 = spop %5230 }
 0x8ec   :  { %s4741_s16 = smul.f32 %s5231_s15, %s8867_s5 }
 0x8ee   :  { %s4742_s17 = sadd.f32 1e-05, %s4741_s16 }
 0x8f0   :  { %v4743_v34 = vstv %s4742_s17 }
 0x8f1   :  { %5322 = vrsqrt.f32 %v4743_v34  ;;  %vm4750_vm0 = vweird.f32 %v4743_v34 }
 0x8f7   :  { %v5323_v25 = vpop.eup %5322 }
 0x8f8   :  { %v4745_v41 = vmul.f32 %v5323_v25, %v4743_v34  ;;  %vm4751_vm15 = vweird.f32 %v5323_v25 }
 0x8f9   :  { %vm4752_vm2 = vmor %vm4750_vm0, %vm4751_vm15 }
 0x8fa   :  { %v4746_v55 = vmul.f32 %v5323_v25, %v4745_v41 }
 0x8fc   :  { %v4747_v2 = vmul.f32 0.5, %v4746_v55 }
 0x8fe   :  { %v4748_v53 = vsub.f32 1.5, %v4747_v2 }
 0x900   :  { %v4749_v46 = vmul.f32 %v5323_v25, %v4748_v53 }
 0x902   :  { %v4753_v0 = vsel %vm4752_vm2, %v5323_v25, %v4749_v46 }
 0x903   :  { %5232 = vpush %v4753_v0 }
 0x934   :  { %s5233_s1 = spop %5232 }
 0x935   :  { %v4755_v54 = vstv %s5233_s1 }
 0x936   :  { %v4756_v58 = vmul.f32 %v4755_v54, %v4709_v35  ;;  %v4757_v13 = vmul.f32 %v4755_v54, %v4710_v49  ;;  %v4758_v1 = vmul.f32 %v4755_v54, %v4711_v5  ;;  %v4759_v29 = vmul.f32 %v4755_v54, %v4712_v22 }
 0x938   :  { %v4762_v48 = vmul.f32 %v4761_v8, %v4756_v58  ;;  %v4763_v40 = vmul.f32 %v4761_v8, %v4757_v13  ;;  %v4764_v21 = vmul.f32 %v4761_v8, %v4758_v1  ;;  %v4765_v12 = vmul.f32 %v4761_v8, %v4759_v29 }
 0x93a   :  { %v4768_v51 = vadd.f32 %v4767_v38, %v4762_v48  ;;  %v4769_v45 = vadd.f32 %v4767_v38, %v4763_v40  ;;  %v4770_v19 = vadd.f32 %v4767_v38, %v4764_v21  ;;  %v4771_v61 = vadd.f32 %v4767_v38, %v4765_v12 }
 0x93c   :  { %v4772_v33 = vsub.f32 0.0, %v4768_v51  ;;  %v4774_v43 = vsub.f32 0.0, %v4770_v19  ;;  %v4773_v20 = vsub.f32 0.0, %v4769_v45  ;;  %v4775_v14 = vsub.f32 0.0, %v4771_v61 }
 0x93d   :  { %v4848_v45 = vlaneseq }
 0x93e   :  { %v4776_v9 = vmul.f32 1.442695, %v4772_v33  ;;  %v4780_v56 = vmul.f32 1.442695, %v4774_v43  ;;  %v4778_v6 = vmul.f32 1.442695, %v4773_v20 }
 0x93f   :  { %v4782_v60 = vmul.f32 1.442695, %v4775_v14 }
 0x940   :  { %5324 = vpow2.f32 %v4776_v9 }
 0x941   :  { %5326 = vpow2.f32 %v4780_v56 }
 0x946   :  { %v5325_v18 = vpop.eup %5324 }
 0x947   :  { %v4784_v23 = vadd.f32 1.0, %v5325_v18  ;;  %v5327_v32 = vpop.eup %5326 }
 0x948   :  { %v4786_v59 = vadd.f32 1.0, %v5327_v32 }
 0x949   :  { %5328 = vrcp.f32 %v4784_v23  ;;  %v4799_v57 = vand.u32 2147483648, %v4784_v23  ;;  %v4797_v31 = vand.u32 2147483647, %v4784_v23  ;;  %vm4793_vm3 = vweird.f32 %v4784_v23 }
 0x94a   :  { %5330 = vrcp.f32 %v4786_v59  ;;  %v4829_v26 = vand.u32 2147483648, %v4786_v59  ;;  %vm4823_vm7 = vweird.f32 %v4786_v59  ;;  %v4827_v30 = vand.u32 2147483647, %v4786_v59 }
 0x94b   :  { %v4800_v35 = vor.u32 1.1754944e-38, %v4799_v57  ;;  %vm4798_vm5 = vcmp.eq.f32.partialorder %v4797_v31, 8.507059e+37  ;;  %5332 = vpow2.f32 %v4778_v6 }
 0x94c   :  { %v4830_v39 = vor.u32 1.1754944e-38, %v4829_v26  ;;  %vm4828_vm9 = vcmp.eq.f32.partialorder %v4827_v30, 8.507059e+37  ;;  %5334 = vpow2.f32 %v4782_v60 }
 0x94f   :  { %v5329_v36 = vpop.eup %5328 }
 0x950   :  { %v4789_v52 = vmul.f32 %v5329_v36, %v4784_v23  ;;  %v5331_v4 = vpop.eup %5330  ;;  %vm4794_vm1 = vweird.f32 %v5329_v36  ;;  %v9561_v23 = vld [vmem:[#allocation26_spill] sm:$0xff] }
 0x951   :  { %v4819_v16 = vmul.f32 %v5331_v4, %v4786_v59  ;;  %vm4795_vm4 = vmor %vm4793_vm3, %vm4794_vm1  ;;  %vm4824_vm6 = vweird.f32 %v5331_v4  ;;  %v5333_v11 = vpop.eup %5332  ;;  %vm4850_vm1 = vcmp.lt.s32.totalorder %v4848_v45, 16  ;;  %vm4867_vm3 = vcmp.ge.s32.totalorder %v4848_v45, 16 }
 0x952   :  { %v4790_v10 = vsub.f32 1.0, %v4789_v52  ;;  %vm4825_vm8 = vmor %vm4823_vm7, %vm4824_vm6  ;;  %v5335_v47 = vpop.eup %5334  ;;  %v4785_v44 = vadd.f32 1.0, %v5333_v11  ;;  %vm4883_vm6 = vcmp.ge.s32.totalorder %v4848_v45, 32  ;;  %vm4884_vm7 = vcmp.lt.s32.totalorder %v4848_v45, 48 }
 0x953   :  { %v4820_v37 = vsub.f32 1.0, %v4819_v16  ;;  %v4787_v27 = vadd.f32 1.0, %v5335_v47 }
 0x954   :  { %v4791_v63 = vmul.f32 %v5329_v36, %v4790_v10  ;;  %5336 = vrcp.f32 %v4785_v44  ;;  %v4814_v13 = vand.u32 2147483648, %v4785_v44  ;;  %vm4808_vm12 = vweird.f32 %v4785_v44 }
 0x955   :  { %v4821_v3 = vmul.f32 %v5331_v4, %v4820_v37  ;;  %5338 = vrcp.f32 %v4787_v27  ;;  %v4812_v29 = vand.u32 2147483647, %v4785_v44  ;;  %v4844_v38 = vand.u32 2147483648, %v4787_v27 }
 0x956   :  { %v4792_v50 = vadd.f32 %v5329_v36, %v4791_v63  ;;  %vm4838_vm14 = vweird.f32 %v4787_v27  ;;  %v4842_v48 = vand.u32 2147483647, %v4787_v27  ;;  %v4815_v12 = vor.u32 1.1754944e-38, %v4814_v13 }
 0x957   :  { %v4822_v22 = vadd.f32 %v5331_v4, %v4821_v3  ;;  %vm4813_vm0 = vcmp.eq.f32.partialorder %v4812_v29, 8.507059e+37  ;;  %v4845_v19 = vor.u32 1.1754944e-38, %v4844_v38 }
 0x958   :  { %v4796_v49 = vsel %vm4795_vm4, %v5329_v36, %v4792_v50  ;;  %vm4843_vm2 = vcmp.eq.f32.partialorder %v4842_v48, 8.507059e+37  ;;  %vm4868_vm4 = vcmp.lt.s32.totalorder %v4848_v45, 32 }
 0x959   :  { %v8875_v5 = vsel %vm4798_vm5, %v4800_v35, %v4796_v49  ;;  %v4826_v17 = vsel %vm4825_vm8, %v5331_v4, %v4822_v22  ;;  %vm8915_vm5 = vmand %vm4867_vm3, %vm4868_vm4  ;;  %vm4948_vm3 = vcmp.lt.s32.totalorder %v4848_v45, 112  ;;  %v9568_v22 = vld [vmem:[#allocation18_spill] sm:$0xff] }
 0x95a   :  { %4856 = vst [vmem:[#allocation1] sm:$0xff] %v8875_v5  ;;  %v8878_v15 = vsel %vm4828_vm9, %v4830_v39, %v4826_v17  ;;  %v5337_v34 = vpop.eup %5336  ;;  %vm8929_vm8 = vmand %vm4883_vm6, %vm4884_vm7  ;;  %vm4899_vm9 = vcmp.ge.s32.totalorder %v4848_v45, 48  ;;  %vm4963_vm6 = vcmp.ge.s32.totalorder %v4848_v45, 112  ;;  %vm4964_vm7 = vcmp.lt.s32.totalorder %v4848_v45, 128 }
 0x95b   :  { %v5339_v25 = vpop.eup %5338  ;;  %v4804_v41 = vmul.f32 %v5337_v34, %v4785_v44  ;;  %vm4809_vm10 = vweird.f32 %v5337_v34  ;;  %4852 = vst.msk [vmem:[#allocation3] sm:$0x1] %vm4850_vm1, %v8875_v5 }
 0x95c   :  { %v4834_v2 = vmul.f32 %v5339_v25, %v4787_v27  ;;  %vm4839_vm11 = vweird.f32 %v5339_v25  ;;  %vm4810_vm13 = vmor %vm4808_vm12, %vm4809_vm10  ;;  %4853 = vst.msk [vmem:[#allocation3 + $0x2] sm:$0x1] %vm4850_vm1, %v8878_v15  ;;  %vm4900_vm10 = vcmp.lt.s32.totalorder %v4848_v45, 64  ;;  %vm4915_vm12 = vcmp.ge.s32.totalorder %v4848_v45, 64 }
 0x95d   :  { %v4805_v53 = vsub.f32 1.0, %v4804_v41  ;;  %vm4840_vm15 = vmor %vm4838_vm14, %vm4839_vm11 }
 0x95e   :  { %v4835_v46 = vsub.f32 1.0, %v4834_v2  ;;  %vm8944_vm11 = vmand %vm4899_vm9, %vm4900_vm10 }
 0x95f   :  { %v4806_v0 = vmul.f32 %v5337_v34, %v4805_v53  ;;  %vm9000_vm9 = vmand %vm4963_vm6, %vm4964_vm7 }
 0x960   :  { %v4836_v8 = vmul.f32 %v5339_v25, %v4835_v46 }
 0x961   :  { %v4858_v24 = vld [vmem:[#allocation1 + $0x1] ss:$9 sm:$0xff]  ;;  %v4807_v58 = vadd.f32 %v5337_v34, %v4806_v0 }
 0x962   :  { %4859 = vst [vmem:[#allocation1] sm:$0xff] %v8878_v15  ;;  %4861 = vrot.lane.b32.xlu2 %v4858_v24, %s5485_s10  ;;  %v4837_v1 = vadd.f32 %v5339_v25, %v4836_v8 }
 0x963   :  { %v4811_v40 = vsel %vm4810_vm13, %v5337_v34, %v4807_v58  ;;  %vm4916_vm13 = vcmp.lt.s32.totalorder %v4848_v45, 80 }
 0x964   :  { %v4841_v51 = vsel %vm4840_vm15, %v5339_v25, %v4837_v1  ;;  %v8896_v61 = vsel %vm4813_vm0, %v4815_v12, %v4811_v40  ;;  %vm8960_vm14 = vmand %vm4915_vm12, %vm4916_vm13  ;;  %vm4931_vm15 = vcmp.ge.s32.totalorder %v4848_v45, 80  ;;  %vm4932_vm0 = vcmp.lt.s32.totalorder %v4848_v45, 96  ;;  %v9556_v12 = vld [vmem:[#allocation20_spill] sm:$0xff] }
 0x965   :  { %v8899_v33 = vsel %vm4843_vm2, %v4845_v19, %v4841_v51  ;;  %4968 = vst.msk [vmem:[#allocation3 + $0x1] sm:$0x1] %vm4850_vm1, %v8896_v61  ;;  %vm8972_vm2 = vmand %vm4931_vm15, %vm4932_vm0 }
 0x966   :  { %4969 = vst.msk [vmem:[#allocation3 + $0x3] sm:$0x1] %vm4850_vm1, %v8899_v33  ;;  %vm4947_vm1 = vcmp.ge.s32.totalorder %v4848_v45, 96  ;;  %v9557_v45 = vld [vmem:[#allocation24_spill] sm:$0xff] }
 0x967   :  { %vm8988_vm4 = vmand %vm4947_vm1, %vm4948_vm3 }
 0x969   :  { %v4860_v7 = vld [vmem:[#allocation1 + $0x1] ss:$9 sm:$0xff] }
 0x96a   :  { %4872 = vst [vmem:[#allocation1] sm:$0xff] %v8875_v5  ;;  %4863 = vrot.lane.b32.xlu2 %v4860_v7, %s5485_s10 }
 0x971   :  { %v4874_v28 = vld [vmem:[#allocation1 + $0x2] ss:$9 sm:$0xff] }
 0x972   :  { %4875 = vst [vmem:[#allocation1] sm:$0xff] %v8878_v15  ;;  %4877 = vrot.lane.b32.xlu2 %v4874_v28, %s5507_s2 }
 0x979   :  { %v4876_v42 = vld [vmem:[#allocation1 + $0x2] ss:$9 sm:$0xff] }
 0x97a   :  { %4888 = vst [vmem:[#allocation1] sm:$0xff] %v8875_v5  ;;  %4879 = vrot.lane.b32.xlu2 %v4876_v42, %s5507_s2 }
 0x981   :  { %v4890_v62 = vld [vmem:[#allocation1 + $0x3] ss:$9 sm:$0xff] }
 0x982   :  { %4891 = vst [vmem:[#allocation1] sm:$0xff] %v8878_v15  ;;  %4893 = vrot.lane.b32.xlu2 %v4890_v62, %s5508_s20 }
 0x989   :  { %v4892_v55 = vld [vmem:[#allocation1 + $0x3] ss:$9 sm:$0xff] }
 0x98a   :  { %4904 = vst [vmem:[#allocation1] sm:$0xff] %v8875_v5  ;;  %4895 = vrot.lane.b32.xlu1 %v4892_v55, %s5508_s20 }
 0x991   :  { %v4906_v54 = vld [vmem:[#allocation1 + $0x4] ss:$9 sm:$0xff] }
 0x992   :  { %4907 = vst [vmem:[#allocation1] sm:$0xff] %v8878_v15  ;;  %4909 = vrot.lane.b32.xlu0 %v4906_v54, %s5509_s23 }
 0x999   :  { %v4908_v21 = vld [vmem:[#allocation1 + $0x4] ss:$9 sm:$0xff] }
 0x99a   :  { %4920 = vst [vmem:[#allocation1] sm:$0xff] %v8875_v5  ;;  %4911 = vrot.lane.b32.xlu2 %v4908_v21, %s5509_s23 }
 0x9a1   :  { %v4922_v43 = vld [vmem:[#allocation1 + $0x5] ss:$9 sm:$0xff] }
 0x9a2   :  { %4923 = vst [vmem:[#allocation1] sm:$0xff] %v8878_v15  ;;  %4925 = vrot.lane.b32.xlu2 %v4922_v43, %s5510_s24  ;;  %v9559_v43 = vld [vmem:[#allocation25_spill] sm:$0xff] }
 0x9a9   :  { %v4924_v9 = vld [vmem:[#allocation1 + $0x5] ss:$9 sm:$0xff] }
 0x9aa   :  { %4936 = vst [vmem:[#allocation1] sm:$0xff] %v8875_v5  ;;  %4927 = vrot.lane.b32.xlu1 %v4924_v9, %s5510_s24 }
 0x9b1   :  { %v4938_v56 = vld [vmem:[#allocation1 + $0x6] ss:$9 sm:$0xff] }
 0x9b2   :  { %4939 = vst [vmem:[#allocation1] sm:$0xff] %v8878_v15  ;;  %4941 = vrot.lane.b32.xlu1 %v4938_v56, %s5511_s25  ;;  %v9560_v56 = vld [vmem:[#allocation22_spill] sm:$0xff] }
 0x9b9   :  { %v4940_v18 = vld [vmem:[#allocation1 + $0x6] ss:$9 sm:$0xff] }
 0x9ba   :  { %4943 = vrot.lane.b32.xlu2 %v4940_v18, %s5511_s25  ;;  %4952 = vst [vmem:[#allocation1] sm:$0xff] %v8875_v5 }
 0x9bc   :  { %v4862_v32 = vpop.permute.xlu2 %4861 }
 0x9bd   :  { %4870 = vst.msk [vmem:[#allocation3] sm:$0x1] %vm8915_vm5, %v4862_v32 }
 0x9c1   :  { %v4954_v59 = vld [vmem:[#allocation1 + $0x7] ss:$9 sm:$0xff] }
 0x9c2   :  { %4957 = vrot.lane.b32.xlu2 %v4954_v59, %s5512_s26  ;;  %4955 = vst [vmem:[#allocation1] sm:$0xff] %v8878_v15 }
 0x9c4   :  { %v4864_v36 = vpop.permute.xlu2 %4863 }
 0x9c5   :  { %4871 = vst.msk [vmem:[#allocation3 + $0x2] sm:$0x1] %vm8915_vm5, %v4864_v36  ;;  %v9562_v36 = vld [vmem:[#allocation23_spill] sm:$0xff] }
 0x9c9   :  { %v8927_v52 = vld [vmem:[#allocation1 + $0x7] ss:$9 sm:$0xff] }
 0x9ca   :  { %4972 = vst [vmem:[#allocation1] sm:$0xff] %v8896_v61 }
 0x9cc   :  { %v4878_v10 = vpop.permute.xlu2 %4877 }
 0x9cd   :  { %4886 = vst.msk [vmem:[#allocation3] sm:$0x1] %vm8929_vm8, %v4878_v10 }
 0x9d1   :  { %v4974_v16 = vld [vmem:[#allocation1 + $0x1] ss:$9 sm:$0xff] }
 0x9d2   :  { %4977 = vrot.lane.b32.xlu2 %v4974_v16, %s5485_s10  ;;  %4975 = vst [vmem:[#allocation1] sm:$0xff] %v8899_v33  ;;  %v9563_v16 = vld [vmem:[#allocation27_spill] sm:$0xff] }
 0x9d4   :  { %v4880_v57 = vpop.permute.xlu2 %4879 }
 0x9d5   :  { %4887 = vst.msk [vmem:[#allocation3 + $0x2] sm:$0x1] %vm8929_vm8, %v4880_v57 }
 0x9d9   :  { %v4976_v63 = vld [vmem:[#allocation1 + $0x1] ss:$9 sm:$0xff] }
 0x9da   :  { %4979 = vrot.lane.b32.xlu0 %v4976_v63, %s5485_s10  ;;  %4985 = vst [vmem:[#allocation1] sm:$0xff] %v8896_v61  ;;  %v9564_v63 = vld [vmem:[#allocation16_spill] sm:$0xff] }
 0x9dc   :  { %v4894_v37 = vpop.permute.xlu2 %4893 }
 0x9dd   :  { %4902 = vst.msk [vmem:[#allocation3] sm:$0x1] %vm8944_vm11, %v4894_v37  ;;  %v9565_v37 = vld [vmem:[#allocation28_spill] sm:$0xff] }
 0x9e1   :  { %v4987_v50 = vld [vmem:[#allocation1 + $0x2] ss:$9 sm:$0xff] }
 0x9e2   :  { %4990 = vrot.lane.b32.xlu1 %v4987_v50, %s5507_s2  ;;  %4988 = vst [vmem:[#allocation1] sm:$0xff] %v8899_v33 }
 0x9e9   :  { %v4989_v3 = vld [vmem:[#allocation1 + $0x2] ss:$9 sm:$0xff] }
 0x9ea   :  { %4992 = vrot.lane.b32.xlu2 %v4989_v3, %s5507_s2  ;;  %4998 = vst [vmem:[#allocation1] sm:$0xff] %v8896_v61  ;;  %v9566_v3 = vld [vmem:[#allocation17_spill] sm:$0xff] }
 0x9f1   :  { %v5000_v35 = vld [vmem:[#allocation1 + $0x3] ss:$9 sm:$0xff] }
 0x9f2   :  { %5003 = vrot.lane.b32.xlu0 %v5000_v35, %s5508_s20  ;;  %5001 = vst [vmem:[#allocation1] sm:$0xff] %v8899_v33 }
 0x9f4   :  { %v4912_v5 = vpop.permute.xlu2 %4911 }
 0x9f9   :  { %v5002_v49 = vld [vmem:[#allocation1 + $0x3] ss:$9 sm:$0xff] }
 0x9fa   :  { %5005 = vrot.lane.b32.xlu1 %v5002_v49, %s5508_s20  ;;  %5011 = vst [vmem:[#allocation1] sm:$0xff] %v8896_v61  ;;  %v9567_v49 = vld [vmem:[#allocation29_spill] sm:$0xff] }
 0x9fc   :  { %v4896_v26 = vpop.permute.xlu1 %4895  ;;  %v4926_v15 = vpop.permute.xlu2 %4925 }
 0x9fd   :  { %4903 = vst.msk [vmem:[#allocation3 + $0x2] sm:$0x1] %vm8944_vm11, %v4896_v26 }
 0x9fe   :  { %4919 = vst.msk [vmem:[#allocation3 + $0x2] sm:$0x1] %vm8960_vm14, %v4912_v5 }
 0xa01   :  { %v5013_v30 = vld [vmem:[#allocation1 + $0x4] ss:$9 sm:$0xff] }
 0xa02   :  { %5016 = vrot.lane.b32.xlu2 %v5013_v30, %s5509_s23  ;;  %5014 = vst [vmem:[#allocation1] sm:$0xff] %v8899_v33  ;;  %v9569_v30 = vld [vmem:[#allocation30_spill] sm:$0xff] }
 0xa04   :  { %v4910_v39 = vpop.permute.xlu0 %4909 }
 0xa05   :  { %4918 = vst.msk [vmem:[#allocation3] sm:$0x1] %vm8960_vm14, %v4910_v39  ;;  %v9570_v39 = vld [vmem:[#allocation19_spill] sm:$0xff] }
 0xa06   :  { %4934 = vst.msk [vmem:[#allocation3] sm:$0x1] %vm8972_vm2, %v4926_v15 }
 0xa09   :  { %v5015_v24 = vld [vmem:[#allocation1 + $0x4] ss:$9 sm:$0xff] }
 0xa0a   :  { %5018 = vrot.lane.b32.xlu0 %v5015_v24, %s5509_s23  ;;  %5024 = vst [vmem:[#allocation1] sm:$0xff] %v8896_v61  ;;  %v9571_v24 = vld [vmem:[#allocation31_spill] sm:$0xff] }
 0xa11   :  { %v5026_v7 = vld [vmem:[#allocation1 + $0x5] ss:$9 sm:$0xff] }
 0xa12   :  { %5029 = vrot.lane.b32.xlu2 %v5026_v7, %s5510_s24  ;;  %5027 = vst [vmem:[#allocation1] sm:$0xff] %v8899_v33 }
 0xa14   :  { %v4944_v14 = vpop.permute.xlu2 %4943 }
 0xa19   :  { %v5028_v20 = vld [vmem:[#allocation1 + $0x5] ss:$9 sm:$0xff] }
 0xa1a   :  { %5031 = vrot.lane.b32.xlu0 %v5028_v20, %s5510_s24  ;;  %5037 = vst [vmem:[#allocation1] sm:$0xff] %v8896_v61 }
 0xa1c   :  { %v4928_v60 = vpop.permute.xlu1 %4927  ;;  %v4958_v42 = vpop.permute.xlu2 %4957 }
 0xa1d   :  { %4935 = vst.msk [vmem:[#allocation3 + $0x2] sm:$0x1] %vm8972_vm2, %v4928_v60 }
 0xa1e   :  { %4951 = vst.msk [vmem:[#allocation3 + $0x2] sm:$0x1] %vm8988_vm4, %v4944_v14 }
 0xa21   :  { %v5039_v28 = vld [vmem:[#allocation1 + $0x6] ss:$9 sm:$0xff] }
 0xa22   :  { %5042 = vrot.lane.b32.xlu0 %v5039_v28, %s5511_s25  ;;  %5040 = vst [vmem:[#allocation1] sm:$0xff] %v8899_v33 }
 0xa24   :  { %v4942_v47 = vpop.permute.xlu1 %4941 }
 0xa25   :  { %4950 = vst.msk [vmem:[#allocation3] sm:$0x1] %vm8988_vm4, %v4942_v47 }
 0xa26   :  { %4966 = vst.msk [vmem:[#allocation3] sm:$0x1] %vm9000_vm9, %v4958_v42 }
 0xa29   :  { %v5041_v44 = vld [vmem:[#allocation1 + $0x6] ss:$9 sm:$0xff] }
 0xa2a   :  { %4959 = vrot.lane.b32.xlu0 %v8927_v52, %s5512_s26  ;;  %5044 = vrot.lane.b32.xlu1 %v5041_v44, %s5511_s25  ;;  %5050 = vst [vmem:[#allocation1] sm:$0xff] %v8896_v61  ;;  %v9558_v61 = vld [vmem:[#allocation21_spill] sm:$0xff] }
 0xa2c   :  { %v4978_v27 = vpop.permute.xlu2 %4977 }
 0xa2d   :  { %4983 = vst.msk [vmem:[#allocation3 + $0x1] sm:$0x1] %vm8915_vm5, %v4978_v27 }
 0xa31   :  { %v5052_v62 = vld [vmem:[#allocation1 + $0x7] ss:$9 sm:$0xff] }
 0xa32   :  { %5055 = vrot.lane.b32.xlu1 %v5052_v62, %s5512_s26  ;;  %5053 = vst [vmem:[#allocation1] sm:$0xff] %v8899_v33 }
 0xa39   :  { %v5054_v34 = vld [vmem:[#allocation1 + $0x7] ss:$9 sm:$0xff] }
 0xa3a   :  { %5057 = vrot.lane.b32.xlu2 %v5054_v34, %s5512_s26 }
 0xa44   :  { %v4993_v41 = vpop.permute.xlu2 %4992 }
 0xa4c   :  { %v4980_v25 = vpop.permute.xlu0 %4979 }
 0xa4d   :  { %4984 = vst.msk [vmem:[#allocation3 + $0x3] sm:$0x1] %vm8915_vm5, %v4980_v25 }
 0xa4e   :  { %4997 = vst.msk [vmem:[#allocation3 + $0x3] sm:$0x1] %vm8929_vm8, %v4993_v41 }
 0xa54   :  { %v4991_v55 = vpop.permute.xlu1 %4990 }
 0xa55   :  { %4996 = vst.msk [vmem:[#allocation3 + $0x1] sm:$0x1] %vm8929_vm8, %v4991_v55 }
 0xa5c   :  { %v5017_v2 = vpop.permute.xlu2 %5016 }
 0xa64   :  { %v5004_v53 = vpop.permute.xlu0 %5003 }
 0xa65   :  { %5009 = vst.msk [vmem:[#allocation3 + $0x1] sm:$0x1] %vm8944_vm11, %v5004_v53 }
 0xa66   :  { %5022 = vst.msk [vmem:[#allocation3 + $0x1] sm:$0x1] %vm8960_vm14, %v5017_v2 }
 0xa6c   :  { %v5006_v46 = vpop.permute.xlu1 %5005  ;;  %v5030_v0 = vpop.permute.xlu2 %5029 }
 0xa6d   :  { %5010 = vst.msk [vmem:[#allocation3 + $0x3] sm:$0x1] %vm8944_vm11, %v5006_v46 }
 0xa6e   :  { %5035 = vst.msk [vmem:[#allocation3 + $0x1] sm:$0x1] %vm8972_vm2, %v5030_v0 }
 0xa7c   :  { %v5019_v54 = vpop.permute.xlu0 %5018 }
 0xa7d   :  { %5023 = vst.msk [vmem:[#allocation3 + $0x3] sm:$0x1] %vm8960_vm14, %v5019_v54 }
 0xa8c   :  { %v5032_v8 = vpop.permute.xlu0 %5031 }
 0xa8d   :  { %5036 = vst.msk [vmem:[#allocation3 + $0x3] sm:$0x1] %vm8972_vm2, %v5032_v8 }
 0xa94   :  { %v5043_v58 = vpop.permute.xlu0 %5042  ;;  %v5058_v29 = vpop.permute.xlu2 %5057 }
 0xa95   :  { %5048 = vst.msk [vmem:[#allocation3 + $0x1] sm:$0x1] %vm8988_vm4, %v5043_v58 }
 0xa9c   :  { %v4960_v13 = vpop.permute.xlu0 %4959  ;;  %v5045_v1 = vpop.permute.xlu1 %5044 }
 0xa9d   :  { %4967 = vst.msk [vmem:[#allocation3 + $0x2] sm:$0x1] %vm9000_vm9, %v4960_v13 }
 0xa9e   :  { %5049 = vst.msk [vmem:[#allocation3 + $0x3] sm:$0x1] %vm8988_vm4, %v5045_v1 }
 0xa9f   :  { %5062 = vst.msk [vmem:[#allocation3 + $0x3] sm:$0x1] %vm9000_vm9, %v5058_v29 }
 0xaa4   :  { %v5056_v38 = vpop.permute.xlu1 %5055 }
 0xaa5   :  { %5061 = vst.msk [vmem:[#allocation3 + $0x1] sm:$0x1] %vm9000_vm9, %v5056_v38 }
 0xaa6   :  { %v5064_v48 = vld [vmem:[#allocation3 + $0x2] sm:$0x3] }
 0xaa7   :  { %v5069_v40 = vperm.slane %v5064_v48, 0  ;;  %v5070_v21 = vperm.slane %v5064_v48, 1 }
 0xaa9   :  { %v5083_v51 = vmul.f32 %v5069_v40, %v9556_v12  ;;  %v5084_v19 = vmul.f32 %v5070_v21, %v9557_v45  ;;  %v5085_v33 = vmul.f32 %v5069_v40, %v9558_v61  ;;  %v5086_v9 = vmul.f32 %v5070_v21, %v9559_v43 }
 0xaaa   :  { %v5087_v18 = vmul.f32 %v5069_v40, %v9560_v56  ;;  %v5088_v32 = vmul.f32 %v5070_v21, %v9561_v23  ;;  %v5089_v52 = vmul.f32 %v5069_v40, %v9562_v36  ;;  %v5090_v57 = vmul.f32 %v5070_v21, %v9563_v16 }
 0xaab   :  { %5099 = vst [vmem:[#allocation11 + $0x40] sm:$0xff] %v5083_v51 }
 0xaac   :  { %5100 = vst [vmem:[#allocation11 + $0x48] sm:$0xff] %v5084_v19  ;;  %v5063_v59 = vld [vmem:[#allocation3] sm:$0x3] }
 0xaad   :  { %5101 = vst [vmem:[#allocation11 + $0x50] sm:$0xff] %v5085_v33  ;;  %v5067_v4 = vperm.slane %v5063_v59, 0  ;;  %v5068_v10 = vperm.slane %v5063_v59, 1 }
 0xaae   :  { %5102 = vst [vmem:[#allocation11 + $0x58] sm:$0xff] %v5086_v9 }
 0xaaf   :  { %5103 = vst [vmem:[#allocation11 + $0x60] sm:$0xff] %v5087_v18  ;;  %v5075_v31 = vmul.f32 %v5067_v4, %v9564_v63  ;;  %v5076_v50 = vmul.f32 %v5068_v10, %v9565_v37  ;;  %v5077_v35 = vmul.f32 %v5067_v4, %v9566_v3  ;;  %v5078_v5 = vmul.f32 %v5068_v10, %v9567_v49 }
 0xab0   :  { %5104 = vst [vmem:[#allocation11 + $0x68] sm:$0xff] %v5088_v32  ;;  %v5079_v26 = vmul.f32 %v5067_v4, %v9568_v22  ;;  %v5080_v17 = vmul.f32 %v5068_v10, %v9569_v30  ;;  %v5081_v15 = vmul.f32 %v5067_v4, %v9570_v39  ;;  %v5082_v7 = vmul.f32 %v5068_v10, %v9571_v24 }
 0xab1   :  { %5105 = vst [vmem:[#allocation11 + $0x70] sm:$0xff] %v5089_v52 }
 0xab2   :  { %5106 = vst [vmem:[#allocation11 + $0x78] sm:$0xff] %v5090_v57 }
 0xab3   :  { %5091 = vst [vmem:[#allocation11] sm:$0xff] %v5075_v31 }
 0xab4   :  { %5092 = vst [vmem:[#allocation11 + $0x8] sm:$0xff] %v5076_v50 }
 0xab5   :  { %5093 = vst [vmem:[#allocation11 + $0x10] sm:$0xff] %v5077_v35 }
 0xab6   :  { %5094 = vst [vmem:[#allocation11 + $0x18] sm:$0xff] %v5078_v5 }
 0xab7   :  { %5095 = vst [vmem:[#allocation11 + $0x20] sm:$0xff] %v5079_v26 }
 0xab8   :  { %5096 = vst [vmem:[#allocation11 + $0x28] sm:$0xff] %v5080_v17 }
 0xab9   :  { %5097 = vst [vmem:[#allocation11 + $0x30] sm:$0xff] %v5081_v15 }
 0xaba   :  { %5098 = vst [vmem:[#allocation11 + $0x38] sm:$0xff] %v5082_v7 }
 0xabb   :  { %5119 = dma.vmem_to_hbm [thread:$0]  %s5112_s27, 2048, %s5114_s3, [#allocation6], %s5484_s9, %s5484_s9, %s5485_s10  }
 0xabc   :  { %5481 = dma.done.wait [#allocation6], 2048  }
 0xabd   :  { %5482 = vsyncadd [#allocation6], 4294965248 }
 0xabe   :  { %5124 = vsyncpa [#allocation5], 1 }
 0xabf   :  { %5125 = vsyncpa [#allocation6], 1 }
 0xac0   :  { %5126 = vsyncpa [#allocation7], 1 }
 0xac1   :  { %5127 = vsyncpa [#allocation10], 1 }

</bundles_post_ra>
